<compile_context>
chip_gen: v6e
topology: v6e:2x2x1
jax: 0.10.0
libtpu: 0.0.40
codegen_flags: <defaults>
</compile_context>

<pallas_src>
import numpy as np

import jax
import jax.numpy as jnp
from jax.experimental import pallas as pl
from jax.experimental.pallas import tpu as pltpu

_BF16 = jnp.bfloat16
_F32 = jnp.float32


# ----------------------------- fused kernel --------------------------------

def _lenet_kernel(x_ref, a1_ref, b1_ref, p1_ref, a2_ref, b2_ref, p2_ref,
                  f1_ref, f1b_ref, f2_ref, f2b_ref, f3_ref, f3b_ref, o_ref):
    B = x_ref.shape[0] // 40        # images in this grid step
    R1 = B * 40 - 8                 # conv1 rows: r = b*40 + oy (oy < 28 valid)
    R2 = B * 14 - 4                 # conv2 rows: r = b*14 + oy2 (oy2 < 10 valid)

    x = x_ref[...]                  # (B*40, 96) f32, cols = c*32 + w

    # conv1 (3->6, k=5): 5 accumulated MXU dots, ci merged into K (K=96).
    acc1 = jnp.dot(x[0:R1, :].astype(_BF16), a1_ref[0],
                   preferred_element_type=_F32)
    for ky in range(1, 5):
        acc1 = acc1 + jnp.dot(x[ky:ky + R1, :].astype(_BF16), a1_ref[ky],
                              preferred_element_type=_F32)
    c1 = jnp.maximum(acc1 + b1_ref[...], 0.0)             # (R1, 168), col=ox*6+co

    # maxpool 2x2 #1: lane-pair max, sublane-pair max, exact 0/1 row compaction.
    cm1 = jnp.maximum(c1[:, 0:162], c1[:, 6:168])          # (R1, 162)
    rm1 = jnp.maximum(cm1[0:R1 - 1, :], cm1[1:R1, :])      # (R1-1, 162)
    h1 = jnp.dot(p1_ref[...], rm1.astype(_BF16),
                 preferred_element_type=_F32)              # (B*14, 162), col=12*px+ci

    # conv2 (6->16, k=5): banded weights over the uncompacted pooled columns.
    acc2 = jnp.dot(h1[0:R2, :].astype(_BF16), a2_ref[0],
                   preferred_element_type=_F32)
    for ky in range(1, 5):
        acc2 = acc2 + jnp.dot(h1[ky:ky + R2, :].astype(_BF16), a2_ref[ky],
                              preferred_element_type=_F32)
    c2 = jnp.maximum(acc2 + b2_ref[...], 0.0)              # (R2, 160), col=ox2*16+co

    # maxpool 2x2 #2 + q-major row gather (rows of h2 are q*B + b).
    cm2 = jnp.maximum(c2[:, 0:144], c2[:, 16:160])         # (R2, 144)
    rm2 = jnp.maximum(cm2[0:R2 - 1, :], cm2[1:R2, :])      # (R2-1, 144)
    h2 = jnp.dot(p2_ref[...], rm2.astype(_BF16),
                 preferred_element_type=_F32)              # (5*B, 144), col=32*qx+co

    # fc1 (400->120) with the torch NCHW flatten folded into F1; M = B rows.
    y = jnp.dot(h2[0:B, :].astype(_BF16), f1_ref[0],
                preferred_element_type=_F32)
    for q in range(1, 5):
        y = y + jnp.dot(h2[q * B:(q + 1) * B, :].astype(_BF16), f1_ref[q],
                        preferred_element_type=_F32)
    y = jnp.maximum(y + f1b_ref[...], 0.0)                 # (B, 120)

    # fc2 (120->84) + ReLU, fc3 (84->10, lane-padded to 128).
    y = jnp.maximum(jnp.dot(y.astype(_BF16), f2_ref[...],
                            preferred_element_type=_F32) + f2b_ref[...], 0.0)
    y = jnp.dot(y.astype(_BF16), f3_ref[...],
                preferred_element_type=_F32) + f3b_ref[...]
    o_ref[...] = y                                         # (B, 128) lane-dense store


# ------------------------- one-time weight packing --------------------------

def pack_params(p, batch_block):
    """Static weight preprocessing (runs once at init).

    Conv weights become banded matmul matrices (bf16), the maxpool row
    compactions become exact 0/1 selection matrices sized for `batch_block`
    images per grid step, and torch's NCHW flatten is folded into fc1.
    """
    f32 = np.float32
    B = batch_block
    w1 = np.asarray(p["w1"]).reshape(5, 5, 3, 6)        # (ky, kx, ci, co)
    w2 = np.asarray(p["w2"]).reshape(5, 5, 6, 16)
    kx = np.arange(5)

    # conv1: A1[ky, c*32+iw, ox*6+co] = w1[ky, kx, c, co]  iff  iw == ox + kx
    ind1 = (np.arange(32)[None, :, None]
            == np.arange(28)[None, None, :] + kx[:, None, None]).astype(f32)
    a1 = np.einsum("ykco,kwx->ycwxo", w1, ind1).reshape(5, 96, 168)

    # conv2 reads the column-uncompacted pooled map (width 162, col = 12*px+ci):
    #   A2[ky, col, ox2*16+co] = w2[ky, kx, ci, co]  iff  col == 12*(ox2+kx)+ci
    ind2 = (np.arange(162)[None, None, :, None]
            == 12 * (np.arange(10)[None, None, None, :]
                     + kx[:, None, None, None])
            + np.arange(6)[None, :, None, None]).astype(f32)     # (5,6,162,10)
    a2 = np.einsum("ykco,kcsx->ysxo", w2, ind2).reshape(5, 162, 160)

    # pool-1 row compaction: row b*14+py selects rm1 row b*40 + 2*py.
    R1 = B * 40 - 8
    rows1 = np.arange(B * 14)
    p1 = np.zeros((B * 14, R1 - 1), f32)
    p1[rows1, (rows1 // 14) * 40 + 2 * (rows1 % 14)] = 1.0

    # pool-2 q-major row gather: row q*B+b selects rm2 row b*14 + 2*q.
    R2 = B * 14 - 4
    rows2 = np.arange(5 * B)
    p2 = np.zeros((5 * B, R2 - 1), f32)
    p2[rows2, (rows2 % B) * 14 + 2 * (rows2 // B)] = 1.0

    # fc1 over the uncompacted pooled-2 columns (144 wide, col = 32*qx + co,
    # valid co < 16); torch flatten idx = co*25 + qy*5 + qx.
    col = np.arange(144)
    qx, co = col // 32, col % 32
    in_idx = co[None, :] * 25 + np.arange(5)[:, None] * 5 + qx[None, :]
    ind3 = ((np.arange(400)[:, None, None] == in_idx[None, :, :])
            & (co[None, None, :] < 16)).astype(f32)              # (400,5,144)
    f1 = np.einsum("ij,ipc->pcj", np.asarray(p["fc1_w"]), ind3)  # (5,144,120)

    # fc3 padded to 128 lanes so the per-step logits store is lane-dense.
    f3 = np.zeros((84, 128), f32); f3[:, :10] = np.asarray(p["fc3_w"])
    f3b = np.zeros((1, 128), f32); f3b[0, :10] = np.asarray(p["fc3_b"])

    bf = jnp.bfloat16
    return {
        "a1": jnp.asarray(a1, bf),
        "b1r": jnp.tile(jnp.asarray(p["b1"], _F32), 28).reshape(1, 168),
        "p1": jnp.asarray(p1, bf),
        "a2": jnp.asarray(a2, bf),
        "b2r": jnp.tile(jnp.asarray(p["b2"], _F32), 10).reshape(1, 160),
        "p2": jnp.asarray(p2, bf),
        "f1": jnp.asarray(f1, bf),
        "f1b": jnp.asarray(p["fc1_b"], _F32).reshape(1, 120),
        "f2": jnp.asarray(p["fc2_w"], bf),
        "f2b": jnp.asarray(p["fc2_b"], _F32).reshape(1, 84),
        "f3": jnp.asarray(f3, bf),
        "f3b": jnp.asarray(f3b, _F32),
    }


# ------------------------------- forward ------------------------------------

def net_forward_fn(x_nchw, packed, batch_block):
    B = batch_block
    N = x_nchw.shape[0]
    G = -(-N // B)                       # grid steps (keep >= 2 for v7x)
    N_pad = G * B

    # NCHW -> (N, H, C*W) channel-on-lanes layout; pad H 32->40 and batch to N_pad.
    x = x_nchw.astype(_F32)
    xl = jnp.transpose(x, (0, 2, 1, 3)).reshape(N, 32, 96)
    xl = jnp.pad(xl, ((0, N_pad - N), (0, 8), (0, 0)))
    xl = xl.reshape(N_pad * 40, 96)

    R1, R2 = B * 40 - 8, B * 14 - 4
    out = pl.pallas_call(
        _lenet_kernel,
        out_shape=jax.ShapeDtypeStruct((N_pad, 128), jnp.float32),
        grid=(G,),
        in_specs=[
            pl.BlockSpec((B * 40, 96), lambda g: (g, 0)),        # x rows block
            pl.BlockSpec((5, 96, 168), lambda g: (0, 0, 0)),     # A1 (banded, bf16)
            pl.BlockSpec((1, 168), lambda g: (0, 0)),            # conv1 bias row
            pl.BlockSpec((B * 14, R1 - 1), lambda g: (0, 0)),    # pool1 selector
            pl.BlockSpec((5, 162, 160), lambda g: (0, 0, 0)),    # A2 (banded, bf16)
            pl.BlockSpec((1, 160), lambda g: (0, 0)),            # conv2 bias row
            pl.BlockSpec((5 * B, R2 - 1), lambda g: (0, 0)),     # pool2 selector
            pl.BlockSpec((5, 144, 120), lambda g: (0, 0, 0)),    # fc1 (folded)
            pl.BlockSpec((1, 120), lambda g: (0, 0)),            # fc1 bias
            pl.BlockSpec((120, 84), lambda g: (0, 0)),           # fc2 W
            pl.BlockSpec((1, 84), lambda g: (0, 0)),             # fc2 bias
            pl.BlockSpec((84, 128), lambda g: (0, 0)),           # fc3 W (padded)
            pl.BlockSpec((1, 128), lambda g: (0, 0)),            # fc3 bias (padded)
        ],
        out_specs=pl.BlockSpec((B, 128), lambda g: (g, 0)),
        compiler_params=pltpu.CompilerParams(
            dimension_semantics=("parallel",)),
    )(xl, packed["a1"], packed["b1r"], packed["p1"], packed["a2"],
      packed["b2r"], packed["p2"], packed["f1"], packed["f1b"],
      packed["f2"], packed["f2b"], packed["f3"], packed["f3b"])
    return out[:N, :10]


net_forward = jax.jit(net_forward_fn, static_argnames=("batch_block",))


# ------------------------------ parameters ----------------------------------

def init_params(key):
    """Deterministic synthetic params, PyTorch-style uniform(+-1/sqrt(fan_in)).

    Conv weights stored as (kh*kw*cin, cout) with (ky, kx, ci) row order;
    FC weights stored as (in, out) == torch weight.T.
    """
    def uniform(k, shape, fan_in):
        bound = 1.0 / jnp.sqrt(float(fan_in))
        return jax.random.uniform(k, shape, jnp.float32, -bound, bound)

    ks = jax.random.split(key, 10)
    return {
        "w1": uniform(ks[0], (5 * 5 * 3, 6), 5 * 5 * 3),
        "b1": uniform(ks[1], (6,), 5 * 5 * 3),
        "w2": uniform(ks[2], (5 * 5 * 6, 16), 5 * 5 * 6),
        "b2": uniform(ks[3], (16,), 5 * 5 * 6),
        "fc1_w": uniform(ks[4], (400, 120), 400),
        "fc1_b": uniform(ks[5], (120,), 400),
        "fc2_w": uniform(ks[6], (120, 84), 120),
        "fc2_b": uniform(ks[7], (84,), 120),
        "fc3_w": uniform(ks[8], (84, 10), 84),
        "fc3_b": uniform(ks[9], (10,), 84),
    }


# -------------------------- pure-JAX reference ------------------------------

def reference_forward(x_nchw, p):
    hp = jax.lax.Precision.HIGHEST
    dn = ("NCHW", "HWIO", "NCHW")
    x = x_nchw.astype(jnp.float32)
    w1 = p["w1"].reshape(5, 5, 3, 6)
    w2 = p["w2"].reshape(5, 5, 6, 16)

    y = jax.lax.conv_general_dilated(x, w1, (1, 1), "VALID",
                                     dimension_numbers=dn, precision=hp)
    y = jnp.maximum(y + p["b1"].reshape(1, 6, 1, 1), 0.0)
    y = jax.lax.reduce_window(y, -jnp.inf, jax.lax.max,
                              (1, 1, 2, 2), (1, 1, 2, 2), "VALID")
    y = jax.lax.conv_general_dilated(y, w2, (1, 1), "VALID",
                                     dimension_numbers=dn, precision=hp)
    y = jnp.maximum(y + p["b2"].reshape(1, 16, 1, 1), 0.0)
    y = jax.lax.reduce_window(y, -jnp.inf, jax.lax.max,
                              (1, 1, 2, 2), (1, 1, 2, 2), "VALID")
    y = y.reshape(y.shape[0], 400)                       # torch NCHW flatten
    y = jnp.maximum(jnp.dot(y, p["fc1_w"], precision=hp) + p["fc1_b"], 0.0)
    y = jnp.maximum(jnp.dot(y, p["fc2_w"], precision=hp) + p["fc2_b"], 0.0)
    return jnp.dot(y, p["fc3_w"], precision=hp) + p["fc3_b"]


# --------------------------------- main --------------------------------------

if __name__ == "__main__":
    key = jax.random.PRNGKey(0)
    k_params, k_x = jax.random.split(key)
    params = init_params(k_params)

    B = 8                                    # images per grid step
    packed = pack_params(params, B)

    # fc1's 16*5*5 input forces a 3x32x32 spatial input; 16 images -> grid of
    # 2 steps so dimension_semantics=("parallel",) splits work on v7x.
    x = jax.random.normal(k_x, (16, 3, 32, 32), dtype=jnp.float32)

    out = net_forward(x, packed, batch_block=B)
    out = jax.block_until_ready(out)
    assert out.shape == (16, 10), out.shape
    assert bool(jnp.all(jnp.isfinite(out)))

    ref = reference_forward(x, params)
    max_err = float(jnp.max(jnp.abs(out - ref)))
    assert max_err < 5e-2, f"mismatch vs pure-JAX reference: {max_err}"

    print("KERNEL_OK")
</pallas_src>

<mosaic_0001>
module attributes {stable_mosaic.version = 11 : i64} {
  func.func @_lenet_kernel(%arg0: i32, %arg1: memref<320x96xf32, #tpu.memory_space<vmem>>, %arg2: memref<5x96x168xbf16, #tpu.memory_space<vmem>>, %arg3: memref<1x168xf32, #tpu.memory_space<vmem>>, %arg4: memref<112x311xbf16, #tpu.memory_space<vmem>>, %arg5: memref<5x162x160xbf16, #tpu.memory_space<vmem>>, %arg6: memref<1x160xf32, #tpu.memory_space<vmem>>, %arg7: memref<40x107xbf16, #tpu.memory_space<vmem>>, %arg8: memref<5x144x120xbf16, #tpu.memory_space<vmem>>, %arg9: memref<1x120xf32, #tpu.memory_space<vmem>>, %arg10: memref<120x84xbf16, #tpu.memory_space<vmem>>, %arg11: memref<1x84xf32, #tpu.memory_space<vmem>>, %arg12: memref<84x128xbf16, #tpu.memory_space<vmem>>, %arg13: memref<1x128xf32, #tpu.memory_space<vmem>>, %arg14: memref<8x128xf32, #tpu.memory_space<vmem>>) attributes {dimension_semantics = [#tpu.dimension_semantics<parallel>], iteration_bounds = array<i64: 2>, scalar_prefetch = 0 : i64, scratch_operands = 0 : i64, tpu.core_type = #tpu.core_type<tc>, window_params = [{transform_indices = @transform_0, window_bounds = array<i64: 320, 96>}, {pipeline_mode = #tpu.pipeline_mode<synchronous>, transform_indices = @transform_1, window_bounds = array<i64: 5, 96, 168>}, {pipeline_mode = #tpu.pipeline_mode<synchronous>, transform_indices = @transform_2, window_bounds = array<i64: 1, 168>}, {pipeline_mode = #tpu.pipeline_mode<synchronous>, transform_indices = @transform_3, window_bounds = array<i64: 112, 311>}, {pipeline_mode = #tpu.pipeline_mode<synchronous>, transform_indices = @transform_4, window_bounds = array<i64: 5, 162, 160>}, {pipeline_mode = #tpu.pipeline_mode<synchronous>, transform_indices = @transform_5, window_bounds = array<i64: 1, 160>}, {pipeline_mode = #tpu.pipeline_mode<synchronous>, transform_indices = @transform_6, window_bounds = array<i64: 40, 107>}, {pipeline_mode = #tpu.pipeline_mode<synchronous>, transform_indices = @transform_7, window_bounds = array<i64: 5, 144, 120>}, {pipeline_mode = #tpu.pipeline_mode<synchronous>, transform_indices = @transform_8, window_bounds = array<i64: 1, 120>}, {pipeline_mode = #tpu.pipeline_mode<synchronous>, transform_indices = @transform_9, window_bounds = array<i64: 120, 84>}, {pipeline_mode = #tpu.pipeline_mode<synchronous>, transform_indices = @transform_10, window_bounds = array<i64: 1, 84>}, {pipeline_mode = #tpu.pipeline_mode<synchronous>, transform_indices = @transform_11, window_bounds = array<i64: 84, 128>}, {pipeline_mode = #tpu.pipeline_mode<synchronous>, transform_indices = @transform_12, window_bounds = array<i64: 1, 128>}, {transform_indices = @transform_13, window_bounds = array<i64: 8, 128>}]} {
    %c0 = arith.constant 0 : index
    %c0_0 = arith.constant 0 : index
    %0 = vector.load %arg1[%c0, %c0_0] : memref<320x96xf32, #tpu.memory_space<vmem>>, vector<320x96xf32>
    %1 = vector.extract_strided_slice %0 {offsets = [0, 0], sizes = [312, 96], strides = [1, 1]} : vector<320x96xf32> to vector<312x96xf32>
    %2 = arith.truncf %1 : vector<312x96xf32> to vector<312x96xbf16>
    %c0_1 = arith.constant 0 : index
    %c0_2 = arith.constant 0 : index
    %c0_3 = arith.constant 0 : index
    %3 = vector.load %arg2[%c0_1, %c0_2, %c0_3] : memref<5x96x168xbf16, #tpu.memory_space<vmem>>, vector<1x96x168xbf16>
    %4 = vector.shape_cast %3 : vector<1x96x168xbf16> to vector<96x168xbf16>
    %cst = arith.constant dense<0.000000e+00> : vector<312x168xf32>
    %5 = tpu.matmul %2, %4, %cst {dimension_numbers = #tpu.dot_dimension_numbers<[1], [0], [0], [1], [0, 0, 1, 1], [], []>} : vector<312x96xbf16>, vector<96x168xbf16>, vector<312x168xf32> -> vector<312x168xf32>
    %6 = vector.extract_strided_slice %0 {offsets = [1, 0], sizes = [312, 96], strides = [1, 1]} : vector<320x96xf32> to vector<312x96xf32>
    %7 = arith.truncf %6 : vector<312x96xf32> to vector<312x96xbf16>
    %c1 = arith.constant 1 : index
    %c0_4 = arith.constant 0 : index
    %c0_5 = arith.constant 0 : index
    %8 = vector.load %arg2[%c1, %c0_4, %c0_5] : memref<5x96x168xbf16, #tpu.memory_space<vmem>>, vector<1x96x168xbf16>
    %9 = vector.shape_cast %8 : vector<1x96x168xbf16> to vector<96x168xbf16>
    %cst_6 = arith.constant dense<0.000000e+00> : vector<312x168xf32>
    %10 = tpu.matmul %7, %9, %cst_6 {dimension_numbers = #tpu.dot_dimension_numbers<[1], [0], [0], [1], [0, 0, 1, 1], [], []>} : vector<312x96xbf16>, vector<96x168xbf16>, vector<312x168xf32> -> vector<312x168xf32>
    %11 = arith.addf %5, %10 : vector<312x168xf32>
    %12 = vector.extract_strided_slice %0 {offsets = [2, 0], sizes = [312, 96], strides = [1, 1]} : vector<320x96xf32> to vector<312x96xf32>
    %13 = arith.truncf %12 : vector<312x96xf32> to vector<312x96xbf16>
    %c2 = arith.constant 2 : index
    %c0_7 = arith.constant 0 : index
    %c0_8 = arith.constant 0 : index
    %14 = vector.load %arg2[%c2, %c0_7, %c0_8] : memref<5x96x168xbf16, #tpu.memory_space<vmem>>, vector<1x96x168xbf16>
    %15 = vector.shape_cast %14 : vector<1x96x168xbf16> to vector<96x168xbf16>
    %cst_9 = arith.constant dense<0.000000e+00> : vector<312x168xf32>
    %16 = tpu.matmul %13, %15, %cst_9 {dimension_numbers = #tpu.dot_dimension_numbers<[1], [0], [0], [1], [0, 0, 1, 1], [], []>} : vector<312x96xbf16>, vector<96x168xbf16>, vector<312x168xf32> -> vector<312x168xf32>
    %17 = arith.addf %11, %16 : vector<312x168xf32>
    %18 = vector.extract_strided_slice %0 {offsets = [3, 0], sizes = [312, 96], strides = [1, 1]} : vector<320x96xf32> to vector<312x96xf32>
    %19 = arith.truncf %18 : vector<312x96xf32> to vector<312x96xbf16>
    %c3 = arith.constant 3 : index
    %c0_10 = arith.constant 0 : index
    %c0_11 = arith.constant 0 : index
    %20 = vector.load %arg2[%c3, %c0_10, %c0_11] : memref<5x96x168xbf16, #tpu.memory_space<vmem>>, vector<1x96x168xbf16>
    %21 = vector.shape_cast %20 : vector<1x96x168xbf16> to vector<96x168xbf16>
    %cst_12 = arith.constant dense<0.000000e+00> : vector<312x168xf32>
    %22 = tpu.matmul %19, %21, %cst_12 {dimension_numbers = #tpu.dot_dimension_numbers<[1], [0], [0], [1], [0, 0, 1, 1], [], []>} : vector<312x96xbf16>, vector<96x168xbf16>, vector<312x168xf32> -> vector<312x168xf32>
    %23 = arith.addf %17, %22 : vector<312x168xf32>
    %24 = vector.extract_strided_slice %0 {offsets = [4, 0], sizes = [312, 96], strides = [1, 1]} : vector<320x96xf32> to vector<312x96xf32>
    %25 = arith.truncf %24 : vector<312x96xf32> to vector<312x96xbf16>
    %c4 = arith.constant 4 : index
    %c0_13 = arith.constant 0 : index
    %c0_14 = arith.constant 0 : index
    %26 = vector.load %arg2[%c4, %c0_13, %c0_14] : memref<5x96x168xbf16, #tpu.memory_space<vmem>>, vector<1x96x168xbf16>
    %27 = vector.shape_cast %26 : vector<1x96x168xbf16> to vector<96x168xbf16>
    %cst_15 = arith.constant dense<0.000000e+00> : vector<312x168xf32>
    %28 = tpu.matmul %25, %27, %cst_15 {dimension_numbers = #tpu.dot_dimension_numbers<[1], [0], [0], [1], [0, 0, 1, 1], [], []>} : vector<312x96xbf16>, vector<96x168xbf16>, vector<312x168xf32> -> vector<312x168xf32>
    %29 = arith.addf %23, %28 : vector<312x168xf32>
    %c0_16 = arith.constant 0 : index
    %c0_17 = arith.constant 0 : index
    %30 = vector.load %arg3[%c0_16, %c0_17] : memref<1x168xf32, #tpu.memory_space<vmem>>, vector<1x168xf32>
    %31 = vector.broadcast %30 : vector<1x168xf32> to vector<312x168xf32>
    %32 = arith.addf %29, %31 : vector<312x168xf32>
    %cst_18 = arith.constant 0.000000e+00 : f32
    %33 = vector.broadcast %cst_18 : f32 to vector<312x168xf32>
    %34 = arith.maximumf %32, %33 : vector<312x168xf32>
    %35 = vector.extract_strided_slice %34 {offsets = [0, 0], sizes = [312, 162], strides = [1, 1]} : vector<312x168xf32> to vector<312x162xf32>
    %36 = vector.extract_strided_slice %34 {offsets = [0, 6], sizes = [312, 162], strides = [1, 1]} : vector<312x168xf32> to vector<312x162xf32>
    %37 = arith.maximumf %35, %36 : vector<312x162xf32>
    %38 = vector.extract_strided_slice %37 {offsets = [0, 0], sizes = [311, 162], strides = [1, 1]} : vector<312x162xf32> to vector<311x162xf32>
    %39 = vector.extract_strided_slice %37 {offsets = [1, 0], sizes = [311, 162], strides = [1, 1]} : vector<312x162xf32> to vector<311x162xf32>
    %40 = arith.maximumf %38, %39 : vector<311x162xf32>
    %c0_19 = arith.constant 0 : index
    %c0_20 = arith.constant 0 : index
    %41 = vector.load %arg4[%c0_19, %c0_20] : memref<112x311xbf16, #tpu.memory_space<vmem>>, vector<112x311xbf16>
    %42 = arith.truncf %40 : vector<311x162xf32> to vector<311x162xbf16>
    %cst_21 = arith.constant dense<0.000000e+00> : vector<112x162xf32>
    %43 = tpu.matmul %41, %42, %cst_21 {dimension_numbers = #tpu.dot_dimension_numbers<[1], [0], [0], [1], [0, 0, 1, 1], [], []>} : vector<112x311xbf16>, vector<311x162xbf16>, vector<112x162xf32> -> vector<112x162xf32>
    %44 = vector.extract_strided_slice %43 {offsets = [0, 0], sizes = [108, 162], strides = [1, 1]} : vector<112x162xf32> to vector<108x162xf32>
    %45 = arith.truncf %44 : vector<108x162xf32> to vector<108x162xbf16>
    %c0_22 = arith.constant 0 : index
    %c0_23 = arith.constant 0 : index
    %c0_24 = arith.constant 0 : index
    %46 = vector.load %arg5[%c0_22, %c0_23, %c0_24] : memref<5x162x160xbf16, #tpu.memory_space<vmem>>, vector<1x162x160xbf16>
    %47 = vector.shape_cast %46 : vector<1x162x160xbf16> to vector<162x160xbf16>
    %cst_25 = arith.constant dense<0.000000e+00> : vector<108x160xf32>
    %48 = tpu.matmul %45, %47, %cst_25 {dimension_numbers = #tpu.dot_dimension_numbers<[1], [0], [0], [1], [0, 0, 1, 1], [], []>} : vector<108x162xbf16>, vector<162x160xbf16>, vector<108x160xf32> -> vector<108x160xf32>
    %49 = vector.extract_strided_slice %43 {offsets = [1, 0], sizes = [108, 162], strides = [1, 1]} : vector<112x162xf32> to vector<108x162xf32>
    %50 = arith.truncf %49 : vector<108x162xf32> to vector<108x162xbf16>
    %c1_26 = arith.constant 1 : index
    %c0_27 = arith.constant 0 : index
    %c0_28 = arith.constant 0 : index
    %51 = vector.load %arg5[%c1_26, %c0_27, %c0_28] : memref<5x162x160xbf16, #tpu.memory_space<vmem>>, vector<1x162x160xbf16>
    %52 = vector.shape_cast %51 : vector<1x162x160xbf16> to vector<162x160xbf16>
    %cst_29 = arith.constant dense<0.000000e+00> : vector<108x160xf32>
    %53 = tpu.matmul %50, %52, %cst_29 {dimension_numbers = #tpu.dot_dimension_numbers<[1], [0], [0], [1], [0, 0, 1, 1], [], []>} : vector<108x162xbf16>, vector<162x160xbf16>, vector<108x160xf32> -> vector<108x160xf32>
    %54 = arith.addf %48, %53 : vector<108x160xf32>
    %55 = vector.extract_strided_slice %43 {offsets = [2, 0], sizes = [108, 162], strides = [1, 1]} : vector<112x162xf32> to vector<108x162xf32>
    %56 = arith.truncf %55 : vector<108x162xf32> to vector<108x162xbf16>
    %c2_30 = arith.constant 2 : index
    %c0_31 = arith.constant 0 : index
    %c0_32 = arith.constant 0 : index
    %57 = vector.load %arg5[%c2_30, %c0_31, %c0_32] : memref<5x162x160xbf16, #tpu.memory_space<vmem>>, vector<1x162x160xbf16>
    %58 = vector.shape_cast %57 : vector<1x162x160xbf16> to vector<162x160xbf16>
    %cst_33 = arith.constant dense<0.000000e+00> : vector<108x160xf32>
    %59 = tpu.matmul %56, %58, %cst_33 {dimension_numbers = #tpu.dot_dimension_numbers<[1], [0], [0], [1], [0, 0, 1, 1], [], []>} : vector<108x162xbf16>, vector<162x160xbf16>, vector<108x160xf32> -> vector<108x160xf32>
    %60 = arith.addf %54, %59 : vector<108x160xf32>
    %61 = vector.extract_strided_slice %43 {offsets = [3, 0], sizes = [108, 162], strides = [1, 1]} : vector<112x162xf32> to vector<108x162xf32>
    %62 = arith.truncf %61 : vector<108x162xf32> to vector<108x162xbf16>
    %c3_34 = arith.constant 3 : index
    %c0_35 = arith.constant 0 : index
    %c0_36 = arith.constant 0 : index
    %63 = vector.load %arg5[%c3_34, %c0_35, %c0_36] : memref<5x162x160xbf16, #tpu.memory_space<vmem>>, vector<1x162x160xbf16>
    %64 = vector.shape_cast %63 : vector<1x162x160xbf16> to vector<162x160xbf16>
    %cst_37 = arith.constant dense<0.000000e+00> : vector<108x160xf32>
    %65 = tpu.matmul %62, %64, %cst_37 {dimension_numbers = #tpu.dot_dimension_numbers<[1], [0], [0], [1], [0, 0, 1, 1], [], []>} : vector<108x162xbf16>, vector<162x160xbf16>, vector<108x160xf32> -> vector<108x160xf32>
    %66 = arith.addf %60, %65 : vector<108x160xf32>
    %67 = vector.extract_strided_slice %43 {offsets = [4, 0], sizes = [108, 162], strides = [1, 1]} : vector<112x162xf32> to vector<108x162xf32>
    %68 = arith.truncf %67 : vector<108x162xf32> to vector<108x162xbf16>
    %c4_38 = arith.constant 4 : index
    %c0_39 = arith.constant 0 : index
    %c0_40 = arith.constant 0 : index
    %69 = vector.load %arg5[%c4_38, %c0_39, %c0_40] : memref<5x162x160xbf16, #tpu.memory_space<vmem>>, vector<1x162x160xbf16>
    %70 = vector.shape_cast %69 : vector<1x162x160xbf16> to vector<162x160xbf16>
    %cst_41 = arith.constant dense<0.000000e+00> : vector<108x160xf32>
    %71 = tpu.matmul %68, %70, %cst_41 {dimension_numbers = #tpu.dot_dimension_numbers<[1], [0], [0], [1], [0, 0, 1, 1], [], []>} : vector<108x162xbf16>, vector<162x160xbf16>, vector<108x160xf32> -> vector<108x160xf32>
    %72 = arith.addf %66, %71 : vector<108x160xf32>
    %c0_42 = arith.constant 0 : index
    %c0_43 = arith.constant 0 : index
    %73 = vector.load %arg6[%c0_42, %c0_43] : memref<1x160xf32, #tpu.memory_space<vmem>>, vector<1x160xf32>
    %74 = vector.broadcast %73 : vector<1x160xf32> to vector<108x160xf32>
    %75 = arith.addf %72, %74 : vector<108x160xf32>
    %cst_44 = arith.constant 0.000000e+00 : f32
    %76 = vector.broadcast %cst_44 : f32 to vector<108x160xf32>
    %77 = arith.maximumf %75, %76 : vector<108x160xf32>
    %78 = vector.extract_strided_slice %77 {offsets = [0, 0], sizes = [108, 144], strides = [1, 1]} : vector<108x160xf32> to vector<108x144xf32>
    %79 = vector.extract_strided_slice %77 {offsets = [0, 16], sizes = [108, 144], strides = [1, 1]} : vector<108x160xf32> to vector<108x144xf32>
    %80 = arith.maximumf %78, %79 : vector<108x144xf32>
    %81 = vector.extract_strided_slice %80 {offsets = [0, 0], sizes = [107, 144], strides = [1, 1]} : vector<108x144xf32> to vector<107x144xf32>
    %82 = vector.extract_strided_slice %80 {offsets = [1, 0], sizes = [107, 144], strides = [1, 1]} : vector<108x144xf32> to vector<107x144xf32>
    %83 = arith.maximumf %81, %82 : vector<107x144xf32>
    %c0_45 = arith.constant 0 : index
    %c0_46 = arith.constant 0 : index
    %84 = vector.load %arg7[%c0_45, %c0_46] : memref<40x107xbf16, #tpu.memory_space<vmem>>, vector<40x107xbf16>
    %85 = arith.truncf %83 : vector<107x144xf32> to vector<107x144xbf16>
    %cst_47 = arith.constant dense<0.000000e+00> : vector<40x144xf32>
    %86 = tpu.matmul %84, %85, %cst_47 {dimension_numbers = #tpu.dot_dimension_numbers<[1], [0], [0], [1], [0, 0, 1, 1], [], []>} : vector<40x107xbf16>, vector<107x144xbf16>, vector<40x144xf32> -> vector<40x144xf32>
    %87 = vector.extract_strided_slice %86 {offsets = [0, 0], sizes = [8, 144], strides = [1, 1]} : vector<40x144xf32> to vector<8x144xf32>
    %88 = arith.truncf %87 : vector<8x144xf32> to vector<8x144xbf16>
    %c0_48 = arith.constant 0 : index
    %c0_49 = arith.constant 0 : index
    %c0_50 = arith.constant 0 : index
    %89 = vector.load %arg8[%c0_48, %c0_49, %c0_50] : memref<5x144x120xbf16, #tpu.memory_space<vmem>>, vector<1x144x120xbf16>
    %90 = vector.shape_cast %89 : vector<1x144x120xbf16> to vector<144x120xbf16>
    %cst_51 = arith.constant dense<0.000000e+00> : vector<8x120xf32>
    %91 = tpu.matmul %88, %90, %cst_51 {dimension_numbers = #tpu.dot_dimension_numbers<[1], [0], [0], [1], [0, 0, 1, 1], [], []>} : vector<8x144xbf16>, vector<144x120xbf16>, vector<8x120xf32> -> vector<8x120xf32>
    %92 = vector.extract_strided_slice %86 {offsets = [8, 0], sizes = [8, 144], strides = [1, 1]} : vector<40x144xf32> to vector<8x144xf32>
    %93 = arith.truncf %92 : vector<8x144xf32> to vector<8x144xbf16>
    %c1_52 = arith.constant 1 : index
    %c0_53 = arith.constant 0 : index
    %c0_54 = arith.constant 0 : index
    %94 = vector.load %arg8[%c1_52, %c0_53, %c0_54] : memref<5x144x120xbf16, #tpu.memory_space<vmem>>, vector<1x144x120xbf16>
    %95 = vector.shape_cast %94 : vector<1x144x120xbf16> to vector<144x120xbf16>
    %cst_55 = arith.constant dense<0.000000e+00> : vector<8x120xf32>
    %96 = tpu.matmul %93, %95, %cst_55 {dimension_numbers = #tpu.dot_dimension_numbers<[1], [0], [0], [1], [0, 0, 1, 1], [], []>} : vector<8x144xbf16>, vector<144x120xbf16>, vector<8x120xf32> -> vector<8x120xf32>
    %97 = arith.addf %91, %96 : vector<8x120xf32>
    %98 = vector.extract_strided_slice %86 {offsets = [16, 0], sizes = [8, 144], strides = [1, 1]} : vector<40x144xf32> to vector<8x144xf32>
    %99 = arith.truncf %98 : vector<8x144xf32> to vector<8x144xbf16>
    %c2_56 = arith.constant 2 : index
    %c0_57 = arith.constant 0 : index
    %c0_58 = arith.constant 0 : index
    %100 = vector.load %arg8[%c2_56, %c0_57, %c0_58] : memref<5x144x120xbf16, #tpu.memory_space<vmem>>, vector<1x144x120xbf16>
    %101 = vector.shape_cast %100 : vector<1x144x120xbf16> to vector<144x120xbf16>
    %cst_59 = arith.constant dense<0.000000e+00> : vector<8x120xf32>
    %102 = tpu.matmul %99, %101, %cst_59 {dimension_numbers = #tpu.dot_dimension_numbers<[1], [0], [0], [1], [0, 0, 1, 1], [], []>} : vector<8x144xbf16>, vector<144x120xbf16>, vector<8x120xf32> -> vector<8x120xf32>
    %103 = arith.addf %97, %102 : vector<8x120xf32>
    %104 = vector.extract_strided_slice %86 {offsets = [24, 0], sizes = [8, 144], strides = [1, 1]} : vector<40x144xf32> to vector<8x144xf32>
    %105 = arith.truncf %104 : vector<8x144xf32> to vector<8x144xbf16>
    %c3_60 = arith.constant 3 : index
    %c0_61 = arith.constant 0 : index
    %c0_62 = arith.constant 0 : index
    %106 = vector.load %arg8[%c3_60, %c0_61, %c0_62] : memref<5x144x120xbf16, #tpu.memory_space<vmem>>, vector<1x144x120xbf16>
    %107 = vector.shape_cast %106 : vector<1x144x120xbf16> to vector<144x120xbf16>
    %cst_63 = arith.constant dense<0.000000e+00> : vector<8x120xf32>
    %108 = tpu.matmul %105, %107, %cst_63 {dimension_numbers = #tpu.dot_dimension_numbers<[1], [0], [0], [1], [0, 0, 1, 1], [], []>} : vector<8x144xbf16>, vector<144x120xbf16>, vector<8x120xf32> -> vector<8x120xf32>
    %109 = arith.addf %103, %108 : vector<8x120xf32>
    %110 = vector.extract_strided_slice %86 {offsets = [32, 0], sizes = [8, 144], strides = [1, 1]} : vector<40x144xf32> to vector<8x144xf32>
    %111 = arith.truncf %110 : vector<8x144xf32> to vector<8x144xbf16>
    %c4_64 = arith.constant 4 : index
    %c0_65 = arith.constant 0 : index
    %c0_66 = arith.constant 0 : index
    %112 = vector.load %arg8[%c4_64, %c0_65, %c0_66] : memref<5x144x120xbf16, #tpu.memory_space<vmem>>, vector<1x144x120xbf16>
    %113 = vector.shape_cast %112 : vector<1x144x120xbf16> to vector<144x120xbf16>
    %cst_67 = arith.constant dense<0.000000e+00> : vector<8x120xf32>
    %114 = tpu.matmul %111, %113, %cst_67 {dimension_numbers = #tpu.dot_dimension_numbers<[1], [0], [0], [1], [0, 0, 1, 1], [], []>} : vector<8x144xbf16>, vector<144x120xbf16>, vector<8x120xf32> -> vector<8x120xf32>
    %115 = arith.addf %109, %114 : vector<8x120xf32>
    %c0_68 = arith.constant 0 : index
    %c0_69 = arith.constant 0 : index
    %116 = vector.load %arg9[%c0_68, %c0_69] : memref<1x120xf32, #tpu.memory_space<vmem>>, vector<1x120xf32>
    %117 = vector.broadcast %116 : vector<1x120xf32> to vector<8x120xf32>
    %118 = arith.addf %115, %117 : vector<8x120xf32>
    %cst_70 = arith.constant 0.000000e+00 : f32
    %119 = vector.broadcast %cst_70 : f32 to vector<8x120xf32>
    %120 = arith.maximumf %118, %119 : vector<8x120xf32>
    %121 = arith.truncf %120 : vector<8x120xf32> to vector<8x120xbf16>
    %c0_71 = arith.constant 0 : index
    %c0_72 = arith.constant 0 : index
    %122 = vector.load %arg10[%c0_71, %c0_72] : memref<120x84xbf16, #tpu.memory_space<vmem>>, vector<120x84xbf16>
    %cst_73 = arith.constant dense<0.000000e+00> : vector<8x84xf32>
    %123 = tpu.matmul %121, %122, %cst_73 {dimension_numbers = #tpu.dot_dimension_numbers<[1], [0], [0], [1], [0, 0, 1, 1], [], []>} : vector<8x120xbf16>, vector<120x84xbf16>, vector<8x84xf32> -> vector<8x84xf32>
    %c0_74 = arith.constant 0 : index
    %c0_75 = arith.constant 0 : index
    %124 = vector.load %arg11[%c0_74, %c0_75] : memref<1x84xf32, #tpu.memory_space<vmem>>, vector<1x84xf32>
    %125 = vector.broadcast %124 : vector<1x84xf32> to vector<8x84xf32>
    %126 = arith.addf %123, %125 : vector<8x84xf32>
    %cst_76 = arith.constant 0.000000e+00 : f32
    %127 = vector.broadcast %cst_76 : f32 to vector<8x84xf32>
    %128 = arith.maximumf %126, %127 : vector<8x84xf32>
    %129 = arith.truncf %128 : vector<8x84xf32> to vector<8x84xbf16>
    %c0_77 = arith.constant 0 : index
    %c0_78 = arith.constant 0 : index
    %130 = vector.load %arg12[%c0_77, %c0_78] : memref<84x128xbf16, #tpu.memory_space<vmem>>, vector<84x128xbf16>
    %cst_79 = arith.constant dense<0.000000e+00> : vector<8x128xf32>
    %131 = tpu.matmul %129, %130, %cst_79 {dimension_numbers = #tpu.dot_dimension_numbers<[1], [0], [0], [1], [0, 0, 1, 1], [], []>} : vector<8x84xbf16>, vector<84x128xbf16>, vector<8x128xf32> -> vector<8x128xf32>
    %c0_80 = arith.constant 0 : index
    %c0_81 = arith.constant 0 : index
    %132 = vector.load %arg13[%c0_80, %c0_81] : memref<1x128xf32, #tpu.memory_space<vmem>>, vector<1x128xf32>
    %133 = vector.broadcast %132 : vector<1x128xf32> to vector<8x128xf32>
    %134 = arith.addf %131, %133 : vector<8x128xf32>
    %c0_82 = arith.constant 0 : index
    %c0_83 = arith.constant 0 : index
    %135 = vector.load %arg14[%c0_82, %c0_83] : memref<8x128xf32, #tpu.memory_space<vmem>>, vector<8x128xf32>
    tpu.vector_store %arg14[%c0_82, %c0_83], %134 {strides = array<i32>} : memref<8x128xf32, #tpu.memory_space<vmem>>, vector<8x128xf32>,
    return
  }
  func.func @transform_0(%arg0: i32) -> (i32, i32) {
    %c0_i32 = arith.constant 0 : i32
    %c0_i32_0 = arith.constant 0 : i32
    return %arg0, %c0_i32 : i32, i32
  }
  func.func @transform_1(%arg0: i32) -> (i32, i32, i32) {
    %c0_i32 = arith.constant 0 : i32
    %c0_i32_0 = arith.constant 0 : i32
    %c0_i32_1 = arith.constant 0 : i32
    %c0_i32_2 = arith.constant 0 : i32
    return %c0_i32, %c0_i32_0, %c0_i32_1 : i32, i32, i32
  }
  func.func @transform_2(%arg0: i32) -> (i32, i32) {
    %c0_i32 = arith.constant 0 : i32
    %c0_i32_0 = arith.constant 0 : i32
    %c0_i32_1 = arith.constant 0 : i32
    return %c0_i32, %c0_i32_0 : i32, i32
  }
  func.func @transform_3(%arg0: i32) -> (i32, i32) {
    %c0_i32 = arith.constant 0 : i32
    %c0_i32_0 = arith.constant 0 : i32
    %c0_i32_1 = arith.constant 0 : i32
    return %c0_i32, %c0_i32_0 : i32, i32
  }
  func.func @transform_4(%arg0: i32) -> (i32, i32, i32) {
    %c0_i32 = arith.constant 0 : i32
    %c0_i32_0 = arith.constant 0 : i32
    %c0_i32_1 = arith.constant 0 : i32
    %c0_i32_2 = arith.constant 0 : i32
    return %c0_i32, %c0_i32_0, %c0_i32_1 : i32, i32, i32
  }
  func.func @transform_5(%arg0: i32) -> (i32, i32) {
    %c0_i32 = arith.constant 0 : i32
    %c0_i32_0 = arith.constant 0 : i32
    %c0_i32_1 = arith.constant 0 : i32
    return %c0_i32, %c0_i32_0 : i32, i32
  }
  func.func @transform_6(%arg0: i32) -> (i32, i32) {
    %c0_i32 = arith.constant 0 : i32
    %c0_i32_0 = arith.constant 0 : i32
    %c0_i32_1 = arith.constant 0 : i32
    return %c0_i32, %c0_i32_0 : i32, i32
  }
  func.func @transform_7(%arg0: i32) -> (i32, i32, i32) {
    %c0_i32 = arith.constant 0 : i32
    %c0_i32_0 = arith.constant 0 : i32
    %c0_i32_1 = arith.constant 0 : i32
    %c0_i32_2 = arith.constant 0 : i32
    return %c0_i32, %c0_i32_0, %c0_i32_1 : i32, i32, i32
  }
  func.func @transform_8(%arg0: i32) -> (i32, i32) {
    %c0_i32 = arith.constant 0 : i32
    %c0_i32_0 = arith.constant 0 : i32
    %c0_i32_1 = arith.constant 0 : i32
    return %c0_i32, %c0_i32_0 : i32, i32
  }
  func.func @transform_9(%arg0: i32) -> (i32, i32) {
    %c0_i32 = arith.constant 0 : i32
    %c0_i32_0 = arith.constant 0 : i32
    %c0_i32_1 = arith.constant 0 : i32
    return %c0_i32, %c0_i32_0 : i32, i32
  }
  func.func @transform_10(%arg0: i32) -> (i32, i32) {
    %c0_i32 = arith.constant 0 : i32
    %c0_i32_0 = arith.constant 0 : i32
    %c0_i32_1 = arith.constant 0 : i32
    return %c0_i32, %c0_i32_0 : i32, i32
  }
  func.func @transform_11(%arg0: i32) -> (i32, i32) {
    %c0_i32 = arith.constant 0 : i32
    %c0_i32_0 = arith.constant 0 : i32
    %c0_i32_1 = arith.constant 0 : i32
    return %c0_i32, %c0_i32_0 : i32, i32
  }
  func.func @transform_12(%arg0: i32) -> (i32, i32) {
    %c0_i32 = arith.constant 0 : i32
    %c0_i32_0 = arith.constant 0 : i32
    %c0_i32_1 = arith.constant 0 : i32
    return %c0_i32, %c0_i32_0 : i32, i32
  }
  func.func @transform_13(%arg0: i32) -> (i32, i32) {
    %c0_i32 = arith.constant 0 : i32
    %c0_i32_0 = arith.constant 0 : i32
    return %arg0, %c0_i32 : i32, i32
  }
}

</mosaic_0001>

<bundles_post_ra>
// kernel: net_forward_fn.1
= control target key start
LH: loop header
LB: loop body
LE: loop exit
PB: predicated region body
PF: predicated region fallthrough
CT: control target
= control target key end

     0   :  { %18 = vsyncpa [#allocation3], 0  ;;  %s13264_s0 = inlined_call_operand.vmem [shape: f32[640,96], index: 0, kind: input, shape index: {}]   ;;  %s13265_s1 = inlined_call_operand.vmem [shape: bf16[5,96,168], index: 1, kind: input, shape index: {}]   ;;  %s13266_s2 = inlined_call_operand.vmem [shape: f32[1,168], index: 2, kind: input, shape index: {}]   ;;  %s13267_s3 = inlined_call_operand.vmem [shape: bf16[112,311], index: 3, kind: input, shape index: {}]   ;;  %s13268_s4 = inlined_call_operand.vmem [shape: bf16[5,162,160], index: 4, kind: input, shape index: {}]   ;;  %s13269_s5 = inlined_call_operand.vmem [shape: f32[1,160], index: 5, kind: input, shape index: {}]   ;;  %s13270_s6 = inlined_call_operand.vmem [shape: bf16[40,107], index: 6, kind: input, shape index: {}]   ;;  %s13271_s7 = inlined_call_operand.vmem [shape: bf16[5,144,120], index: 7, kind: input, shape index: {}]   ;;  %s13272_s8 = inlined_call_operand.vmem [shape: f32[1,120], index: 8, kind: input, shape index: {}]   ;;  %s13273_s9 = inlined_call_operand.vmem [shape: bf16[120,84], index: 9, kind: input, shape index: {}]   ;;  %s13274_s10 = inlined_call_operand.vmem [shape: f32[1,84], index: 10, kind: input, shape index: {}]   ;;  %s13275_s11 = inlined_call_operand.vmem [shape: bf16[84,128], index: 11, kind: input, shape index: {}]   ;;  %s13276_s12 = inlined_call_operand.vmem [shape: f32[1,128], index: 12, kind: input, shape index: {}]   ;;  %s13277_s13 = inlined_call_operand.hbm [shape: f32[16,128], index: 13, kind: output, shape index: {}]  }
   0x1   :  { %20 = vsyncpa [#allocation3 + $0x1], 0  ;;  %s8745_s25 = smov 0   ;;  %s8747_s26 = smov 0  }
   0x2   :  { %s8749_s27 = smov 0   ;;  %s8751_s28 = smov 0  }
   0x3 LB: > { %13428 = sst [smem:[#allocation5_spill]] %s8662_s27  ;;  %s8766_s29 = sadd.s32 4294967295, %s8666_s28   ;;  %s8666_s28 = sphi %s8751_s28, %s13943_s28   ;;  %s8662_s27 = sphi %s8749_s27, %s13945_s27   ;;  %s8658_s26 = sphi %s8747_s26, %s13947_s26   ;;  %s8654_s25 = sphi %s8745_s25, %s13946_s25  }
   0x4   : > { %s7277_s30 = sadd.s32 4294967294, %s8666_s28   ;;  %s8770_s14 = sadd.s32 1, %s8666_s28  }
   0x5   : > { %13429 = sst [smem:[#allocation6_spill]] %s8770_s14  ;;  %s311_s15 = sadd.s32 1, %s8662_s27 }
   0x6   : > { %s308_s16 = ssub.s32 %s8666_s28, %s8770_s14  ;;  %p321_p0 = scmp.ne.s32.totalorder %s8662_s27, %s8658_s26 }
   0x7   : > { %p309_p1 = scmp.eq.s32.totalorder %s308_s16, 0  ;;  %p322_p2 = scmp.eq.s32.totalorder %s8766_s29, 1 }
   0x8   : > { %p327_p3 = scmp.ne.s32.totalorder %s8658_s26, %s8654_s25  ;;  %p328_p4 = scmp.eq.s32.totalorder %s7277_s30, 1 }
   0x9   : > { %s8781_s17 = scalar_select %p309_p1, %s8662_s27, %s311_s15  }
   0xa   : > { %p8783_p5 = por %p322_p2, %p321_p0  ;;  %p8787_p6 = por %p328_p4, %p327_p3 }
   0xb   : > { %13430 = sst [smem:[#allocation7_spill]] %s8781_s17  ;;  %p7280_p7 = scmp.ge.s32.totalorder %s8666_s28, 1 }
   0xc   : > { %s13432_s19 = scalar_select %p8787_p6, 1, 0 }
   0xd   : > { %p391_p8 = scmp.lt.s32.totalorder %s8666_s28, 3 }
   0xe   : > { %13433 = sst [smem:[#allocation8_spill]] %s13432_s19 }
   0xf   : > { %p392_p9 = pnand %p7280_p7, %p391_p8 }
  0x11   : > { %395 = sbr.rel (%p392_p9) target bundleno = 2578 (0xa12), region = 72 }
  0x16   : > { %v8266_v0 = vld [vmem:[%s13265_s1 + $0xb4] ss:$8 sps:$4 sm:$0xff]   ;;  %s435_s22 = smul.u32 40, %s8766_s29  ;;  %v13282_v2 = vmov 0   ;;  %v8270_v3 = vld [vmem:[%s13265_s1 + $0xb0] ss:$8 sps:$4 sm:$0xff]  }
  0x17   : > { %v8268_v1 = vld [vmem:[%s13265_s1 + $0x54] ss:$8 sps:$4 sm:$0xff]   ;;  %841 = vmatprep.mubr.bf16.mxu0 %v13282_v2  ;;  %1173 = vmatprep.mubr.bf16.mxu1 %v13282_v2  ;;  %v8271_v4 = vld [vmem:[%s13265_s1 + $0x50] ss:$8 sps:$4 sm:$0xff]   ;;  %v8272_v5 = vld [vmem:[%s13265_s1 + $0xa4] ss:$8 sps:$4 sm:$0xff]  }
  0x18   : > { %813 = vmatprep.subr.bf16.mxu0 %v8266_v0  ;;  %p436_p10 = scmp.lt.s32.totalorder %s435_s22, 79  ;;  %1145 = vmatprep.subr.bf16.mxu1 %v8268_v1  ;;  %v8274_v6 = vld [vmem:[%s13265_s1 + $0x44] ss:$8 sps:$4 sm:$0xff]   ;;  %v8276_v7 = vld [vmem:[%s13265_s1 + $0xa0] ss:$8 sps:$4 sm:$0xff]   ;;  %vm748_vm1 = vcmask 785408  }
  0x19   : > { %814 = vmatpush1.bf16.msra.mxu0 %v8270_v3  ;;  %1146 = vmatpush1.bf16.msra.mxu1 %v8271_v4  ;;  %v8277_v8 = vld [vmem:[%s13265_s1 + $0x40] ss:$8 sps:$4 sm:$0xff]   ;;  %v8278_v9 = vld [vmem:[%s13265_s1 + $0x94] ss:$8 sps:$4 sm:$0xff]   ;;  %v8282_v11 = vld [vmem:[%s13265_s1 + $0x90] ss:$8 sps:$4 sm:$0xff]  }
  0x1a   : > { %815 = vmatprep.subr.bf16.mxu0 %v8272_v5  ;;  %1147 = vmatprep.subr.bf16.mxu1 %v8274_v6  ;;  %s13949_s22 = smov (!%p436_p10, %s435_s22), 79  ;;  %v8280_v10 = vld [vmem:[%s13265_s1 + $0x34] ss:$8 sps:$4 sm:$0xff]   ;;  %v8283_v12 = vld [vmem:[%s13265_s1 + $0x30] ss:$8 sps:$4 sm:$0xff]   ;;  %vm1405_vm3 = vcmask 1046528  }
  0x1b   : > { %v8284_v13 = vld [vmem:[%s13265_s1 + $0x84] ss:$8 sps:$4 sm:$0xff]   ;;  %s7282_s20 = sshll.u32 %s13949_s22, 3  ;;  %v8288_v15 = vld [vmem:[%s13265_s1 + $0x80] ss:$8 sps:$4 sm:$0xff]   ;;  %vm2409_vm4 = vcmask 1045504  }
  0x1c   : > { %v8286_v14 = vld [vmem:[%s13265_s1 + $0x24] ss:$8 sps:$4 sm:$0xff]   ;;  %v8289_v16 = vld [vmem:[%s13265_s1 + $0x20] ss:$8 sps:$4 sm:$0xff]   ;;  %v8290_v17 = vld [vmem:[%s13265_s1 + $0x74] ss:$8 sps:$4 sm:$0xff]   ;;  %s8853_s21 = scalar_lea.vmem %s13264_s0, %s7282_s20 }
  0x1d   : > { %816 = vmatpush1.bf16.msra.mxu0 %v8276_v7  ;;  %1148 = vmatpush1.bf16.msra.mxu1 %v8277_v8  ;;  %v8292_v18 = vld [vmem:[%s13265_s1 + $0x14] ss:$8 sps:$4 sm:$0xff]   ;;  %v8294_v19 = vld [vmem:[%s13265_s1 + $0x70] ss:$8 sps:$4 sm:$0xff]   ;;  %v8296_v21 = vld [vmem:[%s13265_s1 + $0x64] ss:$8 sps:$4 sm:$0xff]  }
  0x1e   : > { %817 = vmatprep.subr.bf16.mxu0 %v8278_v9  ;;  %1149 = vmatprep.subr.bf16.mxu1 %v8280_v10  ;;  %v8295_v20 = vld [vmem:[%s13265_s1 + $0x10] ss:$8 sps:$4 sm:$0xff]   ;;  %v8298_v22 = vld [vmem:[%s13265_s1 + $0x4] ss:$8 sps:$4 sm:$0xff]   ;;  %v8300_v33 = vld [vmem:[%s13265_s1 + $0x60] ss:$8 sps:$4 sm:$0xff]  }
  0x1f   : > { %v442_v23 = vld [vmem:[%s8853_s21] sm:$0xff]  ;;  %v443_v24 = vld [vmem:[%s8853_s21 + $0x8] sm:$0xff]  ;;  %v444_v25 = vld [vmem:[%s8853_s21 + $0x10] sm:$0xff]  ;;  %vm528_vm0 = vsmask.f32 7424  ;;  %vm3280_vm5 = vcmask 998400  }
  0x20   : > { %v445_v26 = vld [vmem:[%s8853_s21 + $0x18] sm:$0xff]  ;;  %v8871_v27 = vpack.c.bf16 %v443_v24, %v442_v23  ;;  %v446_v28 = vld [vmem:[%s8853_s21 + $0x20] sm:$0xff]  ;;  %v447_v29 = vld [vmem:[%s8853_s21 + $0x28] sm:$0xff]  ;;  %vm1887_vm2 = vsmask.f32 6400  ;;  %vm4060_vm6 = vcmask 1042432  }
  0x21   : > { %818 = vmatpush1.bf16.msra.mxu0 %v8282_v11  ;;  %1150 = vmatpush1.bf16.msra.mxu1 %v8283_v12  ;;  %v8875_v30 = vpack.c.bf16 %v445_v26, %v444_v25  ;;  %v8301_v34 = vld [vmem:[%s13265_s1] ss:$8 sps:$4 sm:$0xff]   ;;  %v8886_v36 = vpack.c.bf16 %v447_v29, %v446_v28  ;;  %v8304_v42 = vld [vmem:[%s13265_s1 + $0x114] ss:$8 sps:$4 sm:$0xff]   ;;  %v8302_v46 = vld [vmem:[%s13265_s1 + $0x110] ss:$8 sps:$4 sm:$0xff]  }
  0x22   : > { %819 = vmatprep.subr.bf16.mxu0 %v8284_v13  ;;  %1151 = vmatprep.subr.bf16.mxu1 %v8286_v14  ;;  %v530_v31 = vshrl.u32 %v8871_v27, 16  ;;  %v532_v32 = vshll.u32 %v8871_v27, 16  ;;  %v448_v44 = vld [vmem:[%s8853_s21 + $0x30] sm:$0xff]  ;;  %v449_v45 = vld [vmem:[%s8853_s21 + $0x38] sm:$0xff]  ;;  %v8307_v50 = vld [vmem:[%s13265_s1 + $0x104] ss:$8 sps:$4 sm:$0xff]  }
  0x23   : > { %v537_v35 = vshll.u32 %v8875_v30, 16  ;;  %v541_v40 = vshrl.u32 %v8875_v30, 16  ;;  %v545_v41 = vshll.u32 %v8886_v36, 16  ;;  %v8914_v49 = vpack.c.bf16 %v449_v45, %v448_v44  ;;  %v8305_v51 = vld [vmem:[%s13265_s1 + $0x100] ss:$8 sps:$4 sm:$0xff]   ;;  %v452_v3 = vld [vmem:[%s8853_s21 + $0x50] sm:$0xff] }
  0x24   : > { %v534_v37 = vrot.slane %v532_v32, 1  ;;  %v549_v53 = vshrl.u32 %v8886_v36, 16  ;;  %v8310_v55 = vld [vmem:[%s13265_s1 + $0xf4] ss:$8 sps:$4 sm:$0xff]   ;;  %v450_v56 = vld [vmem:[%s8853_s21 + $0x40] sm:$0xff]  ;;  %v451_v57 = vld [vmem:[%s8853_s21 + $0x48] sm:$0xff] }
  0x25   : > { %820 = vmatpush1.bf16.msra.mxu0 %v8288_v15  ;;  %1152 = vmatpush1.bf16.msra.mxu1 %v8289_v16  ;;  %v539_v38 = vrot.slane %v537_v35, 1  ;;  %v547_v48 = vrot.slane %v545_v41, 1  ;;  %v553_v54 = vshll.u32 %v8914_v49, 16  ;;  %v8308_v58 = vld [vmem:[%s13265_s1 + $0xf0] ss:$8 sps:$4 sm:$0xff]   ;;  %v8948_v63 = vpack.c.bf16 %v451_v57, %v450_v56  ;;  %v458_v57 = vld [vmem:[%s8853_s21 + $0x80] sm:$0xff] }
  0x26   : > { %821 = vmatprep.subr.bf16.mxu0 %v8290_v17  ;;  %1153 = vmatprep.subr.bf16.mxu1 %v8292_v18  ;;  %v535_v39 = vor.u32 %v534_v37, %v530_v31  ;;  %v8311_v59 = vld [vmem:[%s13265_s1 + $0x170] ss:$8 sps:$4 sm:$0xff]   ;;  %v8313_v60 = vld [vmem:[%s13265_s1 + $0x174] ss:$8 sps:$4 sm:$0xff]   ;;  %v8314_v0 = vld [vmem:[%s13265_s1 + $0x160] ss:$8 sps:$4 sm:$0xff]  }
  0x27   : > { %v543_v47 = vor.u32 %v541_v40, %v539_v38  ;;  %v551_v61 = vor.u32 %v549_v53, %v547_v48  ;;  %v555_v62 = vrot.slane %v553_v54, 1  ;;  %v8316_v1 = vld [vmem:[%s13265_s1 + $0x164] ss:$8 sps:$4 sm:$0xff]   ;;  %v557_v5 = vshrl.u32 %v8914_v49, 16  ;;  %v453_v7 = vld [vmem:[%s8853_s21 + $0x58] sm:$0xff]  ;;  %v456_v24 = vld [vmem:[%s8853_s21 + $0x70] sm:$0xff] }
  0x28   : > { %v540_v43 = vsel %vm528_vm0, %v535_v39, %v539_v38  ;;  %v561_v6 = vshll.u32 %v8948_v63, 16  ;;  %v8317_v8 = vld [vmem:[%s13265_s1 + $0xe0] ss:$8 sps:$4 sm:$0xff]   ;;  %v8319_v9 = vld [vmem:[%s13265_s1 + $0xe4] ss:$8 sps:$4 sm:$0xff]   ;;  %v8976_v12 = vpack.c.bf16 %v453_v7, %v452_v3  ;;  %v565_v17 = vshrl.u32 %v8948_v63, 16 }
  0x29   : > { %822 = vmatpush1.bf16.msra.mxu0 %v8294_v19  ;;  %1154 = vmatpush1.bf16.msra.mxu1 %v8295_v20  ;;  %v548_v52 = vsel %vm528_vm0, %v543_v47, %v547_v48  ;;  %v556_v4 = vsel %vm528_vm0, %v551_v61, %v555_v62  ;;  %v559_v10 = vor.u32 %v557_v5, %v555_v62  ;;  %v8320_v13 = vld [vmem:[%s13265_s1 + $0x150] ss:$8 sps:$4 sm:$0xff]   ;;  %v8322_v14 = vld [vmem:[%s13265_s1 + $0x154] ss:$8 sps:$4 sm:$0xff]   ;;  %v8325_v15 = vld [vmem:[%s13265_s1 + $0x144] ss:$8 sps:$4 sm:$0xff]  }
  0x2a   : > { %823 = vmatprep.subr.bf16.mxu0 %v8296_v21  ;;  %1155 = vmatprep.subr.bf16.mxu1 %v8298_v22  ;;  %v563_v11 = vrot.slane %v561_v6, 1  ;;  %v569_v18 = vshll.u32 %v8976_v12, 16  ;;  %v454_v19 = vld [vmem:[%s8853_s21 + $0x60] sm:$0xff]  ;;  %v455_v20 = vld [vmem:[%s8853_s21 + $0x68] sm:$0xff]  ;;  %v8328_v22 = vld [vmem:[%s13265_s1 + $0xd4] ss:$8 sps:$4 sm:$0xff]  }
  0x2b   : > { %v8323_v21 = vld [vmem:[%s13265_s1 + $0x140] ss:$8 sps:$4 sm:$0xff]   ;;  %v8326_v23 = vld [vmem:[%s13265_s1 + $0xd0] ss:$8 sps:$4 sm:$0xff]   ;;  %v1888_v26 = vrot.slane %v530_v31, 1  ;;  %v1889_v37 = vrot.slane %v532_v32, 2 }
  0x2c   : > { %v564_v16 = vsel %vm528_vm0, %v559_v10, %v563_v11  ;;  %v457_v25 = vld [vmem:[%s8853_s21 + $0x78] sm:$0xff]  ;;  %v567_v28 = vor.u32 %v565_v17, %v563_v11  ;;  %v571_v29 = vrot.slane %v569_v18, 1  ;;  %v1892_v31 = vrot.slane %v537_v35, 2  ;;  %v8334_v39 = vld [vmem:[%s13265_s1 + $0xc4] ss:$8 sps:$4 sm:$0xff]   ;;  %s8671_s15 = smov 112  }
  0x2d   : > { %824 = vmatpush1.bf16.msra.mxu0 %v8300_v33  ;;  %1156 = vmatpush1.bf16.msra.mxu1 %v8301_v34  ;;  %v9014_v33 = vpack.c.bf16 %v455_v20, %v454_v19  ;;  %v8331_v34 = vld [vmem:[%s13265_s1 + $0x134] ss:$8 sps:$4 sm:$0xff]   ;;  %v8329_v38 = vld [vmem:[%s13265_s1 + $0x130] ss:$8 sps:$4 sm:$0xff]   ;;  %v8332_v32 = vld [vmem:[%s13265_s1 + $0xc0] ss:$8 sps:$4 sm:$0xff]  }
  0x2e   : > { %1569 = vmatprep.subr.bf16.mxu0 %v8304_v42  ;;  %2091 = vmatprep.subr.bf16.mxu1 %v8313_v60  ;;  %v1891_v42 = vrot.slane %v541_v40, 1  ;;  %v8337_v35 = vld [vmem:[%s13265_s1 + $0x124] ss:$8 sps:$4 sm:$0xff]   ;;  %v8335_v44 = vld [vmem:[%s13265_s1 + $0x120] ss:$8 sps:$4 sm:$0xff]   ;;  %v572_v45 = vsel %vm528_vm0, %v567_v28, %v571_v29  ;;  %v573_v40 = vshrl.u32 %v8976_v12, 16 }
  0x2f   : > { %v581_v47 = vshrl.u32 %v9014_v33, 16  ;;  %v1895_v60 = vrot.slane %v549_v53, 1  ;;  %v1896_v61 = vrot.slane %v545_v41, 2  ;;  %v461_v7 = vld [vmem:[%s8853_s21 + $0x98] sm:$0xff]  ;;  %v1899_v10 = vrot.slane %v557_v5, 1  ;;  %v462_v19 = vld [vmem:[%s8853_s21 + $0xa0] sm:$0xff] }
  0x30   : > { %7307 = vmatmul.mubr.msk.bf16.vlgmr.msra.gmra.mxu0 %vm748_vm1, %v540_v43  ;;  %7339 = vmatmul.mubr.msk.bf16.vlgmr.msra.gmra.mxu1 %vm748_vm1, %v8871_v27  ;;  %v9031_v43 = vpack.c.bf16 %v457_v25, %v456_v24  ;;  %v1900_v11 = vrot.slane %v553_v54, 2  ;;  %v463_v20 = vld [vmem:[%s8853_s21 + $0xa8] sm:$0xff]  ;;  %v1904_v24 = vrot.slane %v561_v6, 2  ;;  %v464_v25 = vld [vmem:[%s8853_s21 + $0xb0] sm:$0xff]  ;;  %vm4061_vm7 = vcmask 1043456   ;;  %s7901_s22 = sshll.u32 %s8766_s29, 7 }
  0x31   : > { %851 = vmatprep.mubr.bf16.mxu0 %v13282_v2  ;;  %1183 = vmatprep.mubr.bf16.mxu1 %v13282_v2  ;;  %v1897_v62 = vor.u32 %v1896_v61, %v1895_v60  ;;  %vm4038_vm8 = vcmask 449536   ;;  %vm4577_vm9 = vcmask 1040384   ;;  %vm4555_vm10 = vcmask 277504   ;;  %s13223_s14 = scalar_lea.hbm %s13277_s13, %s7901_s22  ;;  %s8674_s29 = smov [#allocation2]  }
  0x32   : > { %1570 = vmatpush1.bf16.msra.mxu0 %v8302_v46  ;;  %2092 = vmatpush1.bf16.msra.mxu1 %v8311_v59  ;;  %v577_v46 = vshll.u32 %v9014_v33, 16  ;;  %v585_v48 = vshll.u32 %v9031_v43, 16  ;;  %v589_v3 = vshrl.u32 %v9031_v43, 16  ;;  %vm6063_vm11 = vcmask 916480  }
  0x33   : > { %1571 = vmatprep.subr.bf16.mxu0 %v8307_v50  ;;  %2093 = vmatprep.subr.bf16.mxu1 %v8316_v1  ;;  %v1890_v50 = vor.u32 %v1889_v37, %v1888_v26  ;;  %v465_v26 = vld [vmem:[%s8853_s21 + $0xb8] sm:$0xff]  ;;  %vm6314_vm12 = vcmask 1044480   ;;  %vm6304_vm13 = vcmask 875520   ;;  %vm6480_vm14 = vcmask 130048  }
  0x34   : > { %v587_v1 = vrot.slane %v585_v48, 1  ;;  %vm8673_vm15 = vmmov 0  }
  0x36   : > { %1572 = vmatpush1.bf16.msra.mxu0 %v8305_v51  ;;  %2094 = vmatpush1.bf16.msra.mxu1 %v8314_v0  ;;  %v1893_v51 = vor.u32 %v1892_v31, %v1891_v42  ;;  %v9127_v31 = vpack.c.bf16 %v465_v26, %v464_v25  ;;  %v466_v42 = vld [vmem:[%s8853_s21 + $0xc0] sm:$0xff] }
  0x37   : > { %1573 = vmatprep.subr.bf16.mxu0 %v8310_v55  ;;  %2095 = vmatprep.subr.bf16.mxu1 %v8322_v14  ;;  %v579_v55 = vrot.slane %v577_v46, 1  ;;  %v591_v14 = vor.u32 %v589_v3, %v587_v1 }
  0x38   : > { %7308 = vmatmul.mubr.msk.bf16.gmra.mxu0 %vm748_vm1, %v548_v52  ;;  %7340 = vmatmul.mubr.msk.bf16.gmra.mxu1 %vm748_vm1, %v8875_v30  ;;  %v575_v52 = vor.u32 %v573_v40, %v571_v29  ;;  %v9057_v56 = vsel %vm1887_vm2, %v1890_v50, %v1893_v51  ;;  %v9078_v41 = vsel %vm1887_vm2, %v1893_v51, %v1897_v62  ;;  %v617_v50 = vshll.u32 %v9127_v31, 16 }
  0x39   : > { %861 = vmatprep.mubr.bf16.mxu0 %v13282_v2  ;;  %1193 = vmatprep.mubr.bf16.mxu1 %v13282_v2  ;;  %v583_v0 = vor.u32 %v581_v47, %v579_v55  ;;  %v621_v61 = vshrl.u32 %v9127_v31, 16 }
  0x3a   : > { %1574 = vmatpush1.bf16.msra.mxu0 %v8308_v58  ;;  %2096 = vmatpush1.bf16.msra.mxu1 %v8320_v13  ;;  %v459_v58 = vld [vmem:[%s8853_s21 + $0x88] sm:$0xff]  ;;  %v580_v59 = vsel %vm528_vm0, %v575_v52, %v579_v55  ;;  %v1901_v13 = vor.u32 %v1900_v11, %v1899_v10  ;;  %v619_v60 = vrot.slane %v617_v50, 1  ;;  %v9157_v10 = vrot.slane %v617_v50, 2 }
  0x3b   : > { %1575 = vmatprep.subr.bf16.mxu0 %v8319_v9  ;;  %2097 = vmatprep.subr.bf16.mxu1 %v8325_v15  ;;  %v9075_v53 = vpack.c.bf16 %v459_v58, %v458_v57 }
  0x3c   : > { %v9101_v54 = vsel %vm1887_vm2, %v1897_v62, %v1901_v13  ;;  %v468_v62 = vld [vmem:[%s8853_s21 + $0xd0] sm:$0xff] }
  0x3d   : > { %v593_v9 = vshll.u32 %v9075_v53, 16 }
  0x3e   : > { %1576 = vmatpush1.bf16.msra.mxu0 %v8317_v8  ;;  %2098 = vmatpush1.bf16.msra.mxu1 %v8323_v21  ;;  %v588_v8 = vsel %vm528_vm0, %v583_v0, %v587_v1  ;;  %v469_v0 = vld [vmem:[%s8853_s21 + $0xd8] sm:$0xff] }
  0x3f   : > { %1577 = vmatprep.subr.bf16.mxu0 %v8328_v22  ;;  %2099 = vmatprep.subr.bf16.mxu1 %v8331_v34  ;;  %v595_v5 = vrot.slane %v593_v9, 1  ;;  %v9121_v34 = vpack.c.bf16 %v463_v20, %v462_v19 }
  0x40   : > { %7309 = vmatmul.mubr.msk.bf16.gmra.mxu0 %vm748_vm1, %v556_v4  ;;  %7341 = vmatmul.mubr.msk.bf16.gmra.mxu1 %vm748_vm1, %v8886_v36  ;;  %v460_v4 = vld [vmem:[%s8853_s21 + $0x90] sm:$0xff] }
  0x41   : > { %871 = vmatprep.mubr.bf16.mxu0 %v13282_v2  ;;  %1203 = vmatprep.mubr.bf16.mxu1 %v13282_v2  ;;  %v9098_v15 = vpack.c.bf16 %v461_v7, %v460_v4  ;;  %v596_v21 = vsel %vm528_vm0, %v591_v14, %v595_v5  ;;  %v613_v58 = vshrl.u32 %v9121_v34, 16  ;;  %v1911_v7 = vrot.slane %v581_v47, 1 }
  0x42   : > { %1578 = vmatpush1.bf16.msra.mxu0 %v8326_v23  ;;  %2100 = vmatpush1.bf16.msra.mxu1 %v8329_v38  ;;  %v1903_v23 = vrot.slane %v565_v17, 1  ;;  %v9167_v14 = vpack.c.bf16 %v469_v0, %v468_v62 }
  0x43   : > { %1579 = vmatprep.subr.bf16.mxu0 %v8334_v39  ;;  %2101 = vmatprep.subr.bf16.mxu1 %v8337_v35  ;;  %v601_v22 = vshll.u32 %v9098_v15, 16  ;;  %v605_v37 = vshrl.u32 %v9098_v15, 16  ;;  %v609_v39 = vshll.u32 %v9121_v34, 16  ;;  %v1907_v35 = vrot.slane %v573_v40, 1 }
  0x44   : > { %v1905_v28 = vor.u32 %v1904_v24, %v1903_v23  ;;  %v1927_v4 = vrot.slane %v613_v58, 1  ;;  %13435 = vst [vmem:[#allocation10_spill] sm:$0xff] %v9167_v14  ;;  %v471_v23 = vld [vmem:[%s8853_s21 + $0xe8] sm:$0xff]  ;;  %v623_v24 = vor.u32 %v621_v61, %v619_v60 }
  0x45   : > { %v603_v29 = vrot.slane %v601_v22, 1  ;;  %v611_v52 = vrot.slane %v609_v39, 1  ;;  %v1924_v55 = vrot.slane %v601_v22, 2  ;;  %v1923_v57 = vrot.slane %v605_v37, 1 }
  0x46   : > { %1580 = vmatpush1.bf16.msra.mxu0 %v8332_v32  ;;  %2102 = vmatpush1.bf16.msra.mxu1 %v8335_v44  ;;  %v9124_v6 = vsel %vm1887_vm2, %v1901_v13, %v1905_v28  ;;  %v467_v32 = vld [vmem:[%s8853_s21 + $0xc8] sm:$0xff]  ;;  %v1908_v44 = vrot.slane %v569_v18, 2  ;;  %v633_v22 = vshll.u32 %v9167_v14, 16 }
  0x47   : > { %v607_v51 = vor.u32 %v605_v37, %v603_v29  ;;  %v9146_v18 = vpack.c.bf16 %v467_v32, %v466_v42  ;;  %v615_v47 = vor.u32 %v613_v58, %v611_v52  ;;  %v472_v37 = vld [vmem:[%s8853_s21 + $0xf0] sm:$0xff]  ;;  %v474_v42 = vld [vmem:[%s8853_s21 + $0x100] sm:$0xff]  ;;  %v475_v32 = vld [vmem:[%s8853_s21 + $0x108] sm:$0xff] }
  0x48   : > { %7310 = vmatmul.mubr.msk.bf16.gmra.mxu0 %vm748_vm1, %v564_v16  ;;  %7342 = vmatmul.mubr.msk.bf16.gmra.mxu1 %vm748_vm1, %v8914_v49  ;;  %v597_v16 = vshrl.u32 %v9075_v53, 16 }
  0x49   : > { %881 = vmatprep.mubr.bf16.mxu0 %v13282_v2  ;;  %1213 = vmatprep.mubr.bf16.mxu1 %v13282_v2  ;;  %13434 = vst [vmem:[#allocation9_spill] sm:$0xff] %v9146_v18  ;;  %v612_v1 = vsel %vm528_vm0, %v607_v51, %v611_v52  ;;  %v625_v11 = vshll.u32 %v9146_v18, 16  ;;  %v620_v19 = vsel %vm528_vm0, %v615_v47, %v619_v60  ;;  %v476_v47 = vld [vmem:[%s8853_s21 + $0x110] sm:$0xff] }
  0x4a   : > { %v599_v17 = vor.u32 %v597_v16, %v595_v5  ;;  %v470_v5 = vld [vmem:[%s8853_s21 + $0xe0] sm:$0xff]  ;;  %v9206_v51 = vor.u32 %v1924_v55, %v1923_v57  ;;  %v8340_v55 = vld [vmem:[%s13265_s1 + $0x1d4] ss:$8 sps:$4 sm:$0xff]  }
  0x4b   : > { %v627_v20 = vrot.slane %v625_v11, 1  ;;  %v9184_v25 = vpack.c.bf16 %v471_v23, %v470_v5  ;;  %2573 = vmatprep.subr.bf16.mxu0 %v8340_v55  ;;  %v477_v5 = vld [vmem:[%s8853_s21 + $0x118] sm:$0xff] }
  0x4c   : > { %v604_v38 = vsel %vm528_vm0, %v599_v17, %v603_v29  ;;  %v635_v17 = vrot.slane %v633_v22, 1 }
  0x4d   : > { %13436 = vst [vmem:[#allocation11_spill] sm:$0xff] %v9184_v25  ;;  %v628_v26 = vsel %vm528_vm0, %v623_v24, %v627_v20  ;;  %v641_v29 = vshll.u32 %v9184_v25, 16  ;;  %v645_v58 = vshrl.u32 %v9184_v25, 16  ;;  %v9245_v24 = vpack.c.bf16 %v477_v5, %v476_v47  ;;  %v481_v47 = vld [vmem:[%s8853_s21 + $0x138] sm:$0xff] }
  0x4f   : > { %13439 = vst [vmem:[#allocation14_spill] sm:$0xff] %v9245_v24 }
  0x50   : > { %7311 = vmatmul.mubr.msk.bf16.gmra.mxu0 %vm748_vm1, %v572_v45  ;;  %7343 = vmatmul.mubr.msk.bf16.gmra.mxu1 %vm748_vm1, %v8948_v63  ;;  %v1909_v45 = vor.u32 %v1908_v44, %v1907_v35  ;;  %v637_v44 = vshrl.u32 %v9167_v14, 16 }
  0x51   : > { %891 = vmatprep.mubr.bf16.mxu0 %v13282_v2  ;;  %1223 = vmatprep.mubr.bf16.mxu1 %v13282_v2 }
  0x52   : > { %v9144_v40 = vsel %vm1887_vm2, %v1905_v28, %v1909_v45  ;;  %v629_v28 = vshrl.u32 %v9146_v18, 16  ;;  %v639_v52 = vor.u32 %v637_v44, %v635_v17  ;;  %v1939_v55 = vrot.slane %v637_v44, 1 }
  0x58   : > { %7312 = vmatmul.mubr.msk.bf16.gmra.mxu0 %vm748_vm1, %v580_v59  ;;  %7344 = vmatmul.mubr.msk.bf16.gmra.mxu1 %vm748_vm1, %v8976_v12  ;;  %v1928_v59 = vrot.slane %v609_v39, 2  ;;  %v631_v39 = vor.u32 %v629_v28, %v627_v20 }
  0x59   : > { %901 = vmatprep.mubr.bf16.mxu0 %v13282_v2  ;;  %1233 = vmatprep.mubr.bf16.mxu1 %v13282_v2 }
  0x5a   : > { %v636_v35 = vsel %vm528_vm0, %v631_v39, %v635_v17  ;;  %v1936_v17 = vrot.slane %v625_v11, 2  ;;  %v478_v39 = vld [vmem:[%s8853_s21 + $0x120] sm:$0xff] }
  0x60   : > { %7313 = vmatmul.mubr.msk.bf16.gmra.mxu0 %vm748_vm1, %v588_v8  ;;  %7345 = vmatmul.mubr.msk.bf16.gmra.mxu1 %vm748_vm1, %v9014_v33  ;;  %v1912_v8 = vrot.slane %v577_v46, 2 }
  0x61   : > { %911 = vmatprep.mubr.bf16.mxu0 %v13282_v2  ;;  %1243 = vmatprep.mubr.bf16.mxu1 %v13282_v2 }
  0x62   : > { %v9160_v13 = vor.u32 %v1912_v8, %v1911_v7 }
  0x64   : > { %v9171_v46 = vsel %vm1887_vm2, %v1909_v45, %v9160_v13  ;;  %v643_v45 = vrot.slane %v641_v29, 1 }
  0x66   : > { %v644_v57 = vsel %vm528_vm0, %v639_v52, %v643_v45  ;;  %v647_v7 = vor.u32 %v645_v58, %v643_v45  ;;  %v1940_v52 = vrot.slane %v633_v22, 2 }
  0x68   : > { %7314 = vmatmul.mubr.msk.bf16.gmra.mxu0 %vm748_vm1, %v596_v21  ;;  %7346 = vmatmul.mubr.msk.bf16.gmra.mxu1 %vm748_vm1, %v9031_v43  ;;  %v1931_v21 = vrot.slane %v621_v61, 1  ;;  %v9215_v61 = vpack.c.bf16 %v475_v32, %v474_v42  ;;  %v479_v42 = vld [vmem:[%s8853_s21 + $0x128] sm:$0xff]  ;;  %v1941_v5 = vor.u32 %v1940_v52, %v1939_v55 }
  0x69   : > { %921 = vmatprep.mubr.bf16.mxu0 %v13282_v2  ;;  %1253 = vmatprep.mubr.bf16.mxu1 %v13282_v2 }
  0x6a   : > { %13438 = vst [vmem:[#allocation13_spill] sm:$0xff] %v9215_v61  ;;  %v657_v0 = vshll.u32 %v9215_v61, 16  ;;  %v1933_v20 = vor.u32 %v9157_v10, %v1931_v21  ;;  %v661_v21 = vshrl.u32 %v9215_v61, 16 }
  0x70   : > { %7315 = vmatmul.mubr.msk.bf16.gmra.mxu0 %vm748_vm1, %v604_v38  ;;  %7347 = vmatmul.mubr.msk.bf16.gmra.mxu1 %vm748_vm1, %v9075_v53  ;;  %v473_v38 = vld [vmem:[%s8853_s21 + $0xf8] sm:$0xff] }
  0x71   : > { %931 = vmatprep.mubr.bf16.mxu0 %v13282_v2  ;;  %1263 = vmatprep.mubr.bf16.mxu1 %v13282_v2  ;;  %v9204_v50 = vpack.c.bf16 %v473_v38, %v472_v37  ;;  %v1935_v37 = vrot.slane %v629_v28, 1  ;;  %v665_v38 = vshll.u32 %v9245_v24, 16 }
  0x73   : > { %13437 = vst [vmem:[#allocation12_spill] sm:$0xff] %v9204_v50  ;;  %v649_v60 = vshll.u32 %v9204_v50, 16  ;;  %v1937_v32 = vor.u32 %v1936_v17, %v1935_v37  ;;  %v667_v28 = vrot.slane %v665_v38, 1 }
  0x75   : > { %v651_v62 = vrot.slane %v649_v60, 1  ;;  %v9267_v45 = vsel %vm1887_vm2, %v1933_v20, %v1937_v32 }
  0x78   : > { %7316 = vmatmul.mubr.msk.bf16.gmra.mxu0 %vm748_vm1, %v612_v1  ;;  %7348 = vmatmul.mubr.msk.bf16.gmra.mxu1 %vm748_vm1, %v9098_v15  ;;  %v1929_v1 = vor.u32 %v1928_v59, %v1927_v4  ;;  %v653_v59 = vshrl.u32 %v9204_v50, 16  ;;  %v659_v4 = vrot.slane %v657_v0, 1 }
  0x79   : > { %941 = vmatprep.mubr.bf16.mxu0 %v13282_v2  ;;  %1273 = vmatprep.mubr.bf16.mxu1 %v13282_v2 }
  0x7a   : > { %v9231_v8 = vsel %vm1887_vm2, %v9206_v51, %v1929_v1  ;;  %v655_v23 = vor.u32 %v653_v59, %v651_v62  ;;  %v663_v11 = vor.u32 %v661_v21, %v659_v4 }
  0x7c   : > { %v660_v10 = vsel %vm528_vm0, %v655_v23, %v659_v4  ;;  %v9284_v4 = vsel %vm1887_vm2, %v1937_v32, %v1941_v5  ;;  %v1943_v23 = vrot.slane %v645_v58, 1  ;;  %v1948_v58 = vrot.slane %v649_v60, 2 }
  0x7d   : > { %v1952_v60 = vrot.slane %v657_v0, 2  ;;  %v1956_v0 = vrot.slane %v665_v38, 2  ;;  %v1409_v38 = vrot.slane %v8886_v36, 1 }
  0x80   : > { %7317 = vmatmul.mubr.msk.bf16.gmra.mxu0 %vm748_vm1, %v620_v19  ;;  %7349 = vmatmul.mubr.msk.bf16.gmra.mxu1 %vm748_vm1, %v9121_v34  ;;  %v652_v19 = vsel %vm528_vm0, %v647_v7, %v651_v62  ;;  %v669_v62 = vshrl.u32 %v9245_v24, 16  ;;  %v480_v7 = vld [vmem:[%s8853_s21 + $0x130] sm:$0xff]  ;;  %s8669_s21 = smov 122  }
  0x81   : > { %951 = vmatprep.mubr.bf16.mxu0 %v13282_v2  ;;  %1283 = vmatprep.mubr.bf16.mxu1 %v13282_v2 }
  0x82   : > { %v671_v22 = vor.u32 %v669_v62, %v667_v28 }
  0x88   : > { %7318 = vmatmul.mubr.msk.bf16.gmra.mxu0 %vm748_vm1, %v628_v26  ;;  %7350 = vmatmul.mubr.msk.bf16.gmra.mxu1 %vm748_vm1, %v9127_v31  ;;  %v9248_v26 = vsel %vm1887_vm2, %v1929_v1, %v1933_v20  ;;  %v1944_v20 = vrot.slane %v641_v29, 2 }
  0x89   : > { %961 = vmatprep.mubr.bf16.mxu0 %v13282_v2  ;;  %1293 = vmatprep.mubr.bf16.mxu1 %v13282_v2 }
  0x90   : > { %7319 = vmatmul.mubr.msk.bf16.gmra.mxu0 %vm748_vm1, %v636_v35  ;;  %7351 = vmatmul.mubr.msk.bf16.gmra.mxu1 %vm748_vm1, %v9146_v18  ;;  %v9264_v35 = vpack.c.bf16 %v479_v42, %v478_v39  ;;  %v1945_v39 = vor.u32 %v1944_v20, %v1943_v23  ;;  %v1407_v20 = vrot.slane %v8875_v30, 1 }
  0x91   : > { %971 = vmatprep.mubr.bf16.mxu0 %v13282_v2  ;;  %1303 = vmatprep.mubr.bf16.mxu1 %v13282_v2 }
  0x92   : > { %13440 = vst [vmem:[#allocation15_spill] sm:$0xff] %v9264_v35  ;;  %v673_v1 = vshll.u32 %v9264_v35, 16  ;;  %v677_v37 = vshrl.u32 %v9264_v35, 16  ;;  %v9297_v29 = vsel %vm1887_vm2, %v1941_v5, %v1945_v39  ;;  %v501_v5 = vpack.c.bf16 %v480_v7, %v480_v7 }
  0x94   : > { %v675_v44 = vrot.slane %v673_v1, 1 }
  0x96   : > { %v676_v17 = vsel %vm528_vm0, %v671_v22, %v675_v44  ;;  %v679_v42 = vor.u32 %v677_v37, %v675_v44  ;;  %v1406_v44 = vrot.slane %v8871_v27, 1 }
  0x98   : > { %7320 = vmatmul.mubr.msk.bf16.gmra.mxu0 %vm748_vm1, %v644_v57  ;;  %7352 = vmatmul.mubr.msk.bf16.gmra.mxu1 %vm748_vm1, %v9167_v14  ;;  %v668_v57 = vsel %vm528_vm0, %v663_v11, %v667_v28  ;;  %v1947_v11 = vrot.slane %v653_v59, 1  ;;  %v1951_v59 = vrot.slane %v661_v21, 1  ;;  %v1955_v21 = vrot.slane %v669_v62, 1 }
  0x99   : > { %981 = vmatprep.mubr.bf16.mxu0 %v13282_v2  ;;  %1313 = vmatprep.mubr.bf16.mxu1 %v13282_v2 }
  0x9a   : > { %v1949_v52 = vor.u32 %v1948_v58, %v1947_v11  ;;  %v1953_v22 = vor.u32 %v1952_v60, %v1951_v59  ;;  %v1960_v58 = vrot.slane %v673_v1, 2  ;;  %v1959_v11 = vrot.slane %v677_v37, 1 }
  0x9b   : > { %v1411_v1 = vrot.slane %v8914_v49, 1 }
  0x9c   : > { %v9320_v23 = vsel %vm1887_vm2, %v1949_v52, %v1953_v22  ;;  %v1961_v60 = vor.u32 %v1960_v58, %v1959_v11 }
  0xa0   : > { %7321 = vmatmul.mubr.msk.bf16.gmra.mxu0 %vm748_vm1, %v652_v19  ;;  %7353 = vmatmul.mubr.msk.bf16.gmra.mxu1 %vm748_vm1, %v9184_v25  ;;  %v9281_v19 = vpack.c.bf16 %v481_v47, %v480_v7  ;;  %v1408_v7 = vsel %vm1405_vm3, %v1406_v44, %v1407_v20 }
  0xa1   : > { %991 = vmatprep.mubr.bf16.mxu0 %v13282_v2  ;;  %1323 = vmatprep.mubr.bf16.mxu1 %v13282_v2 }
  0xa2   : > { %13441 = vst [vmem:[#allocation16_spill] sm:$0xff] %v9281_v19  ;;  %v685_v55 = vshrl.u32 %v9281_v19, 16 }
  0xa8   : > { %7322 = vmatmul.mubr.msk.bf16.gmra.mxu0 %vm748_vm1, %v660_v10  ;;  %7354 = vmatmul.mubr.msk.bf16.gmra.mxu1 %vm748_vm1, %v9204_v50  ;;  %v681_v10 = vshll.u32 %v9281_v19, 16 }
  0xa9   : > { %1001 = vmatprep.mubr.bf16.mxu0 %v13282_v2  ;;  %1333 = vmatprep.mubr.bf16.mxu1 %v13282_v2 }
  0xaa   : > { %v683_v32 = vrot.slane %v681_v10, 1  ;;  %v1964_v59 = vrot.slane %v681_v10, 2  ;;  %v8347_v10 = vld [vmem:[%s13265_s1 + $0x1a0] ss:$8 sps:$4 sm:$0xff]  }
  0xac   : > { %v684_v28 = vsel %vm528_vm0, %v679_v42, %v683_v32  ;;  %v687_v47 = vor.u32 %v685_v55, %v683_v32  ;;  %v1957_v42 = vor.u32 %v1956_v0, %v1955_v21  ;;  %v8341_v32 = vld [vmem:[%s13265_s1 + $0x1c0] ss:$8 sps:$4 sm:$0xff]   ;;  %v8350_v0 = vld [vmem:[%s13265_s1 + $0x190] ss:$8 sps:$4 sm:$0xff]   ;;  %v1415_v21 = vrot.slane %v8976_v12, 1 }
  0xae   : > { %v9338_v62 = vsel %vm1887_vm2, %v1953_v22, %v1957_v42  ;;  %v9357_v37 = vsel %vm1887_vm2, %v1957_v42, %v1961_v60 }
  0xb0   : > { %7323 = vmatmul.mubr.msk.bf16.gmra.mxu0 %vm748_vm1, %v668_v57  ;;  %7355 = vmatmul.mubr.msk.bf16.gmra.mxu1 %vm748_vm1, %v9215_v61  ;;  %v9309_v57 = vsel %vm1887_vm2, %v1945_v39, %v1949_v52  ;;  %v8343_v39 = vld [vmem:[%s13265_s1 + $0x1c4] ss:$8 sps:$4 sm:$0xff]   ;;  %v8344_v52 = vld [vmem:[%s13265_s1 + $0x1b0] ss:$8 sps:$4 sm:$0xff]  }
  0xb1   : > { %1011 = vmatprep.mubr.bf16.mxu0 %v13282_v2  ;;  %1343 = vmatprep.mubr.bf16.mxu1 %v13282_v2 }
  0xb8   : > { %7324 = vmatmul.mubr.msk.bf16.gmra.mxu0 %vm748_vm1, %v676_v17  ;;  %7356 = vmatmul.mubr.msk.bf16.gmra.mxu1 %vm748_vm1, %v9245_v24  ;;  %v8338_v17 = vld [vmem:[%s13265_s1 + $0x1d0] ss:$8 sps:$4 sm:$0xff]  }
  0xb9   : > { %1021 = vmatprep.mubr.bf16.mxu0 %v13282_v2  ;;  %1353 = vmatprep.mubr.bf16.mxu1 %v13282_v2 }
  0xc0   : > { %7325 = vmatmul.mubr.msk.bf16.gmra.mxu0 %vm748_vm1, %v684_v28  ;;  %7357 = vmatmul.mubr.msk.bf16.gmra.mxu1 %vm748_vm1, %v9264_v35  ;;  %v1410_v28 = vsel %vm1405_vm3, %v1407_v20, %v1409_v38  ;;  %v8352_v20 = vld [vmem:[%s13265_s1 + $0x194] ss:$8 sps:$4 sm:$0xff]  }
  0xc1   : > { %1031 = vmatprep.mubr.bf16.mxu0 %v13282_v2  ;;  %1363 = vmatprep.mubr.bf16.mxu1 %v13282_v2 }
  0xc8   : > { %7326 = vmatmul.mubr.msk.bf16.gmra.mxu0 %vm748_vm1, %v687_v47  ;;  %7358 = vmatmul.mubr.msk.bf16.gmra.mxu1 %vm748_vm1, %v501_v5  ;;  %v1963_v47 = vrot.slane %v685_v55, 1  ;;  %v1412_v5 = vsel %vm1405_vm3, %v1409_v38, %v1411_v1  ;;  %v8349_v55 = vld [vmem:[%s13265_s1 + $0x1a4] ss:$8 sps:$4 sm:$0xff]  }
  0xc9   : > { %1597 = vmatprep.mubr.bf16.mxu0 %v13282_v2  ;;  %2119 = vmatprep.mubr.bf16.mxu1 %v13282_v2 }
  0xca   : > { %v9360_v22 = vor.u32 %v1964_v59, %v1963_v47  ;;  %v1916_v59 = vrot.slane %v585_v48, 2 }
  0xcc   : > { %v9376_v44 = vsel %vm1887_vm2, %v1961_v60, %v9360_v22 }
  0xd0   : > { %7383 = vmatmul.mubr.msk.bf16.vlgmr.msra.gmra.mxu0 %vm748_vm1, %v1408_v7  ;;  %7427 = vmatmul.mubr.msk.bf16.vlgmr.msra.gmra.mxu1 %vm748_vm1, %v9057_v56  ;;  %v8346_v56 = vld [vmem:[%s13265_s1 + $0x1b4] ss:$8 sps:$4 sm:$0xff]   ;;  %v8355_v7 = vld [vmem:[%s13265_s1 + $0x184] ss:$8 sps:$4 sm:$0xff]  }
  0xd1   : > { %1607 = vmatprep.mubr.bf16.mxu0 %v13282_v2  ;;  %2129 = vmatprep.mubr.bf16.mxu1 %v13282_v2 }
  0xd2   : > { %2574 = vmatpush1.bf16.msra.mxu0 %v8338_v17  ;;  %v8353_v17 = vld [vmem:[%s13265_s1 + $0x180] ss:$8 sps:$4 sm:$0xff]  }
  0xd3   : > { %2575 = vmatprep.subr.bf16.mxu0 %v8343_v39 }
  0xd6   : > { %2576 = vmatpush1.bf16.msra.mxu0 %v8341_v32  ;;  %v1417_v32 = vrot.slane %v9014_v33, 1 }
  0xd7   : > { %2577 = vmatprep.subr.bf16.mxu0 %v8346_v56 }
  0xd8   : > { %7384 = vmatmul.mubr.msk.bf16.gmra.mxu0 %vm748_vm1, %v1410_v28  ;;  %7428 = vmatmul.mubr.msk.bf16.gmra.mxu1 %vm748_vm1, %v9078_v41  ;;  %v1413_v41 = vrot.slane %v8948_v63, 1 }
  0xd9   : > { %1617 = vmatprep.mubr.bf16.mxu0 %v13282_v2  ;;  %2139 = vmatprep.mubr.bf16.mxu1 %v13282_v2 }
  0xda   : > { %2578 = vmatpush1.bf16.msra.mxu0 %v8344_v52  ;;  %v1416_v39 = vsel %vm1405_vm3, %v1413_v41, %v1415_v21 }
  0xdb   : > { %2579 = vmatprep.subr.bf16.mxu0 %v8349_v55 }
  0xde   : > { %2580 = vmatpush1.bf16.msra.mxu0 %v8347_v10 }
  0xdf   : > { %2581 = vmatprep.subr.bf16.mxu0 %v8352_v20 }
  0xe0   : > { %7385 = vmatmul.mubr.msk.bf16.gmra.mxu0 %vm748_vm1, %v1412_v5  ;;  %7429 = vmatmul.mubr.msk.bf16.gmra.mxu1 %vm748_vm1, %v9101_v54  ;;  %v1414_v54 = vsel %vm1405_vm3, %v1411_v1, %v1413_v41  ;;  %v1418_v1 = vsel %vm1405_vm3, %v1415_v21, %v1417_v32 }
  0xe1   : > { %1627 = vmatprep.mubr.bf16.mxu0 %v13282_v2  ;;  %2149 = vmatprep.mubr.bf16.mxu1 %v13282_v2 }
  0xe2   : > { %2582 = vmatpush1.bf16.msra.mxu0 %v8350_v0 }
  0xe3   : > { %2583 = vmatprep.subr.bf16.mxu0 %v8355_v7 }
  0xe6   : > { %2584 = vmatpush1.bf16.msra.mxu0 %v8353_v17 }
  0xe8   : > { %7386 = vmatmul.mubr.msk.bf16.gmra.mxu0 %vm748_vm1, %v1414_v54  ;;  %7430 = vmatmul.mubr.msk.bf16.gmra.mxu1 %vm748_vm1, %v9124_v6  ;;  %v1419_v54 = vrot.slane %v9031_v43, 1 }
  0xe9   : > { %1637 = vmatprep.mubr.bf16.mxu0 %v13282_v2  ;;  %2159 = vmatprep.mubr.bf16.mxu1 %v13282_v2 }
  0xf0   : > { %v843_v6 = vpop.f32.mrf.mxu0  ;;  %v1175_v42 = vpop.f32.mrf.mxu1  ;;  %7387 = vmatmul.mubr.msk.bf16.gmra.mxu0 %vm748_vm1, %v1416_v39  ;;  %7431 = vmatmul.mubr.msk.bf16.gmra.mxu1 %vm748_vm1, %v9144_v40  ;;  %v1915_v40 = vrot.slane %v589_v3, 1  ;;  %v1420_v39 = vsel %vm1405_vm3, %v1417_v32, %v1419_v54 }
  0xf1   : > { %v9401_v38 = vadd.f32 %v1175_v42, %v843_v6  ;;  %1647 = vmatprep.mubr.bf16.mxu0 %v13282_v2  ;;  %2169 = vmatprep.mubr.bf16.mxu1 %v13282_v2  ;;  %v1919_v42 = vrot.slane %v597_v16, 1 }
  0xf2   : > { %v845_v58 = vpop.f32.mrf.mxu0  ;;  %v1177_v11 = vpop.f32.mrf.mxu1  ;;  %v1917_v48 = vor.u32 %v1916_v59, %v1915_v40 }
  0xf3   : > { %v9406_v56 = vadd.f32 %v1177_v11, %v845_v58  ;;  %v1920_v58 = vrot.slane %v593_v9, 2 }
  0xf4   : > { %v847_v28 = vpop.f32.mrf.mxu0  ;;  %v1179_v52 = vpop.f32.mrf.mxu1 }
  0xf5   : > { %v9408_v60 = vadd.f32 %v1179_v52, %v847_v28  ;;  %v1921_v16 = vor.u32 %v1920_v58, %v1919_v42  ;;  %v1423_v58 = vrot.slane %v9098_v15, 1 }
  0xf6   : > { %v849_v47 = vpop.f32.mrf.mxu0  ;;  %v1181_v5 = vpop.f32.mrf.mxu1 }
  0xf7   : > { %v9415_v41 = vadd.f32 %v1181_v5, %v849_v47 }
  0xf8   : > { %v853_v10 = vpop.f32.mrf.mxu0  ;;  %v1185_v55 = vpop.f32.mrf.mxu1  ;;  %7388 = vmatmul.mubr.msk.bf16.gmra.mxu0 %vm748_vm1, %v1418_v1  ;;  %7432 = vmatmul.mubr.msk.bf16.gmra.mxu1 %vm748_vm1, %v9171_v46  ;;  %v1918_v46 = vsel %vm1887_vm2, %v9160_v13, %v1917_v48  ;;  %v1421_v13 = vrot.slane %v9075_v53, 1 }
  0xf9   : > { %v9421_v20 = vadd.f32 %v1185_v55, %v853_v10  ;;  %1657 = vmatprep.mubr.bf16.mxu0 %v13282_v2  ;;  %2179 = vmatprep.mubr.bf16.mxu1 %v13282_v2 }
  0xfa   : > { %v855_v3 = vpop.f32.mrf.mxu0  ;;  %v1187_v0 = vpop.f32.mrf.mxu1 }
  0xfb   : > { %v9425_v21 = vadd.f32 %v1187_v0, %v855_v3  ;;  %v1422_v3 = vsel %vm1405_vm3, %v1419_v54, %v1421_v13  ;;  %v1922_v0 = vsel %vm1887_vm2, %v1917_v48, %v1921_v16 }
  0xfc   : > { %v857_v7 = vpop.f32.mrf.mxu0  ;;  %v1189_v17 = vpop.f32.mrf.mxu1 }
  0xfd   : > { %v9428_v6 = vadd.f32 %v1189_v17, %v857_v7 }
  0xfe   : > { %v859_v11 = vpop.f32.mrf.mxu0  ;;  %v1191_v28 = vpop.f32.mrf.mxu1 }
  0xff   : > { %v9436_v52 = vadd.f32 %v1191_v28, %v859_v11 }
 0x100   : > { %v863_v1 = vpop.f32.mrf.mxu0  ;;  %v1195_v40 = vpop.f32.mrf.mxu1  ;;  %7389 = vmatmul.mubr.msk.bf16.gmra.mxu0 %vm748_vm1, %v1420_v39  ;;  %7433 = vmatmul.mubr.msk.bf16.gmra.mxu1 %vm748_vm1, %v1918_v46 }
 0x101   : > { %v9440_v32 = vadd.f32 %v1195_v40, %v863_v1  ;;  %1667 = vmatprep.mubr.bf16.mxu0 %v13282_v2  ;;  %2189 = vmatprep.mubr.bf16.mxu1 %v13282_v2 }
 0x102   : > { %v865_v9 = vpop.f32.mrf.mxu0  ;;  %v1197_v59 = vpop.f32.mrf.mxu1 }
 0x103   : > { %v9445_v47 = vadd.f32 %v1197_v59, %v865_v9  ;;  %v1424_v59 = vsel %vm1405_vm3, %v1421_v13, %v1423_v58 }
 0x104   : > { %v867_v5 = vpop.f32.mrf.mxu0  ;;  %v1199_v10 = vpop.f32.mrf.mxu1 }
 0x105   : > { %v9447_v55 = vadd.f32 %v1199_v10, %v867_v5  ;;  %v1926_v5 = vsel %vm1887_vm2, %v1921_v16, %v9206_v51 }
 0x106   : > { %v869_v7 = vpop.f32.mrf.mxu0  ;;  %v1201_v17 = vpop.f32.mrf.mxu1 }
 0x107   : > { %v9451_v39 = vadd.f32 %v1201_v17, %v869_v7 }
 0x108   : > { %v873_v46 = vpop.f32.mrf.mxu0  ;;  %v1205_v11 = vpop.f32.mrf.mxu1  ;;  %7390 = vmatmul.mubr.msk.bf16.gmra.mxu0 %vm748_vm1, %v1422_v3  ;;  %7434 = vmatmul.mubr.msk.bf16.gmra.mxu1 %vm748_vm1, %v1922_v0 }
 0x109   : > { %v9455_v42 = vadd.f32 %v1205_v11, %v873_v46  ;;  %1677 = vmatprep.mubr.bf16.mxu0 %v13282_v2  ;;  %2199 = vmatprep.mubr.bf16.mxu1 %v13282_v2  ;;  %v1425_v11 = vrot.slane %v9121_v34, 1 }
 0x10a   : > { %v875_v54 = vpop.f32.mrf.mxu0  ;;  %v1207_v48 = vpop.f32.mrf.mxu1 }
 0x10b   : > { %v9460_v28 = vadd.f32 %v1207_v48, %v875_v54 }
 0x10c   : > { %v877_v1 = vpop.f32.mrf.mxu0  ;;  %v1209_v40 = vpop.f32.mrf.mxu1 }
 0x10d   : > { %v9462_v9 = vadd.f32 %v1209_v40, %v877_v1  ;;  %v1426_v40 = vsel %vm1405_vm3, %v1423_v58, %v1425_v11 }
 0x10e   : > { %v879_v10 = vpop.f32.mrf.mxu0  ;;  %v1211_v3 = vpop.f32.mrf.mxu1 }
 0x10f   : > { %v9467_v0 = vadd.f32 %v1211_v3, %v879_v10 }
 0x110   : > { %v883_v7 = vpop.f32.mrf.mxu0  ;;  %v1215_v17 = vpop.f32.mrf.mxu1  ;;  %7391 = vmatmul.mubr.msk.bf16.gmra.mxu0 %vm748_vm1, %v1424_v59  ;;  %7435 = vmatmul.mubr.msk.bf16.gmra.mxu1 %vm748_vm1, %v1926_v5 }
 0x111   : > { %v9471_v46 = vadd.f32 %v1215_v17, %v883_v7  ;;  %1687 = vmatprep.mubr.bf16.mxu0 %v13282_v2  ;;  %2209 = vmatprep.mubr.bf16.mxu1 %v13282_v2 }
 0x112   : > { %v885_v13 = vpop.f32.mrf.mxu0  ;;  %v1217_v51 = vpop.f32.mrf.mxu1 }
 0x113   : > { %v9476_v16 = vadd.f32 %v1217_v51, %v885_v13  ;;  %v1427_v13 = vrot.slane %v9127_v31, 1 }
 0x114   : > { %v887_v54 = vpop.f32.mrf.mxu0  ;;  %v1219_v48 = vpop.f32.mrf.mxu1 }
 0x115   : > { %v9478_v1 = vadd.f32 %v1219_v48, %v887_v54 }
 0x116   : > { %v889_v59 = vpop.f32.mrf.mxu0  ;;  %v1221_v5 = vpop.f32.mrf.mxu1 }
 0x117   : > { %v9481_v10 = vadd.f32 %v1221_v5, %v889_v59 }
 0x118   : > { %v893_v3 = vpop.f32.mrf.mxu0  ;;  %v1225_v7 = vpop.f32.mrf.mxu1  ;;  %7392 = vmatmul.mubr.msk.bf16.gmra.mxu0 %vm748_vm1, %v1426_v40  ;;  %7436 = vmatmul.mubr.msk.bf16.gmra.mxu1 %vm748_vm1, %v9231_v8  ;;  %v1428_v40 = vsel %vm1405_vm3, %v1425_v11, %v1427_v13 }
 0x119   : > { %13442 = vst [vmem:[#allocation17_spill] sm:$0xff] %v9481_v10  ;;  %v9486_v17 = vadd.f32 %v1225_v7, %v893_v3  ;;  %1697 = vmatprep.mubr.bf16.mxu0 %v13282_v2  ;;  %2219 = vmatprep.mubr.bf16.mxu1 %v13282_v2 }
 0x11a   : > { %v895_v58 = vpop.f32.mrf.mxu0  ;;  %v1227_v51 = vpop.f32.mrf.mxu1 }
 0x11b   : > { %13443 = vst [vmem:[#allocation18_spill] sm:$0xff] %v9486_v17  ;;  %v9491_v54 = vadd.f32 %v1227_v51, %v895_v58  ;;  %v13447_v58 = vmov 0   ;;  %v1429_v51 = vrot.slane %v9146_v18, 1 }
 0x11c   : > { %v897_v48 = vpop.f32.mrf.mxu0  ;;  %v1229_v59 = vpop.f32.mrf.mxu1 }
 0x11d   : > { %v9493_v5 = vadd.f32 %v1229_v59, %v897_v48 }
 0x11e   : > { %v899_v10 = vpop.f32.mrf.mxu0  ;;  %v1231_v8 = vpop.f32.mrf.mxu1 }
 0x11f   : > { %13444 = vst [vmem:[#allocation19_spill] sm:$0xff] %v9493_v5  ;;  %v9496_v3 = vadd.f32 %v1231_v8, %v899_v10 }
 0x120   : > { %v903_v7 = vpop.f32.mrf.mxu0  ;;  %v1235_v17 = vpop.f32.mrf.mxu1  ;;  %7393 = vmatmul.mubr.msk.bf16.gmra.mxu0 %vm748_vm1, %v1428_v40  ;;  %7437 = vmatmul.mubr.msk.bf16.gmra.mxu1 %vm748_vm1, %v9248_v26  ;;  %v1430_v40 = vsel %vm1405_vm3, %v1427_v13, %v1429_v51 }
 0x121   : > { %13445 = vst [vmem:[#allocation20_spill] sm:$0xff] %v9496_v3  ;;  %v9501_v2 = vadd.f32 %v1235_v17, %v903_v7  ;;  %1707 = vmatprep.mubr.bf16.mxu0 %v13447_v58  ;;  %2229 = vmatprep.mubr.bf16.mxu1 %v13447_v58 }
 0x122   : > { %v905_v11 = vpop.f32.mrf.mxu0  ;;  %v1237_v48 = vpop.f32.mrf.mxu1 }
 0x123   : > { %13446 = vst [vmem:[#allocation21_spill] sm:$0xff] %v9501_v2  ;;  %v9506_v59 = vadd.f32 %v1237_v48, %v905_v11  ;;  %v1431_v11 = vrot.slane %v9167_v14, 1 }
 0x124   : > { %v907_v10 = vpop.f32.mrf.mxu0  ;;  %v1239_v8 = vpop.f32.mrf.mxu1 }
 0x125   : > { %v9508_v3 = vadd.f32 %v1239_v8, %v907_v10 }
 0x126   : > { %v909_v5 = vpop.f32.mrf.mxu0  ;;  %v1241_v26 = vpop.f32.mrf.mxu1 }
 0x127   : > { %v9511_v17 = vadd.f32 %v1241_v26, %v909_v5 }
 0x128   : > { %v913_v7 = vpop.f32.mrf.mxu0  ;;  %v1245_v2 = vpop.f32.mrf.mxu1  ;;  %7394 = vmatmul.mubr.msk.bf16.gmra.mxu0 %vm748_vm1, %v1430_v40  ;;  %7438 = vmatmul.mubr.msk.bf16.gmra.mxu1 %vm748_vm1, %v9267_v45  ;;  %v1432_v40 = vsel %vm1405_vm3, %v1429_v51, %v1431_v11 }
 0x129   : > { %13448 = vst [vmem:[#allocation22_spill] sm:$0xff] %v9511_v17  ;;  %v9516_v18 = vadd.f32 %v1245_v2, %v913_v7  ;;  %1717 = vmatprep.mubr.bf16.mxu0 %v13447_v58  ;;  %2239 = vmatprep.mubr.bf16.mxu1 %v13447_v58 }
 0x12a   : > { %v915_v13 = vpop.f32.mrf.mxu0  ;;  %v1247_v48 = vpop.f32.mrf.mxu1 }
 0x12b   : > { %13449 = vst [vmem:[#allocation23_spill] sm:$0xff] %v9516_v18  ;;  %v9521_v10 = vadd.f32 %v1247_v48, %v915_v13  ;;  %v1433_v13 = vrot.slane %v9184_v25, 1 }
 0x12c   : > { %v917_v5 = vpop.f32.mrf.mxu0  ;;  %v1249_v8 = vpop.f32.mrf.mxu1 }
 0x12d   : > { %v9523_v26 = vadd.f32 %v1249_v8, %v917_v5 }
 0x12e   : > { %v919_v17 = vpop.f32.mrf.mxu0  ;;  %v1251_v45 = vpop.f32.mrf.mxu1 }
 0x12f   : > { %v9526_v2 = vadd.f32 %v1251_v45, %v919_v17 }
 0x130   : > { %v923_v7 = vpop.f32.mrf.mxu0  ;;  %v1255_v18 = vpop.f32.mrf.mxu1  ;;  %7395 = vmatmul.mubr.msk.bf16.gmra.mxu0 %vm748_vm1, %v1432_v40  ;;  %7439 = vmatmul.mubr.msk.bf16.gmra.mxu1 %vm748_vm1, %v9284_v4  ;;  %v1434_v40 = vsel %vm1405_vm3, %v1431_v11, %v1433_v13 }
 0x131   : > { %13450 = vst [vmem:[#allocation24_spill] sm:$0xff] %v9526_v2  ;;  %v9531_v14 = vadd.f32 %v1255_v18, %v923_v7  ;;  %1727 = vmatprep.mubr.bf16.mxu0 %v13447_v58  ;;  %2249 = vmatprep.mubr.bf16.mxu1 %v13447_v58 }
 0x132   : > { %v925_v51 = vpop.f32.mrf.mxu0  ;;  %v1257_v48 = vpop.f32.mrf.mxu1 }
 0x133   : > { %13451 = vst [vmem:[#allocation25_spill] sm:$0xff] %v9531_v14  ;;  %v9536_v5 = vadd.f32 %v1257_v48, %v925_v51  ;;  %v1435_v51 = vrot.slane %v9204_v50, 1 }
 0x134   : > { %v927_v17 = vpop.f32.mrf.mxu0  ;;  %v1259_v8 = vpop.f32.mrf.mxu1 }
 0x135   : > { %v9538_v45 = vadd.f32 %v1259_v8, %v927_v17 }
 0x136   : > { %v929_v2 = vpop.f32.mrf.mxu0  ;;  %v1261_v4 = vpop.f32.mrf.mxu1 }
 0x137   : > { %v9541_v18 = vadd.f32 %v1261_v4, %v929_v2 }
 0x138   : > { %v933_v7 = vpop.f32.mrf.mxu0  ;;  %v1265_v14 = vpop.f32.mrf.mxu1  ;;  %7396 = vmatmul.mubr.msk.bf16.gmra.mxu0 %vm748_vm1, %v1434_v40  ;;  %7440 = vmatmul.mubr.msk.bf16.gmra.mxu1 %vm748_vm1, %v9297_v29  ;;  %v1436_v40 = vsel %vm1405_vm3, %v1433_v13, %v1435_v51 }
 0x139   : > { %13452 = vst [vmem:[#allocation26_spill] sm:$0xff] %v9541_v18  ;;  %v9546_v25 = vadd.f32 %v1265_v14, %v933_v7  ;;  %1737 = vmatprep.mubr.bf16.mxu0 %v13447_v58  ;;  %2259 = vmatprep.mubr.bf16.mxu1 %v13447_v58 }
 0x13a   : > { %v935_v11 = vpop.f32.mrf.mxu0  ;;  %v1267_v48 = vpop.f32.mrf.mxu1 }
 0x13b   : > { %13453 = vst [vmem:[#allocation27_spill] sm:$0xff] %v9546_v25  ;;  %v9551_v17 = vadd.f32 %v1267_v48, %v935_v11  ;;  %v1437_v11 = vrot.slane %v9215_v61, 1 }
 0x13c   : > { %v937_v2 = vpop.f32.mrf.mxu0  ;;  %v1269_v8 = vpop.f32.mrf.mxu1 }
 0x13d   : > { %v9553_v4 = vadd.f32 %v1269_v8, %v937_v2 }
 0x13e   : > { %v939_v18 = vpop.f32.mrf.mxu0  ;;  %v1271_v29 = vpop.f32.mrf.mxu1 }
 0x13f   : > { %v9556_v14 = vadd.f32 %v1271_v29, %v939_v18 }
 0x140   : > { %v943_v7 = vpop.f32.mrf.mxu0  ;;  %v1275_v25 = vpop.f32.mrf.mxu1  ;;  %7397 = vmatmul.mubr.msk.bf16.gmra.mxu0 %vm748_vm1, %v1436_v40  ;;  %7441 = vmatmul.mubr.msk.bf16.gmra.mxu1 %vm748_vm1, %v9309_v57  ;;  %v1438_v40 = vsel %vm1405_vm3, %v1435_v51, %v1437_v11 }
 0x141   : > { %13454 = vst [vmem:[#allocation28_spill] sm:$0xff] %v9556_v14  ;;  %v9561_v50 = vadd.f32 %v1275_v25, %v943_v7  ;;  %1747 = vmatprep.mubr.bf16.mxu0 %v13447_v58  ;;  %2269 = vmatprep.mubr.bf16.mxu1 %v13447_v58 }
 0x142   : > { %v945_v13 = vpop.f32.mrf.mxu0  ;;  %v1277_v48 = vpop.f32.mrf.mxu1 }
 0x143   : > { %13455 = vst [vmem:[#allocation29_spill] sm:$0xff] %v9561_v50  ;;  %v9566_v2 = vadd.f32 %v1277_v48, %v945_v13  ;;  %v1439_v13 = vrot.slane %v9245_v24, 1 }
 0x144   : > { %v947_v18 = vpop.f32.mrf.mxu0  ;;  %v1279_v8 = vpop.f32.mrf.mxu1 }
 0x145   : > { %v9568_v29 = vadd.f32 %v1279_v8, %v947_v18 }
 0x146   : > { %v949_v14 = vpop.f32.mrf.mxu0  ;;  %v1281_v57 = vpop.f32.mrf.mxu1 }
 0x147   : > { %v9571_v25 = vadd.f32 %v1281_v57, %v949_v14 }
 0x148   : > { %v953_v7 = vpop.f32.mrf.mxu0  ;;  %v1285_v50 = vpop.f32.mrf.mxu1  ;;  %7398 = vmatmul.mubr.msk.bf16.gmra.mxu0 %vm748_vm1, %v1438_v40  ;;  %7442 = vmatmul.mubr.msk.bf16.gmra.mxu1 %vm748_vm1, %v9320_v23  ;;  %v1440_v40 = vsel %vm1405_vm3, %v1437_v11, %v1439_v13 }
 0x149   : > { %13456 = vst [vmem:[#allocation30_spill] sm:$0xff] %v9571_v25  ;;  %v9576_v61 = vadd.f32 %v1285_v50, %v953_v7  ;;  %1757 = vmatprep.mubr.bf16.mxu0 %v13447_v58  ;;  %2279 = vmatprep.mubr.bf16.mxu1 %v13447_v58 }
 0x14a   : > { %v955_v51 = vpop.f32.mrf.mxu0  ;;  %v1287_v48 = vpop.f32.mrf.mxu1 }
 0x14b   : > { %13457 = vst [vmem:[#allocation31_spill] sm:$0xff] %v9576_v61  ;;  %v9581_v18 = vadd.f32 %v1287_v48, %v955_v51  ;;  %v1441_v51 = vrot.slane %v9264_v35, 1 }
 0x14c   : > { %v957_v14 = vpop.f32.mrf.mxu0  ;;  %v1289_v8 = vpop.f32.mrf.mxu1 }
 0x14d   : > { %v9583_v57 = vadd.f32 %v1289_v8, %v957_v14 }
 0x14e   : > { %v959_v25 = vpop.f32.mrf.mxu0  ;;  %v1291_v23 = vpop.f32.mrf.mxu1 }
 0x14f   : > { %v9586_v50 = vadd.f32 %v1291_v23, %v959_v25 }
 0x150   : > { %v963_v7 = vpop.f32.mrf.mxu0  ;;  %v1295_v61 = vpop.f32.mrf.mxu1  ;;  %7399 = vmatmul.mubr.msk.bf16.gmra.mxu0 %vm748_vm1, %v1440_v40  ;;  %7443 = vmatmul.mubr.msk.bf16.gmra.mxu1 %vm748_vm1, %v9338_v62  ;;  %v1442_v40 = vsel %vm1405_vm3, %v1439_v13, %v1441_v51 }
 0x151   : > { %13458 = vst [vmem:[#allocation32_spill] sm:$0xff] %v9586_v50  ;;  %v9591_v24 = vadd.f32 %v1295_v61, %v963_v7  ;;  %1767 = vmatprep.mubr.bf16.mxu0 %v13447_v58  ;;  %2289 = vmatprep.mubr.bf16.mxu1 %v13447_v58 }
 0x152   : > { %v965_v11 = vpop.f32.mrf.mxu0  ;;  %v1297_v48 = vpop.f32.mrf.mxu1 }
 0x153   : > { %v9596_v14 = vadd.f32 %v1297_v48, %v965_v11  ;;  %v1443_v11 = vrot.slane %v9281_v19, 1 }
 0x154   : > { %v967_v25 = vpop.f32.mrf.mxu0  ;;  %v1299_v8 = vpop.f32.mrf.mxu1 }
 0x155   : > { %v9598_v23 = vadd.f32 %v1299_v8, %v967_v25 }
 0x156   : > { %v9601_v50 = vpop.f32.mrf.mxu0  ;;  %v9603_v61 = vpop.f32.mrf.mxu1 }
 0x157   : > { %13459 = vst [vmem:[#allocation33_spill] sm:$0xff] %v9598_v23  ;;  %13460 = vst [vmem:[#allocation34_spill] sm:$0xff] %v9601_v50 }
 0x158   : > { %13461 = vst [vmem:[#allocation35_spill] sm:$0xff] %v9603_v61  ;;  %v973_v62 = vpop.f32.mrf.mxu0  ;;  %v1305_v7 = vpop.f32.mrf.mxu1  ;;  %7400 = vmatmul.mubr.msk.bf16.gmra.mxu0 %vm748_vm1, %v1442_v40  ;;  %7444 = vmatmul.mubr.msk.bf16.gmra.mxu1 %vm748_vm1, %v9357_v37  ;;  %v1444_v40 = vsel %vm1405_vm3, %v1441_v51, %v1443_v11 }
 0x159   : > { %v9608_v35 = vadd.f32 %v1305_v7, %v973_v62  ;;  %1777 = vmatprep.mubr.bf16.mxu0 %v13447_v58  ;;  %2299 = vmatprep.mubr.bf16.mxu1 %v13447_v58 }
 0x15a   : > { %v975_v13 = vpop.f32.mrf.mxu0  ;;  %v1307_v48 = vpop.f32.mrf.mxu1 }
 0x15b   : > { %v9613_v25 = vadd.f32 %v1307_v48, %v975_v13 }
 0x15c   : > { %v977_v8 = vpop.f32.mrf.mxu0  ;;  %v1309_v61 = vpop.f32.mrf.mxu1 }
 0x15d   : > { %v9615_v50 = vadd.f32 %v1309_v61, %v977_v8 }
 0x15e   : > { %v9618_v23 = vpop.f32.mrf.mxu0  ;;  %v9620_v37 = vpop.f32.mrf.mxu1 }
 0x15f   : > { %13462 = vst [vmem:[#allocation36_spill] sm:$0xff] %v9615_v50  ;;  %13463 = vst [vmem:[#allocation37_spill] sm:$0xff] %v9618_v23 }
 0x160   : > { %13464 = vst [vmem:[#allocation38_spill] sm:$0xff] %v9620_v37  ;;  %v983_v62 = vpop.f32.mrf.mxu0  ;;  %v1315_v7 = vpop.f32.mrf.mxu1  ;;  %7401 = vmatmul.mubr.msk.bf16.gmra.mxu0 %vm748_vm1, %v1444_v40  ;;  %7445 = vmatmul.mubr.msk.bf16.gmra.mxu1 %vm748_vm1, %v9376_v44 }
 0x161   : > { %v9625_v19 = vadd.f32 %v1315_v7, %v983_v62  ;;  %1787 = vmatprep.mubr.bf16.mxu0 %v13447_v58  ;;  %2309 = vmatprep.mubr.bf16.mxu1 %v13447_v58  ;;  %v2410_v7 = vrot.slane %v8871_v27, 2 }
 0x162   : > { %v985_v61 = vpop.f32.mrf.mxu0  ;;  %v1317_v13 = vpop.f32.mrf.mxu1 }
 0x163   : > { %v9629_v51 = vadd.f32 %v1317_v13, %v985_v61  ;;  %v2411_v61 = vrot.slane %v8875_v30, 2  ;;  %v2413_v30 = vrot.slane %v8886_v36, 2  ;;  %v2415_v36 = vrot.slane %v8914_v49, 2 }
 0x164   : > { %v987_v48 = vpop.f32.mrf.mxu0  ;;  %v1319_v8 = vpop.f32.mrf.mxu1  ;;  %v2417_v49 = vrot.slane %v8948_v63, 2  ;;  %v2419_v63 = vrot.slane %v8976_v12, 2  ;;  %v2421_v12 = vrot.slane %v9014_v33, 2 }
 0x165   : > { %v9631_v37 = vadd.f32 %v1319_v8, %v987_v48 }
 0x166   : > { %v9633_v23 = vpop.f32.mrf.mxu0  ;;  %v9635_v40 = vpop.f32.mrf.mxu1 }
 0x167   : > { %13465 = vst [vmem:[#allocation39_spill] sm:$0xff] %v9631_v37  ;;  %13466 = vst [vmem:[#allocation40_spill] sm:$0xff] %v9633_v23 }
 0x168   : > { %13467 = vst [vmem:[#allocation41_spill] sm:$0xff] %v9635_v40  ;;  %v993_v50 = vpop.f32.mrf.mxu0  ;;  %v1325_v44 = vpop.f32.mrf.mxu1  ;;  %7402 = vmatmul.mubr.msk.bf16.gmra.mxu0 %vm748_vm1, %v1443_v11  ;;  %7446 = vmatmul.mubr.msk.bf16.gmra.mxu1 %vm748_vm1, %v9360_v22  ;;  %v2412_v11 = vsel %vm2409_vm4, %v2410_v7, %v2411_v61 }
 0x169   : > { %v9640_v62 = vadd.f32 %v1325_v44, %v993_v50  ;;  %2601 = vmatprep.mubr.bf16.mxu0 %v13447_v58 }
 0x16a   : > { %v995_v13 = vpop.f32.mrf.mxu0  ;;  %v1327_v48 = vpop.f32.mrf.mxu1 }
 0x16b   : > { %13468 = vst [vmem:[#allocation42_spill] sm:$0xff] %v9640_v62  ;;  %v9645_v8 = vadd.f32 %v1327_v48, %v995_v13 }
 0x16c   : > { %v997_v40 = vpop.f32.mrf.mxu0  ;;  %v1329_v23 = vpop.f32.mrf.mxu1 }
 0x16d   : > { %13469 = vst [vmem:[#allocation43_spill] sm:$0xff] %v9645_v8  ;;  %v9647_v37 = vadd.f32 %v1329_v23, %v997_v40 }
 0x16e   : > { %v9650_v22 = vpop.f32.mrf.mxu0  ;;  %v9652_v50 = vpop.f32.mrf.mxu1 }
 0x16f   : > { %13470 = vst [vmem:[#allocation44_spill] sm:$0xff] %v9647_v37  ;;  %13471 = vst [vmem:[#allocation45_spill] sm:$0xff] %v9650_v22 }
 0x170   : > { %13472 = vst [vmem:[#allocation46_spill] sm:$0xff] %v9652_v50  ;;  %v1003_v44 = vpop.f32.mrf.mxu0  ;;  %v1335_v62 = vpop.f32.mrf.mxu1  ;;  %7471 = vmatmul.mubr.msk.bf16.vlgmr.msra.gmra.mxu0 %vm748_vm1, %v2412_v11  ;;  %v2414_v50 = vsel %vm2409_vm4, %v2411_v61, %v2413_v30 }
 0x171   : > { %v9655_v27 = vadd.f32 %v1335_v62, %v1003_v44  ;;  %2611 = vmatprep.mubr.bf16.mxu0 %v13447_v58 }
 0x172   : > { %v1005_v13 = vpop.f32.mrf.mxu0  ;;  %v1337_v48 = vpop.f32.mrf.mxu1 }
 0x173   : > { %v9659_v23 = vadd.f32 %v1337_v48, %v1005_v13 }
 0x174   : > { %v1007_v40 = vpop.f32.mrf.mxu0  ;;  %v1339_v7 = vpop.f32.mrf.mxu1 }
 0x175   : > { %13473 = vst [vmem:[#allocation47_spill] sm:$0xff] %v9659_v23  ;;  %v9661_v37 = vadd.f32 %v1339_v7, %v1007_v40 }
 0x176   : > { %v9664_v22 = vpop.f32.mrf.mxu0  ;;  %v9666_v8 = vpop.f32.mrf.mxu1 }
 0x177   : > { %13474 = vst [vmem:[#allocation48_spill] sm:$0xff] %v9661_v37  ;;  %13475 = vst [vmem:[#allocation49_spill] sm:$0xff] %v9664_v22 }
 0x178   : > { %13476 = vst [vmem:[#allocation50_spill] sm:$0xff] %v9666_v8  ;;  %v1013_v62 = vpop.f32.mrf.mxu0  ;;  %v1345_v11 = vpop.f32.mrf.mxu1  ;;  %7472 = vmatmul.mubr.msk.bf16.gmra.mxu0 %vm748_vm1, %v2414_v50  ;;  %v2416_v8 = vsel %vm2409_vm4, %v2413_v30, %v2415_v36 }
 0x179   : > { %v9669_v44 = vadd.f32 %v1345_v11, %v1013_v62  ;;  %2621 = vmatprep.mubr.bf16.mxu0 %v13447_v58 }
 0x17a   : > { %v1015_v13 = vpop.f32.mrf.mxu0  ;;  %v1347_v48 = vpop.f32.mrf.mxu1 }
 0x17b   : > { %v9673_v40 = vadd.f32 %v1347_v48, %v1015_v13 }
 0x17c   : > { %v1017_v7 = vpop.f32.mrf.mxu0  ;;  %v1349_v61 = vpop.f32.mrf.mxu1 }
 0x17d   : > { %13477 = vst [vmem:[#allocation51_spill] sm:$0xff] %v9673_v40  ;;  %v9675_v37 = vadd.f32 %v1349_v61, %v1017_v7 }
 0x17e   : > { %v9678_v22 = vpop.f32.mrf.mxu0  ;;  %v9680_v23 = vpop.f32.mrf.mxu1 }
 0x17f   : > { %13478 = vst [vmem:[#allocation52_spill] sm:$0xff] %v9675_v37  ;;  %13479 = vst [vmem:[#allocation53_spill] sm:$0xff] %v9678_v22 }
 0x180   : > { %13480 = vst [vmem:[#allocation54_spill] sm:$0xff] %v9680_v23  ;;  %v1023_v50 = vpop.f32.mrf.mxu0  ;;  %v1355_v62 = vpop.f32.mrf.mxu1  ;;  %7473 = vmatmul.mubr.msk.bf16.gmra.mxu0 %vm748_vm1, %v2416_v8  ;;  %v2418_v23 = vsel %vm2409_vm4, %v2415_v36, %v2417_v49 }
 0x181   : > { %v9683_v11 = vadd.f32 %v1355_v62, %v1023_v50  ;;  %2631 = vmatprep.mubr.bf16.mxu0 %v13447_v58 }
 0x182   : > { %v1025_v13 = vpop.f32.mrf.mxu0  ;;  %v1357_v48 = vpop.f32.mrf.mxu1 }
 0x183   : > { %v9687_v7 = vadd.f32 %v1357_v48, %v1025_v13 }
 0x184   : > { %v1027_v61 = vpop.f32.mrf.mxu0  ;;  %v1359_v30 = vpop.f32.mrf.mxu1 }
 0x185   : > { %13481 = vst [vmem:[#allocation55_spill] sm:$0xff] %v9687_v7  ;;  %v9689_v37 = vadd.f32 %v1359_v30, %v1027_v61 }
 0x186   : > { %v9692_v22 = vpop.f32.mrf.mxu0  ;;  %v9694_v40 = vpop.f32.mrf.mxu1 }
 0x187   : > { %13482 = vst [vmem:[#allocation56_spill] sm:$0xff] %v9689_v37  ;;  %13483 = vst [vmem:[#allocation57_spill] sm:$0xff] %v9692_v22  ;;  %v2420_v22 = vsel %vm2409_vm4, %v2417_v49, %v2419_v63 }
 0x188   : > { %13484 = vst [vmem:[#allocation58_spill] sm:$0xff] %v9694_v40  ;;  %v1033_v8 = vpop.f32.mrf.mxu0  ;;  %v1365_v50 = vpop.f32.mrf.mxu1  ;;  %7474 = vmatmul.mubr.msk.bf16.gmra.mxu0 %vm748_vm1, %v2418_v23 }
 0x189   : > { %v9697_v62 = vadd.f32 %v1365_v50, %v1033_v8  ;;  %2641 = vmatprep.mubr.bf16.mxu0 %v13447_v58 }
 0x18a   : > { %v1035_v13 = vpop.f32.mrf.mxu0  ;;  %v1367_v48 = vpop.f32.mrf.mxu1 }
 0x18b   : > { %13485 = vst [vmem:[#allocation59_spill] sm:$0xff] %v9697_v62  ;;  %v9701_v61 = vadd.f32 %v1367_v48, %v1035_v13 }
 0x18c   : > { %v1037_v30 = vpop.f32.mrf.mxu0  ;;  %v1369_v36 = vpop.f32.mrf.mxu1 }
 0x18d   : > { %13486 = vst [vmem:[#allocation60_spill] sm:$0xff] %v9701_v61 }
 0x18e   : > { %v1038_v37 = vpop.f32.mrf.mxu0  ;;  %v1370_v40 = vpop.f32.mrf.mxu1 }
 0x190   : > { %v1599_v7 = vpop.f32.mrf.mxu0  ;;  %7475 = vmatmul.mubr.msk.bf16.gmra.mxu0 %vm748_vm1, %v2420_v22  ;;  %v2121_v23 = vpop.f32.mrf.mxu1  ;;  %v2422_v22 = vsel %vm2409_vm4, %v2419_v63, %v2421_v12 }
 0x191   : > { %v1796_v8 = vadd.f32 %v1599_v7, %v9401_v38  ;;  %2651 = vmatprep.mubr.bf16.mxu0 %v13447_v58 }
 0x192   : > { %v1601_v50 = vpop.f32.mrf.mxu0  ;;  %v2123_v62 = vpop.f32.mrf.mxu1 }
 0x193   : > { %v1797_v13 = vadd.f32 %v1601_v50, %v9406_v56  ;;  %v9709_v48 = vadd.f32 %v2121_v23, %v1796_v8 }
 0x194   : > { %v1603_v30 = vpop.f32.mrf.mxu0  ;;  %v2125_v49 = vpop.f32.mrf.mxu1 }
 0x195   : > { %v1798_v37 = vadd.f32 %v1603_v30, %v9408_v60  ;;  %v9712_v40 = vadd.f32 %v2123_v62, %v1797_v13  ;;  %v2423_v60 = vrot.slane %v9031_v43, 2 }
 0x196   : > { %v1605_v36 = vpop.f32.mrf.mxu0  ;;  %v9715_v38 = vpop.f32.mrf.mxu1 }
 0x197   : > { %13487 = vst [vmem:[#allocation61_spill] sm:$0xff] %v9715_v38  ;;  %v9718_v7 = vadd.f32 %v1605_v36, %v9415_v41  ;;  %v9720_v33 = vadd.f32 %v2125_v49, %v1798_v37  ;;  %v2424_v37 = vsel %vm2409_vm4, %v2421_v12, %v2423_v60 }
 0x198   : > { %v1609_v61 = vpop.f32.mrf.mxu0  ;;  %7476 = vmatmul.mubr.msk.bf16.gmra.mxu0 %vm748_vm1, %v2422_v22  ;;  %v2131_v56 = vpop.f32.mrf.mxu1 }
 0x199   : > { %13488 = vst [vmem:[#allocation62_spill] sm:$0xff] %v9718_v7  ;;  %v1800_v23 = vadd.f32 %v1609_v61, %v9421_v20  ;;  %2661 = vmatprep.mubr.bf16.mxu0 %v13447_v58 }
 0x19a   : > { %v1611_v62 = vpop.f32.mrf.mxu0  ;;  %v2133_v63 = vpop.f32.mrf.mxu1 }
 0x19b   : > { %v1801_v8 = vadd.f32 %v1611_v62, %v9425_v21  ;;  %v9727_v50 = vadd.f32 %v2131_v56, %v1800_v23 }
 0x19c   : > { %v1613_v41 = vpop.f32.mrf.mxu0  ;;  %v2135_v13 = vpop.f32.mrf.mxu1 }
 0x19d   : > { %v1802_v30 = vadd.f32 %v1613_v41, %v9428_v6  ;;  %v9730_v49 = vadd.f32 %v2133_v63, %v1801_v8  ;;  %v2425_v6 = vrot.slane %v9075_v53, 2 }
 0x19e   : > { %v1615_v22 = vpop.f32.mrf.mxu0  ;;  %v9733_v20 = vpop.f32.mrf.mxu1 }
 0x19f   : > { %13489 = vst [vmem:[#allocation63_spill] sm:$0xff] %v9733_v20  ;;  %v9736_v61 = vadd.f32 %v1615_v22, %v9436_v52  ;;  %v9738_v43 = vadd.f32 %v2135_v13, %v1802_v30  ;;  %v2426_v30 = vsel %vm2409_vm4, %v2423_v60, %v2425_v6 }
 0x1a0   : > { %v1619_v36 = vpop.f32.mrf.mxu0  ;;  %7477 = vmatmul.mubr.msk.bf16.gmra.mxu0 %vm748_vm1, %v2424_v37  ;;  %v2141_v21 = vpop.f32.mrf.mxu1 }
 0x1a1   : > { %13490 = vst [vmem:[#allocation64_spill] sm:$0xff] %v9736_v61  ;;  %v1804_v56 = vadd.f32 %v1619_v36, %v9440_v32  ;;  %2671 = vmatprep.mubr.bf16.mxu0 %v13447_v58 }
 0x1a2   : > { %v1621_v23 = vpop.f32.mrf.mxu0  ;;  %v2143_v12 = vpop.f32.mrf.mxu1 }
 0x1a3   : > { %v1805_v62 = vadd.f32 %v1621_v23, %v9445_v47  ;;  %v9745_v63 = vadd.f32 %v2141_v21, %v1804_v56 }
 0x1a4   : > { %v1623_v52 = vpop.f32.mrf.mxu0  ;;  %v2145_v8 = vpop.f32.mrf.mxu1 }
 0x1a5   : > { %v1806_v41 = vadd.f32 %v1623_v52, %v9447_v55  ;;  %v9748_v13 = vadd.f32 %v2143_v12, %v1805_v62  ;;  %v2427_v55 = vrot.slane %v9098_v15, 2 }
 0x1a6   : > { %v1625_v37 = vpop.f32.mrf.mxu0  ;;  %v9751_v32 = vpop.f32.mrf.mxu1 }
 0x1a7   : > { %13491 = vst [vmem:[#allocation65_spill] sm:$0xff] %v9751_v32  ;;  %v9754_v22 = vadd.f32 %v1625_v37, %v9451_v39  ;;  %v9756_v53 = vadd.f32 %v2145_v8, %v1806_v41  ;;  %v2428_v41 = vsel %vm2409_vm4, %v2425_v6, %v2427_v55 }
 0x1a8   : > { %v1629_v36 = vpop.f32.mrf.mxu0  ;;  %7478 = vmatmul.mubr.msk.bf16.gmra.mxu0 %vm748_vm1, %v2426_v30  ;;  %v2151_v47 = vpop.f32.mrf.mxu1 }
 0x1a9   : > { %13492 = vst [vmem:[#allocation66_spill] sm:$0xff] %v9754_v22  ;;  %13493 = vst [vmem:[#allocation67_spill] sm:$0xff] %v9756_v53  ;;  %v1808_v21 = vadd.f32 %v1629_v36, %v9455_v42  ;;  %2681 = vmatprep.mubr.bf16.mxu0 %v13447_v58 }
 0x1aa   : > { %v1631_v56 = vpop.f32.mrf.mxu0  ;;  %v2153_v60 = vpop.f32.mrf.mxu1 }
 0x1ab   : > { %v1809_v23 = vadd.f32 %v1631_v56, %v9460_v28  ;;  %v9763_v12 = vadd.f32 %v2151_v47, %v1808_v21 }
 0x1ac   : > { %v1633_v39 = vpop.f32.mrf.mxu0  ;;  %v2155_v62 = vpop.f32.mrf.mxu1 }
 0x1ad   : > { %13494 = vst [vmem:[#allocation68_spill] sm:$0xff] %v9763_v12  ;;  %v1810_v52 = vadd.f32 %v1633_v39, %v9462_v9  ;;  %v9766_v8 = vadd.f32 %v2153_v60, %v1809_v23  ;;  %v2429_v9 = vrot.slane %v9121_v34, 2 }
 0x1ae   : > { %v1635_v30 = vpop.f32.mrf.mxu0  ;;  %v9769_v42 = vpop.f32.mrf.mxu1 }
 0x1af   : > { %13495 = vst [vmem:[#allocation69_spill] sm:$0xff] %v9766_v8  ;;  %v9772_v37 = vadd.f32 %v1635_v30, %v9467_v0  ;;  %v9774_v15 = vadd.f32 %v2155_v62, %v1810_v52  ;;  %v2430_v52 = vsel %vm2409_vm4, %v2427_v55, %v2429_v9  ;;  %v13499_v30 = vld [vmem:[#allocation17_spill] sm:$0xff] }
 0x1b0   : > { %v1639_v36 = vpop.f32.mrf.mxu0  ;;  %7479 = vmatmul.mubr.msk.bf16.gmra.mxu0 %vm748_vm1, %v2428_v41  ;;  %v2161_v28 = vpop.f32.mrf.mxu1 }
 0x1b1   : > { %13496 = vst [vmem:[#allocation70_spill] sm:$0xff] %v9774_v15  ;;  %v1812_v47 = vadd.f32 %v1639_v36, %v9471_v46  ;;  %2691 = vmatprep.mubr.bf16.mxu0 %v13447_v58 }
 0x1b2   : > { %v1641_v21 = vpop.f32.mrf.mxu0  ;;  %v2163_v6 = vpop.f32.mrf.mxu1 }
 0x1b3   : > { %v1813_v56 = vadd.f32 %v1641_v21, %v9476_v16  ;;  %v9781_v60 = vadd.f32 %v2161_v28, %v1812_v47  ;;  %v13501_v28 = vld [vmem:[#allocation18_spill] sm:$0xff] }
 0x1b4   : > { %v1643_v0 = vpop.f32.mrf.mxu0  ;;  %v2165_v23 = vpop.f32.mrf.mxu1 }
 0x1b5   : > { %13497 = vst [vmem:[#allocation71_spill] sm:$0xff] %v9781_v60  ;;  %v1814_v39 = vadd.f32 %v1643_v0, %v9478_v1  ;;  %v9784_v62 = vadd.f32 %v2163_v6, %v1813_v56  ;;  %v2431_v1 = vrot.slane %v9127_v31, 2 }
 0x1b6   : > { %v1645_v41 = vpop.f32.mrf.mxu0  ;;  %v9787_v46 = vpop.f32.mrf.mxu1 }
 0x1b7   : > { %13498 = vst [vmem:[#allocation72_spill] sm:$0xff] %v9784_v62  ;;  %v9790_v36 = vadd.f32 %v1645_v41, %v13499_v30  ;;  %v9792_v34 = vadd.f32 %v2165_v23, %v1814_v39  ;;  %v13502_v23 = vld [vmem:[#allocation19_spill] sm:$0xff] }
 0x1b8   : > { %v1649_v38 = vpop.f32.mrf.mxu0  ;;  %7480 = vmatmul.mubr.msk.bf16.gmra.mxu0 %vm748_vm1, %v2430_v52  ;;  %v2171_v16 = vpop.f32.mrf.mxu1  ;;  %v2432_v52 = vsel %vm2409_vm4, %v2429_v9, %v2431_v1 }
 0x1b9   : > { %13500 = vst [vmem:[#allocation17_spill] sm:$0xff] %v9792_v34  ;;  %v1816_v47 = vadd.f32 %v1649_v38, %v13501_v28  ;;  %2701 = vmatprep.mubr.bf16.mxu0 %v13447_v58  ;;  %v13503_v28 = vld [vmem:[#allocation20_spill] sm:$0xff] }
 0x1ba   : > { %v1651_v21 = vpop.f32.mrf.mxu0  ;;  %v2173_v55 = vpop.f32.mrf.mxu1 }
 0x1bb   : > { %v1817_v6 = vadd.f32 %v1651_v21, %v9491_v54  ;;  %v9799_v56 = vadd.f32 %v2171_v16, %v1816_v47  ;;  %v13504_v16 = vld [vmem:[#allocation21_spill] sm:$0xff] }
 0x1bc   : > { %v1653_v0 = vpop.f32.mrf.mxu0  ;;  %v2175_v41 = vpop.f32.mrf.mxu1  ;;  %v13505_v21 = vld [vmem:[#allocation9_spill] sm:$0xff] }
 0x1bd   : > { %v1818_v39 = vadd.f32 %v1653_v0, %v13502_v23  ;;  %v9802_v30 = vadd.f32 %v2173_v55, %v1817_v6  ;;  %v2433_v55 = vrot.slane %v13505_v21, 2 }
 0x1be   : > { %v1655_v7 = vpop.f32.mrf.mxu0  ;;  %v9805_v38 = vpop.f32.mrf.mxu1 }
 0x1bf   : > { %v9808_v53 = vadd.f32 %v1655_v7, %v13503_v28  ;;  %v9810_v31 = vadd.f32 %v2175_v41, %v1818_v39 }
 0x1c0   : > { %v1659_v20 = vpop.f32.mrf.mxu0  ;;  %7481 = vmatmul.mubr.msk.bf16.gmra.mxu0 %vm748_vm1, %v2432_v52  ;;  %v2181_v54 = vpop.f32.mrf.mxu1  ;;  %v2434_v52 = vsel %vm2409_vm4, %v2431_v1, %v2433_v55 }
 0x1c1   : > { %v1820_v47 = vadd.f32 %v1659_v20, %v13504_v16  ;;  %2711 = vmatprep.mubr.bf16.mxu0 %v13447_v58  ;;  %v13506_v16 = vld [vmem:[#allocation22_spill] sm:$0xff] }
 0x1c2   : > { %v1661_v6 = vpop.f32.mrf.mxu0  ;;  %v2183_v9 = vpop.f32.mrf.mxu1 }
 0x1c3   : > { %v1821_v0 = vadd.f32 %v1661_v6, %v9506_v59  ;;  %v9817_v23 = vadd.f32 %v2181_v54, %v1820_v47  ;;  %v13507_v54 = vld [vmem:[#allocation23_spill] sm:$0xff] }
 0x1c4   : > { %v1663_v7 = vpop.f32.mrf.mxu0  ;;  %v2185_v28 = vpop.f32.mrf.mxu1 }
 0x1c5   : > { %v1822_v41 = vadd.f32 %v1663_v7, %v9508_v3  ;;  %v9820_v39 = vadd.f32 %v2183_v9, %v1821_v0  ;;  %v13508_v3 = vld [vmem:[#allocation10_spill] sm:$0xff] }
 0x1c6   : > { %v1665_v61 = vpop.f32.mrf.mxu0  ;;  %v9823_v20 = vpop.f32.mrf.mxu1  ;;  %v2435_v6 = vrot.slane %v13508_v3, 2 }
 0x1c7   : > { %v9826_v15 = vadd.f32 %v1665_v61, %v13506_v16  ;;  %v9828_v21 = vadd.f32 %v2185_v28, %v1822_v41 }
 0x1c8   : > { %v1669_v12 = vpop.f32.mrf.mxu0  ;;  %7482 = vmatmul.mubr.msk.bf16.gmra.mxu0 %vm748_vm1, %v2434_v52  ;;  %v2191_v59 = vpop.f32.mrf.mxu1  ;;  %v2436_v52 = vsel %vm2409_vm4, %v2433_v55, %v2435_v6 }
 0x1c9   : > { %v1824_v47 = vadd.f32 %v1669_v12, %v13507_v54  ;;  %2721 = vmatprep.mubr.bf16.mxu0 %v13447_v58  ;;  %v13509_v54 = vld [vmem:[#allocation24_spill] sm:$0xff] }
 0x1ca   : > { %v1671_v9 = vpop.f32.mrf.mxu0  ;;  %v2193_v1 = vpop.f32.mrf.mxu1 }
 0x1cb   : > { %v1825_v0 = vadd.f32 %v1671_v9, %v9521_v10  ;;  %v9835_v7 = vadd.f32 %v2191_v59, %v1824_v47  ;;  %v13510_v59 = vld [vmem:[#allocation25_spill] sm:$0xff] }
 0x1cc   : > { %v1673_v61 = vpop.f32.mrf.mxu0  ;;  %v2195_v16 = vpop.f32.mrf.mxu1 }
 0x1cd   : > { %v1826_v28 = vadd.f32 %v1673_v61, %v9523_v26  ;;  %v9838_v41 = vadd.f32 %v2193_v1, %v1825_v0  ;;  %v13511_v26 = vld [vmem:[#allocation11_spill] sm:$0xff] }
 0x1ce   : > { %v1675_v32 = vpop.f32.mrf.mxu0  ;;  %v9841_v12 = vpop.f32.mrf.mxu1  ;;  %v2437_v9 = vrot.slane %v13511_v26, 2 }
 0x1cf   : > { %v9844_v22 = vadd.f32 %v1675_v32, %v13509_v54  ;;  %v9846_v3 = vadd.f32 %v2195_v16, %v1826_v28 }
 0x1d0   : > { %v1679_v34 = vpop.f32.mrf.mxu0  ;;  %7483 = vmatmul.mubr.msk.bf16.gmra.mxu0 %vm748_vm1, %v2436_v52  ;;  %v2201_v10 = vpop.f32.mrf.mxu1  ;;  %v2438_v52 = vsel %vm2409_vm4, %v2435_v6, %v2437_v9 }
 0x1d1   : > { %v1828_v47 = vadd.f32 %v1679_v34, %v13510_v59  ;;  %2731 = vmatprep.mubr.bf16.mxu0 %v13447_v58  ;;  %v13513_v59 = vld [vmem:[#allocation26_spill] sm:$0xff] }
 0x1d2   : > { %v1681_v1 = vpop.f32.mrf.mxu0  ;;  %v2203_v55 = vpop.f32.mrf.mxu1 }
 0x1d3   : > { %v1829_v0 = vadd.f32 %v1681_v1, %v9536_v5  ;;  %v9853_v61 = vadd.f32 %v2201_v10, %v1828_v47  ;;  %v13516_v10 = vld [vmem:[#allocation27_spill] sm:$0xff] }
 0x1d4   : > { %v1683_v32 = vpop.f32.mrf.mxu0  ;;  %v2205_v54 = vpop.f32.mrf.mxu1 }
 0x1d5   : > { %v1830_v16 = vadd.f32 %v1683_v32, %v9538_v45  ;;  %v9856_v28 = vadd.f32 %v2203_v55, %v1829_v0  ;;  %v13517_v45 = vld [vmem:[#allocation12_spill] sm:$0xff] }
 0x1d6   : > { %v1685_v60 = vpop.f32.mrf.mxu0  ;;  %v9859_v34 = vpop.f32.mrf.mxu1  ;;  %v2439_v1 = vrot.slane %v13517_v45, 2 }
 0x1d7   : > { %13512 = vst [vmem:[#allocation18_spill] sm:$0xff] %v9859_v34  ;;  %v9862_v8 = vadd.f32 %v1685_v60, %v13513_v59  ;;  %v9864_v26 = vadd.f32 %v2205_v54, %v1830_v16 }
 0x1d8   : > { %v1689_v62 = vpop.f32.mrf.mxu0  ;;  %7484 = vmatmul.mubr.msk.bf16.gmra.mxu0 %vm748_vm1, %v2438_v52  ;;  %v2211_v5 = vpop.f32.mrf.mxu1  ;;  %v2440_v52 = vsel %vm2409_vm4, %v2437_v9, %v2439_v1 }
 0x1d9   : > { %13514 = vst [vmem:[#allocation19_spill] sm:$0xff] %v9862_v8  ;;  %13515 = vst [vmem:[#allocation20_spill] sm:$0xff] %v9864_v26  ;;  %v1832_v47 = vadd.f32 %v1689_v62, %v13516_v10  ;;  %2741 = vmatprep.mubr.bf16.mxu0 %v13447_v58  ;;  %v13519_v10 = vld [vmem:[#allocation28_spill] sm:$0xff] }
 0x1da   : > { %v1691_v55 = vpop.f32.mrf.mxu0  ;;  %v2213_v6 = vpop.f32.mrf.mxu1 }
 0x1db   : > { %v1833_v0 = vadd.f32 %v1691_v55, %v9551_v17  ;;  %v9871_v32 = vadd.f32 %v2211_v5, %v1832_v47  ;;  %v13522_v5 = vld [vmem:[#allocation29_spill] sm:$0xff] }
 0x1dc   : > { %v1693_v60 = vpop.f32.mrf.mxu0  ;;  %v2215_v59 = vpop.f32.mrf.mxu1 }
 0x1dd   : > { %v1834_v54 = vadd.f32 %v1693_v60, %v9553_v4  ;;  %v9874_v16 = vadd.f32 %v2213_v6, %v1833_v0  ;;  %v13523_v4 = vld [vmem:[#allocation13_spill] sm:$0xff] }
 0x1de   : > { %v1695_v34 = vpop.f32.mrf.mxu0  ;;  %v9877_v62 = vpop.f32.mrf.mxu1  ;;  %v2441_v55 = vrot.slane %v13523_v4, 2 }
 0x1df   : > { %13518 = vst [vmem:[#allocation21_spill] sm:$0xff] %v9877_v62  ;;  %v9880_v8 = vadd.f32 %v1695_v34, %v13519_v10  ;;  %v9882_v45 = vadd.f32 %v2215_v59, %v1834_v54 }
 0x1e0   : > { %v1699_v26 = vpop.f32.mrf.mxu0  ;;  %7485 = vmatmul.mubr.msk.bf16.gmra.mxu0 %vm748_vm1, %v2440_v52  ;;  %v2221_v17 = vpop.f32.mrf.mxu1  ;;  %v2442_v52 = vsel %vm2409_vm4, %v2439_v1, %v2441_v55 }
 0x1e1   : > { %13520 = vst [vmem:[#allocation9_spill] sm:$0xff] %v9880_v8  ;;  %13521 = vst [vmem:[#allocation22_spill] sm:$0xff] %v9882_v45  ;;  %v1836_v47 = vadd.f32 %v1699_v26, %v13522_v5  ;;  %2751 = vmatprep.mubr.bf16.mxu0 %v13447_v58  ;;  %v13525_v5 = vld [vmem:[#allocation30_spill] sm:$0xff] }
 0x1e2   : > { %v1701_v6 = vpop.f32.mrf.mxu0  ;;  %v2223_v9 = vpop.f32.mrf.mxu1 }
 0x1e3   : > { %v1837_v0 = vadd.f32 %v1701_v6, %v9566_v2  ;;  %v9889_v60 = vadd.f32 %v2221_v17, %v1836_v47  ;;  %v13528_v17 = vld [vmem:[#allocation31_spill] sm:$0xff] }
 0x1e4   : > { %v1703_v34 = vpop.f32.mrf.mxu0  ;;  %v2225_v10 = vpop.f32.mrf.mxu1 }
 0x1e5   : > { %v1838_v59 = vadd.f32 %v1703_v34, %v9568_v29  ;;  %v9892_v54 = vadd.f32 %v2223_v9, %v1837_v0  ;;  %v13529_v29 = vld [vmem:[#allocation14_spill] sm:$0xff] }
 0x1e6   : > { %v1705_v62 = vpop.f32.mrf.mxu0  ;;  %v9895_v26 = vpop.f32.mrf.mxu1  ;;  %v2443_v6 = vrot.slane %v13529_v29, 2 }
 0x1e7   : > { %13524 = vst [vmem:[#allocation23_spill] sm:$0xff] %v9895_v26  ;;  %v9898_v8 = vadd.f32 %v1705_v62, %v13525_v5  ;;  %v9900_v4 = vadd.f32 %v2225_v10, %v1838_v59 }
 0x1e8   : > { %v1709_v45 = vpop.f32.mrf.mxu0  ;;  %7486 = vmatmul.mubr.msk.bf16.gmra.mxu0 %vm748_vm1, %v2442_v52  ;;  %v2231_v2 = vpop.f32.mrf.mxu1  ;;  %v2444_v52 = vsel %vm2409_vm4, %v2441_v55, %v2443_v6 }
 0x1e9   : > { %13526 = vst [vmem:[#allocation10_spill] sm:$0xff] %v9898_v8  ;;  %13527 = vst [vmem:[#allocation24_spill] sm:$0xff] %v9900_v4  ;;  %v1840_v47 = vadd.f32 %v1709_v45, %v13528_v17  ;;  %2761 = vmatprep.mubr.bf16.mxu0 %v13447_v58  ;;  %v13533_v17 = vld [vmem:[#allocation32_spill] sm:$0xff] }
 0x1ea   : > { %v1711_v9 = vpop.f32.mrf.mxu0  ;;  %v2233_v1 = vpop.f32.mrf.mxu1 }
 0x1eb   : > { %v1841_v0 = vadd.f32 %v1711_v9, %v9581_v18  ;;  %v9907_v34 = vadd.f32 %v2231_v2, %v1840_v47 }
 0x1ec   : > { %v1713_v62 = vpop.f32.mrf.mxu0  ;;  %v2235_v5 = vpop.f32.mrf.mxu1 }
 0x1ed   : > { %13530 = vst [vmem:[#allocation25_spill] sm:$0xff] %v9907_v34  ;;  %v1842_v10 = vadd.f32 %v1713_v62, %v9583_v57  ;;  %v9910_v59 = vadd.f32 %v2233_v1, %v1841_v0  ;;  %v13536_v57 = vld [vmem:[#allocation15_spill] sm:$0xff] }
 0x1ee   : > { %v1715_v26 = vpop.f32.mrf.mxu0  ;;  %v9913_v45 = vpop.f32.mrf.mxu1  ;;  %v2445_v47 = vrot.slane %v13536_v57, 2 }
 0x1ef   : > { %13531 = vst [vmem:[#allocation11_spill] sm:$0xff] %v9910_v59  ;;  %13532 = vst [vmem:[#allocation26_spill] sm:$0xff] %v9913_v45  ;;  %v9916_v8 = vadd.f32 %v1715_v26, %v13533_v17  ;;  %v9918_v29 = vadd.f32 %v2235_v5, %v1842_v10  ;;  %v13538_v5 = vld [vmem:[#allocation33_spill] sm:$0xff] }
 0x1f0   : > { %v1719_v4 = vpop.f32.mrf.mxu0  ;;  %7487 = vmatmul.mubr.msk.bf16.gmra.mxu0 %vm748_vm1, %v2444_v52  ;;  %v2241_v18 = vpop.f32.mrf.mxu1  ;;  %v2446_v52 = vsel %vm2409_vm4, %v2443_v6, %v2445_v47 }
 0x1f1   : > { %13534 = vst [vmem:[#allocation27_spill] sm:$0xff] %v9916_v8  ;;  %13535 = vst [vmem:[#allocation12_spill] sm:$0xff] %v9918_v29  ;;  %v1844_v2 = vadd.f32 %v1719_v4, %v9591_v24  ;;  %2771 = vmatprep.mubr.bf16.mxu0 %v13447_v58 }
 0x1f2   : > { %v1721_v9 = vpop.f32.mrf.mxu0  ;;  %v2243_v55 = vpop.f32.mrf.mxu1 }
 0x1f3   : > { %v1845_v1 = vadd.f32 %v1721_v9, %v9596_v14  ;;  %v9925_v0 = vadd.f32 %v2241_v18, %v1844_v2  ;;  %v13543_v2 = vld [vmem:[#allocation16_spill] sm:$0xff] }
 0x1f4   : > { %v1723_v26 = vpop.f32.mrf.mxu0  ;;  %v2245_v62 = vpop.f32.mrf.mxu1  ;;  %v2447_v9 = vrot.slane %v13543_v2, 2 }
 0x1f5   : > { %13537 = vst [vmem:[#allocation28_spill] sm:$0xff] %v9925_v0  ;;  %v1846_v10 = vadd.f32 %v1723_v26, %v13538_v5  ;;  %v9928_v17 = vadd.f32 %v2243_v55, %v1845_v1 }
 0x1f6   : > { %v9931_v29 = vpop.f32.mrf.mxu0  ;;  %v9933_v24 = vpop.f32.mrf.mxu1 }
 0x1f7   : > { %13539 = vst [vmem:[#allocation29_spill] sm:$0xff] %v9928_v17  ;;  %13540 = vst [vmem:[#allocation13_spill] sm:$0xff] %v9931_v29  ;;  %v9935_v4 = vadd.f32 %v2245_v62, %v1846_v10  ;;  %v13545_v62 = vld [vmem:[#allocation36_spill] sm:$0xff] }
 0x1f8   : > { %13541 = vst [vmem:[#allocation30_spill] sm:$0xff] %v9933_v24  ;;  %v1729_v57 = vpop.f32.mrf.mxu0  ;;  %7488 = vmatmul.mubr.msk.bf16.gmra.mxu0 %vm748_vm1, %v2446_v52  ;;  %v2251_v14 = vpop.f32.mrf.mxu1  ;;  %v2448_v52 = vsel %vm2409_vm4, %v2445_v47, %v2447_v9 }
 0x1f9   : > { %13542 = vst [vmem:[#allocation31_spill] sm:$0xff] %v9935_v4  ;;  %v1848_v18 = vadd.f32 %v1729_v57, %v9608_v35  ;;  %2781 = vmatprep.mubr.bf16.mxu0 %v13447_v58 }
 0x1fa   : > { %v1731_v55 = vpop.f32.mrf.mxu0  ;;  %v2253_v1 = vpop.f32.mrf.mxu1 }
 0x1fb   : > { %v1849_v6 = vadd.f32 %v1731_v55, %v9613_v25  ;;  %v9942_v26 = vadd.f32 %v2251_v14, %v1848_v18 }
 0x1fc   : > { %v1733_v5 = vpop.f32.mrf.mxu0  ;;  %v2255_v34 = vpop.f32.mrf.mxu1 }
 0x1fd   : > { %13544 = vst [vmem:[#allocation14_spill] sm:$0xff] %v9942_v26  ;;  %v1850_v10 = vadd.f32 %v1733_v5, %v13545_v62  ;;  %v9945_v4 = vadd.f32 %v2253_v1, %v1849_v6  ;;  %v13551_v62 = vld [vmem:[#allocation39_spill] sm:$0xff] }
 0x1fe   : > { %v9948_v45 = vpop.f32.mrf.mxu0  ;;  %v9950_v35 = vpop.f32.mrf.mxu1 }
 0x1ff   : > { %13546 = vst [vmem:[#allocation32_spill] sm:$0xff] %v9945_v4  ;;  %13547 = vst [vmem:[#allocation15_spill] sm:$0xff] %v9948_v45  ;;  %v9952_v57 = vadd.f32 %v2255_v34, %v1850_v10 }
 0x200   : > { %13548 = vst [vmem:[#allocation33_spill] sm:$0xff] %v9950_v35  ;;  %v1739_v2 = vpop.f32.mrf.mxu0  ;;  %7489 = vmatmul.mubr.msk.bf16.gmra.mxu0 %vm748_vm1, %v2448_v52  ;;  %v2261_v25 = vpop.f32.mrf.mxu1 }
 0x201   : > { %13549 = vst [vmem:[#allocation16_spill] sm:$0xff] %v9952_v57  ;;  %v1852_v14 = vadd.f32 %v1739_v2, %v9625_v19  ;;  %2791 = vmatprep.mubr.bf16.mxu0 %v13447_v58  ;;  %v13556_v58 = vld [vmem:[#allocation42_spill] sm:$0xff] }
 0x202   : > { %v1741_v18 = vpop.f32.mrf.mxu0  ;;  %v2263_v55 = vpop.f32.mrf.mxu1 }
 0x203   : > { %v1853_v1 = vadd.f32 %v1741_v18, %v9629_v51  ;;  %v9958_v6 = vadd.f32 %v2261_v25, %v1852_v14  ;;  %v13557_v18 = vld [vmem:[#allocation43_spill] sm:$0xff] }
 0x204   : > { %v1743_v47 = vpop.f32.mrf.mxu0  ;;  %v2265_v5 = vpop.f32.mrf.mxu1 }
 0x205   : > { %13550 = vst [vmem:[#allocation36_spill] sm:$0xff] %v9958_v6  ;;  %v1854_v8 = vadd.f32 %v1743_v47, %v13551_v62  ;;  %v9961_v34 = vadd.f32 %v2263_v55, %v1853_v1  ;;  %v13559_v47 = vld [vmem:[#allocation44_spill] sm:$0xff] }
 0x206   : > { %v9963_v10 = vpop.f32.mrf.mxu0  ;;  %v9965_v52 = vpop.f32.mrf.mxu1 }
 0x207   : > { %13552 = vst [vmem:[#allocation39_spill] sm:$0xff] %v9961_v34  ;;  %13553 = vst [vmem:[#allocation73_spill] sm:$0xff] %v9963_v10  ;;  %v9967_v59 = vadd.f32 %v2265_v5, %v1854_v8 }
 0x208   : > { %13554 = vst [vmem:[#allocation74_spill] sm:$0xff] %v9965_v52  ;;  %v1749_v19 = vpop.f32.mrf.mxu0  ;;  %7490 = vmatmul.mubr.msk.bf16.gmra.mxu0 %vm748_vm1, %v2447_v9  ;;  %v2271_v2 = vpop.f32.mrf.mxu1  ;;  %vm7055_vm1 = vcmask 982016  }
 0x209   : > { %13555 = vst [vmem:[#allocation75_spill] sm:$0xff] %v9967_v59  ;;  %v1856_v51 = vadd.f32 %v1749_v19, %v13556_v58 }
 0x20a   : > { %v1751_v25 = vpop.f32.mrf.mxu0  ;;  %v2273_v14 = vpop.f32.mrf.mxu1 }
 0x20b   : > { %v1857_v57 = vadd.f32 %v1751_v25, %v13557_v18  ;;  %v9972_v0 = vadd.f32 %v2271_v2, %v1856_v51  ;;  %v13564_v2 = vld [vmem:[#allocation47_spill] sm:$0xff] }
 0x20c   : > { %v1753_v55 = vpop.f32.mrf.mxu0  ;;  %v2275_v1 = vpop.f32.mrf.mxu1 }
 0x20d   : > { %13558 = vst [vmem:[#allocation42_spill] sm:$0xff] %v9972_v0  ;;  %v1858_v62 = vadd.f32 %v1753_v55, %v13559_v47  ;;  %v9975_v24 = vadd.f32 %v2273_v14, %v1857_v57  ;;  %v13566_v57 = vld [vmem:[#allocation48_spill] sm:$0xff] }
 0x20e   : > { %v9977_v8 = vpop.f32.mrf.mxu0  ;;  %v9979_v5 = vpop.f32.mrf.mxu1 }
 0x20f   : > { %13560 = vst [vmem:[#allocation43_spill] sm:$0xff] %v9975_v24  ;;  %13561 = vst [vmem:[#allocation44_spill] sm:$0xff] %v9977_v8  ;;  %v9981_v9 = vadd.f32 %v2275_v1, %v1858_v62 }
 0x210   : > { %13562 = vst [vmem:[#allocation76_spill] sm:$0xff] %v9979_v5  ;;  %v1759_v17 = vpop.f32.mrf.mxu0  ;;  %v2281_v58 = vpop.f32.mrf.mxu1 }
 0x211   : > { %13563 = vst [vmem:[#allocation77_spill] sm:$0xff] %v9981_v9  ;;  %v1860_v19 = vadd.f32 %v1759_v17, %v9655_v27 }
 0x212   : > { %v1761_v59 = vpop.f32.mrf.mxu0  ;;  %v2283_v25 = vpop.f32.mrf.mxu1 }
 0x213   : > { %v1861_v51 = vadd.f32 %v1761_v59, %v13564_v2  ;;  %v9985_v18 = vadd.f32 %v2281_v58, %v1860_v19  ;;  %v13571_v58 = vld [vmem:[#allocation51_spill] sm:$0xff] }
 0x214   : > { %v1763_v26 = vpop.f32.mrf.mxu0  ;;  %v2285_v55 = vpop.f32.mrf.mxu1 }
 0x215   : > { %13565 = vst [vmem:[#allocation47_spill] sm:$0xff] %v9985_v18  ;;  %v1862_v14 = vadd.f32 %v1763_v26, %v13566_v57  ;;  %v9988_v47 = vadd.f32 %v2283_v25, %v1861_v51  ;;  %v13573_v25 = vld [vmem:[#allocation52_spill] sm:$0xff] }
 0x216   : > { %v9990_v35 = vpop.f32.mrf.mxu0  ;;  %v9992_v1 = vpop.f32.mrf.mxu1 }
 0x217   : > { %13567 = vst [vmem:[#allocation48_spill] sm:$0xff] %v9988_v47  ;;  %13568 = vst [vmem:[#allocation78_spill] sm:$0xff] %v9990_v35  ;;  %v9994_v62 = vadd.f32 %v2285_v55, %v1862_v14 }
 0x218   : > { %13569 = vst [vmem:[#allocation79_spill] sm:$0xff] %v9992_v1  ;;  %v1769_v4 = vpop.f32.mrf.mxu0  ;;  %v2291_v27 = vpop.f32.mrf.mxu1 }
 0x219   : > { %13570 = vst [vmem:[#allocation80_spill] sm:$0xff] %v9994_v62  ;;  %v1864_v17 = vadd.f32 %v1769_v4, %v9669_v44 }
 0x21a   : > { %v1771_v29 = vpop.f32.mrf.mxu0  ;;  %v2293_v59 = vpop.f32.mrf.mxu1 }
 0x21b   : > { %v1865_v19 = vadd.f32 %v1771_v29, %v13571_v58  ;;  %v9998_v2 = vadd.f32 %v2291_v27, %v1864_v17  ;;  %v13578_v27 = vld [vmem:[#allocation55_spill] sm:$0xff] }
 0x21c   : > { %v1773_v18 = vpop.f32.mrf.mxu0  ;;  %v2295_v26 = vpop.f32.mrf.mxu1 }
 0x21d   : > { %13572 = vst [vmem:[#allocation51_spill] sm:$0xff] %v9998_v2  ;;  %v1866_v51 = vadd.f32 %v1773_v18, %v13573_v25  ;;  %v10001_v57 = vadd.f32 %v2293_v59, %v1865_v19  ;;  %v13580_v59 = vld [vmem:[#allocation56_spill] sm:$0xff] }
 0x21e   : > { %v10003_v35 = vpop.f32.mrf.mxu0  ;;  %v10005_v55 = vpop.f32.mrf.mxu1 }
 0x21f   : > { %13574 = vst [vmem:[#allocation52_spill] sm:$0xff] %v10001_v57  ;;  %13575 = vst [vmem:[#allocation81_spill] sm:$0xff] %v10003_v35  ;;  %v10007_v14 = vadd.f32 %v2295_v26, %v1866_v51 }
 0x220   : > { %13576 = vst [vmem:[#allocation82_spill] sm:$0xff] %v10005_v55  ;;  %v1779_v62 = vpop.f32.mrf.mxu0  ;;  %v2301_v44 = vpop.f32.mrf.mxu1 }
 0x221   : > { %13577 = vst [vmem:[#allocation83_spill] sm:$0xff] %v10007_v14  ;;  %v1868_v4 = vadd.f32 %v1779_v62, %v9683_v11  ;;  %v13585_v62 = vld [vmem:[#allocation59_spill] sm:$0xff] }
 0x222   : > { %v1781_v1 = vpop.f32.mrf.mxu0  ;;  %v2303_v29 = vpop.f32.mrf.mxu1 }
 0x223   : > { %v1869_v17 = vadd.f32 %v1781_v1, %v13578_v27  ;;  %v10011_v58 = vadd.f32 %v2301_v44, %v1868_v4  ;;  %v13586_v44 = vld [vmem:[#allocation60_spill] sm:$0xff] }
 0x224   : > { %v1783_v2 = vpop.f32.mrf.mxu0  ;;  %v2305_v18 = vpop.f32.mrf.mxu1 }
 0x225   : > { %13579 = vst [vmem:[#allocation55_spill] sm:$0xff] %v10011_v58  ;;  %v1870_v19 = vadd.f32 %v1783_v2, %v13580_v59  ;;  %v10014_v25 = vadd.f32 %v2303_v29, %v1869_v17 }
 0x226   : > { %v10016_v57 = vpop.f32.mrf.mxu0  ;;  %v10018_v26 = vpop.f32.mrf.mxu1 }
 0x227   : > { %13581 = vst [vmem:[#allocation56_spill] sm:$0xff] %v10014_v25  ;;  %13582 = vst [vmem:[#allocation84_spill] sm:$0xff] %v10016_v57  ;;  %v10020_v51 = vadd.f32 %v2305_v18, %v1870_v19 }
 0x228   : > { %13583 = vst [vmem:[#allocation85_spill] sm:$0xff] %v10018_v26  ;;  %v1789_v14 = vpop.f32.mrf.mxu0  ;;  %v2311_v11 = vpop.f32.mrf.mxu1  ;;  %v2878_v26 = vld [vmem:[%s13266_s2] sm:$0x3] }
 0x229   : > { %13584 = vst [vmem:[#allocation86_spill] sm:$0xff] %v10020_v51  ;;  %v1872_v55 = vadd.f32 %v1789_v14, %v13585_v62 }
 0x22a   : > { %v1791_v35 = vpop.f32.mrf.mxu0  ;;  %v2313_v1 = vpop.f32.mrf.mxu1 }
 0x22b   : > { %v1873_v4 = vadd.f32 %v1791_v35, %v13586_v44  ;;  %v10024_v27 = vadd.f32 %v2311_v11, %v1872_v55 }
 0x22c   : > { %v1793_v58 = vpop.f32.mrf.mxu0  ;;  %v2315_v2 = vpop.f32.mrf.mxu1 }
 0x22d   : > { %13587 = vst [vmem:[#allocation59_spill] sm:$0xff] %v10024_v27  ;;  %v10026_v29 = vadd.f32 %v2313_v1, %v1873_v4 }
 0x22e   : > { %v1794_v17 = vpop.f32.mrf.mxu0  ;;  %v2316_v59 = vpop.f32.mrf.mxu1 }
 0x22f   : > { %13588 = vst [vmem:[#allocation60_spill] sm:$0xff] %v10026_v29 }
 0x230   : > { %v2603_v25 = vpop.f32.mrf.mxu0 }
 0x231   : > { %v10029_v18 = vadd.f32 %v2603_v25, %v9709_v48 }
 0x232   : > { %v2605_v19 = vpop.f32.mrf.mxu0 }
 0x233   : > { %v10032_v51 = vadd.f32 %v2605_v19, %v9712_v40 }
 0x234   : > { %v2607_v14 = vpop.f32.mrf.mxu0 }
 0x235   : > { %v10035_v62 = vadd.f32 %v2607_v14, %v9720_v33 }
 0x236   : > { %v10037_v35 = vpop.f32.mrf.mxu0 }
 0x238   : > { %v2613_v55 = vpop.f32.mrf.mxu0 }
 0x239   : > { %v10040_v58 = vadd.f32 %v2613_v55, %v9727_v50 }
 0x23a   : > { %v2615_v11 = vpop.f32.mrf.mxu0 }
 0x23b   : > { %v10043_v1 = vadd.f32 %v2615_v11, %v9730_v49 }
 0x23c   : > { %v2617_v48 = vpop.f32.mrf.mxu0 }
 0x23d   : > { %v10046_v25 = vadd.f32 %v2617_v48, %v9738_v43 }
 0x23e   : > { %v10048_v40 = vpop.f32.mrf.mxu0 }
 0x240   : > { %v2623_v44 = vpop.f32.mrf.mxu0 }
 0x241   : > { %v10051_v33 = vadd.f32 %v2623_v44, %v9745_v63 }
 0x242   : > { %v2625_v4 = vpop.f32.mrf.mxu0 }
 0x243   : > { %v10054_v2 = vadd.f32 %v2625_v4, %v9748_v13  ;;  %v2880_v13 = vlaneseq }
 0x244   : > { %v10056_v50 = vpop.f32.mrf.mxu0 }
 0x245   : > { %v10074_v44 = vshrl.u32 %v2880_v13, 7 }
 0x246   : > { %v10058_v17 = vpop.f32.mrf.mxu0 }
 0x247   : > { %13589 = vst [vmem:[#allocation87_spill] sm:$0xff] %v10074_v44  ;;  %v13293_v27 = vsub.s32 0, %v10074_v44  ;;  %v13294_v47 = vsub.s32 1, %v10074_v44 }
 0x248   : > { %v10060_v49 = vpop.f32.mrf.mxu0 }
 0x249   : > { %v10083_v52 = vrot.slane %v2878_v26, %v13293_v27  ;;  %v10088_v9 = vrot.slane %v2878_v26, %v13294_v47 }
 0x24a   : > { %v10062_v59 = vpop.f32.mrf.mxu0 }
 0x24c   : > { %v10064_v43 = vpop.f32.mrf.mxu0 }
 0x24e   : > { %v10066_v19 = vpop.f32.mrf.mxu0 }
 0x250   : > { %v10068_v14 = vpop.f32.mrf.mxu0 }
 0x252   : > { %v10070_v63 = vpop.f32.mrf.mxu0 }
 0x254   : > { %v10072_v55 = vpop.f32.mrf.mxu0 }
 0x256   : > { %v2649_v11 = vpop.f32.mrf.mxu0 }
 0x258   : > { %v2653_v48 = vpop.f32.mrf.mxu0 }
 0x25a   : > { %v2655_v4 = vpop.f32.mrf.mxu0 }
 0x25c   : > { %v2657_v29 = vpop.f32.mrf.mxu0 }
 0x25e   : > { %v2659_v57 = vpop.f32.mrf.mxu0 }
 0x260   : > { %v2663_v6 = vpop.f32.mrf.mxu0 }
 0x261   : > { %v2824_v45 = vadd.f32 %v2663_v6, %v9817_v23 }
 0x262   : > { %v2665_v13 = vpop.f32.mrf.mxu0 }
 0x263   : > { %v10091_v5 = vadd.f32 %v10083_v52, %v2824_v45  ;;  %v2825_v34 = vadd.f32 %v2665_v13, %v9820_v39  ;;  %v2345_v39 = vadd.f32 %v9823_v20, %v9826_v15  ;;  %v2341_v15 = vadd.f32 %v9805_v38, %v9808_v53 }
 0x264   : > { %v2667_v24 = vpop.f32.mrf.mxu0 }
 0x265   : > { %v10095_v10 = vadd.f32 %v10088_v9, %v2825_v34  ;;  %v13297_v27 = vmax.f32 %v10091_v5, 0.0  ;;  %v2826_v20 = vadd.f32 %v2667_v24, %v9828_v21 }
 0x266   : > { %v2669_v0 = vpop.f32.mrf.mxu0 }
 0x267   : > { %v13325_v8 = vmax.f32 %v10095_v10, 0.0 }
 0x268   : > { %v2673_v23 = vpop.f32.mrf.mxu0 }
 0x269   : > { %v2828_v6 = vadd.f32 %v2673_v23, %v9835_v7  ;;  %v8001_v45 = vpack.i.bf16 %v13325_v8, %v13297_v27  ;;  %v2349_v7 = vadd.f32 %v9841_v12, %v9844_v22  ;;  %v2827_v23 = vadd.f32 %v2669_v0, %v2345_v39 }
 0x26a   : > { %v2675_v26 = vpop.f32.mrf.mxu0  ;;  %v2333_v12 = vadd.f32 %v9769_v42, %v9772_v37  ;;  %v2821_v0 = vadd.f32 %v2655_v4, %v9802_v30  ;;  %v2337_v42 = vadd.f32 %v9787_v46, %v9790_v36  ;;  %v2820_v37 = vadd.f32 %v2653_v48, %v9799_v56  ;;  %v13590_v46 = vld [vmem:[#allocation72_spill] sm:$0xff] }
 0x26b   : > { %v10107_v34 = vadd.f32 %v10083_v52, %v2828_v6  ;;  %v2829_v13 = vadd.f32 %v2675_v26, %v9838_v41  ;;  %8002 = vrot.lane.b32.xlu1 %v8001_v45, %s8669_s21  ;;  %v10129_v53 = vadd.f32 %v10088_v9, %v2827_v23  ;;  %v2822_v30 = vadd.f32 %v2657_v29, %v9810_v31 }
 0x26c   : > { %v2677_v47 = vpop.f32.mrf.mxu0  ;;  %v2817_v36 = vadd.f32 %v10070_v63, %v13590_v46  ;;  %v2819_v56 = vadd.f32 %v2649_v11, %v2337_v42  ;;  %v10156_v31 = vadd.f32 %v10088_v9, %v2821_v0  ;;  %v13592_v11 = vld [vmem:[#allocation69_spill] sm:$0xff] }
 0x26d   : > { %v10114_v44 = vadd.f32 %v10088_v9, %v2829_v13  ;;  %v2830_v27 = vadd.f32 %v2677_v47, %v9846_v3  ;;  %v13319_v41 = vmax.f32 %v10107_v34, 0.0  ;;  %v2823_v3 = vadd.f32 %v2659_v57, %v2341_v15  ;;  %v13591_v15 = vld [vmem:[#allocation20_spill] sm:$0xff]  ;;  %v13594_v0 = vld [vmem:[#allocation17_spill] sm:$0xff] }
 0x26e   : > { %v2679_v6 = vpop.f32.mrf.mxu0  ;;  %v10144_v57 = vadd.f32 %v10083_v52, %v2826_v20  ;;  %v2813_v20 = vadd.f32 %v10062_v59, %v13592_v11 }
 0x26f   : > { %v13324_v45 = vmax.f32 %v10114_v44, 0.0  ;;  %v10123_v26 = vadd.f32 %v10083_v52, %v2830_v27  ;;  %v2831_v22 = vadd.f32 %v2679_v6, %v2349_v7  ;;  %v10159_v29 = vadd.f32 %v10088_v9, %v2823_v3  ;;  %v13593_v6 = vld [vmem:[#allocation71_spill] sm:$0xff] }
 0x270   : > { %v2683_v47 = vpop.f32.mrf.mxu0  ;;  %v13299_v7 = vmax.f32 %v10129_v53, 0.0  ;;  %v2818_v3 = vadd.f32 %v10072_v55, %v13594_v0  ;;  %v13298_v42 = vmax.f32 %v10144_v57, 0.0  ;;  %v10192_v55 = vadd.f32 %v10088_v9, %v2817_v36  ;;  %v13600_v36 = vld [vmem:[#allocation65_spill] sm:$0xff] }
 0x271   : > { %v10132_v38 = vadd.f32 %v10088_v9, %v2831_v22  ;;  %v2832_v21 = vadd.f32 %v2683_v47, %v9853_v61  ;;  %v8006_v24 = vpack.i.bf16 %v13324_v45, %v13319_v41  ;;  %v13314_v4 = vmax.f32 %v10123_v26, 0.0 }
 0x272   : > { %v2685_v27 = vpop.f32.mrf.mxu0  ;;  %v2816_v22 = vadd.f32 %v10068_v14, %v13593_v6  ;;  %v10179_v47 = vadd.f32 %v10083_v52, %v2820_v37  ;;  %v2815_v14 = vadd.f32 %v10066_v19, %v2333_v12  ;;  %13597 = vst [vmem:[#allocation69_spill] sm:$0xff] %v10192_v55  ;;  %v10195_v37 = vadd.f32 %v10088_v9, %v2819_v56  ;;  %v13599_v12 = vld [vmem:[#allocation66_spill] sm:$0xff] }
 0x273   : > { %v13326_v61 = vmax.f32 %v10132_v38, 0.0  ;;  %v10149_v39 = vadd.f32 %v10083_v52, %v2832_v21  ;;  %v2833_v13 = vadd.f32 %v2685_v27, %v9856_v28  ;;  %8007 = vrot.lane.b32.xlu0 %v8006_v24, %s8669_s21  ;;  %v10184_v24 = vadd.f32 %v10083_v52, %v2822_v30  ;;  %v13602_v6 = vld [vmem:[#allocation70_spill] sm:$0xff] }
 0x274   : > { %v2687_v48 = vpop.f32.mrf.mxu0  ;;  %13595 = vst [vmem:[#allocation72_spill] sm:$0xff] %v10179_v47  ;;  %13598 = vst [vmem:[#allocation71_spill] sm:$0xff] %v10195_v37  ;;  %v13303_v46 = vmax.f32 %v10159_v29, 0.0  ;;  %v2329_v56 = vadd.f32 %v13600_v36, %v13599_v12  ;;  %v10217_v0 = vadd.f32 %v10083_v52, %v2816_v22  ;;  %v10234_v22 = vadd.f32 %v10088_v9, %v2815_v14  ;;  %v13609_v14 = vld [vmem:[#allocation63_spill] sm:$0xff] }
 0x275   : > { %v10163_v23 = vadd.f32 %v10088_v9, %v2833_v13  ;;  %v10166_v28 = vadd.f32 %v2687_v48, %v13591_v15  ;;  %v8011_v63 = vpack.i.bf16 %v13326_v61, %v13314_v4  ;;  %13596 = vst [vmem:[#allocation20_spill] sm:$0xff] %v10184_v24  ;;  %v13300_v27 = vmax.f32 %v10149_v39, 0.0 }
 0x276   : > { %v10181_v21 = vpop.f32.mrf.mxu0  ;;  %v13305_v13 = vmax.f32 %v10156_v31, 0.0  ;;  %v8016_v15 = vpack.i.bf16 %v13299_v7, %v13298_v42  ;;  %13603 = vst [vmem:[#allocation17_spill] sm:$0xff] %v10217_v0  ;;  %v10220_v42 = vadd.f32 %v10083_v52, %v2818_v3  ;;  %v13304_v7 = vmax.f32 %v10179_v47, 0.0  ;;  %v13644_v47 = vld [vmem:[#allocation74_spill] sm:$0xff] }
 0x277   : > { %v13301_v59 = vmax.f32 %v10163_v23, 0.0  ;;  %8012 = vrot.lane.b32.xlu0 %v8011_v63, %s8669_s21  ;;  %v13601_v63 = vld [vmem:[#allocation68_spill] sm:$0xff]  ;;  %v13309_v3 = vmax.f32 %v10192_v55, 0.0  ;;  %v13307_v36 = vmax.f32 %v10195_v37, 0.0 }
 0x278   : > { %v2693_v30 = vpop.f32.mrf.mxu0  ;;  %v2812_v11 = vadd.f32 %v10060_v49, %v13601_v63  ;;  %13604 = vst [vmem:[#allocation66_spill] sm:$0xff] %v10220_v42  ;;  %v2811_v49 = vadd.f32 %v10058_v17, %v2329_v56  ;;  %13606 = vst [vmem:[#allocation68_spill] sm:$0xff] %v10234_v22  ;;  %v13607_v63 = vld [vmem:[#allocation22_spill] sm:$0xff]  ;;  %v8026_v17 = vpack.i.bf16 %v13305_v13, %v13304_v7  ;;  %v13610_v56 = vld [vmem:[#allocation67_spill] sm:$0xff] }
 0x279   : > { %v10200_v48 = vadd.f32 %v2693_v30, %v9871_v32  ;;  %v8021_v19 = vpack.i.bf16 %v13301_v59, %v13300_v27  ;;  %v2814_v32 = vadd.f32 %v10064_v43, %v13602_v6  ;;  %v13302_v27 = vmax.f32 %v10184_v24, 0.0 }
 0x27a   : > { %v2695_v30 = vpop.f32.mrf.mxu0  ;;  %v10231_v43 = vadd.f32 %v10088_v9, %v2813_v20  ;;  %v13608_v20 = vld [vmem:[#allocation64_spill] sm:$0xff]  ;;  %v2810_v6 = vadd.f32 %v10056_v50, %v13610_v56  ;;  %v10268_v50 = vadd.f32 %v10088_v9, %v10054_v2  ;;  %v13313_v56 = vmax.f32 %v10234_v22, 0.0  ;;  %v13636_v22 = vld [vmem:[#allocation37_spill] sm:$0xff] }
 0x27b   : > { %v10225_v59 = vadd.f32 %v2695_v30, %v9874_v16  ;;  %8017 = vrot.lane.b32.xlu0 %v8016_v15, %s8669_s21  ;;  %8022 = vrot.lane.b32.xlu1 %v8021_v19, %s8669_s21  ;;  %v8031_v15 = vpack.i.bf16 %v13303_v46, %v13302_v27  ;;  %v2325_v19 = vadd.f32 %v13609_v14, %v13608_v20  ;;  %v13308_v27 = vmax.f32 %v10217_v0, 0.0  ;;  %v13637_v0 = vld [vmem:[#allocation38_spill] sm:$0xff] }
 0x27c   : > { %13605 = vst [vmem:[#allocation65_spill] sm:$0xff] %v10231_v43  ;;  %v2697_v12 = vpop.f32.mrf.mxu0  ;;  %v13306_v46 = vmax.f32 %v10220_v42, 0.0  ;;  %13613 = vst [vmem:[#allocation64_spill] sm:$0xff] %v10268_v50  ;;  %v1312_v42 = vadd.f32 %v13637_v0, %v13636_v22 }
 0x27d   : > { %v10239_v16 = vadd.f32 %v2697_v12, %v13607_v63  ;;  %v10256_v12 = vadd.f32 %v10083_v52, %v2812_v11  ;;  %v10259_v63 = vadd.f32 %v10083_v52, %v2814_v32  ;;  %v2807_v20 = vadd.f32 %v10048_v40, %v2325_v19 }
 0x27e   : > { %v10253_v30 = vpop.f32.mrf.mxu0  ;;  %v10271_v11 = vadd.f32 %v10088_v9, %v2811_v49  ;;  %v13311_v32 = vmax.f32 %v10231_v43, 0.0  ;;  %v8041_v40 = vpack.i.bf16 %v13307_v36, %v13306_v46  ;;  %v8036_v2 = vpack.i.bf16 %v13309_v3, %v13308_v27  ;;  %v13615_v49 = vld [vmem:[#allocation62_spill] sm:$0xff]  ;;  %v13635_v43 = vld [vmem:[#allocation43_spill] sm:$0xff] }
 0x27f   : > { %13611 = vst [vmem:[#allocation70_spill] sm:$0xff] %v10256_v12  ;;  %13612 = vst [vmem:[#allocation22_spill] sm:$0xff] %v10259_v63  ;;  %8032 = vrot.lane.b32.xlu0 %v8031_v15, %s8669_s21  ;;  %8027 = vrot.lane.b32.xlu1 %v8026_v17, %s8669_s21  ;;  %v13616_v15 = vld [vmem:[#allocation61_spill] sm:$0xff]  ;;  %v10290_v19 = vadd.f32 %v10083_v52, %v10051_v33  ;;  %v13312_v46 = vmax.f32 %v10259_v63, 0.0  ;;  %v10305_v33 = vadd.f32 %v10088_v9, %v10043_v1 }
 0x280   : > { %13614 = vst [vmem:[#allocation63_spill] sm:$0xff] %v10271_v11  ;;  %v2703_v14 = vpop.f32.mrf.mxu0  ;;  %v2321_v17 = vadd.f32 %v13616_v15, %v13615_v49  ;;  %v13317_v15 = vmax.f32 %v10268_v50, 0.0  ;;  %v13318_v3 = vmax.f32 %v10271_v11, 0.0 }
 0x281   : > { %v10276_v7 = vadd.f32 %v2703_v14, %v9889_v60  ;;  %13617 = vst [vmem:[#allocation67_spill] sm:$0xff] %v10290_v19  ;;  %v10293_v60 = vadd.f32 %v10083_v52, %v2810_v6  ;;  %v13310_v14 = vmax.f32 %v10256_v12, 0.0  ;;  %13619 = vst [vmem:[#allocation61_spill] sm:$0xff] %v10305_v33  ;;  %v10308_v6 = vadd.f32 %v10088_v9, %v2807_v20 }
 0x282   : > { %v2705_v13 = vpop.f32.mrf.mxu0  ;;  %v2803_v49 = vadd.f32 %v10037_v35, %v2321_v17  ;;  %v8051_v35 = vpack.i.bf16 %v13313_v56, %v13312_v46  ;;  %v10364_v46 = vadd.f32 %v10083_v52, %v10035_v62 }
 0x283   : > { %13618 = vst [vmem:[#allocation62_spill] sm:$0xff] %v10293_v60  ;;  %v10298_v36 = vadd.f32 %v2705_v13, %v9892_v54  ;;  %8042 = vrot.lane.b32.xlu0 %v8041_v40, %s8669_s21  ;;  %8037 = vrot.lane.b32.xlu1 %v8036_v2, %s8669_s21  ;;  %13620 = vst [vmem:[#allocation88_spill] sm:$0xff] %v10308_v6  ;;  %v13621_v54 = vld [vmem:[#allocation24_spill] sm:$0xff]  ;;  %v8046_v1 = vpack.i.bf16 %v13311_v32, %v13310_v14  ;;  %v13316_v2 = vmax.f32 %v10290_v19, 0.0 }
 0x284   : > { %v2707_v27 = vpop.f32.mrf.mxu0  ;;  %v10327_v40 = vadd.f32 %v10083_v52, %v10040_v58  ;;  %v13315_v17 = vmax.f32 %v10293_v60, 0.0  ;;  %v10342_v14 = vadd.f32 %v10088_v9, %v2803_v49  ;;  %v13323_v32 = vmax.f32 %v10308_v6, 0.0  ;;  %13627 = vst [vmem:[#allocation93_spill] sm:$0xff] %v10364_v46  ;;  %v13633_v6 = vld [vmem:[#allocation42_spill] sm:$0xff]  ;;  %v13634_v60 = vld [vmem:[#allocation73_spill] sm:$0xff] }
 0x285   : > { %v10313_v13 = vadd.f32 %v2707_v27, %v13621_v54  ;;  %v10331_v27 = vadd.f32 %v10083_v52, %v10046_v25  ;;  %v10339_v54 = vadd.f32 %v10088_v9, %v10032_v51  ;;  %v13322_v25 = vmax.f32 %v10305_v33, 0.0 }
 0x286   : > { %v10323_v20 = vpop.f32.mrf.mxu0  ;;  %13622 = vst [vmem:[#allocation24_spill] sm:$0xff] %v10327_v40  ;;  %13625 = vst [vmem:[#allocation91_spill] sm:$0xff] %v10342_v14  ;;  %v8056_v51 = vpack.i.bf16 %v13317_v15, %v13316_v2  ;;  %v10360_v49 = vadd.f32 %v10083_v52, %v10029_v18  ;;  %v13321_v56 = vmax.f32 %v10327_v40, 0.0  ;;  %v13329_v15 = vmax.f32 %v10342_v14, 0.0  ;;  %v13628_v14 = vld [vmem:[#allocation45_spill] sm:$0xff] }
 0x287   : > { %13623 = vst [vmem:[#allocation89_spill] sm:$0xff] %v10331_v27  ;;  %8052 = vrot.lane.b32.xlu0 %v8051_v35, %s8669_s21  ;;  %8047 = vrot.lane.b32.xlu1 %v8046_v1, %s8669_s21  ;;  %13624 = vst [vmem:[#allocation90_spill] sm:$0xff] %v10339_v54  ;;  %v8061_v35 = vpack.i.bf16 %v13318_v3, %v13315_v17  ;;  %v13320_v4 = vmax.f32 %v10331_v27, 0.0  ;;  %v13334_v2 = vmax.f32 %v10339_v54, 0.0  ;;  %v13629_v54 = vld [vmem:[#allocation46_spill] sm:$0xff]  ;;  %v13631_v40 = vld [vmem:[#allocation41_spill] sm:$0xff] }
 0x288   : > { %v10344_v58 = vpop.f32.mrf.mxu0  ;;  %13626 = vst [vmem:[#allocation92_spill] sm:$0xff] %v10360_v49  ;;  %v8066_v62 = vpack.i.bf16 %v13322_v25, %v13321_v56 }
 0x289   : > { %v8071_v18 = vpack.i.bf16 %v13323_v32, %v13320_v4 }
 0x28a   : > { %v10356_v1 = vpop.f32.mrf.mxu0 }
 0x28b   : > { %8062 = vrot.lane.b32.xlu0 %v8061_v35, %s8669_s21  ;;  %8057 = vrot.lane.b32.xlu1 %v8056_v51, %s8669_s21  ;;  %v13333_v35 = vmax.f32 %v10360_v49, 0.0  ;;  %v13328_v51 = vmax.f32 %v10364_v46, 0.0 }
 0x28c   : > { %v10370_v17 = vpop.f32.mrf.mxu0 }
 0x28d   : > { %v8081_v4 = vpack.i.bf16 %v13329_v15, %v13328_v51  ;;  %v8076_v56 = vpack.i.bf16 %v13334_v2, %v13333_v35  ;;  %v1332_v35 = vadd.f32 %v13629_v54, %v13628_v14  ;;  %v13630_v2 = vld [vmem:[#allocation40_spill] sm:$0xff]  ;;  %v13638_v14 = vld [vmem:[#allocation39_spill] sm:$0xff] }
 0x28e   : > { %v10382_v3 = vpop.f32.mrf.mxu0 }
 0x28f   : > { %8072 = vrot.lane.b32.xlu0 %v8071_v18, %s8669_s21  ;;  %8067 = vrot.lane.b32.xlu1 %v8066_v62, %s8669_s21 }
 0x290   : > { %v10388_v41 = vpop.f32.mrf.mxu0 }
 0x292   : > { %v2725_v25 = vpop.f32.mrf.mxu0 }
 0x293   : > { %8082 = vrot.lane.b32.xlu0 %v8081_v4, %s8669_s21  ;;  %8077 = vrot.lane.b32.xlu1 %v8076_v56, %s8669_s21  ;;  %v1322_v4 = vadd.f32 %v13631_v40, %v13630_v2  ;;  %v13632_v56 = vld [vmem:[#allocation44_spill] sm:$0xff] }
 0x294   : > { %v10400_v18 = vpop.f32.mrf.mxu0  ;;  %v1859_v33 = vadd.f32 %v13632_v56, %v1332_v35  ;;  %v13639_v40 = vld [vmem:[#allocation76_spill] sm:$0xff] }
 0x295   : > { %v1855_v50 = vadd.f32 %v13634_v60, %v1322_v4  ;;  %v13641_v60 = vld [vmem:[#allocation34_spill] sm:$0xff]  ;;  %v13642_v4 = vld [vmem:[#allocation35_spill] sm:$0xff] }
 0x296   : > { %v10402_v62 = vpop.f32.mrf.mxu0  ;;  %v2381_v2 = vadd.f32 %v13639_v40, %v1859_v33  ;;  %v1302_v56 = vadd.f32 %v13642_v4, %v13641_v60  ;;  %v13647_v40 = vld [vmem:[#allocation32_spill] sm:$0xff] }
 0x298   : > { %v2733_v32 = vpop.f32.mrf.mxu0 }
 0x29a   : > { %v2735_v45 = vpop.f32.mrf.mxu0 }
 0x29c   : > { %v2737_v8 = vpop.f32.mrf.mxu0 }
 0x29e   : > { %v2739_v61 = vpop.f32.mrf.mxu0 }
 0x2a0   : > { %v2743_v46 = vpop.f32.mrf.mxu0 }
 0x2a2   : > { %v2745_v51 = vpop.f32.mrf.mxu0 }
 0x2a3   : > { %v2857_v54 = vadd.f32 %v2745_v51, %v13638_v14  ;;  %v13646_v14 = vld [vmem:[#allocation13_spill] sm:$0xff] }
 0x2a4   : > { %v2747_v15 = vpop.f32.mrf.mxu0 }
 0x2a5   : > { %v10436_v60 = vadd.f32 %v10088_v9, %v2857_v54  ;;  %v13653_v54 = vld [vmem:[#allocation75_spill] sm:$0xff] }
 0x2a6   : > { %v2749_v49 = vpop.f32.mrf.mxu0 }
 0x2a7   : > { %13648 = vst [vmem:[#allocation45_spill] sm:$0xff] %v10436_v60 }
 0x2a8   : > { %v2753_v27 = vpop.f32.mrf.mxu0 }
 0x2a9   : > { %v2860_v19 = vadd.f32 %v2753_v27, %v13633_v6  ;;  %v13640_v6 = vld [vmem:[#allocation77_spill] sm:$0xff] }
 0x2aa   : > { %v2755_v11 = vpop.f32.mrf.mxu0 }
 0x2ab   : > { %v10412_v12 = vadd.f32 %v10083_v52, %v2860_v19  ;;  %v2861_v63 = vadd.f32 %v2755_v11, %v13635_v43  ;;  %v13643_v19 = vld [vmem:[#allocation15_spill] sm:$0xff]  ;;  %v2377_v43 = vadd.f32 %v13644_v47, %v1855_v50  ;;  %v13645_v11 = vld [vmem:[#allocation36_spill] sm:$0xff] }
 0x2ac   : > { %v2757_v55 = vpop.f32.mrf.mxu0  ;;  %v1851_v37 = vadd.f32 %v13643_v19, %v1312_v42  ;;  %v2856_v24 = vadd.f32 %v2743_v46, %v13645_v11  ;;  %v13649_v50 = vld [vmem:[#allocation47_spill] sm:$0xff] }
 0x2ad   : > { %v10420_v35 = vadd.f32 %v10088_v9, %v2861_v63  ;;  %v2862_v27 = vadd.f32 %v2757_v55, %v13640_v6  ;;  %v13353_v22 = vmax.f32 %v10412_v12, 0.0  ;;  %v1847_v55 = vadd.f32 %v13646_v14, %v1302_v56  ;;  %v13651_v56 = vld [vmem:[#allocation14_spill] sm:$0xff] }
 0x2ae   : > { %v2759_v0 = vpop.f32.mrf.mxu0  ;;  %v2853_v6 = vadd.f32 %v2735_v45, %v13647_v40  ;;  %v2859_v47 = vadd.f32 %v2749_v49, %v2377_v43  ;;  %v2852_v11 = vadd.f32 %v2733_v32, %v13651_v56  ;;  %v10449_v45 = vadd.f32 %v10083_v52, %v2856_v24  ;;  %v13655_v40 = vld [vmem:[#allocation48_spill] sm:$0xff] }
 0x2af   : > { %v13355_v51 = vmax.f32 %v10420_v35, 0.0  ;;  %v10431_v33 = vadd.f32 %v10083_v52, %v2862_v27  ;;  %v2863_v63 = vadd.f32 %v2759_v0, %v2381_v2  ;;  %v13650_v2 = vld [vmem:[#allocation33_spill] sm:$0xff]  ;;  %v2858_v0 = vadd.f32 %v2747_v15, %v13653_v54 }
 0x2b0   : > { %v2763_v42 = vpop.f32.mrf.mxu0  ;;  %v2373_v19 = vadd.f32 %v13650_v2, %v1851_v37  ;;  %13652 = vst [vmem:[#allocation46_spill] sm:$0xff] %v10449_v45  ;;  %v13656_v37 = vld [vmem:[#allocation29_spill] sm:$0xff]  ;;  %v10461_v32 = vadd.f32 %v10088_v9, %v2853_v6  ;;  %v13358_v15 = vmax.f32 %v10436_v60, 0.0  ;;  %v10467_v56 = vadd.f32 %v10088_v9, %v2859_v47  ;;  %v13660_v6 = vld [vmem:[#allocation28_spill] sm:$0xff] }
 0x2b1   : > { %v10439_v46 = vadd.f32 %v10088_v9, %v2863_v63  ;;  %v2864_v4 = vadd.f32 %v2763_v42, %v13649_v50  ;;  %v8086_v27 = vpack.i.bf16 %v13355_v51, %v13353_v22  ;;  %v13354_v43 = vmax.f32 %v10431_v33, 0.0 }
 0x2b2   : > { %v2765_v49 = vpop.f32.mrf.mxu0  ;;  %v2849_v50 = vadd.f32 %v2725_v25, %v13656_v37  ;;  %13657 = vst [vmem:[#allocation41_spill] sm:$0xff] %v10461_v32  ;;  %v2855_v24 = vadd.f32 %v2739_v61, %v2373_v19  ;;  %13658 = vst [vmem:[#allocation44_spill] sm:$0xff] %v10467_v56  ;;  %v13659_v25 = vld [vmem:[#allocation30_spill] sm:$0xff]  ;;  %v2848_v61 = vadd.f32 %v10388_v41, %v13660_v6 }
 0x2b3   : > { %v13356_v63 = vmax.f32 %v10439_v46, 0.0  ;;  %v10455_v14 = vadd.f32 %v10083_v52, %v2864_v4  ;;  %v2865_v42 = vadd.f32 %v2765_v49, %v13655_v40  ;;  %8087 = vrot.lane.b32.xlu1 %v8086_v27, %s8669_s21  ;;  %v2369_v54 = vadd.f32 %v13659_v25, %v1847_v55  ;;  %v13662_v49 = vld [vmem:[#allocation16_spill] sm:$0xff]  ;;  %v13664_v55 = vld [vmem:[#allocation11_spill] sm:$0xff] }
 0x2b4   : > { %v10463_v2 = vpop.f32.mrf.mxu0  ;;  %v10480_v19 = vadd.f32 %v10083_v52, %v2852_v11  ;;  %v2854_v40 = vadd.f32 %v2737_v8, %v13662_v49  ;;  %v10487_v37 = vadd.f32 %v10083_v52, %v2858_v0  ;;  %v2845_v41 = vadd.f32 %v10356_v1, %v13664_v55  ;;  %v13667_v55 = vld [vmem:[#allocation25_spill] sm:$0xff]  ;;  %v13669_v49 = vld [vmem:[#allocation31_spill] sm:$0xff] }
 0x2b5   : > { %13654 = vst [vmem:[#allocation40_spill] sm:$0xff] %v10455_v14  ;;  %v10470_v4 = vadd.f32 %v10088_v9, %v2865_v42  ;;  %v8091_v27 = vpack.i.bf16 %v13356_v63, %v13354_v43  ;;  %v13357_v42 = vmax.f32 %v10449_v45, 0.0  ;;  %v13359_v22 = vmax.f32 %v10455_v14, 0.0  ;;  %v13684_v45 = vld [vmem:[#allocation18_spill] sm:$0xff] }
 0x2b6   : > { %13661 = vst [vmem:[#allocation42_spill] sm:$0xff] %v10480_v19  ;;  %v10483_v47 = vpop.f32.mrf.mxu0  ;;  %13663 = vst [vmem:[#allocation73_spill] sm:$0xff] %v10487_v37  ;;  %v10495_v11 = vadd.f32 %v10088_v9, %v2849_v50  ;;  %v2851_v8 = vadd.f32 %v10402_v62, %v2369_v54  ;;  %v10502_v0 = vadd.f32 %v10088_v9, %v2855_v24  ;;  %v13665_v62 = vld [vmem:[#allocation27_spill] sm:$0xff]  ;;  %v13666_v50 = vld [vmem:[#allocation26_spill] sm:$0xff] }
 0x2b7   : > { %v13360_v43 = vmax.f32 %v10470_v4, 0.0  ;;  %8092 = vrot.lane.b32.xlu0 %v8091_v27, %s8669_s21  ;;  %v8096_v27 = vpack.i.bf16 %v13358_v15, %v13357_v42  ;;  %v2365_v54 = vadd.f32 %v13666_v50, %v13665_v62  ;;  %v2844_v51 = vadd.f32 %v10344_v58, %v13667_v55  ;;  %v13675_v62 = vld [vmem:[#allocation12_spill] sm:$0xff] }
 0x2b8   : > { %v10499_v6 = vpop.f32.mrf.mxu0  ;;  %v10518_v24 = vadd.f32 %v10083_v52, %v2848_v61  ;;  %v2850_v25 = vadd.f32 %v10400_v18, %v13669_v49  ;;  %v13362_v42 = vmax.f32 %v10480_v19, 0.0  ;;  %v10526_v15 = vadd.f32 %v10083_v52, %v2854_v40 }
 0x2b9   : > { %v8101_v1 = vpack.i.bf16 %v13360_v43, %v13359_v22  ;;  %v13363_v22 = vmax.f32 %v10487_v37, 0.0  ;;  %v10532_v58 = vadd.f32 %v10088_v9, %v2845_v41  ;;  %v2847_v61 = vadd.f32 %v10382_v3, %v2365_v54  ;;  %v13672_v3 = vld [vmem:[#allocation10_spill] sm:$0xff]  ;;  %v13673_v54 = vld [vmem:[#allocation23_spill] sm:$0xff]  ;;  %v13686_v37 = vld [vmem:[#allocation21_spill] sm:$0xff] }
 0x2ba   : > { %13668 = vst [vmem:[#allocation43_spill] sm:$0xff] %v10518_v24  ;;  %v10520_v63 = vpop.f32.mrf.mxu0  ;;  %v10539_v18 = vadd.f32 %v10088_v9, %v2851_v8  ;;  %v13670_v49 = vmax.f32 %v10461_v32, 0.0  ;;  %v13671_v41 = vmax.f32 %v10467_v56, 0.0  ;;  %v2361_v55 = vadd.f32 %v13673_v54, %v13672_v3  ;;  %v13677_v3 = vld [vmem:[#allocation50_spill] sm:$0xff]  ;;  %v13681_v32 = vld [vmem:[#allocation57_spill] sm:$0xff] }
 0x2bb   : > { %8097 = vrot.lane.b32.xlu0 %v8096_v27, %s8669_s21  ;;  %8102 = vrot.lane.b32.xlu1 %v8101_v1, %s8669_s21  ;;  %v10553_v43 = vadd.f32 %v10083_v52, %v2844_v51  ;;  %v2846_v40 = vadd.f32 %v10370_v17, %v13675_v62  ;;  %v13371_v19 = vmax.f32 %v10518_v24, 0.0  ;;  %v10570_v54 = vadd.f32 %v10088_v9, %v10298_v36  ;;  %v13683_v62 = vld [vmem:[#allocation19_spill] sm:$0xff] }
 0x2bc   : > { %v10536_v50 = vpop.f32.mrf.mxu0  ;;  %v8111_v27 = vpack.i.bf16 %v13670_v49, %v13362_v42  ;;  %v8106_v1 = vpack.i.bf16 %v13671_v41, %v13363_v22  ;;  %v10561_v49 = vadd.f32 %v10083_v52, %v2850_v25  ;;  %v13676_v41 = vld [vmem:[#allocation49_spill] sm:$0xff]  ;;  %v2843_v17 = vadd.f32 %v10323_v20, %v2361_v55  ;;  %v13682_v20 = vld [vmem:[#allocation58_spill] sm:$0xff] }
 0x2bd   : > { %13674 = vst [vmem:[#allocation37_spill] sm:$0xff] %v10553_v43  ;;  %v1342_v51 = vadd.f32 %v13677_v3, %v13676_v41  ;;  %v10575_v25 = vadd.f32 %v10088_v9, %v2847_v61  ;;  %v13679_v41 = vmax.f32 %v10526_v15, 0.0  ;;  %v13680_v36 = vmax.f32 %v10502_v0, 0.0  ;;  %v13685_v61 = vld [vmem:[#allocation9_spill] sm:$0xff]  ;;  %v13687_v42 = vld [vmem:[#allocation78_spill] sm:$0xff] }
 0x2be   : > { %v10555_v8 = vpop.f32.mrf.mxu0  ;;  %v1362_v55 = vadd.f32 %v13682_v20, %v13681_v32  ;;  %v2353_v60 = vadd.f32 %v13684_v45, %v13683_v62  ;;  %v2357_v56 = vadd.f32 %v13686_v37, %v13685_v61  ;;  %v13374_v32 = vmax.f32 %v10561_v49, 0.0  ;;  %v13697_v62 = vld [vmem:[#allocation79_spill] sm:$0xff] }
 0x2bf   : > { %8112 = vrot.lane.b32.xlu0 %v8111_v27, %s8669_s21  ;;  %8107 = vrot.lane.b32.xlu1 %v8106_v1, %s8669_s21  ;;  %v13678_v27 = vmax.f32 %v10495_v11, 0.0  ;;  %v8116_v3 = vpack.i.bf16 %v13680_v36, %v13679_v41  ;;  %v1863_v14 = vadd.f32 %v13687_v42, %v1342_v51  ;;  %v10599_v41 = vadd.f32 %v10083_v52, %v2846_v40 }
 0x2c0   : > { %v2783_v22 = vpop.f32.mrf.mxu0  ;;  %v2835_v45 = vadd.f32 %v10181_v21, %v2353_v60  ;;  %v10607_v42 = vadd.f32 %v10088_v9, %v10225_v59  ;;  %v10612_v40 = vadd.f32 %v10088_v9, %v2843_v17  ;;  %v13692_v21 = vmax.f32 %v10539_v18, 0.0  ;;  %v13693_v60 = vld [vmem:[#allocation53_spill] sm:$0xff] }
 0x2c1   : > { %v8121_v1 = vpack.i.bf16 %v13678_v27, %v13371_v19  ;;  %v10595_v27 = vadd.f32 %v10083_v52, %v10276_v7  ;;  %v13373_v19 = vmax.f32 %v10553_v43, 0.0  ;;  %13689 = vst [vmem:[#allocation39_spill] sm:$0xff] %v10599_v41  ;;  %v2839_v7 = vadd.f32 %v10253_v30, %v2357_v56  ;;  %v13694_v30 = vld [vmem:[#allocation54_spill] sm:$0xff] }
 0x2c2   : > { %v2785_v24 = vpop.f32.mrf.mxu0  ;;  %13690 = vst [vmem:[#allocation76_spill] sm:$0xff] %v10607_v42  ;;  %v8126_v59 = vpack.i.bf16 %v13692_v21, %v13374_v32  ;;  %v1352_v56 = vadd.f32 %v13694_v30, %v13693_v60  ;;  %v10628_v17 = vadd.f32 %v10083_v52, %v10200_v48  ;;  %v2385_v37 = vadd.f32 %v13697_v62, %v1863_v14 }
 0x2c3   : > { %13688 = vst [vmem:[#allocation38_spill] sm:$0xff] %v10595_v27  ;;  %8122 = vrot.lane.b32.xlu0 %v8121_v1, %s8669_s21  ;;  %8117 = vrot.lane.b32.xlu1 %v8116_v3, %s8669_s21  ;;  %v13691_v1 = vmax.f32 %v10532_v58, 0.0  ;;  %v13695_v3 = vld [vmem:[#allocation84_spill] sm:$0xff]  ;;  %v13375_v43 = vmax.f32 %v10595_v27, 0.0  ;;  %v13378_v21 = vmax.f32 %v10599_v41, 0.0  ;;  %v10641_v48 = vadd.f32 %v10088_v9, %v2835_v45  ;;  %v13706_v27 = vld [vmem:[#allocation59_spill] sm:$0xff] }
 0x2c4   : > { %v2787_v51 = vpop.f32.mrf.mxu0  ;;  %v1871_v20 = vadd.f32 %v13695_v3, %v1362_v55  ;;  %13696 = vst [vmem:[#allocation77_spill] sm:$0xff] %v10628_v17  ;;  %v13698_v55 = vld [vmem:[#allocation81_spill] sm:$0xff]  ;;  %v10645_v14 = vadd.f32 %v10088_v9, %v2839_v7  ;;  %v13699_v3 = vld [vmem:[#allocation56_spill] sm:$0xff]  ;;  %v13701_v45 = vmax.f32 %v10575_v25, 0.0  ;;  %v10660_v7 = vadd.f32 %v10083_v52, %v10166_v28 }
 0x2c5   : > { %v8131_v36 = vpack.i.bf16 %v13691_v1, %v13373_v19  ;;  %v10634_v1 = vadd.f32 %v10083_v52, %v10313_v13  ;;  %v1867_v60 = vadd.f32 %v13698_v55, %v1352_v56  ;;  %v2873_v19 = vadd.f32 %v2785_v24, %v13699_v3  ;;  %v13702_v55 = vld [vmem:[#allocation85_spill] sm:$0xff] }
 0x2c6   : > { %v2789_v61 = vpop.f32.mrf.mxu0  ;;  %v8136_v56 = vpack.i.bf16 %v13701_v45, %v13378_v21  ;;  %v2393_v32 = vadd.f32 %v13702_v55, %v1871_v20  ;;  %13703 = vst [vmem:[#allocation34_spill] sm:$0xff] %v10660_v7  ;;  %v13379_v13 = vmax.f32 %v10628_v17, 0.0  ;;  %v10665_v24 = vadd.f32 %v10083_v52, %v10239_v16  ;;  %v13707_v45 = vld [vmem:[#allocation60_spill] sm:$0xff]  ;;  %v13714_v20 = vld [vmem:[#allocation82_spill] sm:$0xff] }
 0x2c7   : > { %8132 = vrot.lane.b32.xlu0 %v8131_v36, %s8669_s21  ;;  %8127 = vrot.lane.b32.xlu1 %v8126_v59, %s8669_s21  ;;  %v13700_v36 = vmax.f32 %v10570_v54, 0.0  ;;  %v13708_v55 = vld [vmem:[#allocation52_spill] sm:$0xff] }
 0x2c8   : > { %v2793_v62 = vpop.f32.mrf.mxu0  ;;  %13704 = vst [vmem:[#allocation35_spill] sm:$0xff] %v10665_v24  ;;  %v2869_v16 = vadd.f32 %v10520_v63, %v13708_v55  ;;  %v2389_v63 = vadd.f32 %v13714_v20, %v1867_v60  ;;  %v13393_v55 = vmax.f32 %v10660_v7, 0.0  ;;  %v13392_v28 = vmax.f32 %v10665_v24, 0.0 }
 0x2c9   : > { %v8141_v59 = vpack.i.bf16 %v13700_v36, %v13375_v43  ;;  %v13705_v43 = vld [vmem:[#allocation55_spill] sm:$0xff]  ;;  %v2876_v41 = vadd.f32 %v2793_v62, %v13706_v27  ;;  %v13709_v36 = vmax.f32 %v10607_v42, 0.0  ;;  %v10682_v27 = vadd.f32 %v10088_v9, %v2873_v19 }
 0x2ca   : > { %v2795_v3 = vpop.f32.mrf.mxu0  ;;  %v2872_v30 = vadd.f32 %v2783_v22, %v13705_v43  ;;  %v2875_v62 = vadd.f32 %v2789_v61, %v2393_v32  ;;  %v13717_v61 = vld [vmem:[#allocation86_spill] sm:$0xff]  ;;  %v2867_v60 = vadd.f32 %v10483_v47, %v2385_v37  ;;  %v10707_v20 = vadd.f32 %v10088_v9, %v2869_v16  ;;  %v13723_v37 = vld [vmem:[#allocation80_spill] sm:$0xff] }
 0x2cb   : > { %v2877_v21 = vadd.f32 %v2795_v3, %v13707_v45  ;;  %8142 = vrot.lane.b32.xlu0 %v8141_v59, %s8669_s21  ;;  %8137 = vrot.lane.b32.xlu1 %v8136_v56, %s8669_s21  ;;  %v8151_v22 = vpack.i.bf16 %v13709_v36, %v13379_v13  ;;  %13710 = vst [vmem:[#allocation15_spill] sm:$0xff] %v10682_v27  ;;  %v13712_v56 = vmax.f32 %v10634_v1, 0.0  ;;  %v13713_v3 = vmax.f32 %v10612_v40, 0.0  ;;  %v13715_v36 = vld [vmem:[#allocation51_spill] sm:$0xff] }
 0x2cc   : > { %v2797_v43 = vpop.f32.mrf.mxu0  ;;  %v10697_v32 = vadd.f32 %v10083_v52, %v2872_v30  ;;  %v10701_v13 = vadd.f32 %v10083_v52, %v2876_v41  ;;  %13719 = vst [vmem:[#allocation32_spill] sm:$0xff] %v10707_v20  ;;  %v2866_v16 = vadd.f32 %v10463_v2, %v13723_v37  ;;  %v13381_v2 = vmax.f32 %v10707_v20, 0.0  ;;  %v13754_v20 = vld [vmem:[#allocation69_spill] sm:$0xff] }
 0x2cd   : > { %v10685_v59 = vadd.f32 %v10088_v9, %v2877_v21  ;;  %v8146_v45 = vpack.i.bf16 %v13713_v3, %v13712_v56  ;;  %v2868_v43 = vadd.f32 %v10499_v6, %v13715_v36  ;;  %v2874_v21 = vadd.f32 %v2787_v51, %v13717_v61  ;;  %v13725_v36 = vld [vmem:[#allocation83_spill] sm:$0xff] }
 0x2ce   : > { %v2798_v19 = vpop.f32.mrf.mxu0  ;;  %13716 = vst [vmem:[#allocation36_spill] sm:$0xff] %v10697_v32  ;;  %13718 = vst [vmem:[#allocation13_spill] sm:$0xff] %v10701_v13  ;;  %v13720_v6 = vmax.f32 %v10641_v48, 0.0  ;;  %v13721_v51 = vmax.f32 %v10645_v14, 0.0  ;;  %v2871_v56 = vadd.f32 %v10555_v8, %v2389_v63  ;;  %v10720_v3 = vadd.f32 %v10088_v9, %v2875_v62 }
 0x2cf   : > { %13711 = vst [vmem:[#allocation74_spill] sm:$0xff] %v10685_v59  ;;  %8152 = vrot.lane.b32.xlu0 %v8151_v22, %s8669_s21  ;;  %8147 = vrot.lane.b32.xlu1 %v8146_v45, %s8669_s21  ;;  %v13388_v22 = vmax.f32 %v10682_v27, 0.0  ;;  %v13391_v47 = vmax.f32 %v10685_v59, 0.0  ;;  %v10726_v45 = vadd.f32 %v10083_v52, %v2868_v43  ;;  %v2870_v19 = vadd.f32 %v10536_v50, %v13725_v36 }
 0x2d0   : > { %v8161_v30 = vpack.i.bf16 %v13720_v6, %v13393_v55  ;;  %v8156_v41 = vpack.i.bf16 %v13721_v51, %v13392_v28  ;;  %13722 = vst [vmem:[#allocation47_spill] sm:$0xff] %v10720_v3  ;;  %v13383_v61 = vmax.f32 %v10697_v32, 0.0  ;;  %v10732_v8 = vadd.f32 %v10083_v52, %v2874_v21 }
 0x2d1   : > { %13724 = vst [vmem:[#allocation33_spill] sm:$0xff] %v10726_v45  ;;  %v13384_v63 = vmax.f32 %v10701_v13, 0.0  ;;  %v10738_v62 = vadd.f32 %v10088_v9, %v2867_v60  ;;  %v10742_v43 = vadd.f32 %v10088_v9, %v2871_v56  ;;  %v13385_v50 = vmax.f32 %v10720_v3, 0.0  ;;  %v13759_v3 = vld [vmem:[#allocation17_spill] sm:$0xff] }
 0x2d2   : > { %13726 = vst [vmem:[#allocation14_spill] sm:$0xff] %v10732_v8  ;;  %v8171_v21 = vpack.i.bf16 %v13388_v22, %v13383_v61  ;;  %v10754_v60 = vadd.f32 %v10083_v52, %v2866_v16  ;;  %v10758_v9 = vadd.f32 %v10083_v52, %v2870_v19  ;;  %v13382_v51 = vmax.f32 %v10732_v8, 0.0 }
 0x2d3   : > { %8162 = vrot.lane.b32.xlu0 %v8161_v30, %s8669_s21  ;;  %8157 = vrot.lane.b32.xlu1 %v8156_v41, %s8669_s21  ;;  %13727 = vst [vmem:[#allocation75_spill] sm:$0xff] %v10738_v62  ;;  %13728 = vst [vmem:[#allocation48_spill] sm:$0xff] %v10742_v43  ;;  %v8166_v6 = vpack.i.bf16 %v13391_v47, %v13384_v63  ;;  %v13380_v30 = vmax.f32 %v10726_v45, 0.0  ;;  %v13387_v41 = vmax.f32 %v10738_v62, 0.0  ;;  %v13390_v56 = vmax.f32 %v10742_v43, 0.0 }
 0x2d4   : > { %13729 = vst [vmem:[#allocation29_spill] sm:$0xff] %v10754_v60  ;;  %13730 = vst [vmem:[#allocation30_spill] sm:$0xff] %v10758_v9  ;;  %v8176_v52 = vpack.i.bf16 %v13385_v50, %v13382_v51  ;;  %v13386_v16 = vmax.f32 %v10754_v60, 0.0  ;;  %v13389_v36 = vmax.f32 %v10758_v9, 0.0  ;;  %v13745_v9 = vld [vmem:[#allocation20_spill] sm:$0xff]  ;;  %v13755_v43 = vmax.f32 %v13754_v20, 0.0 }
 0x2d5   : > { %v8181_v37 = vpack.i.bf16 %v13381_v2, %v13380_v30  ;;  %v13760_v27 = vmax.f32 %v13759_v3, 0.0 }
 0x2d6   : > { %v8191_v19 = vpack.i.bf16 %v13387_v41, %v13386_v16  ;;  %v13731_v41 = vmax.f32 %v10132_v38, 0.0 }
 0x2d7   : > { %8172 = vrot.lane.b32.xlu0 %v8171_v21, %s8669_s21  ;;  %8167 = vrot.lane.b32.xlu1 %v8166_v6, %s8669_s21  ;;  %v8186_v21 = vpack.i.bf16 %v13390_v56, %v13389_v36 }
 0x2db   : > { %8182 = vrot.lane.b32.xlu0 %v8181_v37, %s8669_s21  ;;  %8177 = vrot.lane.b32.xlu1 %v8176_v52, %s8669_s21 }
 0x2dd   : > { %v8003_v6 = vpop.permute.xlu1 %8002 }
 0x2de   : > { %v8005_v2 = vunpack.i.h.bf16 %v8003_v6  ;;  %v8004_v37 = vunpack.i.l.bf16 %v8003_v6 }
 0x2df   : > { %8192 = vrot.lane.b32.xlu0 %v8191_v19, %s8669_s21  ;;  %8187 = vrot.lane.b32.xlu1 %v8186_v21, %s8669_s21  ;;  %v13732_v19 = vmax.f32 %v10095_v10, 0.0  ;;  %v13733_v21 = vmax.f32 %v10114_v44, 0.0  ;;  %v8358_v10 = vld [vmem:[%s13267_s3 + $0x4] ss:$12 sps:$4 sm:$0xff]   ;;  %s432_s21 = sand.u32 1, %s8658_s26  }
 0x2e0   : > { %v3293_v16 = vsel %vm3280_vm5, %v8004_v37, %v8005_v2  ;;  %v13734_v37 = vmax.f32 %v10091_v5, 0.0  ;;  %v13737_v5 = vmax.f32 %v10129_v53, 0.0  ;;  %4102 = vmatprep.mubr.bf16.mxu1 %v8358_v10  ;;  %s7281_s17 = sshll.u32 %s432_s21, 3  ;;  %s7205_s30 = scalar_lea.sflag [#allocation3], %s432_s21 }
 0x2e1   : > { %v10794_v36 = vmax.f32 %v13732_v19, %v8005_v2  ;;  %s434_s16 = scalar_lea.vmem [#allocation2], %s7281_s17  ;;  %s8610_s17 = sshll.u32 %s8674_s29, 4  ;;  %s8611_s17 = int_to_ptr.vmem [resolvable:$false] %s8610_s17 }
 0x2e2   : > { %v10804_v28 = vmax.f32 %v13734_v37, %v3293_v16  ;;  %s7218_s23 = sshll.u32 %s434_s16, 4  ;;  %s8612_s19 = scalar_lea.vmem %s8611_s17, 256  ;;  %s13225_s23 = int_to_ptr.vmem [resolvable:$true] %s7218_s23 }
 0x2e3   : > { %s8606_s20 = scalar_lea.vmem %s13225_s23, 128  ;;  %p8613_p0 = scmp.lt.s32.totalorder %s13225_s23, %s8611_s17 }
 0x2e4   : > { %p8607_p11 = scmp.ne.s32.totalorder %s13225_s23, %s8606_s20  ;;  %p8614_p1 = scmp.lt.s32.totalorder %s8612_s19, %s8606_s20 }
 0x2e5   : > { %v8008_v30 = vpop.permute.xlu0 %8007 }
 0x2e6   : > { %v8010_v52 = vunpack.i.h.bf16 %v8008_v30  ;;  %v8009_v51 = vunpack.i.l.bf16 %v8008_v30  ;;  %p8608_p12 = pnand %p8607_p11, %p8783_p5  ;;  %p8615_p2 = por %p8614_p1, %p8613_p0 }
 0x2e8   : > { %v10798_v56 = vmax.f32 %v13733_v21, %v8010_v52  ;;  %v3295_v6 = vsel %vm3280_vm5, %v8009_v51, %v8010_v52  ;;  %v13735_v51 = vmax.f32 %v10107_v34, 0.0  ;;  %p8609_p13 = pneg %p8608_p12 }
 0x2e9   : > { %v8013_v61 = vpop.permute.xlu0 %8012 }
 0x2ea   : > { %v8015_v63 = vunpack.i.h.bf16 %v8013_v61  ;;  %v8014_v50 = vunpack.i.l.bf16 %v8013_v61  ;;  %v10812_v52 = vmax.f32 %v13735_v51, %v3295_v6  ;;  %v3611_v21 = vrot.slane %v10798_v56, 1  ;;  %p8616_p3 = pnand %p8615_p2, %p8609_p13 }
 0x2ec   : > { %v10790_v22 = vmax.f32 %v13731_v41, %v8015_v63  ;;  %v3296_v30 = vsel %vm3280_vm5, %v8014_v50, %v8015_v63  ;;  %v13736_v63 = vmax.f32 %v10123_v26, 0.0  ;;  %v13741_v26 = vmax.f32 %v10159_v29, 0.0 }
 0x2ed   : > { %v8018_v47 = vpop.permute.xlu0 %8017  ;;  %v8023_v61 = vpop.permute.xlu1 %8022  ;;  %v13746_v29 = vmax.f32 %v13745_v9, 0.0 }
 0x2ee   : > { %v8020_v38 = vunpack.i.h.bf16 %v8018_v47  ;;  %v8019_v41 = vunpack.i.l.bf16 %v8018_v47  ;;  %v8025_v55 = vunpack.i.h.bf16 %v8023_v61  ;;  %v3615_v44 = vrot.slane %v10790_v22, 1 }
 0x2ef   : > { %v8024_v2 = vunpack.i.l.bf16 %v8023_v61  ;;  %v10816_v50 = vmax.f32 %v13736_v63, %v3296_v30  ;;  %v13738_v61 = vmax.f32 %v10163_v23, 0.0  ;;  %v13740_v30 = vmax.f32 %v10144_v57, 0.0 }
 0x2f0   : > { %v10820_v16 = vmax.f32 %v13737_v5, %v8020_v38  ;;  %v3294_v47 = vsel %vm3280_vm5, %v8019_v41, %v8020_v38  ;;  %v10836_v5 = vsel %vm1405_vm3, %v3611_v21, %v3615_v44  ;;  %v3609_v23 = vrot.slane %v10812_v52, 1 }
 0x2f1   : > { %v10827_v34 = vmax.f32 %v13738_v61, %v8025_v55  ;;  %v8033_v6 = vpop.permute.xlu0 %8032  ;;  %v8028_v37 = vpop.permute.xlu1 %8027  ;;  %v10832_v53 = vmax.f32 %v13740_v30, %v3294_v47  ;;  %v3297_v51 = vsel %vm3280_vm5, %v8024_v2, %v8025_v55  ;;  %v3613_v61 = vrot.slane %v10816_v50, 1 }
 0x2f2   : > { %v8035_v38 = vunpack.i.h.bf16 %v8033_v6  ;;  %v8034_v41 = vunpack.i.l.bf16 %v8033_v6  ;;  %v8030_v10 = vunpack.i.h.bf16 %v8028_v37  ;;  %v8029_v63 = vunpack.i.l.bf16 %v8028_v37 }
 0x2f3   : > { %13739 = vst [vmem:[#allocation28_spill] sm:$0xff] %v10827_v34  ;;  %v13742_v55 = vmax.f32 %v10149_v39, 0.0  ;;  %v13744_v37 = vmax.f32 %v10156_v31, 0.0  ;;  %v3816_v39 = vmax.f32 %v10798_v56, %v10836_v5  ;;  %v13749_v62 = vrot.slane %v10820_v16, 1  ;;  %v13750_v5 = vld [vmem:[#allocation71_spill] sm:$0xff] }
 0x2f4   : > { %v10843_v57 = vmax.f32 %v13741_v26, %v8035_v38  ;;  %v3292_v6 = vsel %vm3280_vm5, %v8034_v41, %v8035_v38  ;;  %v3291_v47 = vsel %vm3280_vm5, %v8029_v63, %v8030_v10  ;;  %v13747_v38 = vld [vmem:[#allocation72_spill] sm:$0xff] }
 0x2f5   : > { %v10848_v2 = vmax.f32 %v13742_v55, %v3297_v51  ;;  %v10853_v30 = vmax.f32 %v13744_v37, %v8030_v10  ;;  %v8043_v60 = vpop.permute.xlu0 %8042  ;;  %v8038_v45 = vpop.permute.xlu1 %8037  ;;  %v10858_v26 = vmax.f32 %v13746_v29, %v3292_v6  ;;  %v13748_v41 = vmax.f32 %v13747_v38, 0.0 }
 0x2f6   : > { %v3599_v51 = vrot.slane %v10843_v57, 1  ;;  %v8045_v55 = vunpack.i.h.bf16 %v8043_v60  ;;  %v8044_v37 = vunpack.i.l.bf16 %v8043_v60  ;;  %v10871_v19 = vsel %vm1405_vm3, %v13749_v62, %v3611_v21 }
 0x2f7   : > { %13743 = vst [vmem:[#allocation16_spill] sm:$0xff] %v10848_v2  ;;  %v10866_v31 = vmax.f32 %v13748_v41, %v3291_v47  ;;  %v8040_v9 = vunpack.i.h.bf16 %v8038_v45  ;;  %v8039_v6 = vunpack.i.l.bf16 %v8038_v45  ;;  %v3614_v10 = vsel %vm1405_vm3, %v3609_v23, %v3613_v61 }
 0x2f8   : > { %v3595_v56 = vrot.slane %v10853_v30, 1  ;;  %v13751_v29 = vmax.f32 %v13750_v5, 0.0  ;;  %v13752_v60 = vrot.slane %v10827_v34, 1  ;;  %v13753_v62 = vrot.slane %v10832_v53, 1  ;;  %v13757_v34 = vld [vmem:[#allocation66_spill] sm:$0xff] }
 0x2f9   : > { %v8053_v47 = vpop.permute.xlu0 %8052  ;;  %v3597_v45 = vrot.slane %v10858_v26, 1  ;;  %v3290_v63 = vsel %vm3280_vm5, %v8044_v37, %v8045_v55  ;;  %v10892_v8 = vmax.f32 %v13755_v43, %v8040_v9  ;;  %v13756_v5 = vrot.slane %v10794_v36, 1  ;;  %v8048_v32 = vpop.permute.xlu1 %8047 }
 0x2fa   : > { %v10878_v38 = vmax.f32 %v13751_v29, %v8045_v55  ;;  %v3620_v41 = vsel %vm1405_vm3, %v3615_v44, %v13752_v60  ;;  %v10886_v21 = vsel %vm1405_vm3, %v13753_v62, %v3609_v23  ;;  %v3593_v44 = vrot.slane %v10866_v31, 1 }
 0x2fb   : > { %v10897_v29 = vsel %vm1405_vm3, %v3599_v51, %v13756_v5  ;;  %v13758_v23 = vmax.f32 %v13757_v34, 0.0  ;;  %v3814_v55 = vmax.f32 %v10820_v16, %v10871_v19  ;;  %v3587_v20 = vrot.slane %v10892_v8, 1 }
 0x2fc   : > { %v3591_v60 = vrot.slane %v10878_v38, 1  ;;  %v3289_v43 = vsel %vm3280_vm5, %v8039_v6, %v8040_v9  ;;  %v8055_v37 = vunpack.i.h.bf16 %v8053_v47  ;;  %v3813_v5 = vmax.f32 %v10832_v53, %v10886_v21  ;;  %v13762_v9 = vld [vmem:[#allocation68_spill] sm:$0xff] }
 0x2fd   : > { %v10903_v62 = vmax.f32 %v13758_v23, %v3290_v63  ;;  %v10912_v13 = vsel %vm1405_vm3, %v3595_v56, %v3599_v51  ;;  %v10916_v34 = vmax.f32 %v13760_v27, %v3289_v43  ;;  %v8054_v63 = vunpack.i.l.bf16 %v8053_v47 }
 0x2fe   : > { %v3810_v23 = vmax.f32 %v10843_v57, %v10897_v29  ;;  %v13761_v19 = vrot.slane %v10804_v28, 1  ;;  %v13763_v6 = vmax.f32 %v13762_v9, 0.0  ;;  %v8050_v21 = vunpack.i.h.bf16 %v8048_v32 }
 0x2ff   : > { %v10930_v51 = vsel %vm1405_vm3, %v3593_v44, %v3597_v45  ;;  %v3589_v27 = vrot.slane %v10903_v62, 1  ;;  %v10934_v3 = vsel %vm1405_vm3, %v3591_v60, %v3595_v56  ;;  %v3288_v57 = vsel %vm3280_vm5, %v8054_v63, %v8055_v37 }
 0x300   : > { %v10923_v59 = vsel %vm1405_vm3, %v3597_v45, %v13761_v19  ;;  %v10927_v24 = vmax.f32 %v13763_v6, %v8055_v37  ;;  %v3808_v47 = vmax.f32 %v10853_v30, %v10912_v13  ;;  %v10940_v29 = vsel %vm1405_vm3, %v3587_v20, %v3591_v60  ;;  %v13764_v19 = vld [vmem:[#allocation22_spill] sm:$0xff]  ;;  %v13766_v45 = vld [vmem:[#allocation65_spill] sm:$0xff]  ;;  %v8063_v30 = vpop.permute.xlu0 %8062 }
 0x301   : > { %v3585_v43 = vrot.slane %v10916_v34, 1  ;;  %v13765_v9 = vmax.f32 %v13764_v19, 0.0  ;;  %v13767_v7 = vmax.f32 %v13766_v45, 0.0  ;;  %v8049_v56 = vunpack.i.l.bf16 %v8048_v32  ;;  %v8058_v19 = vpop.permute.xlu1 %8057 }
 0x302   : > { %v3818_v42 = vmax.f32 %v10790_v22, %v3620_v41  ;;  %v13768_v37 = vrot.slane %v10848_v2, 1  ;;  %v10963_v32 = vsel %vm1405_vm3, %v3589_v27, %v3593_v44  ;;  %v13769_v44 = vld [vmem:[#allocation70_spill] sm:$0xff] }
 0x303   : > { %v10945_v6 = vmax.f32 %v13765_v9, %v3288_v57  ;;  %v10949_v17 = vmax.f32 %v13767_v7, %v8050_v21  ;;  %v3583_v7 = vrot.slane %v10927_v24, 1  ;;  %v10969_v9 = vsel %vm1405_vm3, %v3585_v43, %v3589_v27 }
 0x304   : > { %v3618_v13 = vsel %vm1405_vm3, %v3613_v61, %v13768_v37  ;;  %v3287_v61 = vsel %vm3280_vm5, %v8049_v56, %v8050_v21  ;;  %v3908_v41 = vpack.c.bf16 %v3818_v42, %v3816_v39  ;;  %v3815_v37 = vmax.f32 %v10812_v52, %v3614_v10 }
 0x305   : > { %v3581_v45 = vrot.slane %v10945_v6, 1  ;;  %v3817_v57 = vmax.f32 %v10816_v50, %v3618_v13  ;;  %v3579_v60 = vrot.slane %v10949_v17, 1  ;;  %v13770_v63 = vmax.f32 %v13769_v44, 0.0  ;;  %v13773_v13 = vld [vmem:[#allocation63_spill] sm:$0xff] }
 0x306   : > { %4070 = vmatprep.subr.bf16.mxu1 %v3908_v41  ;;  %v13771_v21 = vrot.slane %v10820_v16, 1  ;;  %v13772_v42 = vrot.slane %v10794_v36, 1  ;;  %v8065_v27 = vunpack.i.h.bf16 %v8063_v30  ;;  %v10985_v56 = vsel %vm1405_vm3, %v3583_v7, %v3587_v20 }
 0x307   : > { %v10977_v2 = vmax.f32 %v13770_v63, %v3287_v61  ;;  %v3907_v52 = vpack.c.bf16 %v3817_v57, %v3815_v37  ;;  %v8064_v10 = vunpack.i.l.bf16 %v8063_v30  ;;  %v13774_v22 = vmax.f32 %v13773_v13, 0.0  ;;  %v13777_v37 = vld [vmem:[#allocation64_spill] sm:$0xff] }
 0x308   : > { %v3608_v39 = vsel %vm1405_vm3, %v13772_v42, %v13771_v21  ;;  %v8060_v63 = vunpack.i.h.bf16 %v8058_v19  ;;  %v8059_v61 = vunpack.i.l.bf16 %v8058_v19  ;;  %v13775_v16 = vrot.slane %v10832_v53, 1  ;;  %v8073_v42 = vpop.permute.xlu0 %8072 }
 0x309   : > { %v3812_v50 = vmax.f32 %v10794_v36, %v3608_v39  ;;  %v10990_v44 = vmax.f32 %v13774_v22, %v8065_v27  ;;  %v13776_v41 = vrot.slane %v10804_v28, 1  ;;  %v10998_v20 = vsel %vm1405_vm3, %v3581_v45, %v3585_v43  ;;  %4071 = vmatpush1.bf16.msra.mxu1 %v3907_v52  ;;  %v13779_v43 = vld [vmem:[#allocation62_spill] sm:$0xff] }
 0x30a   : > { %v3286_v36 = vsel %vm3280_vm5, %v8064_v10, %v8065_v27  ;;  %v11003_v22 = vsel %vm1405_vm3, %v3579_v60, %v3583_v7  ;;  %v3577_v19 = vrot.slane %v10977_v2, 1  ;;  %v13778_v39 = vmax.f32 %v13777_v37, 0.0 }
 0x30b   : > { %v3606_v21 = vsel %vm1405_vm3, %v13776_v41, %v13775_v16  ;;  %v3906_v57 = vpack.c.bf16 %v3814_v55, %v3812_v50  ;;  %v3575_v53 = vrot.slane %v10990_v44, 1  ;;  %v8068_v16 = vpop.permute.xlu1 %8067  ;;  %v13780_v52 = vmax.f32 %v13779_v43, 0.0  ;;  %v13781_v41 = vld [vmem:[#allocation67_spill] sm:$0xff] }
 0x30c   : > { %v3811_v30 = vmax.f32 %v10804_v28, %v3606_v21  ;;  %v11009_v13 = vmax.f32 %v13778_v39, %v8060_v63  ;;  %v3285_v27 = vsel %vm3280_vm5, %v8059_v61, %v8060_v63  ;;  %v8075_v50 = vunpack.i.h.bf16 %v8073_v42 }
 0x30d   : > { %4072 = vmatprep.subr.bf16.mxu1 %v3906_v57  ;;  %v11013_v55 = vmax.f32 %v13780_v52, %v3286_v36  ;;  %v3805_v7 = vmax.f32 %v10903_v62, %v10963_v32  ;;  %v3803_v10 = vmax.f32 %v10916_v34, %v10969_v9  ;;  %v13782_v21 = vmax.f32 %v13781_v41, 0.0  ;;  %v13783_v36 = vld [vmem:[#allocation88_spill] sm:$0xff] }
 0x30e   : > { %v3905_v28 = vpack.c.bf16 %v3813_v5, %v3811_v30  ;;  %v3904_v39 = vpack.c.bf16 %v3810_v23, %v3808_v47  ;;  %v3571_v57 = vrot.slane %v11009_v13, 1  ;;  %v13784_v43 = vmax.f32 %v13783_v36, 0.0 }
 0x30f   : > { %v11022_v37 = vmax.f32 %v13782_v21, %v3285_v27  ;;  %v8074_v5 = vunpack.i.l.bf16 %v8073_v42  ;;  %v8070_v63 = vunpack.i.h.bf16 %v8068_v16  ;;  %v3801_v62 = vmax.f32 %v10945_v6, %v10998_v20  ;;  %v13785_v20 = vld [vmem:[#allocation61_spill] sm:$0xff]  ;;  %v13789_v21 = vld [vmem:[#allocation24_spill] sm:$0xff] }
 0x310   : > { %4073 = vmatpush1.bf16.msra.mxu1 %v3905_v28  ;;  %v11027_v52 = vmax.f32 %v13784_v43, %v8075_v50  ;;  %v3802_v34 = vmax.f32 %v10927_v24, %v10985_v56  ;;  %v3800_v32 = vmax.f32 %v10949_v17, %v11003_v22  ;;  %v8069_v23 = vunpack.i.l.bf16 %v8068_v16  ;;  %v8083_v17 = vpop.permute.xlu0 %8082  ;;  %v8078_v22 = vpop.permute.xlu1 %8077 }
 0x311   : > { %4074 = vmatprep.subr.bf16.mxu1 %v3904_v39  ;;  %v3582_v47 = vsel %vm1405_vm3, %v3577_v19, %v3581_v45  ;;  %v3573_v9 = vrot.slane %v11013_v55, 1  ;;  %v3580_v61 = vsel %vm1405_vm3, %v3575_v53, %v3579_v60  ;;  %v3284_v42 = vsel %vm3280_vm5, %v8074_v5, %v8075_v50  ;;  %v13787_v45 = vld [vmem:[#allocation89_spill] sm:$0xff] }
 0x312   : > { %v3569_v30 = vrot.slane %v11022_v37, 1  ;;  %v3567_v6 = vrot.slane %v11027_v52, 1  ;;  %v13786_v27 = vmax.f32 %v13785_v20, 0.0  ;;  %v3283_v56 = vsel %vm3280_vm5, %v8069_v23, %v8070_v63 }
 0x313   : > { %v3576_v16 = vsel %vm1405_vm3, %v3571_v57, %v3575_v53  ;;  %v13788_v28 = vmax.f32 %v13787_v45, 0.0  ;;  %v13790_v60 = vmax.f32 %v13789_v21, 0.0  ;;  %v13791_v50 = vmax.f32 %v10866_v31, %v10930_v51 }
 0x314   : > { %v3403_v24 = vmax.f32 %v13786_v27, %v8070_v63  ;;  %v13792_v36 = vmax.f32 %v10858_v26, %v10923_v59  ;;  %v3799_v5 = vmax.f32 %v10977_v2, %v3582_v47  ;;  %v3798_v63 = vmax.f32 %v10990_v44, %v3580_v61 }
 0x315   : > { %v3404_v41 = vmax.f32 %v13788_v28, %v3284_v42  ;;  %v3402_v39 = vmax.f32 %v13790_v60, %v3283_v56  ;;  %v13793_v53 = vmax.f32 %v10892_v8, %v10940_v29  ;;  %v13794_v42 = vmax.f32 %v10878_v38, %v10934_v3  ;;  %v13795_v29 = vld [vmem:[#allocation91_spill] sm:$0xff] }
 0x316   : > { %v3903_v43 = vpack.c.bf16 %v13792_v36, %v13791_v50  ;;  %v3563_v23 = vrot.slane %v3403_v24, 1  ;;  %v3578_v27 = vsel %vm1405_vm3, %v3573_v9, %v3577_v19  ;;  %v8085_v31 = vunpack.i.h.bf16 %v8083_v17 }
 0x317   : > { %v3902_v20 = vpack.c.bf16 %v13794_v42, %v13793_v53  ;;  %v8084_v51 = vunpack.i.l.bf16 %v8083_v17  ;;  %v8080_v56 = vunpack.i.h.bf16 %v8078_v22  ;;  %v3796_v59 = vmax.f32 %v11009_v13, %v3576_v16  ;;  %v13797_v17 = vld [vmem:[#allocation90_spill] sm:$0xff]  ;;  %v13799_v16 = vld [vmem:[#allocation93_spill] sm:$0xff] }
 0x318   : > { %4075 = vmatpush1.bf16.msra.mxu1 %v3903_v43  ;;  %v3574_v2 = vsel %vm1405_vm3, %v3569_v30, %v3573_v9  ;;  %v3572_v26 = vsel %vm1405_vm3, %v3567_v6, %v3571_v57  ;;  %v8079_v44 = vunpack.i.l.bf16 %v8078_v22  ;;  %v3565_v47 = vrot.slane %v3404_v41, 1  ;;  %v13801_v22 = vld [vmem:[#allocation92_spill] sm:$0xff] }
 0x319   : > { %4076 = vmatprep.subr.bf16.mxu1 %v3902_v20  ;;  %v3561_v8 = vrot.slane %v3402_v39, 1  ;;  %v13796_v61 = vmax.f32 %v13795_v29, 0.0  ;;  %v3901_v3 = vpack.c.bf16 %v3805_v7, %v3803_v10  ;;  %v3568_v19 = vsel %vm1405_vm3, %v3563_v23, %v3567_v6 }
 0x31a   : > { %v3282_v45 = vsel %vm3280_vm5, %v8084_v51, %v8085_v31  ;;  %v13798_v28 = vmax.f32 %v13797_v17, 0.0  ;;  %v3281_v13 = vsel %vm3280_vm5, %v8079_v44, %v8080_v56  ;;  %v13800_v57 = vmax.f32 %v13799_v16, 0.0 }
 0x31b   : > { %v3401_v38 = vmax.f32 %v13796_v61, %v8085_v31  ;;  %v13802_v50 = vmax.f32 %v13801_v22, 0.0  ;;  %v3900_v43 = vpack.c.bf16 %v3802_v34, %v3800_v32  ;;  %v3797_v7 = vmax.f32 %v11013_v55, %v3578_v27 }
 0x31c   : > { %v3399_v21 = vmax.f32 %v13798_v28, %v8080_v56  ;;  %v3400_v60 = vmax.f32 %v13800_v57, %v3282_v45  ;;  %4077 = vmatpush1.bf16.msra.mxu1 %v3901_v3  ;;  %v3795_v10 = vmax.f32 %v11022_v37, %v3574_v2  ;;  %v3570_v53 = vsel %vm1405_vm3, %v3565_v47, %v3569_v30 }
 0x31d   : > { %v3559_v9 = vrot.slane %v3401_v38, 1  ;;  %v3398_v36 = vmax.f32 %v13802_v50, %v3281_v13  ;;  %v3794_v42 = vmax.f32 %v11027_v52, %v3572_v26  ;;  %v3792_v20 = vmax.f32 %v3403_v24, %v3568_v19  ;;  %4078 = vmatprep.subr.bf16.mxu1 %v3900_v43 }
 0x31e   : > { %v3558_v6 = vrot.slane %v3399_v21, 1  ;;  %v3899_v31 = vpack.c.bf16 %v3801_v62, %v3799_v5  ;;  %v3566_v51 = vsel %vm1405_vm3, %v3561_v8, %v3565_v47  ;;  %v3556_v56 = vrot.slane %v3400_v60, 1 }
 0x31f   : > { %v3555_v44 = vrot.slane %v3398_v36, 1  ;;  %v3898_v29 = vpack.c.bf16 %v3798_v63, %v3796_v59  ;;  %v3564_v61 = vsel %vm1405_vm3, %v3559_v9, %v3563_v23  ;;  %v3793_v55 = vmax.f32 %v3404_v41, %v3570_v53 }
 0x320   : > { %v3560_v34 = vsel %vm1405_vm3, %v3558_v6, %v3559_v9  ;;  %4079 = vmatpush1.bf16.msra.mxu1 %v3899_v31  ;;  %v3791_v37 = vmax.f32 %v3402_v39, %v3566_v51  ;;  %v3897_v32 = vpack.c.bf16 %v3797_v7, %v3795_v10  ;;  %v3896_v30 = vpack.c.bf16 %v3794_v42, %v3792_v20 }
 0x321   : > { %4080 = vmatprep.subr.bf16.mxu1 %v3898_v29  ;;  %v3562_v52 = vsel %vm1405_vm3, %v3556_v56, %v3561_v8  ;;  %v3790_v24 = vmax.f32 %v3401_v38, %v3564_v61  ;;  %v3788_v27 = vmax.f32 %v3399_v21, %v3560_v34  ;;  %v3557_v62 = vsel %vm1405_vm3, %v3555_v44, %v3556_v56  ;;  %v13808_v61 = vld [vmem:[#allocation40_spill] sm:$0xff] }
 0x322   : > { %v3789_v5 = vmax.f32 %v3400_v60, %v3562_v52  ;;  %v3787_v63 = vmax.f32 %v3398_v36, %v3557_v62  ;;  %v3895_v59 = vpack.c.bf16 %v3793_v55, %v3791_v37  ;;  %v13803_v8 = vmax.f32 %v10439_v46, 0.0 }
 0x323   : > { %v3894_v23 = vpack.c.bf16 %v3790_v24, %v3788_v27  ;;  %v13804_v19 = vmax.f32 %v10420_v35, 0.0  ;;  %v13805_v60 = vmax.f32 %v10470_v4, 0.0  ;;  %v13806_v35 = vmax.f32 %v10431_v33, 0.0 }
 0x324   : > { %4081 = vmatpush1.bf16.msra.mxu1 %v3897_v32  ;;  %v3893_v2 = vpack.c.bf16 %v3789_v5, %v3787_v63  ;;  %v13807_v51 = vmax.f32 %v10412_v12, 0.0  ;;  %v13809_v34 = vmax.f32 %v13808_v61, 0.0  ;;  %v13414_v62 = vmov 65535   ;;  %v13810_v63 = vld [vmem:[#allocation44_spill] sm:$0xff] }
 0x325   : > { %4082 = vmatprep.subr.bf16.mxu1 %v3896_v30  ;;  %v8088_v41 = vpop.permute.xlu1 %8087  ;;  %v4062_v5 = vsel %vm4060_vm6, 4294967295, %v13414_v62  ;;  %v13822_v61 = vmax.f32 %v10502_v0, 0.0 }
 0x326   : > { %v8090_v39 = vunpack.i.h.bf16 %v8088_v41  ;;  %v8089_v17 = vunpack.i.l.bf16 %v8088_v41 }
 0x328   : > { %4083 = vmatpush1.bf16.msra.mxu1 %v3895_v59  ;;  %v11091_v45 = vmax.f32 %v13804_v19, %v8090_v39  ;;  %v3311_v46 = vsel %vm3280_vm5, %v8089_v17, %v8090_v39  ;;  %v13811_v59 = vmax.f32 %v13810_v63, 0.0 }
 0x329   : > { %4084 = vmatprep.subr.bf16.mxu1 %v3894_v23  ;;  %v8093_v26 = vpop.permute.xlu0 %8092  ;;  %v11111_v33 = vmax.f32 %v13807_v51, %v3311_v46  ;;  %v13816_v46 = vld [vmem:[#allocation46_spill] sm:$0xff] }
 0x32a   : > { %v8095_v47 = vunpack.i.h.bf16 %v8093_v26  ;;  %v8094_v3 = vunpack.i.l.bf16 %v8093_v26  ;;  %v3675_v50 = vrot.slane %v11091_v45, 1 }
 0x32c   : > { %4085 = vmatpush1.bf16.msra.mxu1 %v3893_v2  ;;  %v3461_v38 = vmax.f32 %v13803_v8, %v8095_v47  ;;  %v3312_v13 = vsel %vm3280_vm5, %v8094_v3, %v8095_v47  ;;  %v13812_v2 = vld [vmem:[#allocation73_spill] sm:$0xff]  ;;  %v3673_v3 = vrot.slane %v11111_v33, 1 }
 0x32d   : > { %v8098_v28 = vpop.permute.xlu0 %8097  ;;  %v8103_v21 = vpop.permute.xlu1 %8102  ;;  %v11102_v36 = vmax.f32 %v13806_v35, %v3312_v13  ;;  %v13813_v41 = vmax.f32 %v13812_v2, 0.0  ;;  %v13817_v35 = vmax.f32 %v13816_v46, 0.0 }
 0x32e   : > { %v8105_v9 = vunpack.i.h.bf16 %v8103_v21  ;;  %v3679_v16 = vrot.slane %v3461_v38, 1  ;;  %v8104_v57 = vunpack.i.l.bf16 %v8103_v21  ;;  %v8100_v10 = vunpack.i.h.bf16 %v8098_v28 }
 0x32f   : > { %v8099_v6 = vunpack.i.l.bf16 %v8098_v28  ;;  %v3677_v12 = vrot.slane %v11102_v36, 1 }
 0x330   : > { %v11096_v22 = vmax.f32 %v13805_v60, %v8105_v9  ;;  %v3313_v42 = vsel %vm3280_vm5, %v8104_v57, %v8105_v9  ;;  %v3680_v31 = vsel %vm1405_vm3, %v3675_v50, %v3679_v16 }
 0x331   : > { %v8113_v43 = vpop.permute.xlu0 %8112  ;;  %v8108_v7 = vpop.permute.xlu1 %8107  ;;  %v11118_v55 = vmax.f32 %v13809_v34, %v3313_v42  ;;  %v3309_v24 = vsel %vm3280_vm5, %v8099_v6, %v8100_v10  ;;  %v3848_v27 = vmax.f32 %v11091_v45, %v3680_v31  ;;  %v11148_v6 = vsel %vm4061_vm7, %v4062_v5, 0  ;;  %v13818_v42 = vld [vmem:[#allocation41_spill] sm:$0xff]  ;;  %v13820_v31 = vld [vmem:[#allocation42_spill] sm:$0xff] }
 0x332   : > { %v3683_v53 = vrot.slane %v11096_v22, 1  ;;  %v8110_v4 = vunpack.i.h.bf16 %v8108_v7  ;;  %v8109_v20 = vunpack.i.l.bf16 %v8108_v7  ;;  %v8115_v56 = vunpack.i.h.bf16 %v8113_v43 }
 0x333   : > { %v8114_v44 = vunpack.i.l.bf16 %v8113_v43  ;;  %v3681_v19 = vrot.slane %v11118_v55, 1  ;;  %v11144_v43 = vmax.f32 %v13817_v35, %v3309_v24  ;;  %v3678_v7 = vsel %vm1405_vm3, %v3673_v3, %v3677_v12 }
 0x334   : > { %v3684_v29 = vsel %vm1405_vm3, %v3679_v16, %v3683_v53  ;;  %v3310_v37 = vsel %vm3280_vm5, %v8109_v20, %v8110_v4  ;;  %v11128_v23 = vmax.f32 %v13811_v59, %v8110_v4  ;;  %v13814_v16 = vld [vmem:[#allocation45_spill] sm:$0xff]  ;;  %v13819_v4 = vmax.f32 %v13818_v42, 0.0 }
 0x335   : > { %v8123_v32 = vpop.permute.xlu0 %8122  ;;  %v8118_v30 = vpop.permute.xlu1 %8117  ;;  %v3850_v52 = vmax.f32 %v3461_v38, %v3684_v29  ;;  %v11132_v39 = vmax.f32 %v13813_v41, %v3310_v37  ;;  %v3307_v8 = vsel %vm3280_vm5, %v8114_v44, %v8115_v56  ;;  %v13815_v57 = vmax.f32 %v13814_v16, 0.0 }
 0x336   : > { %v8120_v26 = vunpack.i.h.bf16 %v8118_v30  ;;  %v8119_v47 = vunpack.i.l.bf16 %v8118_v30  ;;  %v8125_v17 = vunpack.i.h.bf16 %v8123_v32  ;;  %v8124_v28 = vunpack.i.l.bf16 %v8123_v32 }
 0x337   : > { %v3924_v38 = vpack.c.bf16 %v3850_v52, %v3848_v27  ;;  %v11140_v60 = vmax.f32 %v13815_v57, %v8100_v10  ;;  %v11152_v20 = vmax.f32 %v13819_v4, %v8115_v56  ;;  %v13821_v51 = vmax.f32 %v13820_v31, 0.0 }
 0x338   : > { %v3308_v21 = vsel %vm3280_vm5, %v8119_v47, %v8120_v26  ;;  %v3671_v10 = vrot.slane %v11128_v23, 1  ;;  %v3669_v29 = vrot.slane %v11132_v39, 1  ;;  %v11162_v34 = vmax.f32 %v13822_v61, %v8120_v26 }
 0x339   : > { %v8133_v13 = vpop.permute.xlu0 %8132  ;;  %v8128_v9 = vpop.permute.xlu1 %8127  ;;  %4086 = vmatprep.subr.bf16.mxu1 %v3924_v38  ;;  %v11156_v44 = vmax.f32 %v13821_v51, %v3307_v8  ;;  %v13823_v37 = vmax.f32 %v10526_v15, 0.0  ;;  %v3305_v56 = vsel %vm3280_vm5, %v8124_v28, %v8125_v17  ;;  %v3682_v5 = vsel %vm1405_vm3, %v3677_v12, %v3681_v19 }
 0x33a   : > { %v8130_v30 = vunpack.i.h.bf16 %v8128_v9  ;;  %v8129_v52 = vunpack.i.l.bf16 %v8128_v9  ;;  %v8135_v24 = vunpack.i.h.bf16 %v8133_v13  ;;  %v8134_v27 = vunpack.i.l.bf16 %v8133_v13 }
 0x33b   : > { %v11166_v32 = vmax.f32 %v13823_v37, %v3308_v21  ;;  %v3667_v0 = vrot.slane %v11140_v60, 1  ;;  %v3665_v59 = vrot.slane %v11144_v43, 1  ;;  %v13824_v15 = vmax.f32 %v10539_v18, 0.0  ;;  %v13826_v21 = vld [vmem:[#allocation43_spill] sm:$0xff] }
 0x33c   : > { %v3306_v41 = vsel %vm3280_vm5, %v8129_v52, %v8130_v30  ;;  %v3676_v47 = vsel %vm1405_vm3, %v3671_v10, %v3675_v50  ;;  %v3674_v8 = vsel %vm1405_vm3, %v3669_v29, %v3673_v3  ;;  %v13825_v12 = vmax.f32 %v10495_v11, 0.0 }
 0x33d   : > { %v11172_v63 = vpop.permute.xlu0 %8142  ;;  %v11178_v2 = vmax.f32 %v13824_v15, %v8130_v30  ;;  %v8138_v26 = vpop.permute.xlu1 %8137  ;;  %v3847_v28 = vmax.f32 %v11111_v33, %v3678_v7  ;;  %v13827_v13 = vmax.f32 %v13826_v21, 0.0  ;;  %v3663_v9 = vrot.slane %v11162_v34, 1  ;;  %v13830_v30 = vld [vmem:[#allocation37_spill] sm:$0xff] }
 0x33e   : > { %v11187_v38 = vmax.f32 %v13825_v12, %v8125_v17  ;;  %v3661_v16 = vrot.slane %v11166_v32, 1  ;;  %v3849_v45 = vmax.f32 %v11102_v36, %v3682_v5  ;;  %v3659_v50 = vrot.slane %v11152_v20, 1 }
 0x33f   : > { %v11192_v18 = vmax.f32 %v13827_v13, %v3305_v56  ;;  %v3657_v3 = vrot.slane %v11156_v44, 1  ;;  %v3303_v11 = vsel %vm3280_vm5, %v8134_v27, %v8135_v24  ;;  %v13828_v17 = vmax.f32 %v10561_v49, 0.0 }
 0x340   : > { %v3846_v33 = vmax.f32 %v11128_v23, %v3676_v47  ;;  %v3655_v46 = vrot.slane %v11178_v2, 1  ;;  %v3923_v35 = vpack.c.bf16 %v3849_v45, %v3847_v28  ;;  %v8140_v7 = vunpack.i.h.bf16 %v8138_v26 }
 0x341   : > { %v11202_v57 = vmax.f32 %v13828_v17, %v3306_v41  ;;  %v3845_v42 = vmax.f32 %v11132_v39, %v3674_v8  ;;  %v3651_v36 = vrot.slane %v11187_v38, 1  ;;  %v13829_v4 = vmax.f32 %v10532_v58, 0.0  ;;  %v11212_v61 = vpop.permute.xlu0 %8152  ;;  %v8148_v39 = vpop.permute.xlu1 %8147 }
 0x342   : > { %v8139_v51 = vunpack.i.l.bf16 %v8138_v26  ;;  %v3649_v49 = vrot.slane %v11192_v18, 1  ;;  %v3668_v37 = vsel %vm1405_vm3, %v3663_v9, %v3667_v0  ;;  %v3666_v23 = vsel %vm1405_vm3, %v3661_v16, %v3665_v59  ;;  %4087 = vmatpush2.bf16.msra.mxu1 %v3923_v35  ;;  %v13834_v35 = vld [vmem:[#allocation39_spill] sm:$0xff] }
 0x343   : > { %v11210_v31 = vmax.f32 %v13829_v4, %v8135_v24  ;;  %v13831_v52 = vmax.f32 %v13830_v30, 0.0  ;;  %v3653_v27 = vrot.slane %v11202_v57, 1  ;;  %v8145_v58 = vunpack.i.h.bf16 %v11172_v63 }
 0x344   : > { %v3672_v24 = vsel %vm1405_vm3, %v3667_v0, %v3671_v10  ;;  %v3670_v5 = vsel %vm1405_vm3, %v3665_v59, %v3669_v29  ;;  %v3660_v15 = vsel %vm1405_vm3, %v3655_v46, %v3659_v50  ;;  %v13832_v41 = vmax.f32 %v10575_v25, 0.0 }
 0x345   : > { %v11219_v56 = vmax.f32 %v13831_v52, %v3303_v11  ;;  %v3844_v47 = vmax.f32 %v11140_v60, %v3672_v24  ;;  %v3843_v8 = vmax.f32 %v11144_v43, %v3670_v5  ;;  %v3842_v12 = vmax.f32 %v11162_v34, %v3668_v37  ;;  %v8163_v11 = vpop.permute.xlu0 %8162 }
 0x346   : > { %v11230_v26 = vmax.f32 %v13832_v41, %v8140_v7  ;;  %v3841_v28 = vmax.f32 %v11166_v32, %v3666_v23  ;;  %v3643_v10 = vrot.slane %v11210_v31, 1  ;;  %v3304_v29 = vsel %vm3280_vm5, %v8139_v51, %v8140_v7 }
 0x347   : > { %v8144_v0 = vunpack.i.l.bf16 %v11172_v63  ;;  %v3922_v59 = vpack.c.bf16 %v3846_v33, %v3844_v47  ;;  %v3921_v21 = vpack.c.bf16 %v3845_v42, %v3843_v8  ;;  %v8150_v13 = vunpack.i.h.bf16 %v8148_v39  ;;  %v8158_v42 = vpop.permute.xlu1 %8157 }
 0x348   : > { %v3641_v25 = vrot.slane %v11219_v56, 1  ;;  %v3838_v45 = vmax.f32 %v11178_v2, %v3660_v15  ;;  %v13833_v60 = vmax.f32 %v10570_v54, 0.0  ;;  %v8149_v34 = vunpack.i.l.bf16 %v8148_v39 }
 0x349   : > { %v3658_v32 = vsel %vm1405_vm3, %v3653_v27, %v3657_v3  ;;  %v3647_v17 = vrot.slane %v11230_v26, 1  ;;  %v13835_v7 = vmax.f32 %v13834_v35, 0.0  ;;  %4088 = vmatprep.subr.bf16.mxu1 %v3922_v59  ;;  %v3664_v33 = vsel %vm1405_vm3, %v3659_v50, %v3663_v9 }
 0x34a   : > { %v11243_v43 = vmax.f32 %v13833_v60, %v8145_v58  ;;  %4089 = vmatpush2.bf16.msra.mxu1 %v3921_v21  ;;  %v8155_v4 = vunpack.i.h.bf16 %v11212_v61  ;;  %v8154_v54 = vunpack.i.l.bf16 %v11212_v61  ;;  %v3840_v51 = vmax.f32 %v11152_v20, %v3664_v33  ;;  %v13842_v60 = vld [vmem:[#allocation76_spill] sm:$0xff] }
 0x34b   : > { %v11249_v63 = vmax.f32 %v13835_v7, %v3304_v29  ;;  %v3662_v37 = vsel %vm1405_vm3, %v3657_v3, %v3661_v16  ;;  %v3301_v23 = vsel %vm3280_vm5, %v8144_v0, %v8145_v58  ;;  %v13836_v30 = vmax.f32 %v10612_v40, 0.0  ;;  %v13839_v0 = vld [vmem:[#allocation38_spill] sm:$0xff] }
 0x34c   : > { %v3839_v39 = vmax.f32 %v11156_v44, %v3662_v37  ;;  %v8165_v24 = vunpack.i.h.bf16 %v8163_v11  ;;  %v3837_v9 = vmax.f32 %v11202_v57, %v3658_v32  ;;  %v3302_v50 = vsel %vm3280_vm5, %v8149_v34, %v8150_v13  ;;  %v13846_v37 = vld [vmem:[#allocation34_spill] sm:$0xff] }
 0x34d   : > { %v11259_v52 = vmax.f32 %v13836_v30, %v8150_v13  ;;  %v3920_v5 = vpack.c.bf16 %v3842_v12, %v3840_v51  ;;  %v8160_v15 = vunpack.i.h.bf16 %v8158_v42  ;;  %v3635_v61 = vrot.slane %v11243_v43, 1  ;;  %v8173_v13 = vpop.permute.xlu0 %8172 }
 0x34e   : > { %v3652_v20 = vsel %vm1405_vm3, %v3647_v17, %v3651_v36  ;;  %v3919_v16 = vpack.c.bf16 %v3841_v28, %v3839_v39  ;;  %v8164_v3 = vunpack.i.l.bf16 %v8163_v11  ;;  %v3645_v58 = vrot.slane %v11249_v63, 1  ;;  %v13848_v39 = vld [vmem:[#allocation35_spill] sm:$0xff] }
 0x34f   : > { %v3299_v40 = vsel %vm3280_vm5, %v8154_v54, %v8155_v4  ;;  %4090 = vmatprep.subr.bf16.mxu1 %v3920_v5  ;;  %v8159_v41 = vunpack.i.l.bf16 %v8158_v42  ;;  %v3656_v44 = vsel %vm1405_vm3, %v3651_v36, %v3655_v46  ;;  %v3639_v57 = vrot.slane %v11259_v52, 1 }
 0x350   : > { %v13837_v47 = vmax.f32 %v10634_v1, 0.0  ;;  %4091 = vmatpush2.bf16.msra.mxu1 %v3919_v16  ;;  %v13838_v12 = vmax.f32 %v10641_v48, 0.0  ;;  %v3836_v29 = vmax.f32 %v11187_v38, %v3656_v44  ;;  %v13840_v59 = vmax.f32 %v13839_v0, 0.0  ;;  %v8168_v48 = vpop.permute.xlu1 %8167 }
 0x351   : > { %v3834_v2 = vmax.f32 %v11230_v26, %v3652_v20  ;;  %v13841_v46 = vmax.f32 %v10645_v14, 0.0  ;;  %v3654_v1 = vsel %vm1405_vm3, %v3649_v49, %v3653_v27  ;;  %v13843_v34 = vmax.f32 %v13842_v60, 0.0  ;;  %v13844_v26 = vld [vmem:[#allocation77_spill] sm:$0xff] }
 0x352   : > { %v11274_v8 = vmax.f32 %v13837_v47, %v3302_v50  ;;  %v11278_v28 = vmax.f32 %v13838_v12, %v8165_v24  ;;  %v11283_v21 = vmax.f32 %v13840_v59, %v3301_v23  ;;  %v3298_v38 = vsel %vm3280_vm5, %v8164_v3, %v8165_v24 }
 0x353   : > { %v11288_v36 = vmax.f32 %v13841_v46, %v8160_v15  ;;  %v11295_v11 = vmax.f32 %v13843_v34, %v8155_v4  ;;  %v3300_v32 = vsel %vm3280_vm5, %v8159_v41, %v8160_v15  ;;  %v3918_v35 = vpack.c.bf16 %v3838_v45, %v3836_v29 }
 0x354   : > { %v3650_v14 = vsel %vm1405_vm3, %v3645_v58, %v3649_v49  ;;  %v13845_v7 = vmax.f32 %v13844_v26, 0.0  ;;  %v3835_v27 = vmax.f32 %v11192_v18, %v3654_v1  ;;  %v3648_v42 = vsel %vm1405_vm3, %v3643_v10, %v3647_v17 }
 0x355   : > { %v3644_v4 = vsel %vm1405_vm3, %v3639_v57, %v3643_v10  ;;  %v3637_v54 = vrot.slane %v11274_v8, 1  ;;  %v3623_v51 = vrot.slane %v11278_v28, 1  ;;  %4092 = vmatprep.subr.bf16.mxu1 %v3918_v35  ;;  %v3832_v45 = vmax.f32 %v11210_v31, %v3648_v42 }
 0x356   : > { %v11304_v33 = vmax.f32 %v13845_v7, %v3299_v40  ;;  %v13847_v23 = vmax.f32 %v13846_v37, 0.0  ;;  %v3631_v30 = vrot.slane %v11288_v36, 1  ;;  %v13849_v24 = vmax.f32 %v13848_v39, 0.0  ;;  %v11329_v40 = vpop.permute.xlu0 %8182  ;;  %v13852_v7 = vld [vmem:[#allocation15_spill] sm:$0xff] }
 0x357   : > { %v3917_v17 = vpack.c.bf16 %v3837_v9, %v3835_v27  ;;  %v3633_v10 = vrot.slane %v11283_v21, 1  ;;  %v3833_v50 = vmax.f32 %v11249_v63, %v3650_v14  ;;  %v3627_v5 = vrot.slane %v11295_v11, 1  ;;  %v8178_v9 = vpop.permute.xlu1 %8177 }
 0x358   : > { %v11314_v49 = vmax.f32 %v13847_v23, %v3298_v38  ;;  %v11319_v18 = vmax.f32 %v13849_v24, %v3300_v32  ;;  %v3916_v15 = vpack.c.bf16 %v3834_v2, %v3832_v45  ;;  %v3625_v31 = vrot.slane %v11304_v33, 1  ;;  %v13854_v45 = vld [vmem:[#allocation47_spill] sm:$0xff] }
 0x359   : > { %v3830_v20 = vmax.f32 %v11259_v52, %v3644_v4  ;;  %4093 = vmatpush2.bf16.msra.mxu1 %v3917_v17  ;;  %v8170_v16 = vunpack.i.h.bf16 %v8168_v48  ;;  %v3646_v3 = vsel %vm1405_vm3, %v3641_v25, %v3645_v58  ;;  %v3642_v63 = vsel %vm1405_vm3, %v3637_v54, %v3641_v25 }
 0x35a   : > { %v11337_v41 = vsel %vm1405_vm3, %v3623_v51, %v3627_v5  ;;  %4094 = vmatprep.subr.bf16.mxu1 %v3916_v15  ;;  %v8169_v52 = vunpack.i.l.bf16 %v8168_v48  ;;  %v3831_v44 = vmax.f32 %v11219_v56, %v3646_v3  ;;  %v3621_v47 = vrot.slane %v11314_v49, 1  ;;  %v13850_v48 = vld [vmem:[#allocation74_spill] sm:$0xff]  ;;  %v8193_v14 = vpop.permute.xlu0 %8192 }
 0x35b   : > { %v3636_v58 = vsel %vm1405_vm3, %v3631_v30, %v3635_v61  ;;  %v3629_v12 = vrot.slane %v11319_v18, 1  ;;  %v3640_v29 = vsel %vm1405_vm3, %v3635_v61, %v3639_v57  ;;  %v8175_v0 = vunpack.i.h.bf16 %v8173_v13  ;;  %v8188_v26 = vpop.permute.xlu1 %8187 }
 0x35c   : > { %v8174_v59 = vunpack.i.l.bf16 %v8173_v13  ;;  %v3915_v25 = vpack.c.bf16 %v3833_v50, %v3831_v44  ;;  %v3828_v2 = vmax.f32 %v11243_v43, %v3640_v29  ;;  %v3829_v46 = vmax.f32 %v11274_v8, %v3642_v63 }
 0x35d   : > { %v3822_v1 = vmax.f32 %v11278_v28, %v11337_v41  ;;  %v13851_v56 = vmax.f32 %v13850_v48, 0.0  ;;  %v8180_v34 = vunpack.i.h.bf16 %v8178_v9  ;;  %v3319_v38 = vsel %vm3280_vm5, %v8169_v52, %v8170_v16  ;;  %v13858_v41 = vld [vmem:[#allocation36_spill] sm:$0xff] }
 0x35e   : > { %4095 = vmatpush2.bf16.msra.mxu1 %v3915_v25  ;;  %v3914_v32 = vpack.c.bf16 %v3830_v20, %v3828_v2  ;;  %v8179_v35 = vunpack.i.l.bf16 %v8178_v9  ;;  %v3638_v61 = vsel %vm1405_vm3, %v3633_v10, %v3637_v54  ;;  %v11353_v57 = vsel %vm1405_vm3, %v3621_v47, %v3625_v31 }
 0x35f   : > { %v3475_v60 = vmax.f32 %v13851_v56, %v8170_v16  ;;  %v3826_v43 = vmax.f32 %v11288_v36, %v3636_v58  ;;  %v3634_v8 = vsel %vm1405_vm3, %v3629_v12, %v3633_v10  ;;  %v3827_v13 = vmax.f32 %v11283_v21, %v3638_v61  ;;  %v13856_v36 = vld [vmem:[#allocation13_spill] sm:$0xff]  ;;  %v13860_v58 = vld [vmem:[#allocation14_spill] sm:$0xff]  ;;  %v13864_v56 = vld [vmem:[#allocation32_spill] sm:$0xff] }
 0x360   : > { %v13853_v27 = vmax.f32 %v13852_v7, 0.0  ;;  %v3317_v4 = vsel %vm3280_vm5, %v8174_v59, %v8175_v0  ;;  %4096 = vmatprep.subr.bf16.mxu1 %v3914_v32  ;;  %v13855_v54 = vmax.f32 %v13854_v45, 0.0  ;;  %v3632_v23 = vsel %vm1405_vm3, %v3627_v5, %v3631_v30  ;;  %v13866_v32 = vld [vmem:[#allocation75_spill] sm:$0xff]  ;;  %v13870_v7 = vld [vmem:[#allocation16_spill] sm:$0xff] }
 0x361   : > { %v13857_v39 = vmax.f32 %v13856_v36, 0.0  ;;  %v3318_v21 = vsel %vm3280_vm5, %v8179_v35, %v8180_v34  ;;  %v3913_v17 = vpack.c.bf16 %v3829_v46, %v3827_v13  ;;  %v3824_v10 = vmax.f32 %v11295_v11, %v3632_v23  ;;  %v13868_v13 = vld [vmem:[#allocation28_spill] sm:$0xff] }
 0x362   : > { %v11360_v42 = vmax.f32 %v13853_v27, %v8175_v0  ;;  %v11365_v37 = vmax.f32 %v13855_v54, %v8180_v34  ;;  %v3707_v50 = vrot.slane %v3475_v60, 1  ;;  %v8185_v15 = vunpack.i.h.bf16 %v11329_v40 }
 0x363   : > { %v3474_v24 = vmax.f32 %v13857_v39, %v3319_v38  ;;  %v8195_v20 = vunpack.i.h.bf16 %v8193_v14  ;;  %v8190_v16 = vunpack.i.h.bf16 %v8188_v26  ;;  %v3821_v3 = vmax.f32 %v11314_v49, %v11353_v57  ;;  %4097 = vmatpush2.bf16.msra.mxu1 %v3913_v17 }
 0x364   : > { %v8184_v9 = vunpack.i.l.bf16 %v11329_v40  ;;  %v3912_v30 = vpack.c.bf16 %v3826_v43, %v3824_v10  ;;  %v8189_v5 = vunpack.i.l.bf16 %v8188_v26  ;;  %v3825_v63 = vmax.f32 %v11319_v18, %v3634_v8  ;;  %v13862_v40 = vld [vmem:[#allocation48_spill] sm:$0xff] }
 0x365   : > { %v13859_v52 = vmax.f32 %v13858_v41, 0.0  ;;  %v3703_v11 = vrot.slane %v11365_v37, 1  ;;  %v13861_v29 = vmax.f32 %v13860_v58, 0.0  ;;  %v3699_v59 = vrot.slane %v11360_v42, 1 }
 0x366   : > { %4098 = vmatprep.subr.bf16.mxu1 %v3912_v30  ;;  %v8194_v49 = vunpack.i.l.bf16 %v8193_v14  ;;  %v13863_v25 = vmax.f32 %v13862_v40, 0.0  ;;  %v3630_v18 = vsel %vm1405_vm3, %v3625_v31, %v3629_v12  ;;  %v3864_v46 = vmax.f32 %v3475_v60, %v3707_v50 }
 0x367   : > { %v11379_v44 = vmax.f32 %v13859_v52, %v3317_v4  ;;  %v11384_v0 = vmax.f32 %v13861_v29, %v3318_v21  ;;  %v3705_v48 = vrot.slane %v3474_v24, 1  ;;  %v13865_v34 = vmax.f32 %v13864_v56, 0.0 }
 0x368   : > { %v11389_v2 = vmax.f32 %v13863_v25, %v8190_v16  ;;  %v13867_v35 = vmax.f32 %v13866_v32, 0.0  ;;  %v3315_v57 = vsel %vm3280_vm5, %v8184_v9, %v8185_v15  ;;  %v3316_v43 = vsel %vm3280_vm5, %v8189_v5, %v8190_v16 }
 0x369   : > { %v11394_v38 = vmax.f32 %v13865_v34, %v8185_v15  ;;  %v3823_v8 = vmax.f32 %v11304_v33, %v3630_v18  ;;  %v13869_v31 = vrot.slane %v13868_v13, 1  ;;  %v3701_v60 = vrot.slane %v11384_v0, 1 }
 0x36a   : > { %v11398_v61 = vmax.f32 %v13867_v35, %v8195_v20  ;;  %v3708_v14 = vsel %vm1405_vm3, %v3703_v11, %v3707_v50  ;;  %v13871_v27 = vrot.slane %v13870_v7, 1  ;;  %v3314_v45 = vsel %vm3280_vm5, %v8194_v49, %v8195_v20  ;;  %v13874_v20 = vld [vmem:[#allocation33_spill] sm:$0xff] }
 0x36b   : > { %v3624_v12 = vsel %vm1405_vm3, %v13869_v31, %v3623_v51  ;;  %v3695_v33 = vrot.slane %v11389_v2, 1  ;;  %v3911_v54 = vpack.c.bf16 %v3825_v63, %v3823_v8  ;;  %v13872_v51 = vld [vmem:[#allocation30_spill] sm:$0xff]  ;;  %v3863_v17 = vmax.f32 %v3474_v24, %v3705_v48  ;;  %v13876_v63 = vld [vmem:[#allocation29_spill] sm:$0xff] }
 0x36c   : > { %v3820_v26 = vmax.f32 %v13868_v13, %v3624_v12  ;;  %v3622_v4 = vsel %vm1405_vm3, %v13871_v27, %v3621_v47  ;;  %v3687_v23 = vrot.slane %v11398_v61, 1  ;;  %v13873_v36 = vmax.f32 %v13872_v51, 0.0  ;;  %v8359_v31 = vld [vmem:[%s13267_s3 + $0x18] ss:$12 sps:$4 sm:$0xff]   ;;  %v8364_v12 = vld [vmem:[%s13267_s3 + $0x34] ss:$12 sps:$4 sm:$0xff]  }
 0x36d   : > { %v3819_v28 = vmax.f32 %v13870_v7, %v3622_v4  ;;  %v3697_v10 = vrot.slane %v11379_v44, 1  ;;  %v3691_v50 = vrot.slane %v11394_v38, 1  ;;  %4099 = vmatpush2.bf16.msra.mxu1 %v3911_v54  ;;  %v3932_v47 = vpack.c.bf16 %v3864_v46, %v3864_v46  ;;  %v8367_v27 = vld [vmem:[%s13267_s3 + $0x4c] ss:$12 sps:$4 sm:$0xff]   ;;  %v8370_v4 = vld [vmem:[%s13267_s3 + $0x64] ss:$12 sps:$4 sm:$0xff]  }
 0x36e   : > { %v3468_v39 = vmax.f32 %v13873_v36, %v3316_v43  ;;  %v3910_v21 = vpack.c.bf16 %v3822_v1, %v3820_v26  ;;  %v3704_v15 = vsel %vm1405_vm3, %v3699_v59, %v3703_v11  ;;  %v13875_v16 = vmax.f32 %v13874_v20, 0.0  ;;  %v8356_v11 = vld [vmem:[%s13267_s3] ss:$12 sps:$4 sm:$0xff]   ;;  %v8371_v54 = vld [vmem:[%s13267_s3 + $0x78] ss:$12 sps:$4 sm:$0xff]  }
 0x36f   : > { %v3706_v30 = vsel %vm1405_vm3, %v3701_v60, %v3705_v48  ;;  %v3862_v5 = vmax.f32 %v11365_v37, %v3708_v14  ;;  %v13877_v41 = vmax.f32 %v13876_v63, 0.0  ;;  %v3700_v1 = vsel %vm1405_vm3, %v3695_v33, %v3699_v59  ;;  %v8377_v36 = vld [vmem:[%s13267_s3 + $0x8] ss:$12 sps:$4 sm:$0xff]  }
 0x370   : > { %v3466_v9 = vmax.f32 %v13875_v16, %v3315_v57  ;;  %4100 = vmatprep.subr.bf16.mxu1 %v3910_v21  ;;  %v3909_v24 = vpack.c.bf16 %v3821_v3, %v3819_v28  ;;  %v3931_v58 = vpack.c.bf16 %v3863_v17, %v3863_v17  ;;  %v4068_v29 = vand.u32 %v11148_v6, %v3932_v47  ;;  %v8361_v3 = vld [vmem:[%s13267_s3 + $0x1c] ss:$12 sps:$4 sm:$0xff]   ;;  %v8376_v28 = vld [vmem:[%s13267_s3 + $0x94] ss:$12 sps:$4 sm:$0xff]   ;;  %v8379_v21 = vld [vmem:[%s13267_s3 + $0x38] ss:$12 sps:$4 sm:$0xff]  }
 0x371   : > { %v3464_v52 = vmax.f32 %v13877_v41, %v3314_v45  ;;  %v3693_v49 = vrot.slane %v3468_v39, 1  ;;  %v3860_v40 = vmax.f32 %v11360_v42, %v3704_v15  ;;  %v3702_v25 = vsel %vm1405_vm3, %v3697_v10, %v3701_v60  ;;  %v8368_v45 = vld [vmem:[%s13267_s3 + $0x60] ss:$12 sps:$4 sm:$0xff]   ;;  %v8380_v17 = vld [vmem:[%s13267_s3 + $0x50] ss:$12 sps:$4 sm:$0xff]  }
 0x372   : > { %v3688_v37 = vsel %vm1405_vm3, %v3683_v53, %v3687_v23  ;;  %4101 = vmatpush2.bf16.msra.mxu1 %v3909_v24  ;;  %v3696_v59 = vsel %vm1405_vm3, %v3691_v50, %v3695_v33  ;;  %v3689_v46 = vrot.slane %v3466_v9, 1  ;;  %v3861_v48 = vmax.f32 %v11384_v0, %v3706_v30  ;;  %v8373_v33 = vld [vmem:[%s13267_s3 + $0x7c] ss:$12 sps:$4 sm:$0xff]   ;;  %v8382_v15 = vld [vmem:[%s13267_s3 + $0x80] ss:$12 sps:$4 sm:$0xff]  }
 0x373   : > { %v3852_v18 = vmax.f32 %v11096_v22, %v3688_v37  ;;  %4181 = vmatprep.subr.bf16.mxu1 %v4068_v29  ;;  %v3685_v42 = vrot.slane %v3464_v52, 1  ;;  %v3858_v56 = vmax.f32 %v11389_v2, %v3700_v1  ;;  %v4065_v34 = vand.u32 %v11148_v6, %v3931_v58  ;;  %v8386_v47 = vld [vmem:[%s13268_s4 + $0x74] ss:$8 sps:$4 sm:$0xff]   ;;  %v8387_v20 = vld [vmem:[%s13268_s4 + $0x60] ss:$8 sps:$4 sm:$0xff]  }
 0x374   : > { %v3859_v53 = vmax.f32 %v11379_v44, %v3702_v25  ;;  %v3698_v32 = vsel %vm1405_vm3, %v3693_v49, %v3697_v10  ;;  %v3930_v35 = vpack.c.bf16 %v3862_v5, %v3860_v40  ;;  %v3856_v57 = vmax.f32 %v11394_v38, %v3696_v59  ;;  %v8381_v10 = vld [vmem:[%s13267_s3 + $0x68] ss:$12 sps:$4 sm:$0xff]   ;;  %4812 = vmatprep.subr.bf16.mxu0 %v8386_v47  ;;  %v8389_v16 = vld [vmem:[%s13268_s4 + $0x64] ss:$8 sps:$4 sm:$0xff]   ;;  %v8399_v24 = vld [vmem:[%s13268_s4 + $0x30] ss:$8 sps:$4 sm:$0xff]  }
 0x375   : > { %4103 = vmatmul.mubr.bf16.vlgmr.msra.gmra.mxu1 %v8356_v11  ;;  %v3694_v43 = vsel %vm1405_vm3, %v3689_v46, %v3693_v49  ;;  %v3692_v22 = vsel %vm1405_vm3, %v3687_v23, %v3691_v50  ;;  %v3857_v0 = vmax.f32 %v3468_v39, %v3698_v32  ;;  %v3690_v6 = vsel %vm1405_vm3, %v3685_v42, %v3689_v46  ;;  %v8374_v23 = vld [vmem:[%s13267_s3 + $0x90] ss:$12 sps:$4 sm:$0xff]   ;;  %v8378_v39 = vld [vmem:[%s13267_s3 + $0x20] ss:$12 sps:$4 sm:$0xff]   ;;  %v8383_v5 = vld [vmem:[%s13267_s3 + $0x98] ss:$12 sps:$4 sm:$0xff]  }
 0x376   : > { %4182 = vmatpush1.bf16.msra.mxu1 %v4065_v34  ;;  %4112 = vmatprep.mubr.bf16.mxu1 %v8361_v3  ;;  %v3929_v8 = vpack.c.bf16 %v3861_v48, %v3859_v53  ;;  %v3855_v2 = vmax.f32 %v3466_v9, %v3694_v43  ;;  %v3854_v44 = vmax.f32 %v11398_v61, %v3692_v22  ;;  %v13878_v51 = vmov 0   ;;  %v8384_v50 = vld [vmem:[%s13268_s4 + $0x70] ss:$8 sps:$4 sm:$0xff]   ;;  %v8392_v30 = vld [vmem:[%s13268_s4 + $0x54] ss:$8 sps:$4 sm:$0xff]  }
 0x377   : > { %4183 = vmatprep.subr.bf16.mxu1 %v3930_v35  ;;  %v3928_v13 = vpack.c.bf16 %v3858_v56, %v3856_v57  ;;  %v3686_v38 = vsel %vm1405_vm3, %v3681_v19, %v3685_v42  ;;  %v3853_v60 = vmax.f32 %v3464_v52, %v3690_v6  ;;  %v8362_v19 = vld [vmem:[%s13267_s3 + $0x30] ss:$12 sps:$4 sm:$0xff]   ;;  %4813 = vmatpush1.bf16.msra.mxu0 %v8384_v50  ;;  %v8393_v63 = vld [vmem:[%s13268_s4 + $0x40] ss:$8 sps:$4 sm:$0xff]   ;;  %v8395_v41 = vld [vmem:[%s13268_s4 + $0x44] ss:$8 sps:$4 sm:$0xff]  }
 0x378   : > { %v3927_v14 = vpack.c.bf16 %v3857_v0, %v3855_v2  ;;  %v3851_v26 = vmax.f32 %v11118_v55, %v3686_v38  ;;  %v3926_v61 = vpack.c.bf16 %v3854_v44, %v3852_v18  ;;  %v8365_v55 = vld [vmem:[%s13267_s3 + $0x48] ss:$12 sps:$4 sm:$0xff]   ;;  %4814 = vmatprep.subr.bf16.mxu0 %v8389_v16  ;;  %v8390_v9 = vld [vmem:[%s13268_s4 + $0x50] ss:$8 sps:$4 sm:$0xff]   ;;  %v8398_v1 = vld [vmem:[%s13268_s4 + $0x11c] ss:$8 sps:$4 sm:$0xff]  }
 0x379   : > { %v8396_v52 = vld [vmem:[%s13268_s4 + $0x118] ss:$8 sps:$4 sm:$0xff]   ;;  %v8401_v58 = vld [vmem:[%s13268_s4 + $0x34] ss:$8 sps:$4 sm:$0xff]   ;;  %v8402_v29 = vld [vmem:[%s13268_s4 + $0x108] ss:$8 sps:$4 sm:$0xff]  }
 0x37a   : > { %4184 = vmatpush1.bf16.msra.mxu1 %v3929_v8  ;;  %v3925_v7 = vpack.c.bf16 %v3853_v60, %v3851_v26  ;;  %v8404_v49 = vld [vmem:[%s13268_s4 + $0x10c] ss:$8 sps:$4 sm:$0xff]   ;;  %v8405_v11 = vld [vmem:[%s13268_s4 + $0x20] ss:$8 sps:$4 sm:$0xff]   ;;  %v8410_v37 = vld [vmem:[%s13268_s4 + $0xfc] ss:$8 sps:$4 sm:$0xff]  }
 0x37b   : > { %4185 = vmatprep.subr.bf16.mxu1 %v3928_v13  ;;  %4815 = vmatpush1.bf16.msra.mxu0 %v8387_v20  ;;  %v8407_v40 = vld [vmem:[%s13268_s4 + $0x24] ss:$8 sps:$4 sm:$0xff]   ;;  %v8408_v25 = vld [vmem:[%s13268_s4 + $0xf8] ss:$8 sps:$4 sm:$0xff]   ;;  %v8413_v3 = vld [vmem:[%s13268_s4 + $0x14] ss:$8 sps:$4 sm:$0xff]  }
 0x37c   : > { %4816 = vmatprep.subr.bf16.mxu0 %v8392_v30  ;;  %v8411_v59 = vld [vmem:[%s13268_s4 + $0x10] ss:$8 sps:$4 sm:$0xff]   ;;  %v8416_v46 = vld [vmem:[%s13268_s4 + $0xec] ss:$8 sps:$4 sm:$0xff]   ;;  %v8417_v48 = vld [vmem:[%s13268_s4] ss:$8 sps:$4 sm:$0xff]  }
 0x37d   : > { %4113 = vmatmul.mubr.bf16.gmra.mxu1 %v8359_v31  ;;  %v8414_v18 = vld [vmem:[%s13268_s4 + $0xe8] ss:$8 sps:$4 sm:$0xff]   ;;  %v8419_v42 = vld [vmem:[%s13268_s4 + $0x4] ss:$8 sps:$4 sm:$0xff]   ;;  %v8420_v56 = vld [vmem:[%s13268_s4 + $0xd8] ss:$8 sps:$4 sm:$0xff]  }
 0x37e   : > { %4186 = vmatpush1.bf16.msra.mxu1 %v3927_v14  ;;  %4122 = vmatprep.mubr.bf16.mxu1 %v8364_v12  ;;  %v8422_v34 = vld [vmem:[%s13268_s4 + $0xdc] ss:$8 sps:$4 sm:$0xff]   ;;  %v8424_v57 = vld [vmem:[%s13268_s4 + $0xc8] ss:$8 sps:$4 sm:$0xff]   ;;  %v8426_v43 = vld [vmem:[%s13268_s4 + $0xcc] ss:$8 sps:$4 sm:$0xff]  }
 0x37f   : > { %4187 = vmatprep.subr.bf16.mxu1 %v3926_v61  ;;  %4817 = vmatpush1.bf16.msra.mxu0 %v8390_v9  ;;  %v4310_v53 = vld [vmem:[%s13268_s4 + $0xa0] sm:$0x11]  ;;  %v8430_v0 = vld [vmem:[%s13268_s4 + $0x94] ss:$8 sps:$4 sm:$0xff]   ;;  %v8428_v8 = vld [vmem:[%s13268_s4 + $0x90] ss:$8 sps:$4 sm:$0xff]  }
 0x380   : > { %4818 = vmatprep.subr.bf16.mxu0 %v8395_v41  ;;  %v7591_v32 = vcombine.high %v4310_v53, %v4310_v53  ;;  %v7590_v35 = vcombine.low %v4310_v53, %v4310_v53  ;;  %v8433_v2 = vld [vmem:[%s13268_s4 + $0xbc] ss:$8 sps:$4 sm:$0xff]   ;;  %v8431_v6 = vld [vmem:[%s13268_s4 + $0xb8] ss:$8 sps:$4 sm:$0xff]   ;;  %v8437_v31 = vld [vmem:[%s13268_s4 + $0xa8] ss:$8 sps:$4 sm:$0xff]  }
 0x381   : > { %v8436_v44 = vld [vmem:[%s13268_s4 + $0x84] ss:$8 sps:$4 sm:$0xff]   ;;  %v8434_v13 = vld [vmem:[%s13268_s4 + $0x80] ss:$8 sps:$4 sm:$0xff]  }
 0x382   : > { %4188 = vmatpush1.bf16.msra.mxu1 %v3925_v7  ;;  %v4807_v22 = vsel %vm4577_vm9, %v7590_v35, 0  ;;  %v8439_v38 = vld [vmem:[%s13268_s4 + $0xac] ss:$8 sps:$4 sm:$0xff]   ;;  %v8442_v61 = vld [vmem:[%s13268_s4 + $0x138] ss:$8 sps:$4 sm:$0xff]  }
 0x383   : > { %4584 = vmatprep.subr.bf16.mxu1 %v8398_v1  ;;  %4819 = vmatpush1.bf16.msra.mxu0 %v8393_v63  ;;  %v7539_v12 = vld [vmem:[%s13268_s4 + $0x148] sm:$0x11]  ;;  %v8444_v7 = vld [vmem:[%s13268_s4 + $0x13c] ss:$8 sps:$4 sm:$0xff]  }
 0x384   : > { %4820 = vmatprep.subr.bf16.mxu0 %v8401_v58  ;;  %v7561_v60 = vcombine.high %v7539_v12, %v7539_v12  ;;  %v7560_v14 = vcombine.low %v7539_v12, %v7539_v12  ;;  %v8448_v53 = vld [vmem:[%s13268_s4 + $0x268] ss:$8 sps:$4 sm:$0xff]  }
 0x385   : > { %4123 = vmatmul.mubr.bf16.gmra.mxu1 %v8362_v19  ;;  %v8447_v19 = vld [vmem:[%s13268_s4 + $0x12c] ss:$8 sps:$4 sm:$0xff]  }
 0x386   : > { %4132 = vmatprep.mubr.bf16.mxu1 %v8367_v27  ;;  %v4579_v26 = vsel %vm4577_vm9, %v7560_v14, 0  ;;  %v8445_v27 = vld [vmem:[%s13268_s4 + $0x128] ss:$8 sps:$4 sm:$0xff]  }
 0x387   : > { %4821 = vmatpush1.bf16.msra.mxu0 %v8399_v24 }
 0x388   : > { %4822 = vmatprep.subr.bf16.mxu0 %v8407_v40 }
 0x38b   : > { %4823 = vmatpush1.bf16.msra.mxu0 %v8405_v11 }
 0x38c   : > { %4824 = vmatprep.subr.bf16.mxu0 %v8413_v3 }
 0x38d   : > { %4133 = vmatmul.mubr.bf16.gmra.mxu1 %v8365_v55  ;;  %v8450_v55 = vld [vmem:[%s13268_s4 + $0x26c] ss:$8 sps:$4 sm:$0xff]  }
 0x38e   : > { %4142 = vmatprep.mubr.bf16.mxu1 %v8370_v4  ;;  %v8462_v4 = vld [vmem:[%s13268_s4 + $0x1c4] ss:$8 sps:$4 sm:$0xff]  }
 0x38f   : > { %4825 = vmatpush1.bf16.msra.mxu0 %v8411_v59 }
 0x390   : > { %4826 = vmatprep.subr.bf16.mxu0 %v8419_v42 }
 0x393   : > { %4827 = vmatpush1.bf16.msra.mxu0 %v8417_v48 }
 0x394   : > { %7592 = vmatprep.subr.msk.bf16.mxu0 %vm4577_vm9, %v7591_v32 }
 0x395   : > { %4143 = vmatmul.mubr.bf16.gmra.mxu1 %v8368_v45 }
 0x396   : > { %4152 = vmatprep.mubr.bf16.mxu1 %v8373_v33 }
 0x397   : > { %4839 = vmatpush2.bf16.msra.mxu0 %v4807_v22 }
 0x398   : > { %4840 = vmatprep.subr.bf16.mxu0 %v8430_v0 }
 0x39b   : > { %4841 = vmatpush2.bf16.msra.mxu0 %v8428_v8 }
 0x39c   : > { %4842 = vmatprep.subr.bf16.mxu0 %v8436_v44 }
 0x39d   : > { %4153 = vmatmul.mubr.bf16.gmra.mxu1 %v8371_v54 }
 0x39e   : > { %4162 = vmatprep.mubr.bf16.mxu1 %v8376_v28 }
 0x39f   : > { %4843 = vmatpush2.bf16.msra.mxu0 %v8434_v13  ;;  %v8456_v13 = vld [vmem:[%s13268_s4 + $0x24c] ss:$8 sps:$4 sm:$0xff]  }
 0x3a0   : > { %5462 = vmatprep.subr.bf16.mxu0 %v8450_v55  ;;  %v8459_v55 = vld [vmem:[%s13268_s4 + $0x23c] ss:$8 sps:$4 sm:$0xff]  }
 0x3a5   : > { %4163 = vmatmul.mubr.bf16.gmra.mxu1 %v8374_v23 }
 0x3a6   : > { %4205 = vmatprep.mubr.bf16.mxu1 %v13878_v51 }
 0x3ad   : > { %7512 = vmatmul.mubr.msk.bf16.vlgmr.msra.gmra.mxu1 %vm4038_vm8, %v8377_v36 }
 0x3ae   : > { %4215 = vmatprep.mubr.bf16.mxu1 %v13878_v51  ;;  %4585 = vmatpush1.bf16.msra.mxu1 %v8396_v52 }
 0x3af   : > { %4586 = vmatprep.subr.bf16.mxu1 %v8404_v49 }
 0x3b2   : > { %4587 = vmatpush1.bf16.msra.mxu1 %v8402_v29 }
 0x3b3   : > { %4588 = vmatprep.subr.bf16.mxu1 %v8410_v37 }
 0x3b5   : > { %7513 = vmatmul.mubr.msk.bf16.gmra.mxu1 %vm4038_vm8, %v8378_v39 }
 0x3b6   : > { %4225 = vmatprep.mubr.bf16.mxu1 %v13878_v51  ;;  %4589 = vmatpush1.bf16.msra.mxu1 %v8408_v25 }
 0x3b7   : > { %4590 = vmatprep.subr.bf16.mxu1 %v8416_v46 }
 0x3ba   : > { %4591 = vmatpush1.bf16.msra.mxu1 %v8414_v18 }
 0x3bb   : > { %4592 = vmatprep.subr.bf16.mxu1 %v8422_v34 }
 0x3bd   : > { %7514 = vmatmul.mubr.msk.bf16.gmra.mxu1 %vm4038_vm8, %v8379_v21 }
 0x3be   : > { %4235 = vmatprep.mubr.bf16.mxu1 %v13878_v51  ;;  %4593 = vmatpush1.bf16.msra.mxu1 %v8420_v56 }
 0x3bf   : > { %4594 = vmatprep.subr.bf16.mxu1 %v8426_v43 }
 0x3c2   : > { %4595 = vmatpush1.bf16.msra.mxu1 %v8424_v57  ;;  %v8453_v57 = vld [vmem:[%s13268_s4 + $0x25c] ss:$8 sps:$4 sm:$0xff]  }
 0x3c3   : > { %4596 = vmatprep.subr.bf16.mxu1 %v8433_v2  ;;  %v8451_v2 = vld [vmem:[%s13268_s4 + $0x258] ss:$8 sps:$4 sm:$0xff]  }
 0x3c5   : > { %7515 = vmatmul.mubr.msk.bf16.gmra.mxu1 %vm4038_vm8, %v8380_v17 }
 0x3c6   : > { %4245 = vmatprep.mubr.bf16.mxu1 %v13878_v51  ;;  %4597 = vmatpush1.bf16.msra.mxu1 %v8431_v6 }
 0x3c7   : > { %4598 = vmatprep.subr.bf16.mxu1 %v8439_v38 }
 0x3ca   : > { %4599 = vmatpush1.bf16.msra.mxu1 %v8437_v31 }
 0x3cb   : > { %7562 = vmatprep.subr.msk.bf16.mxu1 %vm4577_vm9, %v7561_v60 }
 0x3cd   : > { %7516 = vmatmul.mubr.msk.bf16.gmra.mxu1 %vm4038_vm8, %v8381_v10 }
 0x3ce   : > { %4255 = vmatprep.mubr.bf16.mxu1 %v13878_v51  ;;  %4611 = vmatpush2.bf16.msra.mxu1 %v4579_v26 }
 0x3cf   : > { %4612 = vmatprep.subr.bf16.mxu1 %v8444_v7  ;;  %v8454_v7 = vld [vmem:[%s13268_s4 + $0x248] ss:$8 sps:$4 sm:$0xff]  }
 0x3d2   : > { %4613 = vmatpush2.bf16.msra.mxu1 %v8442_v61 }
 0x3d3   : > { %4614 = vmatprep.subr.bf16.mxu1 %v8447_v19 }
 0x3d5   : > { %7517 = vmatmul.mubr.msk.bf16.gmra.mxu1 %vm4038_vm8, %v8382_v15 }
 0x3d6   : > { %4265 = vmatprep.mubr.bf16.mxu1 %v13878_v51  ;;  %4615 = vmatpush2.bf16.msra.mxu1 %v8445_v27 }
 0x3d7   : > { %5116 = vmatprep.subr.bf16.mxu1 %v8462_v4 }
 0x3dd   : > { %7518 = vmatmul.mubr.msk.bf16.gmra.mxu1 %vm4038_vm8, %v8383_v5 }
 0x435   : > { %v4104_v45 = vpop.f32.mrf.mxu1 }
 0x437   : > { %v4106_v33 = vpop.f32.mrf.mxu1 }
 0x439   : > { %v4108_v54 = vpop.f32.mrf.mxu1 }
 0x43b   : > { %v4110_v28 = vpop.f32.mrf.mxu1 }
 0x43d   : > { %v4114_v23 = vpop.f32.mrf.mxu1 }
 0x43f   : > { %v4116_v36 = vpop.f32.mrf.mxu1 }
 0x441   : > { %v4118_v39 = vpop.f32.mrf.mxu1 }
 0x443   : > { %v4120_v21 = vpop.f32.mrf.mxu1 }
 0x445   : > { %v11662_v17 = vpop.f32.mrf.mxu1 }
 0x447   : > { %v11664_v10 = vpop.f32.mrf.mxu1 }
 0x449   : > { %v11666_v50 = vpop.f32.mrf.mxu1 }
 0x44b   : > { %v11668_v47 = vpop.f32.mrf.mxu1 }
 0x44d   : > { %v11670_v15 = vpop.f32.mrf.mxu1 }
 0x44f   : > { %v11672_v20 = vpop.f32.mrf.mxu1 }
 0x451   : > { %v11674_v16 = vpop.f32.mrf.mxu1 }
 0x453   : > { %v11676_v9 = vpop.f32.mrf.mxu1 }
 0x455   : > { %v11678_v30 = vpop.f32.mrf.mxu1 }
 0x457   : > { %v11680_v5 = vpop.f32.mrf.mxu1 }
 0x459   : > { %v11682_v63 = vpop.f32.mrf.mxu1 }
 0x45b   : > { %v11684_v41 = vpop.f32.mrf.mxu1 }
 0x45d   : > { %v11686_v52 = vpop.f32.mrf.mxu1 }
 0x45f   : > { %v11688_v1 = vpop.f32.mrf.mxu1 }
 0x461   : > { %v11690_v24 = vpop.f32.mrf.mxu1 }
 0x463   : > { %v11692_v58 = vpop.f32.mrf.mxu1 }
 0x465   : > { %v11694_v29 = vpop.f32.mrf.mxu1 }
 0x467   : > { %v11696_v49 = vpop.f32.mrf.mxu1 }
 0x469   : > { %v11698_v11 = vpop.f32.mrf.mxu1 }
 0x46b   : > { %v11700_v40 = vpop.f32.mrf.mxu1 }
 0x46d   : > { %v4207_v25 = vpop.f32.mrf.mxu1 }
 0x46e   : > { %v4208_v42 = vadd.f32 %v4207_v25, %v4104_v45 }
 0x46f   : > { %v4209_v37 = vpop.f32.mrf.mxu1 }
 0x470   : > { %v4210_v46 = vadd.f32 %v4209_v37, %v4106_v33  ;;  %v8457_v37 = vld [vmem:[%s13268_s4 + $0x238] ss:$8 sps:$4 sm:$0xff]  }
 0x471   : > { %v4211_v59 = vpop.f32.mrf.mxu1 }
 0x472   : > { %v4212_v3 = vadd.f32 %v4211_v59, %v4108_v54 }
 0x473   : > { %v4213_v18 = vpop.f32.mrf.mxu1 }
 0x474   : > { %v4214_v48 = vadd.f32 %v4213_v18, %v4110_v28  ;;  %v11707_v32 = vpack.c.bf16 %v4212_v3, %v4208_v42 }
 0x475   : > { %v4217_v56 = vpop.f32.mrf.mxu1 }
 0x476   : > { %v11702_v34 = vpack.c.bf16 %v4214_v48, %v4210_v46  ;;  %v4218_v22 = vadd.f32 %v4217_v56, %v4114_v23  ;;  %v4336_v6 = vshll.u32 %v11707_v32, 16  ;;  %v4334_v54 = vshrl.u32 %v11707_v32, 16 }
 0x477   : > { %v4219_v35 = vpop.f32.mrf.mxu1  ;;  %v5615_v18 = vrot.slane %v11707_v32, 2 }
 0x478   : > { %7593 = vmatprep.mubr.msk.bf16.mxu0 %vm4555_vm10, %v11702_v34  ;;  %v4348_v8 = vshll.u32 %v11702_v34, 16  ;;  %v4220_v31 = vadd.f32 %v4219_v35, %v4116_v36  ;;  %v4338_v27 = vrot.slane %v4336_v6, 1  ;;  %v4346_v4 = vshrl.u32 %v11702_v34, 16 }
 0x479   : > { %v4221_v43 = vpop.f32.mrf.mxu1  ;;  %4845 = vmatmul.mubr.bf16.vlgmr.msra.gmra.mxu0 %v11707_v32 }
 0x47a   : > { %v4222_v0 = vadd.f32 %v4221_v43, %v4118_v39  ;;  %5463 = vmatpush1.bf16.msra.mxu0 %v8448_v53  ;;  %v4350_v26 = vrot.slane %v4348_v8, 1  ;;  %v4339_v3 = vor.u32 %v4338_v27, %v4334_v54  ;;  %v8468_v53 = vld [vmem:[%s13268_s4 + $0x1b4] ss:$8 sps:$4 sm:$0xff]   ;;  %v5618_v43 = vrot.slane %v11702_v34, 2 }
 0x47b   : > { %v4223_v44 = vpop.f32.mrf.mxu1  ;;  %5464 = vmatprep.subr.bf16.mxu0 %v8453_v57 }
 0x47c   : > { %v11723_v38 = vpack.c.bf16 %v4222_v0, %v4218_v22  ;;  %v4224_v12 = vadd.f32 %v4223_v44, %v4120_v21  ;;  %v4351_v21 = vor.u32 %v4350_v26, %v4346_v4 }
 0x47d   : > { %v4227_v60 = vpop.f32.mrf.mxu1 }
 0x47e   : > { %v11725_v14 = vpack.c.bf16 %v4224_v12, %v4220_v31  ;;  %v4341_v61 = vshll.u32 %v11723_v38, 16  ;;  %5465 = vmatpush1.bf16.msra.mxu0 %v8451_v2  ;;  %v5616_v23 = vrot.slane %v11723_v38, 2  ;;  %v4228_v36 = vadd.f32 %v4227_v60, %v11662_v17  ;;  %v8460_v17 = vld [vmem:[%s13268_s4 + $0x1c0] ss:$8 sps:$4 sm:$0xff]   ;;  %v8471_v31 = vld [vmem:[%s13268_s4 + $0x21c] ss:$8 sps:$4 sm:$0xff]  }
 0x47f   : > { %v4229_v19 = vpop.f32.mrf.mxu1  ;;  %5466 = vmatprep.subr.bf16.mxu0 %v8456_v13  ;;  %v8463_v2 = vld [vmem:[%s13268_s4 + $0x228] ss:$8 sps:$4 sm:$0xff]   ;;  %v4357_v27 = vshrl.u32 %v11723_v38, 16 }
 0x480   : > { %7594 = vmatprep.mubr.msk.bf16.mxu0 %vm4555_vm10, %v11725_v14  ;;  %v4353_v45 = vshll.u32 %v11725_v14, 16  ;;  %v4343_v28 = vrot.slane %v4341_v61, 1  ;;  %v4230_v46 = vadd.f32 %v4229_v19, %v11664_v10  ;;  %v5619_v22 = vrot.slane %v11725_v14, 2  ;;  %v8466_v13 = vld [vmem:[%s13268_s4 + $0x1b0] ss:$8 sps:$4 sm:$0xff]  }
 0x481   : > { %v4231_v33 = vpop.f32.mrf.mxu1  ;;  %4855 = vmatmul.mubr.bf16.gmra.mxu0 %v11723_v38  ;;  %v11780_v10 = vsel %vm2409_vm4, %v5615_v18, %v5616_v23  ;;  %v4365_v60 = vshrl.u32 %v11725_v14, 16 }
 0x482   : > { %v4232_v39 = vadd.f32 %v4231_v33, %v11666_v50  ;;  %v4355_v25 = vrot.slane %v4353_v45, 1  ;;  %5467 = vmatpush1.bf16.msra.mxu0 %v8454_v7  ;;  %v8465_v50 = vld [vmem:[%s13268_s4 + $0x22c] ss:$8 sps:$4 sm:$0xff]   ;;  %v4344_v57 = vsel %vm528_vm0, %v4339_v3, %v4343_v28  ;;  %v11795_v12 = vsel %vm2409_vm4, %v5618_v43, %v5619_v22 }
 0x483   : > { %v4233_v59 = vpop.f32.mrf.mxu1  ;;  %5468 = vmatprep.subr.bf16.mxu0 %v8459_v55  ;;  %v8474_v7 = vld [vmem:[%s13268_s4 + $0x1a4] ss:$8 sps:$4 sm:$0xff]  }
 0x484   : > { %v11766_v48 = vpack.c.bf16 %v4232_v39, %v4228_v36  ;;  %v4234_v42 = vadd.f32 %v4233_v59, %v11668_v47  ;;  %v4356_v56 = vsel %vm528_vm0, %v4351_v21, %v4355_v25  ;;  %v4367_v21 = vor.u32 %v4365_v60, %v4355_v25  ;;  %v8469_v59 = vld [vmem:[%s13268_s4 + $0x218] ss:$8 sps:$4 sm:$0xff]  }
 0x485   : > { %v4237_v35 = vpop.f32.mrf.mxu1  ;;  %7563 = vmatprep.mubr.msk.bf16.mxu1 %vm4555_vm10, %v4356_v56 }
 0x486   : > { %v11782_v47 = vpack.c.bf16 %v4234_v42, %v4230_v46  ;;  %4617 = vmatmul.mubr.bf16.vlgmr.msra.gmra.mxu1 %v4344_v57  ;;  %v4361_v0 = vshll.u32 %v11766_v48, 16  ;;  %5469 = vmatpush1.bf16.msra.mxu0 %v8457_v37  ;;  %v5621_v33 = vrot.slane %v11766_v48, 2  ;;  %v4238_v36 = vadd.f32 %v4237_v35, %v11670_v15  ;;  %v8472_v15 = vld [vmem:[%s13268_s4 + $0x1a0] ss:$8 sps:$4 sm:$0xff]  }
 0x487   : > { %v4239_v44 = vpop.f32.mrf.mxu1  ;;  %5117 = vmatpush1.bf16.msra.mxu1 %v8460_v17  ;;  %5470 = vmatprep.subr.bf16.mxu0 %v8465_v50  ;;  %v4359_v17 = vor.u32 %v4357_v27, %v4343_v28  ;;  %v8480_v28 = vld [vmem:[%s13268_s4 + $0x194] ss:$8 sps:$4 sm:$0xff]   ;;  %v8475_v57 = vld [vmem:[%s13268_s4 + $0x208] ss:$8 sps:$4 sm:$0xff]  }
 0x488   : > { %7595 = vmatprep.mubr.msk.bf16.mxu0 %vm4555_vm10, %v11782_v47  ;;  %v4369_v26 = vshll.u32 %v11782_v47, 16  ;;  %5118 = vmatprep.subr.bf16.mxu1 %v8468_v53  ;;  %v4363_v55 = vrot.slane %v4361_v0, 1  ;;  %v4240_v25 = vadd.f32 %v4239_v44, %v11672_v20  ;;  %v5623_v53 = vrot.slane %v11782_v47, 2 }
 0x489   : > { %v4241_v19 = vpop.f32.mrf.mxu1  ;;  %4865 = vmatmul.mubr.bf16.gmra.mxu0 %v11766_v48  ;;  %v11842_v20 = vsel %vm2409_vm4, %v5616_v23, %v5621_v33  ;;  %v8483_v23 = vld [vmem:[%s13268_s4 + $0x1fc] ss:$8 sps:$4 sm:$0xff]  }
 0x48a   : > { %v4242_v39 = vadd.f32 %v4241_v19, %v11674_v16  ;;  %v4371_v37 = vrot.slane %v4369_v26, 1  ;;  %5471 = vmatpush1.bf16.msra.mxu0 %v8463_v2  ;;  %v8477_v16 = vld [vmem:[%s13268_s4 + $0x20c] ss:$8 sps:$4 sm:$0xff]   ;;  %v4364_v56 = vsel %vm528_vm0, %v4359_v17, %v4363_v55  ;;  %v8478_v2 = vld [vmem:[%s13268_s4 + $0x190] ss:$8 sps:$4 sm:$0xff]   ;;  %v11857_v44 = vsel %vm2409_vm4, %v5619_v22, %v5623_v53 }
 0x48b   : > { %v4243_v3 = vpop.f32.mrf.mxu1  ;;  %5119 = vmatpush1.bf16.msra.mxu1 %v8466_v13  ;;  %5472 = vmatprep.subr.bf16.mxu0 %v8471_v31  ;;  %v4381_v13 = vshrl.u32 %v11782_v47, 16  ;;  %v7671_v19 = vld [vmem:[%s13268_s4 + $0x298] sm:$0x11]  ;;  %v4373_v22 = vshrl.u32 %v11766_v48, 16 }
 0x48c   : > { %v11827_v50 = vpack.c.bf16 %v4242_v39, %v4238_v36  ;;  %v4244_v18 = vadd.f32 %v4243_v3, %v11676_v9  ;;  %v4372_v46 = vsel %vm528_vm0, %v4367_v21, %v4371_v37  ;;  %5120 = vmatprep.subr.bf16.mxu1 %v8474_v7  ;;  %v8486_v7 = vld [vmem:[%s13268_s4 + $0x184] ss:$8 sps:$4 sm:$0xff]  }
 0x48d   : > { %v4247_v42 = vpop.f32.mrf.mxu1  ;;  %7564 = vmatprep.mubr.msk.bf16.mxu1 %vm4555_vm10, %v4372_v46  ;;  %v4383_v17 = vor.u32 %v4381_v13, %v4371_v37  ;;  %v7692_v37 = vcombine.low %v7671_v19, %v7671_v19 }
 0x48e   : > { %v11844_v9 = vpack.c.bf16 %v4244_v18, %v4240_v25  ;;  %4627 = vmatmul.mubr.bf16.gmra.mxu1 %v4364_v56  ;;  %v13418_v35 = vshll.u32 %v11827_v50, 16  ;;  %5473 = vmatpush1.bf16.msra.mxu0 %v8469_v59  ;;  %v5625_v21 = vrot.slane %v11827_v50, 2  ;;  %v4248_v59 = vadd.f32 %v4247_v42, %v11678_v30  ;;  %v8484_v30 = vld [vmem:[%s13268_s4 + $0x180] ss:$8 sps:$4 sm:$0xff]  }
 0x48f   : > { %v4249_v43 = vpop.f32.mrf.mxu1  ;;  %5121 = vmatpush1.bf16.msra.mxu1 %v8472_v15  ;;  %5474 = vmatprep.subr.bf16.mxu0 %v8477_v16  ;;  %v8481_v16 = vld [vmem:[%s13268_s4 + $0x1f8] ss:$8 sps:$4 sm:$0xff]   ;;  %v4375_v18 = vor.u32 %v4373_v22, %v4363_v55  ;;  %v8490_v55 = vld [vmem:[%s13268_s4 + $0x174] ss:$8 sps:$4 sm:$0xff]  }
 0x490   : > { %7596 = vmatprep.mubr.msk.bf16.mxu0 %vm4555_vm10, %v11844_v9  ;;  %v4385_v31 = vshll.u32 %v11844_v9, 16  ;;  %5122 = vmatprep.subr.bf16.mxu1 %v8480_v28  ;;  %v4379_v39 = vrot.slane %v13418_v35, 1  ;;  %v4250_v46 = vadd.f32 %v4249_v43, %v11680_v5  ;;  %v11904_v5 = vsel %vm2409_vm4, %v5621_v33, %v5625_v21  ;;  %v8494_v33 = vld [vmem:[%s13268_s4 + $0x28c] ss:$8 sps:$4 sm:$0xff]  }
 0x491   : > { %v4251_v36 = vpop.f32.mrf.mxu1  ;;  %4875 = vmatmul.mubr.bf16.gmra.mxu0 %v11827_v50 }
 0x492   : > { %v4252_v3 = vadd.f32 %v4251_v36, %v11682_v63  ;;  %v4387_v15 = vrot.slane %v4385_v31, 1  ;;  %5475 = vmatpush1.bf16.msra.mxu0 %v8475_v57  ;;  %v7693_v63 = vcombine.high %v7671_v19, %v7671_v19  ;;  %v8488_v19 = vld [vmem:[%s13268_s4 + $0x170] ss:$8 sps:$4 sm:$0xff]   ;;  %v5457_v36 = vsel %vm4577_vm9, %v7692_v37, 0 }
 0x493   : > { %v4253_v25 = vpop.f32.mrf.mxu1  ;;  %5123 = vmatpush1.bf16.msra.mxu1 %v8478_v2  ;;  %5476 = vmatprep.subr.bf16.mxu0 %v8483_v23  ;;  %v4380_v2 = vsel %vm528_vm0, %v4375_v18, %v4379_v39  ;;  %v5627_v23 = vrot.slane %v11844_v9, 2  ;;  %v4389_v18 = vshrl.u32 %v11827_v50, 16 }
 0x494   : > { %v11889_v28 = vpack.c.bf16 %v4252_v3, %v4248_v59  ;;  %v4254_v42 = vadd.f32 %v4253_v25, %v11684_v41  ;;  %v4388_v56 = vsel %vm528_vm0, %v4383_v17, %v4387_v15  ;;  %5124 = vmatprep.subr.bf16.mxu1 %v8486_v7  ;;  %v4397_v3 = vshrl.u32 %v11844_v9, 16 }
 0x495   : > { %v4257_v57 = vpop.f32.mrf.mxu1  ;;  %7565 = vmatprep.mubr.msk.bf16.mxu1 %vm4555_vm10, %v4388_v56  ;;  %v11918_v59 = vsel %vm2409_vm4, %v5623_v53, %v5627_v23  ;;  %v8492_v56 = vld [vmem:[%s13268_s4 + $0x288] ss:$8 sps:$4 sm:$0xff]  }
 0x496   : > { %v11906_v41 = vpack.c.bf16 %v4254_v42, %v4250_v46  ;;  %4637 = vmatmul.mubr.bf16.gmra.mxu1 %v4380_v2  ;;  %v13415_v43 = vshll.u32 %v11889_v28, 16  ;;  %5477 = vmatpush1.bf16.msra.mxu0 %v8481_v16  ;;  %v8497_v16 = vld [vmem:[%s13268_s4 + $0x164] ss:$8 sps:$4 sm:$0xff]   ;;  %v4399_v46 = vor.u32 %v4397_v3, %v4387_v15  ;;  %v4391_v2 = vor.u32 %v4389_v18, %v4379_v39  ;;  %v8503_v39 = vld [vmem:[%s13268_s4 + $0x154] ss:$8 sps:$4 sm:$0xff]  }
 0x497   : > { %v4259_v7 = vpop.f32.mrf.mxu1  ;;  %5125 = vmatpush1.bf16.msra.mxu1 %v8484_v30  ;;  %7694 = vmatprep.subr.msk.bf16.mxu0 %vm4577_vm9, %v7693_v63  ;;  %v5629_v30 = vrot.slane %v11889_v28, 2  ;;  %v4258_v63 = vadd.f32 %v4257_v57, %v11686_v52  ;;  %v8495_v52 = vld [vmem:[%s13268_s4 + $0x160] ss:$8 sps:$4 sm:$0xff]  }
 0x498   : > { %7597 = vmatprep.mubr.msk.bf16.mxu0 %vm4555_vm10, %v11906_v41  ;;  %v13416_v17 = vshll.u32 %v11906_v41, 16  ;;  %5126 = vmatprep.subr.bf16.mxu1 %v8490_v55  ;;  %v4395_v53 = vrot.slane %v13415_v43, 1  ;;  %v4260_v15 = vadd.f32 %v4259_v7, %v11688_v1  ;;  %v5631_v7 = vrot.slane %v11906_v41, 2 }
 0x499   : > { %v4261_v25 = vpop.f32.mrf.mxu1  ;;  %4885 = vmatmul.mubr.bf16.gmra.mxu0 %v11889_v28 }
 0x49a   : > { %v4262_v37 = vadd.f32 %v4261_v25, %v11690_v24  ;;  %v4403_v42 = vrot.slane %v13416_v17, 1  ;;  %5489 = vmatpush2.bf16.msra.mxu0 %v5457_v36  ;;  %v8500_v24 = vld [vmem:[%s13268_s4 + $0x27c] ss:$8 sps:$4 sm:$0xff]   ;;  %v4396_v1 = vsel %vm528_vm0, %v4391_v2, %v4395_v53  ;;  %v5280_v2 = vrot.slane %v4353_v45, 2 }
 0x49b   : > { %v4263_v55 = vpop.f32.mrf.mxu1  ;;  %5127 = vmatpush1.bf16.msra.mxu1 %v8488_v19  ;;  %5490 = vmatprep.subr.bf16.mxu0 %v8494_v33  ;;  %v7620_v19 = vld [vmem:[%s13268_s4 + $0x1f0] sm:$0x11]  ;;  %v5276_v45 = vrot.slane %v4346_v4, 1 }
 0x49c   : > { %v11950_v57 = vpack.c.bf16 %v4262_v37, %v4258_v63  ;;  %v4264_v36 = vadd.f32 %v4263_v55, %v11692_v58  ;;  %v4404_v25 = vsel %vm528_vm0, %v4399_v46, %v4403_v42  ;;  %5128 = vmatprep.subr.bf16.mxu1 %v8497_v16  ;;  %v11968_v58 = vsel %vm2409_vm4, %v5625_v21, %v5629_v30  ;;  %v8498_v37 = vld [vmem:[%s13268_s4 + $0x278] ss:$8 sps:$4 sm:$0xff]  }
 0x49d   : > { %v4267_v33 = vpop.f32.mrf.mxu1  ;;  %7566 = vmatprep.mubr.msk.bf16.mxu1 %vm4555_vm10, %v4404_v25  ;;  %v5279_v55 = vrot.slane %v4365_v60, 1  ;;  %v8501_v21 = vld [vmem:[%s13268_s4 + $0x150] ss:$8 sps:$4 sm:$0xff]   ;;  %v4405_v25 = vshrl.u32 %v11889_v28, 16 }
 0x49e   : > { %v11970_v16 = vpack.c.bf16 %v4264_v36, %v4260_v15  ;;  %4647 = vmatmul.mubr.bf16.gmra.mxu1 %v4396_v1  ;;  %v13417_v63 = vshll.u32 %v11950_v57, 16  ;;  %5491 = vmatpush2.bf16.msra.mxu0 %v8492_v56  ;;  %v7641_v15 = vcombine.low %v7620_v19, %v7620_v19  ;;  %v11984_v56 = vsel %vm2409_vm4, %v5627_v23, %v5631_v7 }
 0x49f   : > { %v4269_v46 = vpop.f32.mrf.mxu1  ;;  %5129 = vmatpush1.bf16.msra.mxu1 %v8495_v52  ;;  %5492 = vmatprep.subr.bf16.mxu0 %v8500_v24  ;;  %v4413_v36 = vshrl.u32 %v11906_v41, 16  ;;  %v7642_v52 = vcombine.high %v7620_v19, %v7620_v19  ;;  %v5277_v1 = vrot.slane %v4348_v8, 2  ;;  %v5633_v62 = vrot.slane %v11950_v57, 2 }
 0x4a0   : > { %7598 = vmatprep.mubr.msk.bf16.mxu0 %vm4555_vm10, %v11970_v16  ;;  %v4417_v60 = vshll.u32 %v11970_v16, 16  ;;  %5130 = vmatprep.subr.bf16.mxu1 %v8503_v39  ;;  %v4411_v23 = vrot.slane %v13417_v63, 1  ;;  %v4268_v43 = vadd.f32 %v4267_v33, %v11694_v29  ;;  %v4407_v63 = vor.u32 %v4405_v25, %v4395_v53 }
 0x4a1   : > { %v4271_v24 = vpop.f32.mrf.mxu1  ;;  %4895 = vmatmul.mubr.bf16.gmra.mxu0 %v11950_v57  ;;  %v4415_v4 = vor.u32 %v4413_v36, %v4403_v42  ;;  %v12007_v35 = vor.u32 %v5280_v2, %v5279_v55  ;;  %v5111_v8 = vsel %vm4577_vm9, %v7641_v15, 0  ;;  %v4270_v29 = vadd.f32 %v4269_v46, %v11696_v49 }
 0x4a2   : > { %v4272_v17 = vadd.f32 %v4271_v24, %v11698_v11  ;;  %v4419_v39 = vrot.slane %v4417_v60, 1  ;;  %5493 = vmatpush2.bf16.msra.mxu0 %v8498_v37  ;;  %v8508_v37 = vld [vmem:[%s13268_s4 + $0x1e4] ss:$8 sps:$4 sm:$0xff]   ;;  %v4412_v53 = vsel %vm528_vm0, %v4407_v63, %v4411_v23  ;;  %v5278_v55 = vor.u32 %v5277_v1, %v5276_v45 }
 0x4a3   : > { %v4273_v19 = vpop.f32.mrf.mxu1  ;;  %5131 = vmatpush1.bf16.msra.mxu1 %v8501_v21  ;;  %v5635_v2 = vrot.slane %v11970_v16, 2  ;;  %v12025_v49 = vsel %vm2409_vm4, %v5629_v30, %v5633_v62  ;;  %v5272_v46 = vrot.slane %v4357_v27, 1  ;;  %v5273_v21 = vrot.slane %v4341_v61, 2  ;;  %v8506_v30 = vld [vmem:[%s13268_s4 + $0x1e0] ss:$8 sps:$4 sm:$0xff]  }
 0x4a4   : > { %v12011_v33 = vpack.c.bf16 %v4272_v17, %v4268_v43  ;;  %v4274_v11 = vadd.f32 %v4273_v19, %v11700_v40  ;;  %v4420_v42 = vsel %vm528_vm0, %v4415_v4, %v4419_v39  ;;  %7643 = vmatprep.subr.msk.bf16.mxu1 %vm4577_vm9, %v7642_v52  ;;  %v5269_v17 = vrot.slane %v4334_v54, 1  ;;  %v8511_v61 = vld [vmem:[%s13268_s4 + $0x1d4] ss:$8 sps:$4 sm:$0xff]  }
 0x4a5   : > { %7567 = vmatprep.mubr.msk.bf16.mxu1 %vm4555_vm10, %v4420_v42  ;;  %v5282_v63 = vsel %vm1887_vm2, %v5278_v55, %v12007_v35  ;;  %v12042_v15 = vsel %vm2409_vm4, %v5631_v7, %v5635_v2  ;;  %v4429_v54 = vshrl.u32 %v11970_v16, 16  ;;  %v5287_v45 = vrot.slane %v4381_v13, 1 }
 0x4a6   : > { %v12027_v40 = vpack.c.bf16 %v4274_v11, %v4270_v29  ;;  %4657 = vmatmul.mubr.bf16.gmra.mxu1 %v4412_v53  ;;  %v4425_v43 = vshll.u32 %v12011_v33, 16  ;;  %v5637_v52 = vrot.slane %v12011_v33, 2  ;;  %v4421_v7 = vshrl.u32 %v11950_v57, 16 }
 0x4a7   : > { %5143 = vmatpush2.bf16.msra.mxu1 %v5111_v8  ;;  %v5288_v1 = vrot.slane %v4369_v26, 2  ;;  %v4431_v13 = vor.u32 %v4429_v54, %v4419_v39  ;;  %v5270_v29 = vrot.slane %v4336_v6, 2  ;;  %v8509_v26 = vld [vmem:[%s13268_s4 + $0x1d0] ss:$8 sps:$4 sm:$0xff]   ;;  %v5274_v53 = vor.u32 %v5273_v21, %v5272_v46  ;;  %v8514_v6 = vld [vmem:[%s13268_s4 + $0x314] ss:$8 sps:$4 sm:$0xff]  }
 0x4a8   : > { %7599 = vmatprep.mubr.msk.bf16.mxu0 %vm4555_vm10, %v12027_v40  ;;  %v4433_v27 = vshll.u32 %v12027_v40, 16  ;;  %5144 = vmatprep.subr.bf16.mxu1 %v8508_v37  ;;  %v4427_v24 = vrot.slane %v4425_v43, 1  ;;  %v5639_v4 = vrot.slane %v12027_v40, 2  ;;  %v4440_v8 = vshrl.u32 %v12027_v40, 16 }
 0x4a9   : > { %4905 = vmatmul.mubr.bf16.gmra.mxu0 %v12011_v33  ;;  %v4423_v11 = vor.u32 %v4421_v7, %v4411_v23  ;;  %v12088_v23 = vsel %vm2409_vm4, %v5633_v62, %v5637_v52  ;;  %v5283_v21 = vrot.slane %v4373_v22, 1  ;;  %v4955_v22 = vrot.slane %v11725_v14, 1 }
 0x4aa   : > { %7695 = vmatprep.mubr.msk.bf16.mxu0 %vm4555_vm10, %v5282_v63  ;;  %v4435_v19 = vrot.slane %v4433_v27, 1  ;;  %v12077_v39 = vsel %vm2409_vm4, %v5635_v2, %v5639_v4  ;;  %v5289_v2 = vor.u32 %v5288_v1, %v5287_v45  ;;  %v5271_v63 = vor.u32 %v5270_v29, %v5269_v17 }
 0x4ab   : > { %5145 = vmatpush2.bf16.msra.mxu1 %v8506_v30  ;;  %v4428_v55 = vsel %vm528_vm0, %v4423_v11, %v4427_v24  ;;  %v5284_v30 = vrot.slane %v4361_v0, 2  ;;  %v5295_v45 = vrot.slane %v4397_v3, 1  ;;  %v5296_v17 = vrot.slane %v4385_v31, 2 }
 0x4ac   : > { %v4436_v42 = vsel %vm528_vm0, %v4431_v13, %v4435_v19  ;;  %v4442_v37 = vor.u32 %v4440_v8, %v4435_v19  ;;  %5146 = vmatprep.subr.bf16.mxu1 %v8511_v61  ;;  %v5275_v46 = vsel %vm1887_vm2, %v5271_v63, %v5274_v53  ;;  %v5290_v62 = vsel %vm1887_vm2, %v12007_v35, %v5289_v2 }
 0x4ad   : > { %7568 = vmatprep.mubr.msk.bf16.mxu1 %vm4555_vm10, %v4436_v42  ;;  %v4437_v61 = vshrl.u32 %v12011_v33, 16  ;;  %v4954_v1 = vrot.slane %v11702_v34, 1  ;;  %v5285_v13 = vor.u32 %v5284_v30, %v5283_v21  ;;  %v5297_v19 = vor.u32 %v5296_v17, %v5295_v45  ;;  %v8520_v30 = vld [vmem:[%s13268_s4 + $0x2f4] ss:$8 sps:$4 sm:$0xff]  }
 0x4ae   : > { %4667 = vmatmul.mubr.bf16.gmra.mxu1 %v4428_v55  ;;  %v5291_v3 = vrot.slane %v4389_v18, 1  ;;  %v13879_v29 = vshll.u32 %v11827_v50, 16  ;;  %v4952_v34 = vrot.slane %v11723_v38, 1  ;;  %v5303_v11 = vrot.slane %v4413_v36, 1  ;;  %v8517_v38 = vld [vmem:[%s13268_s4 + $0x304] ss:$8 sps:$4 sm:$0xff]  }
 0x4af   : > { %7569 = vmatprep.mubr.msk.bf16.mxu1 %vm4555_vm10, %v4442_v37  ;;  %5147 = vmatpush2.bf16.msra.mxu1 %v8509_v26  ;;  %v4439_v0 = vor.u32 %v4437_v61, %v4427_v24  ;;  %v4956_v35 = vsel %vm1405_vm3, %v4954_v1, %v4955_v22  ;;  %v5286_v31 = vsel %vm1887_vm2, %v5274_v53, %v5285_v13  ;;  %v13880_v26 = vshll.u32 %v11906_v41, 16  ;;  %v8512_v53 = vld [vmem:[%s13268_s4 + $0x310] ss:$8 sps:$4 sm:$0xff]  }
 0x4b0   : > { %5780 = vmatprep.subr.bf16.mxu1 %v8514_v6  ;;  %v5292_v14 = vrot.slane %v13879_v29, 2  ;;  %v5298_v24 = vsel %vm1887_vm2, %v5289_v2, %v5297_v19  ;;  %v4959_v37 = vrot.slane %v11782_v47, 1  ;;  %v4951_v18 = vrot.slane %v11707_v32, 1  ;;  %v8515_v32 = vld [vmem:[%s13268_s4 + $0x300] ss:$8 sps:$4 sm:$0xff]  }
 0x4b1   : > { %5495 = vmatmul.mubr.bf16.vlgmr.msra.gmra.mxu0 %v5275_v46  ;;  %v5304_v42 = vrot.slane %v13880_v26, 2  ;;  %v5299_v63 = vrot.slane %v4405_v25, 1  ;;  %v13881_v46 = vshll.u32 %v11889_v28, 16  ;;  %v4957_v45 = vrot.slane %v11766_v48, 1  ;;  %v8523_v48 = vld [vmem:[%s13268_s4 + $0x2e4] ss:$8 sps:$4 sm:$0xff]  }
 0x4b2   : > { %7696 = vmatprep.mubr.msk.bf16.mxu0 %vm4555_vm10, %v5290_v62  ;;  %v5293_v6 = vor.u32 %v5292_v14, %v5291_v3  ;;  %v4953_v36 = vsel %vm1405_vm3, %v4951_v18, %v4952_v34  ;;  %v4960_v2 = vsel %vm1405_vm3, %v4955_v22, %v4959_v37  ;;  %v5311_v17 = vrot.slane %v4429_v54, 1  ;;  %v8526_v29 = vld [vmem:[%s13268_s4 + $0x2d4] ss:$8 sps:$4 sm:$0xff]   ;;  %v8524_v26 = vld [vmem:[%s13268_s4 + $0x2d0] ss:$8 sps:$4 sm:$0xff]  }
 0x4b3   : > { %v5305_v55 = vor.u32 %v5304_v42, %v5303_v11  ;;  %v5300_v21 = vrot.slane %v13881_v46, 2  ;;  %v5312_v22 = vrot.slane %v4417_v60, 2  ;;  %v4963_v25 = vrot.slane %v11844_v9, 1  ;;  %v8521_v9 = vld [vmem:[%s13268_s4 + $0x2e0] ss:$8 sps:$4 sm:$0xff]  }
 0x4b4   : > { %v5294_v47 = vsel %vm1887_vm2, %v5285_v13, %v5293_v6  ;;  %v4958_v54 = vsel %vm1405_vm3, %v4952_v34, %v4957_v45  ;;  %v5319_v34 = vrot.slane %v4440_v8, 1  ;;  %v5320_v11 = vrot.slane %v4433_v27, 2 }
 0x4b5   : > { %v5306_v62 = vsel %vm1887_vm2, %v5297_v19, %v5305_v55  ;;  %v5301_v1 = vor.u32 %v5300_v21, %v5299_v63  ;;  %v5313_v13 = vor.u32 %v5312_v22, %v5311_v17  ;;  %v4964_v60 = vsel %vm1405_vm3, %v4959_v37, %v4963_v25  ;;  %v8533_v63 = vld [vmem:[%s13268_s4 + $0x2a0] ss:$8 sps:$4 sm:$0xff]   ;;  %v8540_v22 = vld [vmem:[%s13268_s4 + $0x334] ss:$8 sps:$4 sm:$0xff]  }
 0x4b6   : > { %4677 = vmatmul.mubr.bf16.gmra.mxu1 %v4439_v0  ;;  %v8518_v0 = vld [vmem:[%s13268_s4 + $0x2f0] ss:$8 sps:$4 sm:$0xff]   ;;  %v5321_v37 = vor.u32 %v5320_v11, %v5319_v34  ;;  %vm7159_vm0 = vcmask 1041408  }
 0x4b7   : > { %7644 = vmatprep.mubr.msk.bf16.mxu1 %vm4555_vm10, %v4956_v35  ;;  %v5302_v19 = vsel %vm1887_vm2, %v5293_v6, %v5301_v1  ;;  %v5307_v35 = vrot.slane %v4421_v7, 1  ;;  %v5314_v14 = vsel %vm1887_vm2, %v5305_v55, %v5313_v13  ;;  %v4967_v7 = vrot.slane %v11906_v41, 1  ;;  %v8527_v41 = vld [vmem:[%s13268_s4 + $0x2c0] ss:$8 sps:$4 sm:$0xff]  }
 0x4b8   : > { %v5316_v6 = vrot.slane %v4425_v43, 2  ;;  %v4965_v55 = vrot.slane %v11889_v28, 1  ;;  %v7722_v28 = vld [vmem:[%s13268_s4 + $0x340] sm:$0x11] }
 0x4b9   : > { %5505 = vmatmul.mubr.bf16.gmra.mxu0 %v5286_v31  ;;  %v13882_v31 = vshll.u32 %v11950_v57, 16  ;;  %v4968_v27 = vsel %vm1405_vm3, %v4963_v25, %v4967_v7  ;;  %v7744_v21 = vcombine.high %v7722_v28, %v7722_v28 }
 0x4ba   : > { %7697 = vmatprep.mubr.msk.bf16.mxu0 %vm4555_vm10, %v5298_v24  ;;  %v4961_v24 = vrot.slane %v11827_v50, 1  ;;  %v8529_v50 = vld [vmem:[%s13268_s4 + $0x2c4] ss:$8 sps:$4 sm:$0xff]  }
 0x4bb   : > { %v5308_v3 = vrot.slane %v13882_v31, 2 }
 0x4bc   : > { %v4962_v8 = vsel %vm1405_vm3, %v4957_v45, %v4961_v24  ;;  %v4975_v45 = vrot.slane %v12027_v40, 1 }
 0x4bd   : > { %v5309_v42 = vor.u32 %v5308_v3, %v5307_v35 }
 0x4be   : > { %5149 = vmatmul.mubr.bf16.vlgmr.msra.gmra.mxu1 %v4953_v36  ;;  %v5322_v36 = vsel %vm1887_vm2, %v5313_v13, %v5321_v37 }
 0x4bf   : > { %7645 = vmatprep.mubr.msk.bf16.mxu1 %vm4555_vm10, %v4960_v2  ;;  %5781 = vmatpush1.bf16.msra.mxu1 %v8512_v53  ;;  %v5310_v18 = vsel %vm1887_vm2, %v5301_v1, %v5309_v42  ;;  %v5315_v53 = vrot.slane %v4437_v61, 1  ;;  %v4971_v2 = vrot.slane %v11970_v16, 1  ;;  %v8530_v61 = vld [vmem:[%s13268_s4 + $0x2b0] ss:$8 sps:$4 sm:$0xff]   ;;  %v8543_v1 = vld [vmem:[%s13268_s4 + $0x324] ss:$8 sps:$4 sm:$0xff]  }
 0x4c0   : > { %5782 = vmatprep.subr.bf16.mxu1 %v8517_v38  ;;  %v8532_v38 = vld [vmem:[%s13268_s4 + $0x2b4] ss:$8 sps:$4 sm:$0xff]  }
 0x4c1   : > { %5515 = vmatmul.mubr.bf16.gmra.mxu0 %v5294_v47  ;;  %v5317_v43 = vor.u32 %v5316_v6, %v5315_v53  ;;  %v4966_v47 = vsel %vm1405_vm3, %v4961_v24, %v4965_v55  ;;  %v4972_v16 = vsel %vm1405_vm3, %v4967_v7, %v4971_v2 }
 0x4c2   : > { %7698 = vmatprep.mubr.msk.bf16.mxu0 %vm4555_vm10, %v5306_v62  ;;  %v4969_v62 = vrot.slane %v11950_v57, 1  ;;  %v8538_v57 = vld [vmem:[%s13268_s4 + $0x330] ss:$8 sps:$4 sm:$0xff]  }
 0x4c3   : > { %5783 = vmatpush1.bf16.msra.mxu1 %v8515_v32  ;;  %v8535_v32 = vld [vmem:[%s13268_s4 + $0x2a4] ss:$8 sps:$4 sm:$0xff]   ;;  %v5318_v46 = vsel %vm1887_vm2, %v5309_v42, %v5317_v43  ;;  %vm7155_vm2 = vcmask 687104  }
 0x4c4   : > { %5784 = vmatprep.subr.bf16.mxu1 %v8520_v30  ;;  %v7743_v30 = vcombine.low %v7722_v28, %v7722_v28  ;;  %v4970_v25 = vsel %vm1405_vm3, %v4965_v55, %v4969_v62 }
 0x4c6   : > { %5159 = vmatmul.mubr.bf16.gmra.mxu1 %v4958_v54  ;;  %v5775_v17 = vsel %vm4577_vm9, %v7743_v30, 0  ;;  %v8541_v54 = vld [vmem:[%s13268_s4 + $0x320] ss:$8 sps:$4 sm:$0xff]  }
 0x4c7   : > { %7646 = vmatprep.mubr.msk.bf16.mxu1 %vm4555_vm10, %v4964_v60  ;;  %5785 = vmatpush1.bf16.msra.mxu1 %v8518_v0  ;;  %v4976_v0 = vsel %vm1405_vm3, %v4971_v2, %v4975_v45 }
 0x4c8   : > { %5786 = vmatprep.subr.bf16.mxu1 %v8523_v48  ;;  %v4973_v48 = vrot.slane %v12011_v33, 1 }
 0x4c9   : > { %5525 = vmatmul.mubr.bf16.gmra.mxu0 %v5302_v19 }
 0x4ca   : > { %7699 = vmatprep.mubr.msk.bf16.mxu0 %vm4555_vm10, %v5314_v14  ;;  %v4974_v13 = vsel %vm1405_vm3, %v4969_v62, %v4973_v48 }
 0x4cb   : > { %5787 = vmatpush1.bf16.msra.mxu1 %v8521_v9 }
 0x4cc   : > { %5788 = vmatprep.subr.bf16.mxu1 %v8526_v29 }
 0x4ce   : > { %5169 = vmatmul.mubr.bf16.gmra.mxu1 %v4962_v8 }
 0x4cf   : > { %7647 = vmatprep.mubr.msk.bf16.mxu1 %vm4555_vm10, %v4968_v27  ;;  %5789 = vmatpush1.bf16.msra.mxu1 %v8524_v26 }
 0x4d0   : > { %5790 = vmatprep.subr.bf16.mxu1 %v8529_v50 }
 0x4d1   : > { %5535 = vmatmul.mubr.bf16.gmra.mxu0 %v5310_v18 }
 0x4d2   : > { %7700 = vmatprep.mubr.msk.bf16.mxu0 %vm4555_vm10, %v5322_v36 }
 0x4d3   : > { %5791 = vmatpush1.bf16.msra.mxu1 %v8527_v41 }
 0x4d4   : > { %5792 = vmatprep.subr.bf16.mxu1 %v8532_v38 }
 0x4d6   : > { %5179 = vmatmul.mubr.bf16.gmra.mxu1 %v4966_v47 }
 0x4d7   : > { %7648 = vmatprep.mubr.msk.bf16.mxu1 %vm4555_vm10, %v4972_v16  ;;  %5793 = vmatpush1.bf16.msra.mxu1 %v8530_v61 }
 0x4d8   : > { %5794 = vmatprep.subr.bf16.mxu1 %v8535_v32 }
 0x4d9   : > { %5545 = vmatmul.mubr.bf16.gmra.mxu0 %v5318_v46 }
 0x4da   : > { %7701 = vmatprep.mubr.msk.bf16.mxu0 %vm4555_vm10, %v5321_v37 }
 0x4db   : > { %5795 = vmatpush1.bf16.msra.mxu1 %v8533_v63 }
 0x4dc   : > { %7745 = vmatprep.subr.msk.bf16.mxu1 %vm4577_vm9, %v7744_v21 }
 0x4de   : > { %5189 = vmatmul.mubr.bf16.gmra.mxu1 %v4970_v25 }
 0x4df   : > { %7649 = vmatprep.mubr.msk.bf16.mxu1 %vm4555_vm10, %v4976_v0  ;;  %5807 = vmatpush2.bf16.msra.mxu1 %v5775_v17 }
 0x4e0   : > { %5808 = vmatprep.subr.bf16.mxu1 %v8540_v22 }
 0x4e1   : > { %5555 = vmatmul.mubr.bf16.gmra.mxu0 %v5317_v43 }
 0x4e2   : > { %6356 = vmatprep.mubr.bf16.mxu0 %v13878_v51 }
 0x4e3   : > { %5809 = vmatpush2.bf16.msra.mxu1 %v8538_v57 }
 0x4e4   : > { %5810 = vmatprep.subr.bf16.mxu1 %v8543_v1 }
 0x4e6   : > { %5199 = vmatmul.mubr.bf16.gmra.mxu1 %v4974_v13 }
 0x4e7   : > { %7650 = vmatprep.mubr.msk.bf16.mxu1 %vm4555_vm10, %v4975_v45  ;;  %5811 = vmatpush2.bf16.msra.mxu1 %v8541_v54 }
 0x4e8   : > { %6484 = vmatprep.subr.bf16.mxu1 %v13878_v51 }
 0x4ee   : > { %5209 = vmatmul.mubr.bf16.gmra.mxu1 %v4973_v48 }
 0x4ef   : > { %7746 = vmatprep.mubr.msk.bf16.mxu1 %vm4555_vm10, %v11795_v12 }
 0x4f6   : > { %5813 = vmatmul.mubr.bf16.vlgmr.msra.gmra.mxu1 %v11780_v10 }
 0x4f7   : > { %7747 = vmatprep.mubr.msk.bf16.mxu1 %vm4555_vm10, %v11857_v44 }
 0x4fe   : > { %5823 = vmatmul.mubr.bf16.gmra.mxu1 %v11842_v20 }
 0x4ff   : > { %7748 = vmatprep.mubr.msk.bf16.mxu1 %vm4555_vm10, %v11918_v59 }
 0x506   : > { %5833 = vmatmul.mubr.bf16.gmra.mxu1 %v11904_v5 }
 0x507   : > { %7749 = vmatprep.mubr.msk.bf16.mxu1 %vm4555_vm10, %v11984_v56 }
 0x50e   : > { %5843 = vmatmul.mubr.bf16.gmra.mxu1 %v11968_v58 }
 0x50f   : > { %7750 = vmatprep.mubr.msk.bf16.mxu1 %vm4555_vm10, %v12042_v15 }
 0x516   : > { %5853 = vmatmul.mubr.bf16.gmra.mxu1 %v12025_v49 }
 0x517   : > { %7751 = vmatprep.mubr.msk.bf16.mxu1 %vm4555_vm10, %v12077_v39 }
 0x51e   : > { %5863 = vmatmul.mubr.bf16.gmra.mxu1 %v12088_v23 }
 0x51f   : > { %7752 = vmatprep.mubr.msk.bf16.mxu1 %vm4555_vm10, %v5639_v4 }
 0x526   : > { %5873 = vmatmul.mubr.bf16.gmra.mxu1 %v5637_v52 }
 0x539   : > { %v4846_v10 = vpop.f32.mrf.mxu0 }
 0x53b   : > { %v4848_v12 = vpop.f32.mrf.mxu0 }
 0x53d   : > { %v4850_v20 = vpop.f32.mrf.mxu0 }
 0x53f   : > { %v4852_v44 = vpop.f32.mrf.mxu0 }
 0x541   : > { %v4856_v5 = vpop.f32.mrf.mxu0 }
 0x543   : > { %v4858_v59 = vpop.f32.mrf.mxu0 }
 0x545   : > { %v4860_v58 = vpop.f32.mrf.mxu0 }
 0x546   : > { %v4618_v56 = vpop.f32.mrf.mxu1 }
 0x547   : > { %v12270_v49 = vadd.f32 %v4846_v10, %v4618_v56  ;;  %v4862_v15 = vpop.f32.mrf.mxu0 }
 0x548   : > { %v4620_v39 = vpop.f32.mrf.mxu1 }
 0x549   : > { %v12272_v23 = vadd.f32 %v4848_v12, %v4620_v39  ;;  %v4866_v40 = vpop.f32.mrf.mxu0 }
 0x54a   : > { %v4622_v60 = vpop.f32.mrf.mxu1 }
 0x54b   : > { %v12274_v4 = vadd.f32 %v4850_v20, %v4622_v60  ;;  %v4868_v33 = vpop.f32.mrf.mxu0 }
 0x54c   : > { %v4624_v52 = vpop.f32.mrf.mxu1 }
 0x54d   : > { %v12276_v9 = vadd.f32 %v4852_v44, %v4624_v52  ;;  %v4870_v19 = vpop.f32.mrf.mxu0 }
 0x54e   : > { %v4628_v35 = vpop.f32.mrf.mxu1 }
 0x54f   : > { %v12278_v31 = vadd.f32 %v4856_v5, %v4628_v35  ;;  %v4872_v3 = vpop.f32.mrf.mxu0 }
 0x550   : > { %v4630_v29 = vpop.f32.mrf.mxu1 }
 0x551   : > { %v12280_v14 = vadd.f32 %v4858_v59, %v4630_v29  ;;  %v4876_v24 = vpop.f32.mrf.mxu0 }
 0x552   : > { %v4632_v34 = vpop.f32.mrf.mxu1 }
 0x553   : > { %v12282_v11 = vadd.f32 %v4860_v58, %v4632_v34  ;;  %v4878_v7 = vpop.f32.mrf.mxu0 }
 0x554   : > { %v4634_v26 = vpop.f32.mrf.mxu1 }
 0x555   : > { %v12284_v42 = vadd.f32 %v4862_v15, %v4634_v26  ;;  %v4880_v50 = vpop.f32.mrf.mxu0 }
 0x556   : > { %v4638_v8 = vpop.f32.mrf.mxu1 }
 0x557   : > { %v12286_v37 = vadd.f32 %v4866_v40, %v4638_v8  ;;  %v4882_v27 = vpop.f32.mrf.mxu0 }
 0x558   : > { %v4640_v41 = vpop.f32.mrf.mxu1 }
 0x559   : > { %v12288_v18 = vadd.f32 %v4868_v33, %v4640_v41  ;;  %v4886_v53 = vpop.f32.mrf.mxu0 }
 0x55a   : > { %v4642_v6 = vpop.f32.mrf.mxu1 }
 0x55b   : > { %v12290_v38 = vadd.f32 %v4870_v19, %v4642_v6  ;;  %v4888_v36 = vpop.f32.mrf.mxu0 }
 0x55c   : > { %v4644_v55 = vpop.f32.mrf.mxu1 }
 0x55d   : > { %v12292_v2 = vadd.f32 %v4872_v3, %v4644_v55  ;;  %v4890_v61 = vpop.f32.mrf.mxu0 }
 0x55e   : > { %v4648_v43 = vpop.f32.mrf.mxu1 }
 0x55f   : > { %v12294_v32 = vadd.f32 %v4876_v24, %v4648_v43  ;;  %v4892_v47 = vpop.f32.mrf.mxu0 }
 0x560   : > { %v4650_v28 = vpop.f32.mrf.mxu1 }
 0x561   : > { %v12296_v16 = vadd.f32 %v4878_v7, %v4650_v28  ;;  %v4896_v63 = vpop.f32.mrf.mxu0 }
 0x562   : > { %v4652_v46 = vpop.f32.mrf.mxu1 }
 0x563   : > { %v12298_v21 = vadd.f32 %v4880_v50, %v4652_v46  ;;  %v4898_v30 = vpop.f32.mrf.mxu0 }
 0x564   : > { %v4654_v62 = vpop.f32.mrf.mxu1 }
 0x565   : > { %v12300_v45 = vadd.f32 %v4882_v27, %v4654_v62  ;;  %v4900_v17 = vpop.f32.mrf.mxu0 }
 0x566   : > { %v4658_v22 = vpop.f32.mrf.mxu1 }
 0x567   : > { %v12302_v25 = vadd.f32 %v4886_v53, %v4658_v22  ;;  %v4902_v0 = vpop.f32.mrf.mxu0 }
 0x568   : > { %v4660_v57 = vpop.f32.mrf.mxu1 }
 0x569   : > { %v12304_v1 = vadd.f32 %v4888_v36, %v4660_v57  ;;  %v12306_v48 = vpop.f32.mrf.mxu0 }
 0x56a   : > { %v4662_v54 = vpop.f32.mrf.mxu1 }
 0x56b   : > { %v12308_v13 = vadd.f32 %v4890_v61, %v4662_v54  ;;  %v12312_v20 = vpop.f32.mrf.mxu0 }
 0x56c   : > { %v4664_v10 = vpop.f32.mrf.mxu1 }
 0x56d   : > { %v12310_v12 = vadd.f32 %v4892_v47, %v4664_v10  ;;  %v12318_v56 = vpop.f32.mrf.mxu0 }
 0x56e   : > { %v4668_v44 = vpop.f32.mrf.mxu1 }
 0x56f   : > { %v12314_v5 = vadd.f32 %v4896_v63, %v4668_v44  ;;  %v12324_v33 = vpop.f32.mrf.mxu0 }
 0x570   : > { %v4670_v59 = vpop.f32.mrf.mxu1 }
 0x571   : > { %v12316_v58 = vadd.f32 %v4898_v30, %v4670_v59  ;;  %v5496_v35 = vpop.f32.mrf.mxu0 }
 0x572   : > { %v4672_v15 = vpop.f32.mrf.mxu1 }
 0x573   : > { %v12320_v39 = vadd.f32 %v4900_v17, %v4672_v15  ;;  %v5498_v24 = vpop.f32.mrf.mxu0 }
 0x574   : > { %v4674_v40 = vpop.f32.mrf.mxu1 }
 0x575   : > { %v12322_v60 = vadd.f32 %v4902_v0, %v4674_v40  ;;  %v5500_v27 = vpop.f32.mrf.mxu0 }
 0x576   : > { %v12326_v52 = vpop.f32.mrf.mxu1 }
 0x577   : > { %v5502_v43 = vpop.f32.mrf.mxu0 }
 0x578   : > { %v12328_v19 = vpop.f32.mrf.mxu1 }
 0x579   : > { %v12355_v62 = vpop.f32.mrf.mxu0 }
 0x57a   : > { %v12330_v3 = vpop.f32.mrf.mxu1 }
 0x57b   : > { %v12363_v0 = vpop.f32.mrf.mxu0 }
 0x57c   : > { %v12332_v29 = vpop.f32.mrf.mxu1 }
 0x57d   : > { %v12371_v10 = vpop.f32.mrf.mxu0 }
 0x57e   : > { %v5150_v34 = vpop.f32.mrf.mxu1  ;;  %13886 = vst [vmem:[#allocation25_spill] sm:$0xff] %v12371_v10 }
 0x57f   : > { %v5219_v7 = vadd.f32 %v5150_v34, %v12270_v49  ;;  %v12379_v15 = vpop.f32.mrf.mxu0 }
 0x580   : > { %v5152_v26 = vpop.f32.mrf.mxu1  ;;  %13888 = vst [vmem:[#allocation10_spill] sm:$0xff] %v12379_v15 }
 0x581   : > { %v5220_v50 = vadd.f32 %v5152_v26, %v12272_v23  ;;  %v12336_v8 = vadd.f32 %v5496_v35, %v5219_v7 }
 0x582   : > { %v5154_v41 = vpop.f32.mrf.mxu1 }
 0x583   : > { %v5221_v53 = vadd.f32 %v5154_v41, %v12274_v4  ;;  %v12339_v6 = vadd.f32 %v5498_v24, %v5220_v50  ;;  %v12387_v24 = vpop.f32.mrf.mxu0 }
 0x584   : > { %v5156_v36 = vpop.f32.mrf.mxu1 }
 0x585   : > { %v5222_v55 = vadd.f32 %v5156_v36, %v12276_v9  ;;  %v12342_v61 = vadd.f32 %v5500_v27, %v5221_v53  ;;  %v12395_v26 = vpop.f32.mrf.mxu0 }
 0x586   : > { %v5160_v47 = vpop.f32.mrf.mxu1 }
 0x587   : > { %v12345_v49 = vadd.f32 %v5160_v47, %v12278_v31  ;;  %v12347_v28 = vadd.f32 %v5502_v43, %v5222_v55  ;;  %v12403_v41 = vpop.f32.mrf.mxu0 }
 0x588   : > { %v5162_v23 = vpop.f32.mrf.mxu1  ;;  %13889 = vst [vmem:[#allocation23_spill] sm:$0xff] %v12403_v41  ;;  %v4911_v41 = vadd.f32 %v12318_v56, %v12330_v3 }
 0x589   : > { %v12350_v63 = vadd.f32 %v5162_v23, %v12280_v14  ;;  %v12411_v55 = vpop.f32.mrf.mxu0 }
 0x58a   : > { %v5164_v46 = vpop.f32.mrf.mxu1  ;;  %13890 = vst [vmem:[#allocation12_spill] sm:$0xff] %v12411_v55  ;;  %v5911_v55 = vld [vmem:[%s13269_s5] sm:$0x3] }
 0x58b   : > { %v12353_v4 = vadd.f32 %v5164_v46, %v12282_v11  ;;  %v12419_v23 = vpop.f32.mrf.mxu0  ;;  %v12499_v56 = vadd.f32 %v12363_v0, %v12350_v63 }
 0x58c   : > { %v5166_v30 = vpop.f32.mrf.mxu1 }
 0x58d   : > { %13883 = vst [vmem:[#allocation11_spill] sm:$0xff] %v12353_v4  ;;  %v12358_v9 = vadd.f32 %v5166_v30, %v12284_v42 }
 0x58e   : > { %v5170_v17 = vpop.f32.mrf.mxu1 }
 0x58f   : > { %13884 = vst [vmem:[#allocation27_spill] sm:$0xff] %v12358_v9  ;;  %v12361_v31 = vadd.f32 %v5170_v17, %v12286_v37  ;;  %v4907_v9 = vadd.f32 %v12306_v48, %v12326_v52 }
 0x590   : > { %v5172_v22 = vpop.f32.mrf.mxu1 }
 0x591   : > { %v12366_v14 = vadd.f32 %v5172_v22, %v12288_v18 }
 0x592   : > { %v5174_v57 = vpop.f32.mrf.mxu1 }
 0x593   : > { %v12369_v11 = vadd.f32 %v5174_v57, %v12290_v38 }
 0x594   : > { %v5176_v54 = vpop.f32.mrf.mxu1 }
 0x595   : > { %13885 = vst [vmem:[#allocation26_spill] sm:$0xff] %v12369_v11  ;;  %v12374_v42 = vadd.f32 %v5176_v54, %v12292_v2 }
 0x596   : > { %v5180_v44 = vpop.f32.mrf.mxu1 }
 0x597   : > { %13887 = vst [vmem:[#allocation31_spill] sm:$0xff] %v12374_v42  ;;  %v12377_v37 = vadd.f32 %v5180_v44, %v12294_v32 }
 0x598   : > { %v5182_v59 = vpop.f32.mrf.mxu1 }
 0x599   : > { %v12382_v18 = vadd.f32 %v5182_v59, %v12296_v16 }
 0x59a   : > { %v5184_v40 = vpop.f32.mrf.mxu1 }
 0x59b   : > { %v12385_v38 = vadd.f32 %v5184_v40, %v12298_v21 }
 0x59c   : > { %v5186_v35 = vpop.f32.mrf.mxu1 }
 0x59d   : > { %v12390_v2 = vadd.f32 %v5186_v35, %v12300_v45 }
 0x59e   : > { %v5190_v34 = vpop.f32.mrf.mxu1 }
 0x59f   : > { %v12393_v32 = vadd.f32 %v5190_v34, %v12302_v25 }
 0x5a0   : > { %v5192_v7 = vpop.f32.mrf.mxu1 }
 0x5a1   : > { %v12398_v16 = vadd.f32 %v5192_v7, %v12304_v1 }
 0x5a2   : > { %v5194_v50 = vpop.f32.mrf.mxu1 }
 0x5a3   : > { %v12401_v21 = vadd.f32 %v5194_v50, %v12308_v13 }
 0x5a4   : > { %v5196_v27 = vpop.f32.mrf.mxu1 }
 0x5a5   : > { %v12406_v45 = vadd.f32 %v5196_v27, %v12310_v12 }
 0x5a6   : > { %v5200_v53 = vpop.f32.mrf.mxu1 }
 0x5a7   : > { %v12409_v25 = vadd.f32 %v5200_v53, %v12314_v5  ;;  %v12424_v5 = vpop.f32.mrf.mxu0 }
 0x5a8   : > { %v5202_v36 = vpop.f32.mrf.mxu1 }
 0x5a9   : > { %v12414_v1 = vadd.f32 %v5202_v36, %v12316_v58  ;;  %v12426_v57 = vpop.f32.mrf.mxu0 }
 0x5aa   : > { %v5204_v43 = vpop.f32.mrf.mxu1  ;;  %v5579_v0 = vadd.f32 %v12426_v57, %v12385_v38 }
 0x5ab   : > { %v12417_v13 = vadd.f32 %v5204_v43, %v12320_v39  ;;  %v12431_v44 = vpop.f32.mrf.mxu0 }
 0x5ac   : > { %v5206_v47 = vpop.f32.mrf.mxu1 }
 0x5ad   : > { %v12422_v12 = vadd.f32 %v5206_v47, %v12322_v60  ;;  %v12439_v34 = vpop.f32.mrf.mxu0 }
 0x5ae   : > { %v5210_v46 = vpop.f32.mrf.mxu1 }
 0x5af   : > { %v5538_v27 = vpop.f32.mrf.mxu0 }
 0x5b0   : > { %v5212_v30 = vpop.f32.mrf.mxu1 }
 0x5b2   : > { %v5214_v17 = vpop.f32.mrf.mxu1 }
 0x5b4   : > { %v5216_v22 = vpop.f32.mrf.mxu1 }
 0x5b6   : > { %v5814_v58 = vpop.f32.mrf.mxu1 }
 0x5b7   : > { %v12429_v54 = vadd.f32 %v5814_v58, %v12336_v8 }
 0x5b8   : > { %v5816_v39 = vpop.f32.mrf.mxu1 }
 0x5b9   : > { %13891 = vst [vmem:[#allocation49_spill] sm:$0xff] %v12429_v54  ;;  %v12434_v59 = vadd.f32 %v5816_v39, %v12339_v6  ;;  %v12452_v6 = vpop.f32.mrf.mxu0 }
 0x5ba   : > { %v5818_v60 = vpop.f32.mrf.mxu1 }
 0x5bb   : > { %13892 = vst [vmem:[#allocation50_spill] sm:$0xff] %v12434_v59  ;;  %v12437_v40 = vadd.f32 %v5818_v60, %v12342_v61  ;;  %v12458_v47 = vpop.f32.mrf.mxu0 }
 0x5bc   : > { %v5820_v35 = vpop.f32.mrf.mxu1 }
 0x5bd   : > { %13893 = vst [vmem:[#allocation57_spill] sm:$0xff] %v12437_v40  ;;  %v12442_v7 = vadd.f32 %v5820_v35, %v12347_v28  ;;  %v5546_v39 = vpop.f32.mrf.mxu0 }
 0x5be   : > { %v12444_v50 = vpop.f32.mrf.mxu1 }
 0x5bf   : > { %13894 = vst [vmem:[#allocation58_spill] sm:$0xff] %v12442_v7  ;;  %13895 = vst [vmem:[#allocation19_spill] sm:$0xff] %v12444_v50  ;;  %v5548_v51 = vpop.f32.mrf.mxu0 }
 0x5c0   : > { %v12446_v8 = vpop.f32.mrf.mxu1 }
 0x5c1   : > { %13896 = vst [vmem:[#allocation18_spill] sm:$0xff] %v12446_v8  ;;  %v5550_v54 = vpop.f32.mrf.mxu0 }
 0x5c2   : > { %v12448_v53 = vpop.f32.mrf.mxu1 }
 0x5c3   : > { %13897 = vst [vmem:[#allocation9_spill] sm:$0xff] %v12448_v53 }
 0x5c4   : > { %v12450_v36 = vpop.f32.mrf.mxu1 }
 0x5c5   : > { %13898 = vst [vmem:[#allocation21_spill] sm:$0xff] %v12450_v36  ;;  %v5552_v36 = vpop.f32.mrf.mxu0 }
 0x5c6   : > { %v12454_v43 = vpop.f32.mrf.mxu1 }
 0x5c7   : > { %13899 = vst [vmem:[#allocation78_spill] sm:$0xff] %v12454_v43  ;;  %v4913_v43 = vadd.f32 %v12324_v33, %v12332_v29  ;;  %v5586_v33 = vadd.f32 %v5548_v51, %v12414_v1  ;;  %v5578_v51 = vadd.f32 %v12424_v5, %v12382_v18  ;;  %v5587_v18 = vadd.f32 %v5550_v54, %v12417_v13 }
 0x5c8   : > { %v12456_v61 = vpop.f32.mrf.mxu1 }
 0x5c9   : > { %13900 = vst [vmem:[#allocation53_spill] sm:$0xff] %v12456_v61  ;;  %v5246_v29 = vadd.f32 %v5216_v22, %v4913_v43 }
 0x5ca   : > { %v12460_v58 = vpop.f32.mrf.mxu1 }
 0x5cb   : > { %13901 = vst [vmem:[#allocation54_spill] sm:$0xff] %v12460_v58  ;;  %v5556_v58 = vpop.f32.mrf.mxu0 }
 0x5cc   : > { %v12462_v28 = vpop.f32.mrf.mxu1 }
 0x5cd   : > { %13902 = vst [vmem:[#allocation84_spill] sm:$0xff] %v12462_v28  ;;  %v4909_v28 = vadd.f32 %v12312_v20, %v12328_v19  ;;  %v5558_v8 = vpop.f32.mrf.mxu0 }
 0x5ce   : > { %v12464_v60 = vpop.f32.mrf.mxu1 }
 0x5cf   : > { %v5244_v11 = vadd.f32 %v5212_v30, %v4909_v28  ;;  %v5560_v61 = vpop.f32.mrf.mxu0  ;;  %v5573_v30 = vadd.f32 %v12387_v24, %v12361_v31  ;;  %v5582_v31 = vadd.f32 %v5538_v27, %v12398_v16  ;;  %v5580_v28 = vadd.f32 %v12431_v44, %v12390_v2 }
 0x5d0   : > { %v12466_v35 = vpop.f32.mrf.mxu1 }
 0x5d1   : > { %v5590_v63 = vadd.f32 %v5558_v8, %v5244_v11  ;;  %v5581_v11 = vadd.f32 %v12439_v34, %v12393_v32 }
 0x5d2   : > { %v12468_v40 = vpop.f32.mrf.mxu1 }
 0x5d3   : > { %13903 = vst [vmem:[#allocation79_spill] sm:$0xff] %v12468_v40  ;;  %v5243_v40 = vadd.f32 %v5210_v46, %v4907_v9  ;;  %v12495_v9 = vadd.f32 %v12355_v62, %v12345_v49  ;;  %v5585_v49 = vadd.f32 %v5546_v39, %v12409_v25 }
 0x5d4   : > { %v12470_v7 = vpop.f32.mrf.mxu1 }
 0x5d5   : > { %13904 = vst [vmem:[#allocation81_spill] sm:$0xff] %v12470_v7  ;;  %v13906_v7 = vld [vmem:[#allocation87_spill] sm:$0xff]  ;;  %v5589_v3 = vadd.f32 %v5556_v58, %v5243_v40 }
 0x5d6   : > { %v5854_v59 = vpop.f32.mrf.mxu1  ;;  %v13907_v48 = vsub.s32 0, %v13906_v7  ;;  %v13908_v20 = vsub.s32 1, %v13906_v7 }
 0x5d7   : > { %v5899_v40 = vadd.f32 %v5854_v59, %v5581_v11 }
 0x5d8   : > { %v5856_v53 = vpop.f32.mrf.mxu1  ;;  %v12487_v52 = vrot.slane %v5911_v55, %v13907_v48  ;;  %v12491_v19 = vrot.slane %v5911_v55, %v13908_v20  ;;  %v5574_v55 = vadd.f32 %v12395_v26, %v12366_v14  ;;  %v5562_v14 = vpop.f32.mrf.mxu0  ;;  %v5588_v26 = vadd.f32 %v5552_v36, %v12422_v12 }
 0x5d9   : > { %v5900_v22 = vadd.f32 %v5856_v53, %v5582_v31  ;;  %v5592_v38 = vadd.f32 %v5562_v14, %v5246_v29  ;;  %v5896_v53 = vadd.f32 %v12466_v35, %v5578_v51  ;;  %v13915_v31 = vld [vmem:[#allocation31_spill] sm:$0xff] }
 0x5da   : > { %v12472_v10 = vpop.f32.mrf.mxu1 }
 0x5db   : > { %13905 = vst [vmem:[#allocation56_spill] sm:$0xff] %v12472_v10  ;;  %v5245_v10 = vadd.f32 %v5214_v17, %v4911_v41  ;;  %v5577_v41 = vadd.f32 %v12419_v23, %v12377_v37  ;;  %v12539_v59 = vadd.f32 %v12491_v19, %v5900_v22  ;;  %v12570_v2 = vadd.f32 %v12491_v19, %v5896_v53  ;;  %v13922_v53 = vld [vmem:[#allocation10_spill] sm:$0xff] }
 0x5dc   : > { %v5860_v4 = vpop.f32.mrf.mxu1  ;;  %v13911_v44 = vld [vmem:[#allocation81_spill] sm:$0xff] }
 0x5dd   : > { %v5591_v23 = vadd.f32 %v5560_v61, %v5245_v10  ;;  %v5584_v10 = vadd.f32 %v12458_v47, %v12406_v45  ;;  %v5583_v45 = vadd.f32 %v12452_v6, %v12401_v21  ;;  %v5895_v58 = vadd.f32 %v12464_v60, %v5577_v41  ;;  %v13910_v60 = vld [vmem:[#allocation53_spill] sm:$0xff]  ;;  %v13912_v41 = vld [vmem:[#allocation78_spill] sm:$0xff] }
 0x5de   : > { %v5864_v15 = vpop.f32.mrf.mxu1 }
 0x5df   : > { %v5903_v24 = vadd.f32 %v5864_v15, %v5585_v49  ;;  %v5902_v36 = vadd.f32 %v5860_v4, %v5584_v10  ;;  %v12558_v4 = vadd.f32 %v12487_v52, %v5899_v40  ;;  %v12592_v14 = vadd.f32 %v12487_v52, %v5895_v58 }
 0x5e0   : > { %v5866_v50 = vpop.f32.mrf.mxu1 }
 0x5e1   : > { %v5904_v17 = vadd.f32 %v5866_v50, %v5586_v33  ;;  %v12530_v50 = vadd.f32 %v12487_v52, %v5903_v24  ;;  %v5898_v33 = vadd.f32 %v13911_v44, %v5580_v28  ;;  %v12575_v29 = vadd.f32 %v12491_v19, %v5902_v36  ;;  %v13916_v24 = vld [vmem:[#allocation12_spill] sm:$0xff] }
 0x5e2   : > { %v5868_v42 = vpop.f32.mrf.mxu1  ;;  %v13909_v21 = vld [vmem:[#allocation56_spill] sm:$0xff]  ;;  %v5963_v28 = vmax.f32 %v12592_v14, 0.0 }
 0x5e3   : > { %v12522_v16 = vadd.f32 %v12491_v19, %v5904_v17  ;;  %v5905_v32 = vadd.f32 %v5868_v42, %v5587_v18  ;;  %v5901_v6 = vadd.f32 %v13909_v21, %v5583_v45  ;;  %v5971_v39 = vmax.f32 %v12530_v50, 0.0 }
 0x5e4   : > { %v5870_v46 = vpop.f32.mrf.mxu1  ;;  %v5891_v17 = vadd.f32 %v13912_v41, %v5573_v30  ;;  %v13918_v30 = vld [vmem:[#allocation18_spill] sm:$0xff]  ;;  %v5970_v40 = vmax.f32 %v12575_v29, 0.0 }
 0x5e5   : > { %v5906_v15 = vadd.f32 %v5870_v46, %v5588_v26  ;;  %v5972_v42 = vmax.f32 %v12522_v16, 0.0  ;;  %v12563_v35 = vadd.f32 %v12487_v52, %v5905_v32  ;;  %v5892_v46 = vadd.f32 %v13910_v60, %v5574_v55  ;;  %v13917_v26 = vld [vmem:[#allocation79_spill] sm:$0xff] }
 0x5e6   : > { %v5874_v62 = vpop.f32.mrf.mxu1  ;;  %v12597_v11 = vadd.f32 %v12487_v52, %v5901_v6  ;;  %v5888_v18 = vadd.f32 %v13918_v30, %v12499_v56  ;;  %v13920_v32 = vld [vmem:[#allocation19_spill] sm:$0xff]  ;;  %v12626_v36 = vadd.f32 %v12487_v52, %v5891_v17  ;;  %v13928_v30 = vld [vmem:[#allocation50_spill] sm:$0xff] }
 0x5e7   : > { %v5907_v7 = vadd.f32 %v5874_v62, %v5589_v3  ;;  %v12545_v43 = vadd.f32 %v12491_v19, %v5906_v15  ;;  %v5968_v3 = vmax.f32 %v12539_v59, 0.0  ;;  %v8206_v55 = vpack.i.bf16 %v5972_v42, %v5971_v39  ;;  %v13924_v60 = vld [vmem:[#allocation11_spill] sm:$0xff] }
 0x5e8   : > { %v5876_v1 = vpop.f32.mrf.mxu1  ;;  %v5973_v22 = vmax.f32 %v12563_v35, 0.0  ;;  %v5969_v6 = vmax.f32 %v12597_v11, 0.0 }
 0x5e9   : > { %v12516_v25 = vadd.f32 %v12487_v52, %v5907_v7  ;;  %v5908_v37 = vadd.f32 %v5876_v1, %v5590_v63  ;;  %v5974_v49 = vmax.f32 %v12545_v43, 0.0  ;;  %v13913_v7 = vld [vmem:[#allocation26_spill] sm:$0xff]  ;;  %v13914_v63 = vld [vmem:[#allocation23_spill] sm:$0xff]  ;;  %v5576_v1 = vadd.f32 %v13916_v24, %v13915_v31  ;;  %v13927_v31 = vld [vmem:[#allocation9_spill] sm:$0xff] }
 0x5ea   : > { %v5878_v5 = vpop.f32.mrf.mxu1  ;;  %v5575_v51 = vadd.f32 %v13914_v63, %v13913_v7  ;;  %v8221_v7 = vpack.i.bf16 %v5970_v40, %v5969_v6 }
 0x5eb   : > { %v12525_v57 = vadd.f32 %v12491_v19, %v5908_v37  ;;  %v5909_v12 = vadd.f32 %v5878_v5, %v5591_v23  ;;  %v5975_v13 = vmax.f32 %v12516_v25, 0.0  ;;  %v5897_v37 = vadd.f32 %v13917_v26, %v5579_v0 }
 0x5ec   : > { %v5880_v34 = vpop.f32.mrf.mxu1  ;;  %v5967_v23 = vmax.f32 %v12558_v4, 0.0  ;;  %v12605_v5 = vadd.f32 %v12491_v19, %v5892_v46  ;;  %v5964_v0 = vmax.f32 %v12570_v2, 0.0  ;;  %v8211_v10 = vpack.i.bf16 %v5974_v49, %v5973_v22  ;;  %v13925_v46 = vld [vmem:[#allocation25_spill] sm:$0xff] }
 0x5ed   : > { %v5976_v54 = vmax.f32 %v12525_v57, 0.0  ;;  %v12535_v8 = vadd.f32 %v12487_v52, %v5909_v12  ;;  %v5910_v27 = vadd.f32 %v5880_v34, %v5592_v38  ;;  %v13919_v38 = vld [vmem:[#allocation84_spill] sm:$0xff]  ;;  %v12610_v12 = vadd.f32 %v12491_v19, %v5898_v33  ;;  %v13926_v33 = vld [vmem:[#allocation21_spill] sm:$0xff] }
 0x5ee   : > { %v5894_v15 = vadd.f32 %v13919_v38, %v5576_v1  ;;  %v8216_v56 = vpack.i.bf16 %v5968_v3, %v5967_v23  ;;  %v5887_v34 = vadd.f32 %v13920_v32, %v12495_v9  ;;  %v12631_v21 = vadd.f32 %v12487_v52, %v5897_v37 }
 0x5ef   : > { %v12548_v61 = vadd.f32 %v12491_v19, %v5910_v27  ;;  %v8196_v47 = vpack.i.bf16 %v5976_v54, %v5975_v13  ;;  %v5977_v48 = vmax.f32 %v12535_v8, 0.0  ;;  %v13921_v27 = vld [vmem:[#allocation27_spill] sm:$0xff]  ;;  %v12637_v9 = vadd.f32 %v12491_v19, %v5888_v18 }
 0x5f0   : > { %v5572_v45 = vadd.f32 %v13922_v53, %v13921_v27  ;;  %v5571_v44 = vadd.f32 %v13925_v46, %v13924_v60  ;;  %v12644_v41 = vadd.f32 %v12491_v19, %v5894_v15  ;;  %v5966_v17 = vmax.f32 %v12610_v12, 0.0  ;;  %v13930_v60 = vld [vmem:[#allocation58_spill] sm:$0xff] }
 0x5f1   : > { %v5978_v20 = vmax.f32 %v12548_v61, 0.0  ;;  %8197 = vrot.lane.b32.xlu1 %v8196_v47, %s8671_s15  ;;  %v13923_v47 = vld [vmem:[#allocation54_spill] sm:$0xff]  ;;  %v8226_v63 = vpack.i.bf16 %v5964_v0, %v5963_v28  ;;  %v5959_v1 = vmax.f32 %v12626_v36, 0.0  ;;  %v5965_v37 = vmax.f32 %v12631_v21, 0.0 }
 0x5f2   : > { %v5893_v58 = vadd.f32 %v13923_v47, %v5575_v51  ;;  %v12656_v51 = vadd.f32 %v12487_v52, %v5887_v34  ;;  %v5889_v24 = vadd.f32 %v13927_v31, %v5571_v44  ;;  %v12668_v18 = vadd.f32 %v12491_v19, %v13928_v30  ;;  %v13929_v34 = vld [vmem:[#allocation49_spill] sm:$0xff] }
 0x5f3   : > { %v8201_v62 = vpack.i.bf16 %v5978_v20, %v5977_v48  ;;  %v13427_v38 = vmax.f32 %v12637_v9, 0.0  ;;  %v12685_v27 = vadd.f32 %v12487_v52, %v13929_v34  ;;  %v12697_v46 = vadd.f32 %v12491_v19, %v13930_v60  ;;  %v8547_v34 = vld [vmem:[%s13271_s7 + $0x80] sm:$0xff]   ;;  %v8548_v60 = vld [vmem:[%s13271_s7 + $0x78] sm:$0xff]  }
 0x5f4   : > { %v12661_v26 = vadd.f32 %v12487_v52, %v5893_v58  ;;  %v13426_v53 = vmax.f32 %v12656_v51, 0.0  ;;  %v13423_v58 = vmax.f32 %v12668_v18, 0.0  ;;  %6485 = vmatpush1.bf16.msra.mxu1 %v8547_v34 }
 0x5f5   : > { %8202 = vrot.lane.b32.xlu0 %v8201_v62, %s8671_s15  ;;  %8207 = vrot.lane.b32.xlu1 %v8206_v55, %s8671_s15  ;;  %v5890_v62 = vadd.f32 %v13926_v33, %v5572_v45  ;;  %v5960_v55 = vmax.f32 %v12605_v5, 0.0  ;;  %v12689_v45 = vadd.f32 %v12487_v52, %v5889_v24  ;;  %v13422_v24 = vmax.f32 %v12697_v46, 0.0 }
 0x5f6   : > { %v5961_v47 = vmax.f32 %v12661_v26, 0.0 }
 0x5f7   : > { %v12672_v15 = vadd.f32 %v12491_v19, %v5890_v62  ;;  %v8236_v32 = vpack.i.bf16 %v5960_v55, %v5959_v1  ;;  %v8246_v62 = vpack.i.bf16 %v13427_v38, %v13426_v53  ;;  %v13424_v19 = vmax.f32 %v12689_v45, 0.0 }
 0x5f9   : > { %8212 = vrot.lane.b32.xlu0 %v8211_v10, %s8671_s15  ;;  %8217 = vrot.lane.b32.xlu1 %v8216_v56, %s8671_s15  ;;  %v5962_v10 = vmax.f32 %v12644_v41, 0.0  ;;  %v8231_v56 = vpack.i.bf16 %v5966_v17, %v5965_v37  ;;  %v13425_v44 = vmax.f32 %v12672_v15, 0.0 }
 0x5fb   : > { %v8241_v33 = vpack.i.bf16 %v5962_v10, %v5961_v47  ;;  %v8251_v30 = vpack.i.bf16 %v13425_v44, %v13424_v19 }
 0x5fd   : > { %8222 = vrot.lane.b32.xlu0 %v8221_v7, %s8671_s15  ;;  %8227 = vrot.lane.b32.xlu1 %v8226_v63, %s8671_s15  ;;  %v13421_v7 = vmax.f32 %v12685_v27, 0.0  ;;  %v13931_v63 = vld [vmem:[#allocation57_spill] sm:$0xff] }
 0x5fe   : > { %v12711_v31 = vadd.f32 %v12487_v52, %v13931_v63  ;;  %v8550_v63 = vld [vmem:[%s13271_s7 + $0x68] sm:$0xff]  }
 0x600   : > { %v13420_v52 = vmax.f32 %v12711_v31, 0.0 }
 0x601   : > { %8232 = vrot.lane.b32.xlu0 %v8231_v56, %s8671_s15  ;;  %8237 = vrot.lane.b32.xlu1 %v8236_v32, %s8671_s15  ;;  %v8256_v56 = vpack.i.bf16 %v13423_v58, %v13421_v7 }
 0x602   : > { %v8261_v32 = vpack.i.bf16 %v13422_v24, %v13420_v52 }
 0x605   : > { %8242 = vrot.lane.b32.xlu0 %v8241_v33, %s8671_s15  ;;  %8247 = vrot.lane.b32.xlu1 %v8246_v62, %s8671_s15  ;;  %v13932_v33 = vmov 0   ;;  %v8549_v62 = vld [vmem:[%s13271_s7 + $0x70] sm:$0xff]  }
 0x606   : > { %6486 = vmatprep.subr.bf16.mxu1 %v13932_v33 }
 0x607   : > { %6487 = vmatpush1.bf16.msra.mxu1 %v8548_v60 }
 0x608   : > { %6488 = vmatprep.subr.bf16.mxu1 %v13932_v33 }
 0x609   : > { %8252 = vrot.lane.b32.xlu0 %v8251_v30, %s8671_s15  ;;  %8257 = vrot.lane.b32.xlu1 %v8256_v56, %s8671_s15  ;;  %v8551_v30 = vld [vmem:[%s13271_s7 + $0x60] sm:$0xff]   ;;  %v8552_v56 = vld [vmem:[%s13271_s7 + $0x58] sm:$0xff]  }
 0x60b   : > { %6489 = vmatpush1.bf16.msra.mxu1 %v8549_v62 }
 0x60c   : > { %6490 = vmatprep.subr.bf16.mxu1 %v13932_v33 }
 0x60d   : > { %8262 = vrot.lane.b32.xlu0 %v8261_v32, %s8671_s15  ;;  %v8553_v32 = vld [vmem:[%s13271_s7 + $0x50] sm:$0xff]  }
 0x60f   : > { %6491 = vmatpush1.bf16.msra.mxu1 %v8550_v63 }
 0x610   : > { %6492 = vmatprep.subr.bf16.mxu1 %v13932_v33 }
 0x613   : > { %6493 = vmatpush1.bf16.msra.mxu1 %v8551_v30 }
 0x614   : > { %6494 = vmatprep.subr.bf16.mxu1 %v13932_v33 }
 0x617   : > { %6495 = vmatpush1.bf16.msra.mxu1 %v8552_v56 }
 0x618   : > { %6496 = vmatprep.subr.bf16.mxu1 %v13932_v33 }
 0x61b   : > { %6497 = vmatpush1.bf16.msra.mxu1 %v8553_v32  ;;  %v13933_v32 = vmov 65535  }
 0x61c   : > { %6498 = vmatprep.subr.bf16.mxu1 %v13932_v33  ;;  %v6316_v44 = vsel %vm6314_vm12, 4294967295, %v13933_v32 }
 0x61d   : > { %v12783_v61 = vsel %vm2409_vm4, %v6316_v44, 0 }
 0x663   : > { %v8198_v34 = vpop.permute.xlu1 %8197 }
 0x664   : > { %v8200_v60 = vunpack.i.h.bf16 %v8198_v34  ;;  %v8199_v62 = vunpack.i.l.bf16 %v8198_v34 }
 0x666   : > { %v6076_v63 = vsel %vm6063_vm11, %v8199_v62, %v8200_v60  ;;  %v12764_v56 = vmax.f32 %v5976_v54, %v8200_v60 }
 0x667   : > { %v8203_v30 = vpop.permute.xlu0 %8202  ;;  %v8208_v52 = vpop.permute.xlu1 %8207  ;;  %v12769_v53 = vmax.f32 %v5975_v13, %v6076_v63 }
 0x668   : > { %v8205_v7 = vunpack.i.h.bf16 %v8203_v30  ;;  %v8204_v24 = vunpack.i.l.bf16 %v8203_v30  ;;  %v8210_v58 = vunpack.i.h.bf16 %v8208_v52  ;;  %v8209_v19 = vunpack.i.l.bf16 %v8208_v52 }
 0x669   : > { %v6210_v25 = vrot.slane %v12764_v56, 1  ;;  %v6208_v8 = vrot.slane %v12769_v53, 1 }
 0x66a   : > { %v6133_v34 = vmax.f32 %v5978_v20, %v8205_v7  ;;  %v6077_v62 = vsel %vm6063_vm11, %v8204_v24, %v8205_v7  ;;  %v12776_v57 = vmax.f32 %v5972_v42, %v8210_v58  ;;  %v6074_v52 = vsel %vm6063_vm11, %v8209_v19, %v8210_v58 }
 0x66b   : > { %v6132_v54 = vmax.f32 %v5977_v48, %v6077_v62  ;;  %v8213_v60 = vpop.permute.xlu0 %8212  ;;  %v8218_v30 = vpop.permute.xlu1 %8217  ;;  %v12787_v20 = vmax.f32 %v5971_v39, %v6074_v52 }
 0x66c   : > { %v6214_v13 = vrot.slane %v6133_v34, 1  ;;  %v8215_v63 = vunpack.i.h.bf16 %v8213_v60  ;;  %v8214_v16 = vunpack.i.l.bf16 %v8213_v60  ;;  %v8220_v42 = vunpack.i.h.bf16 %v8218_v30 }
 0x66d   : > { %v8219_v7 = vunpack.i.l.bf16 %v8218_v30  ;;  %v6212_v48 = vrot.slane %v6132_v54, 1  ;;  %v6202_v58 = vrot.slane %v12776_v57, 1 }
 0x66e   : > { %v12793_v19 = vmax.f32 %v5974_v49, %v8215_v63  ;;  %v6271_v24 = vmax.f32 %v6133_v34, %v6214_v13  ;;  %v6075_v44 = vsel %vm6063_vm11, %v8214_v16, %v8215_v63  ;;  %v12798_v50 = vmax.f32 %v5968_v3, %v8220_v42 }
 0x66f   : > { %v6072_v39 = vsel %vm6063_vm11, %v8219_v7, %v8220_v42  ;;  %v8223_v32 = vpop.permute.xlu0 %8222  ;;  %v8228_v62 = vpop.permute.xlu1 %8227  ;;  %v12804_v60 = vmax.f32 %v5973_v22, %v6075_v44  ;;  %v6200_v34 = vrot.slane %v12787_v20, 1  ;;  %v6215_v35 = vsel %vm1405_vm3, %v6210_v25, %v6214_v13 }
 0x670   : > { %v6206_v52 = vrot.slane %v12793_v19, 1  ;;  %v12808_v43 = vmax.f32 %v5967_v23, %v6072_v39  ;;  %v8225_v49 = vunpack.i.h.bf16 %v8223_v32  ;;  %v8224_v59 = vunpack.i.l.bf16 %v8223_v32 }
 0x671   : > { %v8230_v3 = vunpack.i.h.bf16 %v8228_v62  ;;  %v8229_v30 = vunpack.i.l.bf16 %v8228_v62  ;;  %v6204_v16 = vrot.slane %v12804_v60, 1  ;;  %v6270_v22 = vmax.f32 %v6132_v54, %v6212_v48 }
 0x672   : > { %v6211_v63 = vsel %vm1405_vm3, %v6206_v52, %v6210_v25  ;;  %v12815_v42 = vmax.f32 %v5970_v40, %v8225_v49  ;;  %v6194_v4 = vrot.slane %v12798_v50, 1  ;;  %v6073_v23 = vsel %vm6063_vm11, %v8224_v59, %v8225_v49 }
 0x673   : > { %v6070_v7 = vsel %vm6063_vm11, %v8229_v30, %v8230_v3  ;;  %v8233_v44 = vpop.permute.xlu0 %8232  ;;  %v8238_v39 = vpop.permute.xlu1 %8237  ;;  %v12822_v32 = vsel %vm1405_vm3, %v6204_v16, %v6208_v8  ;;  %v6192_v62 = vrot.slane %v12808_v43, 1  ;;  %v12828_v40 = vmax.f32 %v5969_v6, %v6073_v23 }
 0x674   : > { %v6198_v29 = vrot.slane %v12815_v42, 1  ;;  %v6267_v54 = vmax.f32 %v12793_v19, %v6211_v63  ;;  %v12833_v25 = vmax.f32 %v5964_v0, %v8230_v3  ;;  %v8235_v13 = vunpack.i.h.bf16 %v8233_v44 }
 0x675   : > { %v8234_v49 = vunpack.i.l.bf16 %v8233_v44  ;;  %v6266_v59 = vmax.f32 %v12804_v60, %v12822_v32  ;;  %v6196_v30 = vrot.slane %v12828_v40, 1  ;;  %v12840_v38 = vmax.f32 %v5963_v28, %v6070_v7 }
 0x676   : > { %v8240_v11 = vunpack.i.h.bf16 %v8238_v39  ;;  %v6203_v6 = vsel %vm1405_vm3, %v6198_v29, %v6202_v58  ;;  %v12845_v19 = vmax.f32 %v5966_v17, %v8235_v13  ;;  %v8239_v0 = vunpack.i.l.bf16 %v8238_v39 }
 0x677   : > { %v6071_v2 = vsel %vm6063_vm11, %v8234_v49, %v8235_v13  ;;  %v12853_v60 = vsel %vm1405_vm3, %v6196_v30, %v6200_v34  ;;  %v6213_v12 = vsel %vm1405_vm3, %v6208_v8, %v6212_v48  ;;  %v8243_v17 = vpop.permute.xlu0 %8242  ;;  %v6186_v3 = vrot.slane %v12833_v25, 1  ;;  %v8248_v32 = vpop.permute.xlu1 %8247 }
 0x678   : > { %v12857_v14 = vmax.f32 %v5965_v37, %v6071_v2  ;;  %v12861_v28 = vmax.f32 %v5960_v55, %v8240_v11  ;;  %v6190_v63 = vrot.slane %v12845_v19, 1  ;;  %v6068_v23 = vsel %vm6063_vm11, %v8239_v0, %v8240_v11 }
 0x679   : > { %v6268_v7 = vmax.f32 %v12769_v53, %v6213_v12  ;;  %v6263_v44 = vmax.f32 %v12815_v42, %v6203_v6  ;;  %v6184_v21 = vrot.slane %v12840_v38, 1  ;;  %v6269_v5 = vmax.f32 %v12764_v56, %v6215_v35 }
 0x67a   : > { %v6188_v37 = vrot.slane %v12857_v14, 1  ;;  %v6262_v55 = vmax.f32 %v12828_v40, %v12853_v60  ;;  %v6207_v48 = vsel %vm1405_vm3, %v6202_v58, %v6206_v52  ;;  %v8245_v39 = vunpack.i.h.bf16 %v8243_v17 }
 0x67b   : > { %v6289_v8 = vpack.c.bf16 %v6270_v22, %v6268_v7  ;;  %v12876_v13 = vsel %vm1405_vm3, %v6190_v63, %v6194_v4  ;;  %v6178_v53 = vrot.slane %v12861_v28, 1  ;;  %v12881_v42 = vmax.f32 %v5959_v1, %v6068_v23  ;;  %v8253_v11 = vpop.permute.xlu0 %8252 }
 0x67c   : > { %v6290_v49 = vpack.c.bf16 %v6271_v24, %v6269_v5  ;;  %v12888_v56 = vsel %vm1405_vm3, %v6188_v37, %v6192_v62  ;;  %v6265_v52 = vmax.f32 %v12776_v57, %v6207_v48  ;;  %v12894_v35 = vmax.f32 %v5962_v10, %v8245_v39 }
 0x67d   : > { %v6319_v58 = vand.u32 %v12783_v61, %v6289_v8  ;;  %v8244_v1 = vunpack.i.l.bf16 %v8243_v17  ;;  %v8250_v22 = vunpack.i.h.bf16 %v8248_v32  ;;  %v8249_v24 = vunpack.i.l.bf16 %v8248_v32 }
 0x67e   : > { %v6322_v36 = vand.u32 %v12783_v61, %v6290_v49  ;;  %v6288_v6 = vpack.c.bf16 %v6267_v54, %v6265_v52  ;;  %v6182_v2 = vrot.slane %v12894_v35, 1  ;;  %v6205_v0 = vsel %vm1405_vm3, %v6200_v34, %v6204_v16 }
 0x67f   : > { %v6199_v60 = vsel %vm1405_vm3, %v6194_v4, %v6198_v29  ;;  %v6259_v41 = vmax.f32 %v12845_v19, %v12876_v13  ;;  %v6069_v10 = vsel %vm6063_vm11, %v8244_v1, %v8245_v39  ;;  %v6066_v57 = vsel %vm6063_vm11, %v8249_v24, %v8250_v22  ;;  %v8258_v4 = vpop.permute.xlu1 %8257 }
 0x680   : > { %6326 = vmatprep.subr.bf16.mxu0 %v6322_v36  ;;  %v6264_v61 = vmax.f32 %v12787_v20, %v6205_v0  ;;  %v6258_v54 = vmax.f32 %v12857_v14, %v12888_v56  ;;  %v6176_v12 = vrot.slane %v12881_v42, 1  ;;  %v12912_v34 = vmax.f32 %v5961_v47, %v6069_v10 }
 0x681   : > { %6327 = vmatpush1.bf16.msra.mxu0 %v6319_v58  ;;  %v6261_v16 = vmax.f32 %v12798_v50, %v6199_v60  ;;  %v6187_v29 = vsel %vm1405_vm3, %v6182_v2, %v6186_v3  ;;  %v13934_v19 = vmax.f32 %v12637_v9, 0.0  ;;  %v13935_v20 = vmax.f32 %v12656_v51, 0.0  ;;  %v8263_v51 = vpop.permute.xlu0 %8262 }
 0x682   : > { %6328 = vmatprep.subr.bf16.mxu0 %v6288_v6  ;;  %v8255_v7 = vunpack.i.h.bf16 %v8253_v11  ;;  %v6180_v5 = vrot.slane %v12912_v34, 1  ;;  %v6287_v8 = vpack.c.bf16 %v6266_v59, %v6264_v61  ;;  %v8254_v47 = vunpack.i.l.bf16 %v8253_v11 }
 0x683   : > { %v6111_v17 = vmax.f32 %v13934_v19, %v8250_v22  ;;  %v12920_v23 = vmax.f32 %v13935_v20, %v6066_v57  ;;  %v6286_v26 = vpack.c.bf16 %v6263_v44, %v6261_v16  ;;  %v13936_v48 = vmax.f32 %v12672_v15, 0.0 }
 0x684   : > { %v8260_v39 = vunpack.i.h.bf16 %v8258_v4  ;;  %v8259_v32 = vunpack.i.l.bf16 %v8258_v4  ;;  %v6197_v9 = vsel %vm1405_vm3, %v6192_v62, %v6196_v30  ;;  %v6185_v13 = vsel %vm1405_vm3, %v6180_v5, %v6184_v21 }
 0x685   : > { %v6113_v50 = vmax.f32 %v13936_v48, %v8255_v7  ;;  %6329 = vmatpush1.bf16.msra.mxu0 %v6287_v8  ;;  %v6067_v59 = vsel %vm6063_vm11, %v8254_v47, %v8255_v7  ;;  %v6260_v44 = vmax.f32 %v12808_v43, %v6197_v9  ;;  %v6191_v15 = vsel %vm1405_vm3, %v6186_v3, %v6190_v63  ;;  %v8544_v9 = vld [vmem:[%s13270_s6] sm:$0xff]  }
 0x686   : > { %v6255_v49 = vmax.f32 %v12894_v35, %v6187_v29  ;;  %6330 = vmatprep.subr.bf16.mxu0 %v6286_v26  ;;  %v13937_v56 = vmax.f32 %v12689_v45, 0.0  ;;  %v13938_v62 = vmax.f32 %v12668_v18, 0.0  ;;  %v6064_v52 = vsel %vm6063_vm11, %v8259_v32, %v8260_v39 }
 0x687   : > { %v6174_v40 = vrot.slane %v6113_v50, 1  ;;  %v6285_v36 = vpack.c.bf16 %v6262_v55, %v6260_v44  ;;  %v6257_v1 = vmax.f32 %v12833_v25, %v6191_v15  ;;  %v8265_v22 = vunpack.i.h.bf16 %v8263_v51  ;;  %v8558_v44 = vld [vmem:[%s13271_s7 + $0x28] sm:$0xff]   ;;  %v8560_v15 = vld [vmem:[%s13271_s7 + $0x20] sm:$0xff]  }
 0x688   : > { %v6112_v58 = vmax.f32 %v13937_v56, %v6067_v59  ;;  %v6107_v30 = vmax.f32 %v13938_v62, %v8260_v39  ;;  %v6254_v43 = vmax.f32 %v12912_v34, %v6185_v13  ;;  %v6170_v24 = vrot.slane %v6111_v17, 1  ;;  %v8554_v13 = vld [vmem:[%s13271_s7 + $0x38] sm:$0xff]   ;;  %v8556_v59 = vld [vmem:[%s13271_s7 + $0x30] sm:$0xff]   ;;  %v8566_v56 = vld [vmem:[%s13271_s7 + $0x8] sm:$0xff]  }
 0x689   : > { %v6168_v3 = vrot.slane %v12920_v23, 1  ;;  %v6179_v63 = vsel %vm1405_vm3, %v6174_v40, %v6178_v53  ;;  %6331 = vmatpush1.bf16.msra.mxu0 %v6285_v36  ;;  %v6284_v35 = vpack.c.bf16 %v6259_v41, %v6257_v1  ;;  %v13939_v18 = vmax.f32 %v12697_v46, 0.0  ;;  %v8555_v62 = vld [vmem:[%s13271_s7 + $0x48] sm:$0xff]  }
 0x68a   : > { %v6172_v45 = vrot.slane %v6112_v58, 1  ;;  %v8264_v6 = vunpack.i.l.bf16 %v8263_v51  ;;  %v6165_v55 = vrot.slane %v6107_v30, 1  ;;  %v13940_v25 = vmax.f32 %v12685_v27, 0.0  ;;  %v8546_v51 = vld [vmem:[%s13270_s6 + $0x10] ss:$0 sps:$4 sm:$0xff]   ;;  %6499 = vmatpush1.bf16.msra.mxu1 %v8555_v62  ;;  %v8601_v62 = vld [vmem:[%s13275_s11 + $0x20] sm:$0xff]  }
 0x68b   : > { %v6109_v11 = vmax.f32 %v13939_v18, %v8265_v22  ;;  %v6189_v60 = vsel %vm1405_vm3, %v6184_v21, %v6188_v37  ;;  %v6183_v10 = vsel %vm1405_vm3, %v6178_v53, %v6182_v2  ;;  %v6251_v57 = vmax.f32 %v6113_v50, %v6179_v63  ;;  %6332 = vmatprep.subr.bf16.mxu0 %v6284_v35  ;;  %v8559_v35 = vld [vmem:[%s13271_s7 + $0xc8] sm:$0xff]  }
 0x68c   : > { %v6106_v0 = vmax.f32 %v13940_v25, %v6064_v52  ;;  %v6065_v46 = vsel %vm6063_vm11, %v8264_v6, %v8265_v22  ;;  %v6256_v61 = vmax.f32 %v12840_v38, %v6189_v60  ;;  %v13941_v27 = vmax.f32 %v12711_v31, 0.0  ;;  %6514 = vmatprep.subr.bf16.mxu1 %v13932_v33  ;;  %v8557_v52 = vld [vmem:[%s13271_s7 + $0x88] sm:$0xff]   ;;  %v8561_v25 = vld [vmem:[%s13271_s7 + $0xc0] sm:$0xff]  }
 0x68d   : > { %v6166_v41 = vrot.slane %v6109_v11, 1  ;;  %v6253_v14 = vmax.f32 %v12861_v28, %v6183_v10  ;;  %v6181_v16 = vsel %vm1405_vm3, %v6176_v12, %v6180_v5  ;;  %v6175_v21 = vsel %vm1405_vm3, %v6170_v24, %v6174_v40  ;;  %v8564_v40 = vld [vmem:[%s13271_s7 + $0x10] sm:$0xff]   ;;  %v8574_v18 = vld [vmem:[%s13271_s7 + $0x108] sm:$0xff]   ;;  %v8576_v60 = vld [vmem:[%s13271_s7 + $0x100] sm:$0xff]  }
 0x68e   : > { %v6108_v34 = vmax.f32 %v13941_v27, %v6065_v46  ;;  %v6283_v4 = vpack.c.bf16 %v6258_v54, %v6256_v61  ;;  %v6252_v53 = vmax.f32 %v12881_v42, %v6181_v16  ;;  %v6249_v2 = vmax.f32 %v6111_v17, %v6175_v21  ;;  %6515 = vmatpush2.bf16.msra.mxu1 %v8557_v52  ;;  %v8578_v46 = vld [vmem:[%s13271_s7 + $0xf8] sm:$0xff]   ;;  %v8580_v16 = vld [vmem:[%s13271_s7 + $0xf0] sm:$0xff]  }
 0x68f   : > { %v6171_v37 = vsel %vm1405_vm3, %v6166_v41, %v6170_v24  ;;  %v6177_v29 = vsel %vm1405_vm3, %v6172_v45, %v6176_v12  ;;  %v6282_v20 = vpack.c.bf16 %v6255_v49, %v6253_v14  ;;  %v6173_v38 = vsel %vm1405_vm3, %v6168_v3, %v6172_v45  ;;  %v8562_v49 = vld [vmem:[%s13271_s7 + $0x18] sm:$0xff]   ;;  %6699 = vmatprep.subr.bf16.mxu1 %v13932_v33  ;;  %v8565_v14 = vld [vmem:[%s13271_s7 + $0xb0] sm:$0xff]  }
 0x690   : > { %v6163_v19 = vrot.slane %v6108_v34, 1  ;;  %6333 = vmatpush1.bf16.msra.mxu0 %v6283_v4  ;;  %v6167_v31 = vsel %vm1405_vm3, %v6165_v55, %v6166_v41  ;;  %v6162_v28 = vrot.slane %v6106_v0, 1  ;;  %v6247_v7 = vmax.f32 %v6109_v11, %v6171_v37  ;;  %v8563_v41 = vld [vmem:[%s13271_s7 + $0xb8] sm:$0xff]   ;;  %v8567_v4 = vld [vmem:[%s13271_s7 + $0xa8] sm:$0xff]   ;;  %v8603_v52 = vld [vmem:[%s13275_s11 + $0x10] sm:$0xff]  }
 0x691   : > { %6334 = vmatprep.subr.bf16.mxu0 %v6282_v20  ;;  %v6280_v5 = vpack.c.bf16 %v6251_v57, %v6249_v2  ;;  %v6245_v8 = vmax.f32 %v6107_v30, %v6167_v31  ;;  %v6250_v26 = vmax.f32 %v6112_v58, %v6177_v29  ;;  %v6281_v47 = vpack.c.bf16 %v6254_v43, %v6252_v53  ;;  %v8568_v58 = vld [vmem:[%s13271_s7] sm:$0xff]   ;;  %v8572_v43 = vld [vmem:[%s13271_s7 + $0x110] sm:$0xff]   ;;  %v8582_v53 = vld [vmem:[%s13271_s7 + $0xe8] sm:$0xff]  }
 0x692   : > { %v6248_v54 = vmax.f32 %v12920_v23, %v6173_v38  ;;  %v6169_v42 = vsel %vm1405_vm3, %v6163_v19, %v6168_v3  ;;  %v6164_v12 = vsel %vm1405_vm3, %v6162_v28, %v6163_v19  ;;  %v8545_v23 = vld [vmem:[%s13270_s6 + $0x8] sm:$0xff]   ;;  %v8570_v30 = vld [vmem:[%s13271_s7 + $0x40] sm:$0xff]   ;;  %v8571_v19 = vld [vmem:[%s13271_s7 + $0x98] sm:$0xff]  }
 0x693   : > { %v6278_v17 = vpack.c.bf16 %v6247_v7, %v6245_v8  ;;  %v6246_v48 = vmax.f32 %v6108_v34, %v6169_v42  ;;  %v6244_v39 = vmax.f32 %v6106_v0, %v6164_v12  ;;  %v8569_v2 = vld [vmem:[%s13271_s7 + $0xa0] sm:$0xff]   ;;  %v8586_v20 = vld [vmem:[%s13271_s7 + $0xd8] sm:$0xff]   ;;  %v8573_v38 = vld [vmem:[%s13271_s7 + $0x90] sm:$0xff]   ;;  %v8672_v8 = vmov 0.0  }
 0x694   : > { %6335 = vmatpush1.bf16.msra.mxu0 %v6281_v47  ;;  %v6279_v50 = vpack.c.bf16 %v6250_v26, %v6248_v54  ;;  %v8584_v29 = vld [vmem:[%s13271_s7 + $0xe0] sm:$0xff]   ;;  %v8588_v31 = vld [vmem:[%s13271_s7 + $0x118] sm:$0xff]   ;;  %v8579_v12 = vld [vmem:[%s13271_s7 + $0x150] sm:$0xff]  }
 0x695   : > { %6336 = vmatprep.subr.bf16.mxu0 %v6280_v5  ;;  %v6277_v32 = vpack.c.bf16 %v6246_v48, %v6244_v39  ;;  %v8592_v28 = vld [vmem:[%s13273_s9 + $0x38] ss:$0 sps:$4 sm:$0xff]   ;;  %v8575_v5 = vld [vmem:[%s13271_s7 + $0xd0] sm:$0xff]   ;;  %v8583_v48 = vld [vmem:[%s13271_s7 + $0x140] sm:$0xff]  }
 0x696   : > { %v7060_v26 = vsel %vm4061_vm7, %v8592_v28, 0  ;;  %v8577_v47 = vld [vmem:[%s13271_s7 + $0x158] sm:$0xff]   ;;  %v8587_v39 = vld [vmem:[%s13271_s7 + $0x130] sm:$0xff]  }
 0x698   : > { %6337 = vmatpush1.bf16.msra.mxu0 %v6279_v50  ;;  %v8585_v50 = vld [vmem:[%s13271_s7 + $0x138] sm:$0xff]  }
 0x699   : > { %6338 = vmatprep.subr.bf16.mxu0 %v6278_v17  ;;  %v8581_v17 = vld [vmem:[%s13271_s7 + $0x148] sm:$0xff]  }
 0x69c   : > { %6339 = vmatpush1.bf16.msra.mxu0 %v6277_v32  ;;  %v8589_v32 = vld [vmem:[%s13271_s7 + $0x128] sm:$0xff]  }
 0x69d   : > { %6581 = vmatprep.subr.bf16.mxu0 %v13932_v33 }
 0x69f   : > { %7756 = vmatmul.mubr.msk.bf16.vlgmr.msra.gmra.mxu0 %vm6304_vm13, %v8544_v9  ;;  %v8590_v9 = vld [vmem:[%s13271_s7 + $0x120] sm:$0xff]  }
 0x6a0   : > { %6366 = vmatprep.mubr.bf16.mxu0 %v13932_v33  ;;  %6582 = vmatpush1.bf16.msra.mxu0 %v8554_v13  ;;  %v8594_v13 = vld [vmem:[%s13273_s9 + $0x28] sm:$0xff]  }
 0x6a1   : > { %6583 = vmatprep.subr.bf16.mxu0 %v13932_v33 }
 0x6a4   : > { %6584 = vmatpush1.bf16.msra.mxu0 %v8556_v59 }
 0x6a5   : > { %6585 = vmatprep.subr.bf16.mxu0 %v13932_v33 }
 0x6a7   : > { %7757 = vmatmul.mubr.msk.bf16.gmra.mxu0 %vm6304_vm13, %v8545_v23  ;;  %v8591_v23 = vld [vmem:[%s13271_s7 + $0x160] sm:$0xff]  }
 0x6a8   : > { %6376 = vmatprep.mubr.bf16.mxu0 %v13932_v33  ;;  %6586 = vmatpush1.bf16.msra.mxu0 %v8558_v44  ;;  %v8596_v44 = vld [vmem:[%s13273_s9 + $0x18] sm:$0xff]  }
 0x6a9   : > { %6587 = vmatprep.subr.bf16.mxu0 %v13932_v33 }
 0x6ac   : > { %6588 = vmatpush1.bf16.msra.mxu0 %v8560_v15  ;;  %v8597_v15 = vld [vmem:[%s13273_s9 + $0x10] sm:$0xff]  }
 0x6ad   : > { %6589 = vmatprep.subr.bf16.mxu0 %v13932_v33 }
 0x6af   : > { %7758 = vmatmul.mubr.msk.bf16.gmra.mxu0 %vm6304_vm13, %v8546_v51  ;;  %v8593_v51 = vld [vmem:[%s13273_s9 + $0x30] sm:$0xff]  }
 0x6b0   : > { %6590 = vmatpush1.bf16.msra.mxu0 %v8562_v49  ;;  %v8598_v49 = vld [vmem:[%s13273_s9 + $0x8] sm:$0xff]  }
 0x6b1   : > { %6591 = vmatprep.subr.bf16.mxu0 %v13932_v33 }
 0x6b4   : > { %6592 = vmatpush1.bf16.msra.mxu0 %v8564_v40  ;;  %v8599_v40 = vld [vmem:[%s13273_s9] sm:$0xff]  }
 0x6b5   : > { %6593 = vmatprep.subr.bf16.mxu0 %v13932_v33 }
 0x6b8   : > { %6594 = vmatpush1.bf16.msra.mxu0 %v8566_v56  ;;  %v8600_v56 = vld [vmem:[%s13275_s11 + $0x28] ss:$0 sps:$4 sm:$0x33]  }
 0x6b9   : > { %6595 = vmatprep.subr.bf16.mxu0 %v13932_v33 }
 0x6bc   : > { %6596 = vmatpush1.bf16.msra.mxu0 %v8568_v58  ;;  %v7161_v58 = vsel %vm7159_vm0, %v8600_v56, 0 }
 0x6bd   : > { %6611 = vmatprep.subr.bf16.mxu0 %v13932_v33 }
 0x6c0   : > { %6612 = vmatpush2.bf16.msra.mxu0 %v8570_v30  ;;  %v8602_v30 = vld [vmem:[%s13275_s11 + $0x18] sm:$0xff]  }
 0x6c1   : > { %6818 = vmatprep.subr.bf16.mxu0 %v13932_v33 }
 0x75f   : > { %v6358_v36 = vpop.f32.mrf.mxu0 }
 0x760   : > { %v6385_v24 = vpack.c.bf16 %v6358_v36, %v6358_v36 }
 0x761   : > { %v6360_v1 = vpop.f32.mrf.mxu0 }
 0x762   : > { %v6386_v22 = vpack.c.bf16 %v6360_v1, %v6360_v1 }
 0x763   : > { %v6362_v3 = vpop.f32.mrf.mxu0 }
 0x764   : > { %7796 = vmatprep.mubr.msk.bf16.mxu0 %vm6480_vm14, %v6386_v22  ;;  %v6405_v11 = vpack.c.bf16 %v6362_v3, %v6362_v3 }
 0x765   : > { %v6364_v63 = vpop.f32.mrf.mxu0  ;;  %6614 = vmatmul.mubr.bf16.vlgmr.msra.gmra.mxu0 %v6385_v24 }
 0x766   : > { %v6406_v45 = vpack.c.bf16 %v6364_v63, %v6364_v63  ;;  %6819 = vmatpush1.bf16.msra.mxu0 %v8572_v43 }
 0x767   : > { %v13041_v6 = vpop.f32.mrf.mxu0  ;;  %6820 = vmatprep.subr.bf16.mxu0 %v13932_v33 }
 0x768   : > { %7786 = vmatprep.mubr.msk.bf16.mxu1 %vm6480_vm14, %v6406_v45  ;;  %v6621_v42 = vpack.c.bf16 %v13041_v6, %v13041_v6 }
 0x769   : > { %6517 = vmatmul.mubr.bf16.vlgmr.msra.gmra.mxu1 %v6405_v11  ;;  %v6370_v55 = vpop.f32.mrf.mxu0 }
 0x76a   : > { %6700 = vmatpush1.bf16.msra.mxu1 %v8559_v35  ;;  %6821 = vmatpush1.bf16.msra.mxu0 %v8574_v18  ;;  %v6622_v0 = vpack.c.bf16 %v6370_v55, %v6370_v55 }
 0x76b   : > { %6701 = vmatprep.subr.bf16.mxu1 %v13932_v33  ;;  %6822 = vmatprep.subr.bf16.mxu0 %v13932_v33  ;;  %v6372_v10 = vpop.f32.mrf.mxu0 }
 0x76c   : > { %7824 = vmatprep.mubr.msk.bf16.mxu1 %vm6480_vm14, %v6622_v0  ;;  %v6740_v7 = vpack.c.bf16 %v6372_v10, %v6372_v10 }
 0x76d   : > { %v6374_v57 = vpop.f32.mrf.mxu0 }
 0x76e   : > { %6702 = vmatpush1.bf16.msra.mxu1 %v8561_v25  ;;  %6823 = vmatpush1.bf16.msra.mxu0 %v8576_v60  ;;  %v6741_v61 = vpack.c.bf16 %v6374_v57, %v6374_v57 }
 0x76f   : > { %6703 = vmatprep.subr.bf16.mxu1 %v13932_v33  ;;  %6824 = vmatprep.subr.bf16.mxu0 %v13932_v33  ;;  %v13062_v27 = vpop.f32.mrf.mxu0 }
 0x770   : > { %7852 = vmatprep.mubr.msk.bf16.mxu0 %vm6480_vm14, %v6741_v61  ;;  %v6859_v59 = vpack.c.bf16 %v13062_v27, %v13062_v27  ;;  %v7881_v61 = vld [vmem:[%s13272_s8] ss:$0 sm:$0xff] }
 0x771   : > { %v6380_v34 = vpop.f32.mrf.mxu0 }
 0x772   : > { %6704 = vmatpush1.bf16.msra.mxu1 %v8563_v41  ;;  %6825 = vmatpush1.bf16.msra.mxu0 %v8578_v46  ;;  %v6860_v54 = vpack.c.bf16 %v6380_v34, %v6380_v34 }
 0x773   : > { %6705 = vmatprep.subr.bf16.mxu1 %v13932_v33  ;;  %6826 = vmatprep.subr.bf16.mxu0 %v13932_v33  ;;  %v6382_v21 = vpop.f32.mrf.mxu0 }
 0x775   : > { %v6383_v37 = vpop.f32.mrf.mxu0 }
 0x776   : > { %6706 = vmatpush1.bf16.msra.mxu1 %v8565_v14  ;;  %6827 = vmatpush1.bf16.msra.mxu0 %v8580_v16 }
 0x777   : > { %6707 = vmatprep.subr.bf16.mxu1 %v13932_v33  ;;  %6828 = vmatprep.subr.bf16.mxu0 %v13932_v33 }
 0x77a   : > { %6708 = vmatpush1.bf16.msra.mxu1 %v8567_v4  ;;  %6829 = vmatpush1.bf16.msra.mxu0 %v8582_v53  ;;  %v8604_v53 = vld [vmem:[%s13275_s11 + $0x8] sm:$0xff]  }
 0x77b   : > { %6709 = vmatprep.subr.bf16.mxu1 %v13932_v33  ;;  %6830 = vmatprep.subr.bf16.mxu0 %v13932_v33 }
 0x77e   : > { %6710 = vmatpush1.bf16.msra.mxu1 %v8569_v2  ;;  %6831 = vmatpush1.bf16.msra.mxu0 %v8584_v29  ;;  %v8605_v2 = vld [vmem:[%s13275_s11] sm:$0xff]  }
 0x77f   : > { %6711 = vmatprep.subr.bf16.mxu1 %v13932_v33  ;;  %6832 = vmatprep.subr.bf16.mxu0 %v13932_v33  ;;  %v7882_v29 = vld [vmem:[%s13274_s10] ss:$0 sm:$0xff] }
 0x782   : > { %6712 = vmatpush1.bf16.msra.mxu1 %v8571_v19  ;;  %6833 = vmatpush1.bf16.msra.mxu0 %v8586_v20 }
 0x783   : > { %6713 = vmatprep.subr.bf16.mxu1 %v13932_v33  ;;  %6848 = vmatprep.subr.bf16.mxu0 %v13932_v33 }
 0x786   : > { %6714 = vmatpush1.bf16.msra.mxu1 %v8573_v38  ;;  %6849 = vmatpush2.bf16.msra.mxu0 %v8588_v31 }
 0x787   : > { %6729 = vmatprep.subr.bf16.mxu1 %v13932_v33  ;;  %7920 = vmatprep.subr.bf16.mxu0 %v8672_v8 }
 0x789   : > { %6851 = vmatmul.mubr.bf16.vlgmr.msra.gmra.mxu0 %v6740_v7 }
 0x78a   : > { %6730 = vmatpush2.bf16.msra.mxu1 %v8575_v5  ;;  %7921 = vmatpush3.bf16.msra.mxu0 %v7060_v26 }
 0x78b   : > { %6937 = vmatprep.subr.bf16.mxu1 %v13932_v33  ;;  %7922 = vmatprep.subr.bf16.mxu0 %v8672_v8 }
 0x78c   : > { %7936 = vmatprep.mubr.msk.bf16.mxu0 %vm8673_vm15, %v8672_v8 }
 0x78d   : > { %6732 = vmatmul.mubr.bf16.vlgmr.msra.gmra.mxu1 %v6621_v42 }
 0x78e   : > { %6938 = vmatpush1.bf16.msra.mxu1 %v8577_v47  ;;  %7880 = vmatprep.mubr.msk.bf16.mxu1 %vm6480_vm14, %v6860_v54 }
 0x78f   : > { %6939 = vmatprep.subr.bf16.mxu1 %v13932_v33  ;;  %7923 = vmatpush3.bf16.msra.mxu0 %v8593_v51 }
 0x790   : > { %7924 = vmatprep.subr.bf16.mxu0 %v8672_v8 }
 0x792   : > { %6940 = vmatpush1.bf16.msra.mxu1 %v8579_v12 }
 0x793   : > { %6941 = vmatprep.subr.bf16.mxu1 %v13932_v33  ;;  %7925 = vmatpush3.bf16.msra.mxu0 %v8594_v13 }
 0x794   : > { %7926 = vmatprep.subr.bf16.mxu0 %v8672_v8 }
 0x796   : > { %6942 = vmatpush1.bf16.msra.mxu1 %v8581_v17 }
 0x797   : > { %6943 = vmatprep.subr.bf16.mxu1 %v13932_v33 }
 0x79a   : > { %6944 = vmatpush1.bf16.msra.mxu1 %v8583_v48 }
 0x79b   : > { %6945 = vmatprep.subr.bf16.mxu1 %v13932_v33 }
 0x79e   : > { %6946 = vmatpush1.bf16.msra.mxu1 %v8585_v50 }
 0x79f   : > { %6947 = vmatprep.subr.bf16.mxu1 %v13932_v33 }
 0x7a2   : > { %6948 = vmatpush1.bf16.msra.mxu1 %v8587_v39 }
 0x7a3   : > { %6949 = vmatprep.subr.bf16.mxu1 %v13932_v33 }
 0x7a6   : > { %6950 = vmatpush1.bf16.msra.mxu1 %v8589_v32 }
 0x7a7   : > { %6951 = vmatprep.subr.bf16.mxu1 %v13932_v33 }
 0x7aa   : > { %6952 = vmatpush1.bf16.msra.mxu1 %v8590_v9 }
 0x7ab   : > { %6967 = vmatprep.subr.bf16.mxu1 %v13932_v33  ;;  %v8595_v33 = vld [vmem:[%s13273_s9 + $0x20] sm:$0xff]  }
 0x7ac   : > { %7927 = vmatpush3.bf16.msra.mxu0 %v8595_v33 }
 0x7ad   : > { %7928 = vmatprep.subr.bf16.mxu0 %v8672_v8 }
 0x7ae   : > { %6968 = vmatpush2.bf16.msra.mxu1 %v8591_v23 }
 0x7af   : > { %7940 = vmatprep.subr.bf16.mxu1 %v8672_v8 }
 0x7b0   : > { %7929 = vmatpush3.bf16.msra.mxu0 %v8596_v44 }
 0x7b1   : > { %6970 = vmatmul.mubr.bf16.vlgmr.msra.gmra.mxu1 %v6859_v59  ;;  %7930 = vmatprep.subr.bf16.mxu0 %v8672_v8 }
 0x7b2   : > { %7952 = vmatprep.mubr.msk.bf16.mxu1 %vm8673_vm15, %v8672_v8  ;;  %7941 = vmatpush3.bf16.msra.mxu1 %v7161_v58 }
 0x7b3   : > { %7942 = vmatprep.subr.bf16.mxu1 %v8672_v8 }
 0x7b4   : > { %7931 = vmatpush3.bf16.msra.mxu0 %v8597_v15 }
 0x7b5   : > { %7932 = vmatprep.subr.bf16.mxu0 %v8672_v8 }
 0x7b6   : > { %7943 = vmatpush3.bf16.msra.mxu1 %v8601_v62 }
 0x7b7   : > { %7944 = vmatprep.subr.bf16.mxu1 %v8672_v8 }
 0x7b8   : > { %7933 = vmatpush3.bf16.msra.mxu0 %v8598_v49 }
 0x7b9   : > { %7934 = vmatprep.subr.bf16.mxu0 %v8672_v8 }
 0x7ba   : > { %7945 = vmatpush3.bf16.msra.mxu1 %v8602_v30 }
 0x7bb   : > { %7946 = vmatprep.subr.bf16.mxu1 %v8672_v8 }
 0x7bc   : > { %7935 = vmatpush3.bf16.msra.mxu0 %v8599_v40 }
 0x7be   : > { %7947 = vmatpush3.bf16.msra.mxu1 %v8603_v52 }
 0x7bf   : > { %7948 = vmatprep.subr.bf16.mxu1 %v8672_v8 }
 0x7c2   : > { %7949 = vmatpush3.bf16.msra.mxu1 %v8604_v53 }
 0x7c3   : > { %7950 = vmatprep.subr.bf16.mxu1 %v8672_v8  ;;  %v7892_v8 = vld [vmem:[%s13276_s12] ss:$0 sm:$0xff] }
 0x7c6   : > { %7951 = vmatpush3.bf16.msra.mxu1 %v8605_v2 }
 0x825   : > { %v6615_v36 = vpop.f32.mrf.mxu0 }
 0x827   : > { %v6617_v1 = vpop.f32.mrf.mxu0 }
 0x829   : > { %v6518_v22 = vpop.f32.mrf.mxu1  ;;  %v6618_v43 = vpop.f32.mrf.mxu0 }
 0x82a   : > { %v6616_v24 = vadd.f32 %v6615_v36, %v6518_v22 }
 0x82b   : > { %v6520_v3 = vpop.f32.mrf.mxu1  ;;  %v6619_v63 = vpop.f32.mrf.mxu0 }
 0x82d   : > { %v6521_v45 = vpop.f32.mrf.mxu1 }
 0x82f   : > { %v6522_v35 = vpop.f32.mrf.mxu1 }
 0x849   : > { %v6852_v18 = vpop.f32.mrf.mxu0 }
 0x84b   : > { %v6854_v11 = vpop.f32.mrf.mxu0 }
 0x84d   : > { %v6733_v6 = vpop.f32.mrf.mxu1  ;;  %v6855_v55 = vpop.f32.mrf.mxu0 }
 0x84e   : > { %v6739_v57 = vadd.f32 %v6733_v6, %v6616_v24 }
 0x84f   : > { %v6735_v25 = vpop.f32.mrf.mxu1  ;;  %v6856_v0 = vpop.f32.mrf.mxu0 }
 0x850   : > { %v6858_v41 = vadd.f32 %v6852_v18, %v6739_v57 }
 0x851   : > { %v6736_v60 = vpop.f32.mrf.mxu1 }
 0x853   : > { %v6737_v10 = vpop.f32.mrf.mxu1 }
 0x871   : > { %v6971_v46 = vpop.f32.mrf.mxu1 }
 0x872   : > { %v6977_v27 = vadd.f32 %v6971_v46, %v6858_v41 }
 0x873   : > { %v6973_v34 = vpop.f32.mrf.mxu1 }
 0x874   : > { %v6985_v14 = vadd.f32 %v7881_v61, %v6977_v27 }
 0x875   : > { %v6974_v16 = vpop.f32.mrf.mxu1 }
 0x876   : > { %v6986_v21 = vmax.f32 %v6985_v14, 0.0 }
 0x877   : > { %v6975_v37 = vpop.f32.mrf.mxu1 }
 0x878   : > { %v6987_v4 = vpack.c.bf16 %v6986_v21, %v6986_v21 }
 0x87a   : > { %7937 = vmatmul.mubr.msk.bf16.vlgmr.msra.gmra.mxu0 %vm7055_vm1, %v6987_v4 }
 0x93a   : > { %v7096_v19 = vpop.f32.mrf.mxu0 }
 0x93b   : > { %v7097_v20 = vadd.f32 %v7882_v29, %v7096_v19 }
 0x93c   : > { %v7938_v38 = vpop.f32.mrf.mxu0 }
 0x93d   : > { %v7102_v31 = vmax.f32 %v7097_v20, 0.0 }
 0x93e   : > { %v7099_v28 = vpop.f32.mrf.mxu0 }
 0x93f   : > { %v7103_v7 = vpack.c.bf16 %v7102_v31, %v7102_v31 }
 0x940   : > { %v7939_v5 = vpop.f32.mrf.mxu0 }
 0x941   : > { %7953 = vmatmul.mubr.msk.bf16.vlgmr.msra.gmra.mxu1 %vm7155_vm2, %v7103_v7 }
 0xa01   : > { %v7197_v26 = vpop.f32.mrf.mxu1 }
 0xa02   : > { %v7198_v47 = vadd.f32 %v7892_v8, %v7197_v26 }
 0xa03   : > { %v7954_v54 = vpop.f32.mrf.mxu1 }
 0xa04   : > { %7203 = vst [vmem:[%s434_s16] sm:$0xff] %v7198_v47 }
 0xa05   : > { %v7200_v42 = vpop.f32.mrf.mxu1 }
 0xa06   : > { %8619 = shalt.err (!%p8616_p3)
}
 0xa07   : > { %s8620_s15 = scalar_lea.hbm %s13223_s14, 128  ;;  %s8624_s16 = scalar_lea.hbm %s13277_s13, 256 }
 0xa08   : > { %p8621_p4 = scmp.ne.s32.totalorder %s13223_s14, %s8620_s15  ;;  %p8625_p9 = scmp.lt.s32.totalorder %s13223_s14, %s13277_s13 }
 0xa09   : > { %p8626_p10 = scmp.lt.s32.totalorder %s8624_s16, %s8620_s15 }
 0xa0a   : > { %p8622_p7 = pnand %p8621_p4, %p8783_p5 }
 0xa0b   : > { %p8627_p11 = por %p8626_p10, %p8625_p9 }
 0xa0c   : > { %p8623_p8 = pneg %p8622_p7 }
 0xa0e   : > { %p8628_p12 = pnand %p8627_p11, %p8623_p8 }
 0xa10   : > { %8631 = shalt.err (!%p8628_p12)
}
 0xa11   : > { %7956 = dma.vmem_to_hbm [thread:$0]  (%p8783_p5), %s13225_s23, 128, %s13223_s14, %s7205_s30   ;;  %v7955_v12 = vpop.f32.mrf.mxu1 }
 0xa12 PF: > { %p7962_p13 = scmp.ge.s32.totalorder %s8666_s28, 2  ;;  %s7230_s29 = sand.u32 1, %s8654_s25  }
 0xa13   : > { %s7231_s17 = scalar_lea.sflag [#allocation3], %s7230_s29 }
 0xa14   : > { %p7959_p0 = pnand %p7962_p13, %p8787_p6 }
 0xa16   : > { %p7960_p1 = pneg %p7959_p0 }
 0xa18   : > { %8649 = dma.done.wait (%p7960_p1), %s7231_s17, 128  }
 0xa19   : > { %8651 = vsyncadd (%p7960_p1), %s7231_s17, 4294967168  ;;  %s13943_s28 = sld [smem:[#allocation6_spill]]  ;;  %s13946_s25 = smov %s8658_s26 }
 0xa1a   : > { %s13944_s19 = sld [smem:[#allocation5_spill]] }
 0xa1b   : > { %s13945_s27 = sld [smem:[#allocation7_spill]] }
 0xa1f   : > { %p23_p2 = scmp.ge.s32.totalorder %s13943_s28, 4  }
 0xa20   : > { %s13947_s26 = smov %s13944_s19 }
 0xa21   :  { %25 = sbr.rel (!%p23_p2) target bundleno = 3 (0x3), region = 119 }
 0xa26   :  { %7236 = vsyncpa [#allocation3], 1 }
 0xa27   :  { %7238 = vsyncpa [#allocation3 + $0x1], 1 }

</bundles_post_ra>
